<compile_context>
chip_gen: v6e
topology: v6e:2x2x1
jax: 0.10.0
libtpu: 0.0.40
codegen_flags: <defaults>
</compile_context>

<pallas_src>
import functools

import jax
import jax.numpy as jnp
from jax import lax
from jax.experimental import pallas as pl
from jax.experimental.pallas import tpu as pltpu

HIDDEN = 768          # hard-coded by the module (logit_fc uses 768 / 768*2)
EPS = 1e-12           # BertLayerNorm eps
VDIM = 64             # visual feature dim (synthetic)
BOXDIM = 4            # box coordinate dim
NUM_ANS = 32          # dataset.num_ans_candidates (synthetic)
VOCAB = 128           # synthetic vocab; fits one 128-lane one-hot MXU pass
MAX_TQ = 16           # max language sequence length supported
VIS_K = 128           # [v | box] padded to a lane-dense contraction dim
LOGIT_PAD = 128       # lane-dense logits; NUM_ANS columns sliced in wrapper


# --------------------------------------------------------------------------
# helpers traced inside the kernel body
# --------------------------------------------------------------------------
def _layernorm(x, gamma, beta, eps):
    mean = jnp.mean(x, axis=-1, keepdims=True)
    xc = x - mean
    var = jnp.mean(xc * xc, axis=-1, keepdims=True)
    return xc * lax.rsqrt(var + eps) * gamma + beta


def _gelu_exact(x):
    # PyTorch nn.GELU() default: exact erf-based GELU.
    return 0.5 * x * (1.0 + lax.erf(x * 0.7071067811865476))


# --------------------------------------------------------------------------
# the single fused kernel
# --------------------------------------------------------------------------
def _fused_kernel(ids_ref, wemb_ref, pemb_ref, lg_ref, lb_ref,
                  vis_ref, wvis_ref, bvis_ref, gv_ref, bev_ref, gb_ref, beb_ref,
                  wp_ref, bp_ref,
                  w1_ref, b1_ref, g1_ref, be1_ref, w2_ref, b2_ref,
                  qemb_ref, vout_ref, cls_ref, logits_ref, *, tq):
    f32 = jnp.float32
    bf16 = jnp.bfloat16

    # ---- language embeddings: one-hot gathers on the MXU (no XLA gather) ----
    ids = ids_ref[...]                                     # (BT_L, 1) int32
    bt_l = ids.shape[0]
    word_oh = (lax.broadcasted_iota(jnp.int32, (bt_l, VOCAB), 1) == ids
               ).astype(bf16)                              # exact 0/1 selector
    word = jnp.dot(word_oh, wemb_ref[...], preferred_element_type=f32)

    row = lax.broadcasted_iota(jnp.int32, (bt_l, MAX_TQ), 0)
    col = lax.broadcasted_iota(jnp.int32, (bt_l, MAX_TQ), 1)
    pos_oh = (col == (row % tq)).astype(bf16)              # position = row % Tq
    pos = jnp.dot(pos_oh, pemb_ref[...], preferred_element_type=f32)

    q_emb = _layernorm(word + pos, lg_ref[...], lb_ref[...], EPS)
    qemb_ref[...] = q_emb.astype(qemb_ref.dtype)

    # ---- vision encoder: ONE K=128 block-diagonal matmul + two LayerNorms ----
    # (LN(feat @ Wv + bv) + LN(box @ Wb + bb)) / 2
    h = jnp.dot(vis_ref[...].astype(bf16), wvis_ref[...],
                preferred_element_type=f32) + bvis_ref[...]
    fv = _layernorm(h[:, :HIDDEN], gv_ref[...], bev_ref[...], EPS)
    fb = _layernorm(h[:, HIDDEN:], gb_ref[...], beb_ref[...], EPS)
    vout_ref[...] = ((fv + fb) * 0.5).astype(vout_ref.dtype)

    # ---- pooler + logit_fc head, computed on ALL language rows ----
    # rows b*Tq are the CLS rows (q_emb[:, 0, :]); the wrapper slices them out.
    # Computing the full BT_L rows keeps sublane groups full (no 2-row masked
    # tiles) and the extra compute is negligible at these shapes.
    pooled = jnp.tanh(jnp.dot(q_emb.astype(bf16), wp_ref[...],
                              preferred_element_type=f32) + bp_ref[...])
    cls_ref[...] = pooled.astype(cls_ref.dtype)

    # Linear(768, 1536) -> GELU -> LayerNorm(1536) -> Linear(1536, NUM_ANS)
    h1 = jnp.dot(pooled.astype(bf16), w1_ref[...],
                 preferred_element_type=f32) + b1_ref[...]
    h1 = _layernorm(_gelu_exact(h1), g1_ref[...], be1_ref[...], EPS)
    logits = jnp.dot(h1.astype(bf16), w2_ref[...],
                     preferred_element_type=f32) + b2_ref[...]
    logits_ref[...] = logits.astype(logits_ref.dtype)      # lane-dense (.,128)


# --------------------------------------------------------------------------
# parameters (deterministic synthetic init); big matrices stored bf16
# --------------------------------------------------------------------------
def init_params(key):
    ks = jax.random.split(key, 8)
    n = lambda k, s: (0.02 * jax.random.normal(k, s)).astype(jnp.float32)
    ones = lambda s: jnp.ones(s, jnp.float32)
    zeros = lambda s: jnp.zeros(s, jnp.float32)
    bf = lambda x: x.astype(jnp.bfloat16)

    wv = n(ks[2], (VDIM, HIDDEN))
    wb = n(ks[3], (BOXDIM, HIDDEN))
    # block-diagonal [Wv 0; 0 Wb] => a single lane-dense K=128 MXU pass
    w_vis = jnp.zeros((VIS_K, 2 * HIDDEN), jnp.float32)
    w_vis = w_vis.at[:VDIM, :HIDDEN].set(wv)
    w_vis = w_vis.at[VDIM:VDIM + BOXDIM, HIDDEN:].set(wb)

    w2 = n(ks[6], (2 * HIDDEN, NUM_ANS))
    w2_pad = jnp.zeros((2 * HIDDEN, LOGIT_PAD), jnp.float32)
    w2_pad = w2_pad.at[:, :NUM_ANS].set(w2)

    return dict(
        word_emb=bf(n(ks[0], (VOCAB, HIDDEN))),
        pos_emb=bf(n(ks[1], (MAX_TQ, HIDDEN))),
        lang_ln_g=ones((1, HIDDEN)), lang_ln_b=zeros((1, HIDDEN)),
        w_vis=bf(w_vis),
        b_vis=zeros((1, 2 * HIDDEN)),                    # [bv | bb]
        gv=ones((1, HIDDEN)), betav=zeros((1, HIDDEN)),
        gb=ones((1, HIDDEN)), betab=zeros((1, HIDDEN)),
        wp=bf(n(ks[4], (HIDDEN, HIDDEN))), bp=zeros((1, HIDDEN)),
        w1=bf(n(ks[5], (HIDDEN, 2 * HIDDEN))), b1=zeros((1, 2 * HIDDEN)),
        g1=ones((1, 2 * HIDDEN)), beta1=zeros((1, 2 * HIDDEN)),
        w2=bf(w2_pad), b2=zeros((1, LOGIT_PAD)),
    )


# --------------------------------------------------------------------------
# forward: mirrors Lxmert_Model.forward -> (q_emb, v_output, cls, logits)
# --------------------------------------------------------------------------
def lxmert_model_forward(params, q, v, b):
    B, Tq = q.shape
    _, Tv, _ = v.shape
    assert Tq <= MAX_TQ, f"Tq={Tq} exceeds MAX_TQ={MAX_TQ}"
    bt_l, bt_v = B * Tq, B * Tv

    ids = q.reshape(bt_l, 1).astype(jnp.int32)
    # [feat | box | 0-pad] -> lane-dense K=128 input for one fused MXU pass
    vis_in = jnp.concatenate(
        [v.reshape(bt_v, VDIM).astype(jnp.float32),
         b.reshape(bt_v, BOXDIM).astype(jnp.float32),
         jnp.zeros((bt_v, VIS_K - VDIM - BOXDIM), jnp.float32)], axis=-1)

    # No grid => single invocation, whole arrays resident in VMEM once
    # (no double-buffering of weights).  Total VMEM footprint < 6 MB.
    vmem = pl.BlockSpec(memory_space=pltpu.MemorySpace.VMEM)
    out_shapes = (
        jax.ShapeDtypeStruct((bt_l, HIDDEN), jnp.float32),     # q_emb (flat)
        jax.ShapeDtypeStruct((bt_v, HIDDEN), jnp.float32),     # v_output (flat)
        jax.ShapeDtypeStruct((bt_l, HIDDEN), jnp.float32),     # pooled (all rows)
        jax.ShapeDtypeStruct((bt_l, LOGIT_PAD), jnp.float32),  # logits (padded)
    )

    q_emb_f, v_out_f, cls_all, logits_all = pl.pallas_call(
        functools.partial(_fused_kernel, tq=Tq),
        out_shape=out_shapes,
        in_specs=[vmem] * 20,
        out_specs=(vmem, vmem, vmem, vmem),
    )(ids,
      params["word_emb"], params["pos_emb"],
      params["lang_ln_g"], params["lang_ln_b"],
      vis_in, params["w_vis"], params["b_vis"],
      params["gv"], params["betav"], params["gb"], params["betab"],
      params["wp"], params["bp"],
      params["w1"], params["b1"], params["g1"], params["beta1"],
      params["w2"], params["b2"])

    q_emb = q_emb_f.reshape(B, Tq, HIDDEN)
    v_output = v_out_f.reshape(B, Tv, HIDDEN)
    cls = cls_all.reshape(B, Tq, HIDDEN)[:, 0, :]                 # CLS rows
    logits = logits_all.reshape(B, Tq, LOGIT_PAD)[:, 0, :NUM_ANS]  # CLS rows
    return q_emb, v_output, cls, logits


# --------------------------------------------------------------------------
if __name__ == "__main__":
    key = jax.random.PRNGKey(0)
    kq, kv, kb, kp = jax.random.split(key, 4)

    B, Tq, Tv = 2, 8, 8
    q = jax.random.randint(kq, (B, Tq), 0, VOCAB, dtype=jnp.int32)
    v = jax.random.normal(kv, (B, Tv, VDIM), dtype=jnp.float32)
    b = jax.random.uniform(kb, (B, Tv, BOXDIM), dtype=jnp.float32)

    params = init_params(kp)

    fwd = jax.jit(lxmert_model_forward)
    q_emb, v_out, cls, logits = fwd(params, q, v, b)
    jax.block_until_ready((q_emb, v_out, cls, logits))

    assert q_emb.shape == (B, Tq, HIDDEN)
    assert v_out.shape == (B, Tv, HIDDEN)
    assert cls.shape == (B, HIDDEN)
    assert logits.shape == (B, NUM_ANS)
    assert bool(jnp.all(jnp.isfinite(q_emb)))
    assert bool(jnp.all(jnp.isfinite(v_out)))
    assert bool(jnp.all(jnp.isfinite(cls)))
    assert bool(jnp.all(jnp.isfinite(logits)))
    print("KERNEL_OK")
</pallas_src>

<mosaic_0001>
module attributes {stable_mosaic.version = 11 : i64} {
  func.func @_fused_kernel(%arg0: memref<16x1xi32, #tpu.memory_space<vmem>>, %arg1: memref<128x768xbf16, #tpu.memory_space<vmem>>, %arg2: memref<16x768xbf16, #tpu.memory_space<vmem>>, %arg3: memref<1x768xf32, #tpu.memory_space<vmem>>, %arg4: memref<1x768xf32, #tpu.memory_space<vmem>>, %arg5: memref<16x128xf32, #tpu.memory_space<vmem>>, %arg6: memref<128x1536xbf16, #tpu.memory_space<vmem>>, %arg7: memref<1x1536xf32, #tpu.memory_space<vmem>>, %arg8: memref<1x768xf32, #tpu.memory_space<vmem>>, %arg9: memref<1x768xf32, #tpu.memory_space<vmem>>, %arg10: memref<1x768xf32, #tpu.memory_space<vmem>>, %arg11: memref<1x768xf32, #tpu.memory_space<vmem>>, %arg12: memref<768x768xbf16, #tpu.memory_space<vmem>>, %arg13: memref<1x768xf32, #tpu.memory_space<vmem>>, %arg14: memref<768x1536xbf16, #tpu.memory_space<vmem>>, %arg15: memref<1x1536xf32, #tpu.memory_space<vmem>>, %arg16: memref<1x1536xf32, #tpu.memory_space<vmem>>, %arg17: memref<1x1536xf32, #tpu.memory_space<vmem>>, %arg18: memref<1536x128xbf16, #tpu.memory_space<vmem>>, %arg19: memref<1x128xf32, #tpu.memory_space<vmem>>, %arg20: memref<16x768xf32, #tpu.memory_space<vmem>>, %arg21: memref<16x768xf32, #tpu.memory_space<vmem>>, %arg22: memref<16x768xf32, #tpu.memory_space<vmem>>, %arg23: memref<16x128xf32, #tpu.memory_space<vmem>>) attributes {dimension_semantics = [], scalar_prefetch = 0 : i64, scratch_operands = 0 : i64, tpu.core_type = #tpu.core_type<tc>} {
    %c0 = arith.constant 0 : index
    %c0_0 = arith.constant 0 : index
    %0 = vector.load %arg0[%c0, %c0_0] : memref<16x1xi32, #tpu.memory_space<vmem>>, vector<16x1xi32>
    %1 = tpu.iota {dimensions = array<i32: 1>} : vector<16x128xi32>
    %2 = vector.broadcast %0 : vector<16x1xi32> to vector<16x128xi32>
    %3 = arith.cmpi eq, %1, %2 : vector<16x128xi32>
    %4 = arith.extui %3 : vector<16x128xi1> to vector<16x128xi32>
    %5 = arith.sitofp %4 : vector<16x128xi32> to vector<16x128xf32>
    %6 = arith.truncf %5 : vector<16x128xf32> to vector<16x128xbf16>
    %c0_1 = arith.constant 0 : index
    %c0_2 = arith.constant 0 : index
    %7 = vector.load %arg1[%c0_1, %c0_2] : memref<128x768xbf16, #tpu.memory_space<vmem>>, vector<128x768xbf16>
    %cst = arith.constant dense<0.000000e+00> : vector<16x768xf32>
    %8 = tpu.matmul %6, %7, %cst {dimension_numbers = #tpu.dot_dimension_numbers<[1], [0], [0], [1], [0, 0, 1, 1], [], []>} : vector<16x128xbf16>, vector<128x768xbf16>, vector<16x768xf32> -> vector<16x768xf32>
    %9 = tpu.iota {dimensions = array<i32: 0>} : vector<16x16xi32>
    %10 = tpu.iota {dimensions = array<i32: 1>} : vector<16x16xi32>
    %c8_i32 = arith.constant 8 : i32
    %c0_i32 = arith.constant 0 : i32
    %11 = arith.cmpi eq, %c8_i32, %c0_i32 : i32
    %c1_i32 = arith.constant 1 : i32
    %12 = arith.select %11, %c1_i32, %c8_i32 : i32
    %13 = vector.broadcast %12 : i32 to vector<16x16xi32>
    %14 = arith.remsi %9, %13 : vector<16x16xi32>
    %c0_i32_3 = arith.constant 0 : i32
    %15 = vector.broadcast %c0_i32_3 : i32 to vector<16x16xi32>
    %16 = arith.cmpi ne, %14, %15 : vector<16x16xi32>
    %c0_i32_4 = arith.constant 0 : i32
    %17 = vector.broadcast %c0_i32_4 : i32 to vector<16x16xi32>
    %18 = arith.cmpi slt, %14, %17 : vector<16x16xi32>
    %c0_i32_5 = arith.constant 0 : i32
    %19 = arith.cmpi slt, %12, %c0_i32_5 : i32
    %20 = vector.broadcast %19 : i1 to vector<16x16xi1>
    %21 = vector.broadcast %20 : vector<16x16xi1> to vector<16x16xi1>
    %22 = arith.xori %18, %21 : vector<16x16xi1>
    %23 = arith.andi %22, %16 : vector<16x16xi1>
    %24 = vector.broadcast %12 : i32 to vector<16x16xi32>
    %25 = arith.addi %14, %24 : vector<16x16xi32>
    %26 = arith.select %23, %25, %14 : vector<16x16xi1>, vector<16x16xi32>
    %27 = arith.cmpi eq, %10, %26 : vector<16x16xi32>
    %28 = arith.extui %27 : vector<16x16xi1> to vector<16x16xi32>
    %29 = arith.sitofp %28 : vector<16x16xi32> to vector<16x16xf32>
    %30 = arith.truncf %29 : vector<16x16xf32> to vector<16x16xbf16>
    %c0_6 = arith.constant 0 : index
    %c0_7 = arith.constant 0 : index
    %31 = vector.load %arg2[%c0_6, %c0_7] : memref<16x768xbf16, #tpu.memory_space<vmem>>, vector<16x768xbf16>
    %cst_8 = arith.constant dense<0.000000e+00> : vector<16x768xf32>
    %32 = tpu.matmul %30, %31, %cst_8 {dimension_numbers = #tpu.dot_dimension_numbers<[1], [0], [0], [1], [0, 0, 1, 1], [], []>} : vector<16x16xbf16>, vector<16x768xbf16>, vector<16x768xf32> -> vector<16x768xf32>
    %33 = arith.addf %8, %32 : vector<16x768xf32>
    %c0_9 = arith.constant 0 : index
    %c0_10 = arith.constant 0 : index
    %34 = vector.load %arg3[%c0_9, %c0_10] : memref<1x768xf32, #tpu.memory_space<vmem>>, vector<1x768xf32>
    %c0_11 = arith.constant 0 : index
    %c0_12 = arith.constant 0 : index
    %35 = vector.load %arg4[%c0_11, %c0_12] : memref<1x768xf32, #tpu.memory_space<vmem>>, vector<1x768xf32>
    %cst_13 = arith.constant dense<0.000000e+00> : vector<16xf32>
    %36 = vector.multi_reduction <add>, %33, %cst_13 [1] : vector<16x768xf32> to vector<16xf32>
    %37 = vector.shape_cast %36 : vector<16xf32> to vector<16x1xf32>
    %cst_14 = arith.constant 7.680000e+02 : f32
    %38 = vector.broadcast %cst_14 : f32 to vector<16x1xf32>
    %39 = arith.divf %37, %38 : vector<16x1xf32>
    %40 = vector.broadcast %39 : vector<16x1xf32> to vector<16x768xf32>
    %41 = arith.subf %33, %40 : vector<16x768xf32>
    %42 = arith.mulf %41, %41 : vector<16x768xf32>
    %cst_15 = arith.constant dense<0.000000e+00> : vector<16xf32>
    %43 = vector.multi_reduction <add>, %42, %cst_15 [1] : vector<16x768xf32> to vector<16xf32>
    %44 = vector.shape_cast %43 : vector<16xf32> to vector<16x1xf32>
    %cst_16 = arith.constant 7.680000e+02 : f32
    %45 = vector.broadcast %cst_16 : f32 to vector<16x1xf32>
    %46 = arith.divf %44, %45 : vector<16x1xf32>
    %cst_17 = arith.constant 9.99999996E-13 : f32
    %47 = vector.broadcast %cst_17 : f32 to vector<16x1xf32>
    %48 = arith.addf %46, %47 : vector<16x1xf32>
    %49 = math.rsqrt %48 : vector<16x1xf32>
    %50 = vector.broadcast %49 : vector<16x1xf32> to vector<16x768xf32>
    %51 = arith.mulf %41, %50 : vector<16x768xf32>
    %52 = vector.broadcast %34 : vector<1x768xf32> to vector<16x768xf32>
    %53 = arith.mulf %51, %52 : vector<16x768xf32>
    %54 = vector.broadcast %35 : vector<1x768xf32> to vector<16x768xf32>
    %55 = arith.addf %53, %54 : vector<16x768xf32>
    %c0_18 = arith.constant 0 : index
    %c0_19 = arith.constant 0 : index
    %56 = vector.load %arg20[%c0_18, %c0_19] : memref<16x768xf32, #tpu.memory_space<vmem>>, vector<16x768xf32>
    tpu.vector_store %arg20[%c0_18, %c0_19], %55 {strides = array<i32>} : memref<16x768xf32, #tpu.memory_space<vmem>>, vector<16x768xf32>,
    %c0_20 = arith.constant 0 : index
    %c0_21 = arith.constant 0 : index
    %57 = vector.load %arg5[%c0_20, %c0_21] : memref<16x128xf32, #tpu.memory_space<vmem>>, vector<16x128xf32>
    %58 = arith.truncf %57 : vector<16x128xf32> to vector<16x128xbf16>
    %c0_22 = arith.constant 0 : index
    %c0_23 = arith.constant 0 : index
    %59 = vector.load %arg6[%c0_22, %c0_23] : memref<128x1536xbf16, #tpu.memory_space<vmem>>, vector<128x1536xbf16>
    %cst_24 = arith.constant dense<0.000000e+00> : vector<16x1536xf32>
    %60 = tpu.matmul %58, %59, %cst_24 {dimension_numbers = #tpu.dot_dimension_numbers<[1], [0], [0], [1], [0, 0, 1, 1], [], []>} : vector<16x128xbf16>, vector<128x1536xbf16>, vector<16x1536xf32> -> vector<16x1536xf32>
    %c0_25 = arith.constant 0 : index
    %c0_26 = arith.constant 0 : index
    %61 = vector.load %arg7[%c0_25, %c0_26] : memref<1x1536xf32, #tpu.memory_space<vmem>>, vector<1x1536xf32>
    %62 = vector.broadcast %61 : vector<1x1536xf32> to vector<16x1536xf32>
    %63 = arith.addf %60, %62 : vector<16x1536xf32>
    %64 = vector.extract_strided_slice %63 {offsets = [0, 0], sizes = [16, 768], strides = [1, 1]} : vector<16x1536xf32> to vector<16x768xf32>
    %c0_27 = arith.constant 0 : index
    %c0_28 = arith.constant 0 : index
    %65 = vector.load %arg8[%c0_27, %c0_28] : memref<1x768xf32, #tpu.memory_space<vmem>>, vector<1x768xf32>
    %c0_29 = arith.constant 0 : index
    %c0_30 = arith.constant 0 : index
    %66 = vector.load %arg9[%c0_29, %c0_30] : memref<1x768xf32, #tpu.memory_space<vmem>>, vector<1x768xf32>
    %cst_31 = arith.constant dense<0.000000e+00> : vector<16xf32>
    %67 = vector.multi_reduction <add>, %64, %cst_31 [1] : vector<16x768xf32> to vector<16xf32>
    %68 = vector.shape_cast %67 : vector<16xf32> to vector<16x1xf32>
    %cst_32 = arith.constant 7.680000e+02 : f32
    %69 = vector.broadcast %cst_32 : f32 to vector<16x1xf32>
    %70 = arith.divf %68, %69 : vector<16x1xf32>
    %71 = vector.broadcast %70 : vector<16x1xf32> to vector<16x768xf32>
    %72 = arith.subf %64, %71 : vector<16x768xf32>
    %73 = arith.mulf %72, %72 : vector<16x768xf32>
    %cst_33 = arith.constant dense<0.000000e+00> : vector<16xf32>
    %74 = vector.multi_reduction <add>, %73, %cst_33 [1] : vector<16x768xf32> to vector<16xf32>
    %75 = vector.shape_cast %74 : vector<16xf32> to vector<16x1xf32>
    %cst_34 = arith.constant 7.680000e+02 : f32
    %76 = vector.broadcast %cst_34 : f32 to vector<16x1xf32>
    %77 = arith.divf %75, %76 : vector<16x1xf32>
    %cst_35 = arith.constant 9.99999996E-13 : f32
    %78 = vector.broadcast %cst_35 : f32 to vector<16x1xf32>
    %79 = arith.addf %77, %78 : vector<16x1xf32>
    %80 = math.rsqrt %79 : vector<16x1xf32>
    %81 = vector.broadcast %80 : vector<16x1xf32> to vector<16x768xf32>
    %82 = arith.mulf %72, %81 : vector<16x768xf32>
    %83 = vector.broadcast %65 : vector<1x768xf32> to vector<16x768xf32>
    %84 = arith.mulf %82, %83 : vector<16x768xf32>
    %85 = vector.broadcast %66 : vector<1x768xf32> to vector<16x768xf32>
    %86 = arith.addf %84, %85 : vector<16x768xf32>
    %87 = vector.extract_strided_slice %63 {offsets = [0, 768], sizes = [16, 768], strides = [1, 1]} : vector<16x1536xf32> to vector<16x768xf32>
    %c0_36 = arith.constant 0 : index
    %c0_37 = arith.constant 0 : index
    %88 = vector.load %arg10[%c0_36, %c0_37] : memref<1x768xf32, #tpu.memory_space<vmem>>, vector<1x768xf32>
    %c0_38 = arith.constant 0 : index
    %c0_39 = arith.constant 0 : index
    %89 = vector.load %arg11[%c0_38, %c0_39] : memref<1x768xf32, #tpu.memory_space<vmem>>, vector<1x768xf32>
    %cst_40 = arith.constant dense<0.000000e+00> : vector<16xf32>
    %90 = vector.multi_reduction <add>, %87, %cst_40 [1] : vector<16x768xf32> to vector<16xf32>
    %91 = vector.shape_cast %90 : vector<16xf32> to vector<16x1xf32>
    %cst_41 = arith.constant 7.680000e+02 : f32
    %92 = vector.broadcast %cst_41 : f32 to vector<16x1xf32>
    %93 = arith.divf %91, %92 : vector<16x1xf32>
    %94 = vector.broadcast %93 : vector<16x1xf32> to vector<16x768xf32>
    %95 = arith.subf %87, %94 : vector<16x768xf32>
    %96 = arith.mulf %95, %95 : vector<16x768xf32>
    %cst_42 = arith.constant dense<0.000000e+00> : vector<16xf32>
    %97 = vector.multi_reduction <add>, %96, %cst_42 [1] : vector<16x768xf32> to vector<16xf32>
    %98 = vector.shape_cast %97 : vector<16xf32> to vector<16x1xf32>
    %cst_43 = arith.constant 7.680000e+02 : f32
    %99 = vector.broadcast %cst_43 : f32 to vector<16x1xf32>
    %100 = arith.divf %98, %99 : vector<16x1xf32>
    %cst_44 = arith.constant 9.99999996E-13 : f32
    %101 = vector.broadcast %cst_44 : f32 to vector<16x1xf32>
    %102 = arith.addf %100, %101 : vector<16x1xf32>
    %103 = math.rsqrt %102 : vector<16x1xf32>
    %104 = vector.broadcast %103 : vector<16x1xf32> to vector<16x768xf32>
    %105 = arith.mulf %95, %104 : vector<16x768xf32>
    %106 = vector.broadcast %88 : vector<1x768xf32> to vector<16x768xf32>
    %107 = arith.mulf %105, %106 : vector<16x768xf32>
    %108 = vector.broadcast %89 : vector<1x768xf32> to vector<16x768xf32>
    %109 = arith.addf %107, %108 : vector<16x768xf32>
    %110 = arith.addf %86, %109 : vector<16x768xf32>
    %cst_45 = arith.constant 5.000000e-01 : f32
    %111 = vector.broadcast %cst_45 : f32 to vector<16x768xf32>
    %112 = arith.mulf %110, %111 : vector<16x768xf32>
    %c0_46 = arith.constant 0 : index
    %c0_47 = arith.constant 0 : index
    %113 = vector.load %arg21[%c0_46, %c0_47] : memref<16x768xf32, #tpu.memory_space<vmem>>, vector<16x768xf32>
    tpu.vector_store %arg21[%c0_46, %c0_47], %112 {strides = array<i32>} : memref<16x768xf32, #tpu.memory_space<vmem>>, vector<16x768xf32>,
    %114 = arith.truncf %55 : vector<16x768xf32> to vector<16x768xbf16>
    %c0_48 = arith.constant 0 : index
    %c0_49 = arith.constant 0 : index
    %115 = vector.load %arg12[%c0_48, %c0_49] : memref<768x768xbf16, #tpu.memory_space<vmem>>, vector<768x768xbf16>
    %cst_50 = arith.constant dense<0.000000e+00> : vector<16x768xf32>
    %116 = tpu.matmul %114, %115, %cst_50 {dimension_numbers = #tpu.dot_dimension_numbers<[1], [0], [0], [1], [0, 0, 1, 1], [], []>} : vector<16x768xbf16>, vector<768x768xbf16>, vector<16x768xf32> -> vector<16x768xf32>
    %c0_51 = arith.constant 0 : index
    %c0_52 = arith.constant 0 : index
    %117 = vector.load %arg13[%c0_51, %c0_52] : memref<1x768xf32, #tpu.memory_space<vmem>>, vector<1x768xf32>
    %118 = vector.broadcast %117 : vector<1x768xf32> to vector<16x768xf32>
    %119 = arith.addf %116, %118 : vector<16x768xf32>
    %120 = math.tanh %119 : vector<16x768xf32>
    %c0_53 = arith.constant 0 : index
    %c0_54 = arith.constant 0 : index
    %121 = vector.load %arg22[%c0_53, %c0_54] : memref<16x768xf32, #tpu.memory_space<vmem>>, vector<16x768xf32>
    tpu.vector_store %arg22[%c0_53, %c0_54], %120 {strides = array<i32>} : memref<16x768xf32, #tpu.memory_space<vmem>>, vector<16x768xf32>,
    %122 = arith.truncf %120 : vector<16x768xf32> to vector<16x768xbf16>
    %c0_55 = arith.constant 0 : index
    %c0_56 = arith.constant 0 : index
    %123 = vector.load %arg14[%c0_55, %c0_56] : memref<768x1536xbf16, #tpu.memory_space<vmem>>, vector<768x1536xbf16>
    %cst_57 = arith.constant dense<0.000000e+00> : vector<16x1536xf32>
    %124 = tpu.matmul %122, %123, %cst_57 {dimension_numbers = #tpu.dot_dimension_numbers<[1], [0], [0], [1], [0, 0, 1, 1], [], []>} : vector<16x768xbf16>, vector<768x1536xbf16>, vector<16x1536xf32> -> vector<16x1536xf32>
    %c0_58 = arith.constant 0 : index
    %c0_59 = arith.constant 0 : index
    %125 = vector.load %arg15[%c0_58, %c0_59] : memref<1x1536xf32, #tpu.memory_space<vmem>>, vector<1x1536xf32>
    %126 = vector.broadcast %125 : vector<1x1536xf32> to vector<16x1536xf32>
    %127 = arith.addf %124, %126 : vector<16x1536xf32>
    %cst_60 = arith.constant 5.000000e-01 : f32
    %128 = vector.broadcast %cst_60 : f32 to vector<16x1536xf32>
    %129 = arith.mulf %128, %127 : vector<16x1536xf32>
    %cst_61 = arith.constant 0.707106769 : f32
    %130 = vector.broadcast %cst_61 : f32 to vector<16x1536xf32>
    %131 = arith.mulf %127, %130 : vector<16x1536xf32>
    %132 = math.erf %131 : vector<16x1536xf32>
    %cst_62 = arith.constant 1.000000e+00 : f32
    %133 = vector.broadcast %cst_62 : f32 to vector<16x1536xf32>
    %134 = arith.addf %133, %132 : vector<16x1536xf32>
    %135 = arith.mulf %129, %134 : vector<16x1536xf32>
    %c0_63 = arith.constant 0 : index
    %c0_64 = arith.constant 0 : index
    %136 = vector.load %arg16[%c0_63, %c0_64] : memref<1x1536xf32, #tpu.memory_space<vmem>>, vector<1x1536xf32>
    %c0_65 = arith.constant 0 : index
    %c0_66 = arith.constant 0 : index
    %137 = vector.load %arg17[%c0_65, %c0_66] : memref<1x1536xf32, #tpu.memory_space<vmem>>, vector<1x1536xf32>
    %cst_67 = arith.constant dense<0.000000e+00> : vector<16xf32>
    %138 = vector.multi_reduction <add>, %135, %cst_67 [1] : vector<16x1536xf32> to vector<16xf32>
    %139 = vector.shape_cast %138 : vector<16xf32> to vector<16x1xf32>
    %cst_68 = arith.constant 1.536000e+03 : f32
    %140 = vector.broadcast %cst_68 : f32 to vector<16x1xf32>
    %141 = arith.divf %139, %140 : vector<16x1xf32>
    %142 = vector.broadcast %141 : vector<16x1xf32> to vector<16x1536xf32>
    %143 = arith.subf %135, %142 : vector<16x1536xf32>
    %144 = arith.mulf %143, %143 : vector<16x1536xf32>
    %cst_69 = arith.constant dense<0.000000e+00> : vector<16xf32>
    %145 = vector.multi_reduction <add>, %144, %cst_69 [1] : vector<16x1536xf32> to vector<16xf32>
    %146 = vector.shape_cast %145 : vector<16xf32> to vector<16x1xf32>
    %cst_70 = arith.constant 1.536000e+03 : f32
    %147 = vector.broadcast %cst_70 : f32 to vector<16x1xf32>
    %148 = arith.divf %146, %147 : vector<16x1xf32>
    %cst_71 = arith.constant 9.99999996E-13 : f32
    %149 = vector.broadcast %cst_71 : f32 to vector<16x1xf32>
    %150 = arith.addf %148, %149 : vector<16x1xf32>
    %151 = math.rsqrt %150 : vector<16x1xf32>
    %152 = vector.broadcast %151 : vector<16x1xf32> to vector<16x1536xf32>
    %153 = arith.mulf %143, %152 : vector<16x1536xf32>
    %154 = vector.broadcast %136 : vector<1x1536xf32> to vector<16x1536xf32>
    %155 = arith.mulf %153, %154 : vector<16x1536xf32>
    %156 = vector.broadcast %137 : vector<1x1536xf32> to vector<16x1536xf32>
    %157 = arith.addf %155, %156 : vector<16x1536xf32>
    %158 = arith.truncf %157 : vector<16x1536xf32> to vector<16x1536xbf16>
    %c0_72 = arith.constant 0 : index
    %c0_73 = arith.constant 0 : index
    %159 = vector.load %arg18[%c0_72, %c0_73] : memref<1536x128xbf16, #tpu.memory_space<vmem>>, vector<1536x128xbf16>
    %cst_74 = arith.constant dense<0.000000e+00> : vector<16x128xf32>
    %160 = tpu.matmul %158, %159, %cst_74 {dimension_numbers = #tpu.dot_dimension_numbers<[1], [0], [0], [1], [0, 0, 1, 1], [], []>} : vector<16x1536xbf16>, vector<1536x128xbf16>, vector<16x128xf32> -> vector<16x128xf32>
    %c0_75 = arith.constant 0 : index
    %c0_76 = arith.constant 0 : index
    %161 = vector.load %arg19[%c0_75, %c0_76] : memref<1x128xf32, #tpu.memory_space<vmem>>, vector<1x128xf32>
    %162 = vector.broadcast %161 : vector<1x128xf32> to vector<16x128xf32>
    %163 = arith.addf %160, %162 : vector<16x128xf32>
    %c0_77 = arith.constant 0 : index
    %c0_78 = arith.constant 0 : index
    %164 = vector.load %arg23[%c0_77, %c0_78] : memref<16x128xf32, #tpu.memory_space<vmem>>, vector<16x128xf32>
    tpu.vector_store %arg23[%c0_77, %c0_78], %163 {strides = array<i32>} : memref<16x128xf32, #tpu.memory_space<vmem>>, vector<16x128xf32>,
    return
  }
}

</mosaic_0001>

<bundles_post_ra>
// kernel: lxmert_model_forward.1
= control target key start
LH: loop header
LB: loop body
LE: loop exit
PB: predicated region body
PF: predicated region fallthrough
CT: control target
= control target key end

     0   :  { %s15328_s0 = inlined_call_operand.vmem [shape: s32[16,1], index: 0, kind: input, shape index: {}]   ;;  %s15329_s1 = inlined_call_operand.hbm [shape: bf16[128,768], index: 1, kind: input, shape index: {}]   ;;  %s15330_s2 = inlined_call_operand.hbm [shape: bf16[16,768], index: 2, kind: input, shape index: {}]   ;;  %s15331_s3 = inlined_call_operand.hbm [shape: f32[1,768], index: 3, kind: input, shape index: {}]   ;;  %s15332_s4 = inlined_call_operand.hbm [shape: f32[1,768], index: 4, kind: input, shape index: {}]   ;;  %s15333_s5 = inlined_call_operand.vmem [shape: f32[16,128], index: 5, kind: input, shape index: {}]   ;;  %s15334_s6 = inlined_call_operand.hbm [shape: bf16[128,1536], index: 6, kind: input, shape index: {}]   ;;  %s15335_s7 = inlined_call_operand.hbm [shape: f32[1,1536], index: 7, kind: input, shape index: {}]   ;;  %s15336_s8 = inlined_call_operand.hbm [shape: f32[1,768], index: 8, kind: input, shape index: {}]   ;;  %s15337_s9 = inlined_call_operand.hbm [shape: f32[1,768], index: 9, kind: input, shape index: {}]   ;;  %s15338_s10 = inlined_call_operand.hbm [shape: f32[1,768], index: 10, kind: input, shape index: {}]   ;;  %s15339_s11 = inlined_call_operand.hbm [shape: f32[1,768], index: 11, kind: input, shape index: {}]   ;;  %s15340_s12 = inlined_call_operand.hbm [shape: bf16[768,768], index: 12, kind: input, shape index: {}]   ;;  %s15341_s13 = inlined_call_operand.hbm [shape: f32[1,768], index: 13, kind: input, shape index: {}]   ;;  %s15342_s14 = inlined_call_operand.hbm [shape: bf16[768,1536], index: 14, kind: input, shape index: {}]   ;;  %s15343_s15 = inlined_call_operand.hbm [shape: f32[1,1536], index: 15, kind: input, shape index: {}]   ;;  %s15344_s16 = inlined_call_operand.hbm [shape: f32[1,1536], index: 16, kind: input, shape index: {}]   ;;  %s15345_s17 = inlined_call_operand.hbm [shape: f32[1,1536], index: 17, kind: input, shape index: {}]   ;;  %s15346_s18 = inlined_call_operand.hbm [shape: bf16[1536,128], index: 18, kind: input, shape index: {}]   ;;  %s15347_s19 = inlined_call_operand.hbm [shape: f32[1,128], index: 19, kind: input, shape index: {}]   ;;  %s15348_s20 = inlined_call_operand.hbm [shape: f32[16,768], index: 20, kind: output, shape index: {0}]   ;;  %s15349_s21 = inlined_call_operand.hbm [shape: f32[16,768], index: 21, kind: output, shape index: {1}]   ;;  %s15350_s22 = inlined_call_operand.vmem [shape: f32[16,768], index: 22, kind: output, shape index: {2}]   ;;  %s15351_s23 = inlined_call_operand.vmem [shape: f32[16,128], index: 23, kind: output, shape index: {3}]  }
   0x1   :  { %15408 = sst [smem:[#allocation80_spill]] %s15328_s0 }
   0x2   :  { %15409 = sst [smem:[#allocation81_spill]] %s15329_s1 }
   0x3   :  { %15410 = sst [smem:[#allocation82_spill]] %s15330_s2 }
   0x4   :  { %15411 = sst [smem:[#allocation83_spill]] %s15331_s3 }
   0x5   :  { %15412 = sst [smem:[#allocation84_spill]] %s15332_s4 }
   0x6   :  { %15413 = sst [smem:[#allocation85_spill]] %s15333_s5 }
   0x7   :  { %15414 = sst [smem:[#allocation86_spill]] %s15334_s6 }
   0x8   :  { %15415 = sst [smem:[#allocation87_spill]] %s15335_s7 }
   0x9   :  { %15416 = sst [smem:[#allocation88_spill]] %s15351_s23 }
   0xa   :  { %29 = vsyncpa [#allocation3], 0 }
   0xb   :  { %30 = vsyncpa [#allocation6], 0 }
   0xc   :  { %31 = vsyncpa [#allocation9], 0 }
   0xd   :  { %32 = vsyncpa [#allocation12], 0 }
   0xe   :  { %33 = vsyncpa [#allocation15], 0 }
   0xf   :  { %34 = vsyncpa [#allocation18], 0 }
  0x10   :  { %35 = vsyncpa [#allocation21], 0 }
  0x11   :  { %36 = vsyncpa [#allocation24], 0 }
  0x12   :  { %37 = vsyncpa [#allocation27], 0 }
  0x13   :  { %38 = vsyncpa [#allocation30], 0 }
  0x14   :  { %39 = vsyncpa [#allocation4], 0 }
  0x15   :  { %40 = vsyncpa [#allocation33], 0  ;;  %s13766_s4 = smov [#allocation5]   ;;  %s13767_s24 = smov [#allocation8]  }
  0x16   :  { %s60_s30 = sshll.u32 %s13766_s4, 4  ;;  %s83_s25 = sshll.u32 %s13767_s24, 4  ;;  %s61_s30 = int_to_ptr.vmem [resolvable:$true] %s60_s30  ;;  %s84_s25 = int_to_ptr.vmem [resolvable:$true] %s83_s25 }
  0x17   :  { %s13350_s5 = scalar_lea.vmem %s61_s30, 768  ;;  %p13355_p1 = scmp.lt.s32.totalorder %s61_s30, %s61_s30 }
  0x18   :  { %p13351_p0 = scmp.ne.s32.totalorder %s61_s30, %s13350_s5  ;;  %p13356_p2 = scmp.lt.s32.totalorder %s13350_s5, %s13350_s5 }
  0x1a   :  { %p13357_p3 = por %p13356_p2, %p13355_p1 }
  0x1c   :  { %p13358_p4 = pnand %p13357_p3, %p13351_p0 }
  0x1e   :  { %13361 = shalt.err (!%p13358_p4)
}
  0x1f   :  { %s13768_s1 = smov 384   ;;  %s13769_s26 = smov 24  }
  0x20   :  { %s15417_s27 = sld [smem:[#allocation82_spill]]  ;;  %s13370_s7 = scalar_lea.vmem %s84_s25, 96 }
  0x21   :  { %p13371_p5 = scmp.ne.s32.totalorder %s84_s25, %s13370_s7  ;;  %p13375_p6 = scmp.lt.s32.totalorder %s84_s25, %s84_s25 }
  0x22   :  { %p13376_p7 = scmp.lt.s32.totalorder %s13370_s7, %s13370_s7 }
  0x24   :  { %p13377_p8 = por %p13376_p7, %p13375_p6 }
  0x26   :  { %66 = dma.hbm_to_vmem [thread:$0]  %s15417_s27, 768, %s61_s30, [#allocation6], %s13768_s1, %s13768_s1, %s13769_s26  }
  0x27   :  { %p13378_p9 = pnand %p13377_p8, %p13371_p5 }
  0x29   :  { %13381 = shalt.err (!%p13378_p9)
}
  0x2a   :  { %s15418_s3 = sld [smem:[#allocation84_spill]]  ;;  %s13770_s0 = smov [#allocation11]  }
  0x2b   :  { %s107_s4 = sshll.u32 %s13770_s0, 4  ;;  %s13771_s24 = smov [#allocation14]   ;;  %s108_s4 = int_to_ptr.vmem [resolvable:$true] %s107_s4 }
  0x2c   :  { %s127_s5 = sshll.u32 %s13771_s24, 4  ;;  %s13390_s23 = scalar_lea.vmem %s108_s4, 192  ;;  %s128_s5 = int_to_ptr.vmem [resolvable:$true] %s127_s5 }
  0x2d   :  { %p13391_p10 = scmp.ne.s32.totalorder %s108_s4, %s13390_s23  ;;  %p13395_p11 = scmp.lt.s32.totalorder %s108_s4, %s108_s4 }
  0x2e   :  { %p13396_p12 = scmp.lt.s32.totalorder %s13390_s23, %s13390_s23 }
  0x30   :  { %86 = dma.hbm_to_vmem [thread:$0]  %s15418_s3, 96, %s84_s25, [#allocation9]  }
  0x31   :  { %p13397_p13 = por %p13396_p12, %p13395_p11 }
  0x33   :  { %p13398_p0 = pnand %p13397_p13, %p13391_p10 }
  0x35   :  { %13401 = shalt.err (!%p13398_p0)
}
  0x36   :  { %s15419_s6 = sld [smem:[#allocation87_spill]]  ;;  %s13410_s27 = scalar_lea.vmem %s128_s5, 96 }
  0x37   :  { %p13411_p1 = scmp.ne.s32.totalorder %s128_s5, %s13410_s27  ;;  %p13415_p2 = scmp.lt.s32.totalorder %s128_s5, %s128_s5 }
  0x38   :  { %p13416_p3 = scmp.lt.s32.totalorder %s13410_s27, %s13410_s27 }
  0x3a   :  { %p13417_p4 = por %p13416_p3, %p13415_p2 }
  0x3c   :  { %110 = dma.hbm_to_vmem [thread:$0]  %s15419_s6, 192, %s108_s4, [#allocation12]  }
  0x3d   :  { %p13418_p5 = pnand %p13417_p4, %p13411_p1 }
  0x3f   :  { %13421 = shalt.err (!%p13418_p5)
}
  0x40   :  { %130 = dma.hbm_to_vmem [thread:$0]  %s15337_s9, 96, %s128_s5, [#allocation15]  }
  0x41   :  { %s13772_s28 = smov [#allocation17]   ;;  %s13773_s29 = smov [#allocation20]  }
  0x42   :  { %s147_s23 = sshll.u32 %s13772_s28, 4  ;;  %s169_s3 = sshll.u32 %s13773_s29, 4  ;;  %s148_s23 = int_to_ptr.vmem [resolvable:$true] %s147_s23  ;;  %s170_s3 = int_to_ptr.vmem [resolvable:$true] %s169_s3 }
  0x43   :  { %s13430_s0 = scalar_lea.vmem %s148_s23, 96  ;;  %p13435_p7 = scmp.lt.s32.totalorder %s148_s23, %s148_s23 }
  0x44   :  { %p13431_p6 = scmp.ne.s32.totalorder %s148_s23, %s13430_s0  ;;  %p13436_p8 = scmp.lt.s32.totalorder %s13430_s0, %s13430_s0 }
  0x46   :  { %p13437_p9 = por %p13436_p8, %p13435_p7 }
  0x48   :  { %p13438_p10 = pnand %p13437_p9, %p13431_p6 }
  0x4a   :  { %13441 = shalt.err (!%p13438_p10)
}
  0x4b   :  { %150 = dma.hbm_to_vmem [thread:$0]  %s15339_s11, 96, %s148_s23, [#allocation18]  }
  0x4c   :  { %s13450_s30 = scalar_lea.vmem %s170_s3, 96  ;;  %p13455_p12 = scmp.lt.s32.totalorder %s170_s3, %s170_s3 }
  0x4d   :  { %p13451_p11 = scmp.ne.s32.totalorder %s170_s3, %s13450_s30  ;;  %p13456_p13 = scmp.lt.s32.totalorder %s13450_s30, %s13450_s30 }
  0x4f   :  { %p13457_p0 = por %p13456_p13, %p13455_p12 }
  0x51   :  { %p13458_p1 = pnand %p13457_p0, %p13451_p11 }
  0x53   :  { %13461 = shalt.err (!%p13458_p1)
}
  0x54   :  { %172 = dma.hbm_to_vmem [thread:$0]  %s15341_s13, 96, %s170_s3, [#allocation21]  }
  0x55   :  { %s13774_s2 = smov [#allocation23]   ;;  %s13775_s27 = smov [#allocation26]  }
  0x56   :  { %s191_s6 = sshll.u32 %s13774_s2, 4  ;;  %s211_s25 = sshll.u32 %s13775_s27, 4  ;;  %s192_s6 = int_to_ptr.vmem [resolvable:$true] %s191_s6  ;;  %s212_s25 = int_to_ptr.vmem [resolvable:$true] %s211_s25 }
  0x57   :  { %s13470_s7 = scalar_lea.vmem %s192_s6, 192  ;;  %p13475_p3 = scmp.lt.s32.totalorder %s192_s6, %s192_s6 }
  0x58   :  { %p13471_p2 = scmp.ne.s32.totalorder %s192_s6, %s13470_s7  ;;  %p13476_p4 = scmp.lt.s32.totalorder %s13470_s7, %s13470_s7 }
  0x5a   :  { %p13477_p5 = por %p13476_p4, %p13475_p3 }
  0x5c   :  { %p13478_p6 = pnand %p13477_p5, %p13471_p2 }
  0x5e   :  { %13481 = shalt.err (!%p13478_p6)
}
  0x5f   :  { %194 = dma.hbm_to_vmem [thread:$0]  %s15343_s15, 192, %s192_s6, [#allocation24]  }
  0x60   :  { %s13490_s23 = scalar_lea.vmem %s212_s25, 192  ;;  %p13495_p8 = scmp.lt.s32.totalorder %s212_s25, %s212_s25 }
  0x61   :  { %p13491_p7 = scmp.ne.s32.totalorder %s212_s25, %s13490_s23  ;;  %p13496_p9 = scmp.lt.s32.totalorder %s13490_s23, %s13490_s23 }
  0x63   :  { %p13497_p10 = por %p13496_p9, %p13495_p8 }
  0x65   :  { %p13498_p11 = pnand %p13497_p10, %p13491_p7 }
  0x67   :  { %13501 = shalt.err (!%p13498_p11)
}
  0x68   :  { %214 = dma.hbm_to_vmem [thread:$0]  %s15345_s17, 192, %s212_s25, [#allocation27]  }
  0x69   :  { %s13776_s3 = smov [#allocation2]   ;;  %s13777_s4 = smov [#allocation7]  }
  0x6a   :  { %s48_s0 = sshll.u32 %s13776_s3, 4  ;;  %s73_s24 = sshll.u32 %s13777_s4, 4  ;;  %s49_s0 = int_to_ptr.vmem [resolvable:$true] %s48_s0  ;;  %s74_s24 = int_to_ptr.vmem [resolvable:$true] %s73_s24 }
  0x6b   :  { %s13510_s30 = scalar_lea.vmem %s49_s0, 6144  ;;  %p13515_p13 = scmp.lt.s32.totalorder %s49_s0, %s49_s0 }
  0x6c   :  { %p13511_p12 = scmp.ne.s32.totalorder %s49_s0, %s13510_s30  ;;  %p13516_p0 = scmp.lt.s32.totalorder %s13510_s30, %s13510_s30 }
  0x6e   :  { %p13517_p1 = por %p13516_p0, %p13515_p13 }
  0x70   :  { %p13518_p2 = pnand %p13517_p1, %p13511_p12 }
  0x72   :  { %13521 = shalt.err (!%p13518_p2)
}
  0x73   :  { %s15420_s5 = sld [smem:[#allocation81_spill]]  ;;  %s13530_s17 = scalar_lea.vmem %s74_s24, 96 }
  0x74   :  { %p13531_p3 = scmp.ne.s32.totalorder %s74_s24, %s13530_s17  ;;  %p13535_p4 = scmp.lt.s32.totalorder %s74_s24, %s74_s24 }
  0x75   :  { %p13536_p5 = scmp.lt.s32.totalorder %s13530_s17, %s13530_s17 }
  0x77   :  { %p13537_p6 = por %p13536_p5, %p13535_p4 }
  0x79   :  { %54 = dma.hbm_to_vmem [thread:$0]  %s15420_s5, 6144, %s49_s0, [#allocation3], %s13768_s1, %s13768_s1, %s13769_s26  }
  0x7a   :  { %p13538_p7 = pnand %p13537_p6, %p13531_p3 }
  0x7c   :  { %13541 = shalt.err (!%p13538_p7)
}
  0x7d   :  { %s15421_s27 = sld [smem:[#allocation83_spill]]  ;;  %s13778_s25 = smov [#allocation10]  }
  0x7e   :  { %s94_s7 = sshll.u32 %s13778_s25, 4  ;;  %s95_s7 = int_to_ptr.vmem [resolvable:$true] %s94_s7 }
  0x7f   :  { %s13550_s11 = scalar_lea.vmem %s95_s7, 12288  ;;  %p13555_p9 = scmp.lt.s32.totalorder %s95_s7, %s95_s7 }
  0x80   :  { %p13551_p8 = scmp.ne.s32.totalorder %s95_s7, %s13550_s11  ;;  %p13556_p10 = scmp.lt.s32.totalorder %s13550_s11, %s13550_s11 }
  0x82   :  { %p13557_p11 = por %p13556_p10, %p13555_p9 }
  0x83   :  { %76 = dma.hbm_to_vmem [thread:$0]  %s15421_s27, 96, %s74_s24, [#allocation6]  }
  0x84   :  { %p13558_p12 = pnand %p13557_p11, %p13551_p8 }
  0x86   :  { %13561 = shalt.err (!%p13558_p12)
}
  0x87   :  { %s13779_s28 = smov 768   ;;  %s13780_s23 = smov 48  }
  0x88   :  { %s15422_s3 = sld [smem:[#allocation86_spill]]  ;;  %s13781_s0 = smov [#allocation13]  }
  0x89   :  { %s117_s4 = sshll.u32 %s13781_s0, 4  ;;  %s13782_s24 = smov [#allocation16]   ;;  %s118_s4 = int_to_ptr.vmem [resolvable:$true] %s117_s4 }
  0x8a   :  { %s137_s30 = sshll.u32 %s13782_s24, 4  ;;  %s13570_s15 = scalar_lea.vmem %s118_s4, 96  ;;  %s138_s30 = int_to_ptr.vmem [resolvable:$true] %s137_s30 }
  0x8b   :  { %p13571_p13 = scmp.ne.s32.totalorder %s118_s4, %s13570_s15  ;;  %p13575_p0 = scmp.lt.s32.totalorder %s118_s4, %s118_s4 }
  0x8c   :  { %p13576_p1 = scmp.lt.s32.totalorder %s13570_s15, %s13570_s15 }
  0x8e   :  { %100 = dma.hbm_to_vmem [thread:$0]  %s15422_s3, 12288, %s95_s7, [#allocation9], %s13779_s28, %s13779_s28, %s13780_s23  }
  0x8f   :  { %p13577_p2 = por %p13576_p1, %p13575_p0 }
  0x91   :  { %p13578_p3 = pnand %p13577_p2, %p13571_p13 }
  0x93   :  { %13581 = shalt.err (!%p13578_p3)
}
  0x94   :  { %120 = dma.hbm_to_vmem [thread:$0]  %s15336_s8, 96, %s118_s4, [#allocation12]  }
  0x95   :  { %s13590_s17 = scalar_lea.vmem %s138_s30, 96  ;;  %p13595_p5 = scmp.lt.s32.totalorder %s138_s30, %s138_s30 }
  0x96   :  { %p13591_p4 = scmp.ne.s32.totalorder %s138_s30, %s13590_s17  ;;  %p13596_p6 = scmp.lt.s32.totalorder %s13590_s17, %s13590_s17 }
  0x98   :  { %p13597_p7 = por %p13596_p6, %p13595_p5 }
  0x9a   :  { %p13598_p8 = pnand %p13597_p7, %p13591_p4 }
  0x9c   :  { %13601 = shalt.err (!%p13598_p8)
}
  0x9d   :  { %140 = dma.hbm_to_vmem [thread:$0]  %s15338_s10, 96, %s138_s30, [#allocation15]  }
  0x9e   :  { %s13783_s27 = smov [#allocation19]   ;;  %s13784_s7 = smov [#allocation22]  }
  0x9f   :  { %s156_s25 = sshll.u32 %s13783_s27, 4  ;;  %s178_s11 = sshll.u32 %s13784_s7, 4  ;;  %s157_s25 = int_to_ptr.vmem [resolvable:$true] %s156_s25  ;;  %s179_s11 = int_to_ptr.vmem [resolvable:$true] %s178_s11 }
  0xa0   :  { %s13610_s13 = scalar_lea.vmem %s157_s25, 36864  ;;  %p13615_p10 = scmp.lt.s32.totalorder %s157_s25, %s157_s25 }
  0xa1   :  { %p13611_p9 = scmp.ne.s32.totalorder %s157_s25, %s13610_s13  ;;  %p13616_p11 = scmp.lt.s32.totalorder %s13610_s13, %s13610_s13 }
  0xa3   :  { %p13617_p12 = por %p13616_p11, %p13615_p10 }
  0xa5   :  { %p13618_p13 = pnand %p13617_p12, %p13611_p9 }
  0xa7   :  { %13621 = shalt.err (!%p13618_p13)
}
  0xa8   :  { %162 = dma.hbm_to_vmem [thread:$0]  %s15340_s12, 36864, %s157_s25, [#allocation18], %s13768_s1, %s13768_s1, %s13769_s26  }
  0xa9   :  { %s13630_s10 = scalar_lea.vmem %s179_s11, 73728  ;;  %p13635_p1 = scmp.lt.s32.totalorder %s179_s11, %s179_s11 }
  0xaa   :  { %p13631_p0 = scmp.ne.s32.totalorder %s179_s11, %s13630_s10  ;;  %p13636_p2 = scmp.lt.s32.totalorder %s13630_s10, %s13630_s10 }
  0xac   :  { %p13637_p3 = por %p13636_p2, %p13635_p1 }
  0xae   :  { %p13638_p4 = pnand %p13637_p3, %p13631_p0 }
  0xb0   :  { %13641 = shalt.err (!%p13638_p4)
}
  0xb1   :  { %184 = dma.hbm_to_vmem [thread:$0]  %s15342_s14, 73728, %s179_s11, [#allocation21], %s13779_s28, %s13779_s28, %s13780_s23  }
  0xb2   :  { %s13785_s4 = smov [#allocation25]   ;;  %s13786_s30 = smov [#allocation28]  }
  0xb3   :  { %s201_s24 = sshll.u32 %s13785_s4, 4  ;;  %s220_s12 = sshll.u32 %s13786_s30, 4  ;;  %s202_s24 = int_to_ptr.vmem [resolvable:$true] %s201_s24  ;;  %s221_s12 = int_to_ptr.vmem [resolvable:$true] %s220_s12 }
  0xb4   :  { %s13650_s1 = scalar_lea.vmem %s202_s24, 192  ;;  %p13655_p6 = scmp.lt.s32.totalorder %s202_s24, %s202_s24 }
  0xb5   :  { %p13651_p5 = scmp.ne.s32.totalorder %s202_s24, %s13650_s1  ;;  %p13656_p7 = scmp.lt.s32.totalorder %s13650_s1, %s13650_s1 }
  0xb7   :  { %p13657_p8 = por %p13656_p7, %p13655_p6 }
  0xb9   :  { %p13658_p9 = pnand %p13657_p8, %p13651_p5 }
  0xbb   :  { %13661 = shalt.err (!%p13658_p9)
}
  0xbc   :  { %204 = dma.hbm_to_vmem [thread:$0]  %s15344_s16, 192, %s202_s24, [#allocation24]  }
  0xbd   :  { %s13670_s9 = scalar_lea.vmem %s221_s12, 12288  ;;  %p13675_p11 = scmp.lt.s32.totalorder %s221_s12, %s221_s12 }
  0xbe   :  { %p13671_p10 = scmp.ne.s32.totalorder %s221_s12, %s13670_s9  ;;  %p13676_p12 = scmp.lt.s32.totalorder %s13670_s9, %s13670_s9 }
  0xc0   :  { %p13677_p13 = por %p13676_p12, %p13675_p11 }
  0xc2   :  { %p13678_p0 = pnand %p13677_p13, %p13671_p10 }
  0xc4   :  { %13681 = shalt.err (!%p13678_p0)
}
  0xc5   :  { %s13787_s14 = smov 64   ;;  %s13788_s5 = smov 4  }
  0xc6   :  { %226 = dma.hbm_to_vmem [thread:$0]  %s15346_s18, 12288, %s221_s12, [#allocation27], %s13787_s14, %s13787_s14, %s13788_s5  }
  0xc7   :  { %s13789_s6 = smov [#allocation29]  }
  0xc8   :  { %s233_s27 = sshll.u32 %s13789_s6, 4  ;;  %s234_s27 = int_to_ptr.vmem [resolvable:$true] %s233_s27 }
  0xc9   :  { %s13690_s25 = scalar_lea.vmem %s234_s27, 16  ;;  %s13694_s16 = scalar_lea.vmem %s234_s27, 32 }
  0xca   :  { %p13691_p1 = scmp.ne.s32.totalorder %s234_s27, %s13690_s25  ;;  %p13695_p2 = scmp.lt.s32.totalorder %s234_s27, %s234_s27 }
  0xcb   :  { %p13696_p3 = scmp.lt.s32.totalorder %s13694_s16, %s13690_s25 }
  0xcd   :  { %p13697_p4 = por %p13696_p3, %p13695_p2 }
  0xcf   :  { %p13698_p5 = pnand %p13697_p4, %p13691_p1 }
  0xd1   :  { %13701 = shalt.err (!%p13698_p5)
}
  0xd2   :  { %236 = dma.hbm_to_vmem [thread:$0]  %s15347_s19, 16, %s234_s27, [#allocation30]  }
  0xd3   :  { %13742 = dma.done.wait [#allocation3], 6144  }
  0xd4   :  { %13743 = vsyncadd [#allocation3], 4294961152 }
  0xd5   :  { %13744 = dma.done.wait [#allocation6], 864  }
  0xd6   :  { %13745 = vsyncadd [#allocation6], 4294966432 }
  0xd7   :  { %13746 = dma.done.wait [#allocation9], 12384  }
  0xd8   :  { %13747 = vsyncadd [#allocation9], 4294954912 }
  0xd9   :  { %13748 = dma.done.wait [#allocation12], 288  }
  0xda   :  { %13749 = vsyncadd [#allocation12], 4294967008 }
  0xdb   :  { %13750 = dma.done.wait [#allocation15], 192  }
  0xdc   :  { %13751 = vsyncadd [#allocation15], 4294967104 }
  0xdd   :  { %13752 = dma.done.wait [#allocation18], 36960  }
  0xde   :  { %13753 = vsyncadd [#allocation18], 4294930336 }
  0xdf   :  { %13754 = dma.done.wait [#allocation21], 73824  }
  0xe0   :  { %13755 = vsyncadd [#allocation21], 4294893472 }
  0xe1   :  { %13756 = dma.done.wait [#allocation24], 384  }
  0xe2   :  { %13757 = vsyncadd [#allocation24], 4294966912 }
  0xe3   :  { %13758 = dma.done.wait [#allocation27], 12480  }
  0xe4   :  { %13759 = vsyncadd [#allocation27], 4294954816 }
  0xe5   :  { %13760 = dma.done.wait [#allocation30], 16  }
  0xe6   :  { %13761 = vsyncadd [#allocation30], 4294967280  ;;  %v294_v0 = vlaneseq  ;;  %v13790_v1 = vmov 0   ;;  %s15423_s13 = sld [smem:[#allocation80_spill]]  ;;  %v13791_v8 = vmov 0.0   ;;  %vm427_vm2 = vcmask 130048  }
  0xe7   :  { %11635 = vset.pattern.permute.xlu0 %v13790_v1  ;;  %463 = vmatprep.mubr.bf16.mxu0 %v13790_v1  ;;  %v11636_v10 = vld [vmem:[#allocation5 + $0x4] ss:$24 sps:$4 sm:$0xff]   ;;  %v11638_v11 = vld [vmem:[#allocation5] ss:$24 sps:$4 sm:$0xff]   ;;  %v11644_v17 = vld [vmem:[#allocation5 + $0x14] ss:$24 sps:$4 sm:$0xff]  }
  0xe8   :  { %v13986_v2 = vand.u32 127, %v294_v0  ;;  %v13988_v3 = vshrl.u32 %v294_v0, 7  ;;  %832 = vmatprep.mubr.bf16.mxu1 %v13790_v1  ;;  %445 = vmatprep.subr.bf16.mxu0 %v11636_v10  ;;  %v11641_v15 = vld [vmem:[#allocation5 + $0xc] ss:$24 sps:$4 sm:$0xff]   ;;  %v11639_v16 = vld [vmem:[#allocation5 + $0x8] ss:$24 sps:$4 sm:$0xff]  }
  0xe9   :  { %446 = vmatpush1.bf16.msra.mxu0 %v11638_v11  ;;  %v11645_v18 = vld [vmem:[#allocation2 + $0x154] ss:$24 sps:$4 sm:$0xff]   ;;  %v11647_v19 = vld [vmem:[#allocation2 + $0x150] ss:$24 sps:$4 sm:$0xff]   ;;  %v11651_v20 = vld [vmem:[#allocation2 + $0x124] ss:$24 sps:$4 sm:$0xff]  }
  0xea   :  { %v359_v4 = vadd.s32 8, %v13988_v3  ;;  %v364_v5 = vand.u32 7, %v13988_v3  ;;  %488 = vmatprep.subr.bf16.mxu0 %v11641_v15  ;;  %800 = vmatprep.subr.bf16.mxu1 %v11645_v18  ;;  %v11653_v21 = vld [vmem:[#allocation2 + $0x120] ss:$24 sps:$4 sm:$0xff]   ;;  %v11657_v22 = vld [vmem:[#allocation2 + $0xf4] ss:$24 sps:$4 sm:$0xff]  }
  0xeb   :  { %801 = vmatpush1.bf16.msra.mxu1 %v11647_v19  ;;  %v11642_v23 = vld [vmem:[#allocation5 + $0x10] ss:$24 sps:$4 sm:$0xff]   ;;  %v11650_v24 = vld [vmem:[#allocation2 + $0x15c] ss:$24 sps:$4 sm:$0xff]   ;;  %v11665_v27 = vld [vmem:[#allocation2 + $0xc0] ss:$24 sps:$4 sm:$0xff]  }
  0xec   :  { %v371_v6 = vand.u32 7, %v359_v4  ;;  %vm384_vm0 = vcmp.eq.s32.totalorder %v13986_v2, %v364_v5  ;;  %v292_v7 = vld [vmem:[%s15423_s13] sm:$0xff]  ;;  %v293_v12 = vld [vmem:[%s15423_s13 + $0x8] sm:$0xff]  ;;  %802 = vmatprep.subr.bf16.mxu1 %v11651_v20  ;;  %v11648_v29 = vld [vmem:[#allocation2 + $0x158] ss:$24 sps:$4 sm:$0xff]   ;;  %s15426_s0 = sld [smem:[#allocation85_spill]] }
  0xed   :  { %v10352_v9 = vsel %vm384_vm0, 1.0, %v13791_v8  ;;  %297 = vperm.xlu0 %11635, %v292_v7   ;;  %v11659_v25 = vld [vmem:[#allocation2 + $0xf0] ss:$24 sps:$4 sm:$0xff]   ;;  %v11663_v26 = vld [vmem:[#allocation2 + $0xc4] ss:$24 sps:$4 sm:$0xff]  }
  0xee   :  { %vm385_vm1 = vcmp.eq.s32.totalorder %v13986_v2, %v371_v6  ;;  %v11669_v28 = vld [vmem:[#allocation2 + $0x94] ss:$24 sps:$4 sm:$0xff]   ;;  %v11671_v31 = vld [vmem:[#allocation2 + $0x90] ss:$24 sps:$4 sm:$0xff]   ;;  %v11675_v32 = vld [vmem:[#allocation2 + $0x64] ss:$24 sps:$4 sm:$0xff]  }
  0xef   :  { %v10353_v13 = vsel %vm385_vm1, 1.0, %v13791_v8  ;;  %803 = vmatpush1.bf16.msra.mxu1 %v11653_v21  ;;  %v11656_v30 = vld [vmem:[#allocation2 + $0x12c] ss:$24 sps:$4 sm:$0xff]   ;;  %v11654_v33 = vld [vmem:[#allocation2 + $0x128] ss:$24 sps:$4 sm:$0xff]  }
  0xf0   :  { %v390_v14 = vpack.c.bf16 %v10353_v13, %v10352_v9  ;;  %804 = vmatprep.subr.bf16.mxu1 %v11657_v22  ;;  %v11662_v34 = vld [vmem:[#allocation2 + $0xfc] ss:$24 sps:$4 sm:$0xff]   ;;  %v11677_v35 = vld [vmem:[#allocation2 + $0x60] ss:$24 sps:$4 sm:$0xff]   ;;  %v11668_v38 = vld [vmem:[#allocation2 + $0xcc] ss:$24 sps:$4 sm:$0xff]  }
  0xf1   :  { %300 = vperm.xlu0 %11635, %v293_v12   ;;  %v11681_v36 = vld [vmem:[#allocation2 + $0x34] ss:$24 sps:$4 sm:$0xff]   ;;  %v11660_v37 = vld [vmem:[#allocation2 + $0xf8] ss:$24 sps:$4 sm:$0xff]   ;;  %v11687_v40 = vld [vmem:[#allocation2 + $0x4] ss:$24 sps:$4 sm:$0xff]  }
  0xf2   :  { %10360 = vmatmul.mubr.msk.bf16.vlgmr.msra.gmra.mxu0 %vm427_vm2, %v390_v14  ;;  %v11683_v39 = vld [vmem:[#allocation2 + $0x30] ss:$24 sps:$4 sm:$0xff]   ;;  %v11674_v42 = vld [vmem:[#allocation2 + $0x9c] ss:$24 sps:$4 sm:$0xff]   ;;  %v11689_v43 = vld [vmem:[#allocation2] ss:$24 sps:$4 sm:$0xff]  }
  0xf3   :  { %489 = vmatpush1.bf16.msra.mxu0 %v11639_v16  ;;  %506 = vmatprep.mubr.bf16.mxu0 %v13790_v1  ;;  %v11666_v41 = vld [vmem:[#allocation2 + $0xc8] ss:$24 sps:$4 sm:$0xff]   ;;  %v11695_v44 = vld [vmem:[#allocation2 + $0x164] ss:$24 sps:$4 sm:$0xff]   ;;  %v11672_v45 = vld [vmem:[#allocation2 + $0x98] ss:$24 sps:$4 sm:$0xff]  }
  0xf4   :  { %531 = vmatprep.subr.bf16.mxu0 %v11644_v17  ;;  %805 = vmatpush1.bf16.msra.mxu1 %v11659_v25  ;;  %v11680_v46 = vld [vmem:[#allocation2 + $0x6c] ss:$24 sps:$4 sm:$0xff]   ;;  %v11678_v47 = vld [vmem:[#allocation2 + $0x68] ss:$24 sps:$4 sm:$0xff]   ;;  %v11686_v48 = vld [vmem:[#allocation2 + $0x3c] ss:$24 sps:$4 sm:$0xff]  }
  0xf5   :  { %806 = vmatprep.subr.bf16.mxu1 %v11663_v26  ;;  %v11684_v49 = vld [vmem:[#allocation2 + $0x38] ss:$24 sps:$4 sm:$0xff]   ;;  %v11692_v50 = vld [vmem:[#allocation2 + $0xc] ss:$24 sps:$4 sm:$0xff]   ;;  %v11690_v51 = vld [vmem:[#allocation2 + $0x8] ss:$24 sps:$4 sm:$0xff]  }
  0xf6   :  { %v11693_v53 = vld [vmem:[#allocation2 + $0x160] ss:$24 sps:$4 sm:$0xff]   ;;  %v11698_v54 = vld [vmem:[#allocation2 + $0x134] ss:$24 sps:$4 sm:$0xff]   ;;  %v11696_v57 = vld [vmem:[#allocation2 + $0x130] ss:$24 sps:$4 sm:$0xff]  }
  0xf7   :  { %v13792_v58 = vmov 1.0|1.0   ;;  %v11701_v59 = vld [vmem:[#allocation2 + $0x104] ss:$24 sps:$4 sm:$0xff]   ;;  %v11699_v60 = vld [vmem:[#allocation2 + $0x100] ss:$24 sps:$4 sm:$0xff]  }
  0xf8   :  { %807 = vmatpush1.bf16.msra.mxu1 %v11665_v27  ;;  %v11704_v61 = vld [vmem:[#allocation2 + $0xd4] ss:$24 sps:$4 sm:$0xff]   ;;  %v11702_v62 = vld [vmem:[#allocation2 + $0xd0] ss:$24 sps:$4 sm:$0xff]   ;;  %v11707_v63 = vld [vmem:[#allocation2 + $0xa4] ss:$24 sps:$4 sm:$0xff]  }
  0xf9   :  { %808 = vmatprep.subr.bf16.mxu1 %v11669_v28  ;;  %v11705_v0 = vld [vmem:[#allocation2 + $0xa0] ss:$24 sps:$4 sm:$0xff]   ;;  %v11708_v4 = vld [vmem:[#allocation2 + $0x70] ss:$24 sps:$4 sm:$0xff]   ;;  %v11713_v5 = vld [vmem:[#allocation2 + $0x44] ss:$24 sps:$4 sm:$0xff]  }
  0xfa   :  { %10361 = vmatmul.mubr.msk.bf16.vlgmr.msra.gmra.mxu0 %vm427_vm2, %v390_v14  ;;  %v11711_v6 = vld [vmem:[#allocation2 + $0x40] ss:$24 sps:$4 sm:$0xff]   ;;  %v11716_v7 = vld [vmem:[#allocation2 + $0x14] ss:$24 sps:$4 sm:$0xff]   ;;  %v11714_v8 = vld [vmem:[#allocation2 + $0x10] ss:$24 sps:$4 sm:$0xff]  }
  0xfb   :  { %532 = vmatpush1.bf16.msra.mxu0 %v11642_v23  ;;  %549 = vmatprep.mubr.bf16.mxu0 %v13790_v1  ;;  %v11717_v9 = vld [vmem:[#allocation10 + $0x2a0] ss:$48 sps:$4 sm:$0xff]   ;;  %v11719_v10 = vld [vmem:[#allocation10 + $0x2a4] ss:$48 sps:$4 sm:$0xff]   ;;  %v11723_v12 = vld [vmem:[#allocation10 + $0x2a8] ss:$48 sps:$4 sm:$0xff]  }
  0xfc   :  { %843 = vmatprep.subr.bf16.mxu0 %v11650_v24  ;;  %809 = vmatpush1.bf16.msra.mxu1 %v11671_v31  ;;  %v11722_v11 = vld [vmem:[#allocation10 + $0x244] ss:$48 sps:$4 sm:$0xff]   ;;  %v11725_v13 = vld [vmem:[#allocation10 + $0x2ac] ss:$48 sps:$4 sm:$0xff]   ;;  %v11729_v17 = vld [vmem:[#allocation10 + $0x248] ss:$48 sps:$4 sm:$0xff]  }
  0xfd   :  { %810 = vmatprep.subr.bf16.mxu1 %v11675_v32  ;;  %v11731_v15 = vld [vmem:[#allocation10 + $0x24c] ss:$48 sps:$4 sm:$0xff]   ;;  %v11728_v16 = vld [vmem:[#allocation10 + $0x1e4] ss:$48 sps:$4 sm:$0xff]   ;;  %v11726_v19 = vld [vmem:[#allocation10 + $0x1e0] ss:$48 sps:$4 sm:$0xff]  }
  0xfe   :  { %v11737_v18 = vld [vmem:[#allocation10 + $0x1ec] ss:$48 sps:$4 sm:$0xff]   ;;  %v11734_v20 = vld [vmem:[#allocation10 + $0x184] ss:$48 sps:$4 sm:$0xff]   ;;  %v11735_v21 = vld [vmem:[#allocation10 + $0x1e8] ss:$48 sps:$4 sm:$0xff]  }
  0xff   :  { %v11743_v22 = vld [vmem:[#allocation10 + $0x18c] ss:$48 sps:$4 sm:$0xff]   ;;  %v11732_v23 = vld [vmem:[#allocation10 + $0x180] ss:$48 sps:$4 sm:$0xff]   ;;  %v11740_v24 = vld [vmem:[#allocation10 + $0x124] ss:$48 sps:$4 sm:$0xff]  }
 0x100   :  { %811 = vmatpush1.bf16.msra.mxu1 %v11677_v35  ;;  %v11741_v25 = vld [vmem:[#allocation10 + $0x188] ss:$48 sps:$4 sm:$0xff]   ;;  %v11749_v26 = vld [vmem:[#allocation10 + $0x12c] ss:$48 sps:$4 sm:$0xff]   ;;  %v11738_v27 = vld [vmem:[#allocation10 + $0x120] ss:$48 sps:$4 sm:$0xff]  }
 0x101   :  { %812 = vmatprep.subr.bf16.mxu1 %v11681_v36  ;;  %v11746_v28 = vld [vmem:[#allocation10 + $0xc4] ss:$48 sps:$4 sm:$0xff]   ;;  %v11744_v31 = vld [vmem:[#allocation10 + $0xc0] ss:$48 sps:$4 sm:$0xff]   ;;  %v11783_v56 = vld [vmem:[#allocation10 + $0x1f8] ss:$48 sps:$4 sm:$0xff]  }
 0x102   :  { %10362 = vmatmul.mubr.msk.bf16.vlgmr.msra.gmra.mxu0 %vm427_vm2, %v390_v14  ;;  %v11720_v14 = vld [vmem:[#allocation10 + $0x240] ss:$48 sps:$4 sm:$0xff]   ;;  %v11752_v32 = vld [vmem:[#allocation10 + $0x64] ss:$48 sps:$4 sm:$0xff]  }
 0x103   :  { %844 = vmatpush1.bf16.msra.mxu0 %v11648_v29  ;;  %875 = vmatprep.mubr.bf16.mxu0 %v13790_v1  ;;  %v11747_v29 = vld [vmem:[#allocation10 + $0x128] ss:$48 sps:$4 sm:$0xff]   ;;  %v11750_v35 = vld [vmem:[#allocation10 + $0x60] ss:$48 sps:$4 sm:$0xff]   ;;  %v11758_v36 = vld [vmem:[#allocation10 + $0x4] ss:$48 sps:$4 sm:$0xff]  }
 0x104   :  { %845 = vmatprep.subr.bf16.mxu0 %v11656_v30  ;;  %813 = vmatpush1.bf16.msra.mxu1 %v11683_v39  ;;  %v11755_v30 = vld [vmem:[#allocation10 + $0xcc] ss:$48 sps:$4 sm:$0xff]   ;;  %v11756_v39 = vld [vmem:[#allocation10] ss:$48 sps:$4 sm:$0xff]  }
 0x105   :  { %814 = vmatprep.subr.bf16.mxu1 %v11687_v40  ;;  %v1102_v40 = vld [vmem:[%s15426_s0] sm:$0xff] }
 0x107   :  { %846 = vmatpush1.bf16.msra.mxu0 %v11654_v33  ;;  %v11753_v33 = vld [vmem:[#allocation10 + $0xc8] ss:$48 sps:$4 sm:$0xff]  }
 0x108   :  { %847 = vmatprep.subr.bf16.mxu0 %v11662_v34  ;;  %815 = vmatpush1.bf16.msra.mxu1 %v11689_v43  ;;  %v11761_v34 = vld [vmem:[#allocation10 + $0x6c] ss:$48 sps:$4 sm:$0xff]   ;;  %v11767_v43 = vld [vmem:[#allocation10 + $0x2b4] ss:$48 sps:$4 sm:$0xff]  }
 0x109   :  { %886 = vmatprep.subr.bf16.mxu1 %v11695_v44  ;;  %v11773_v44 = vld [vmem:[#allocation10 + $0x2bc] ss:$48 sps:$4 sm:$0xff]  }
 0x10b   :  { %848 = vmatpush1.bf16.msra.mxu0 %v11660_v37  ;;  %v11759_v37 = vld [vmem:[#allocation10 + $0x68] ss:$48 sps:$4 sm:$0xff]  }
 0x10c   :  { %849 = vmatprep.subr.bf16.mxu0 %v11668_v38  ;;  %v11764_v38 = vld [vmem:[#allocation10 + $0xc] ss:$48 sps:$4 sm:$0xff]  }
 0x10f   :  { %850 = vmatpush1.bf16.msra.mxu0 %v11666_v41  ;;  %v1103_v41 = vld [vmem:[%s15426_s0 + $0x8] sm:$0xff] }
 0x110   :  { %851 = vmatprep.subr.bf16.mxu0 %v11674_v42  ;;  %v11762_v42 = vld [vmem:[#allocation10 + $0x8] ss:$48 sps:$4 sm:$0xff]  }
 0x113   :  { %852 = vmatpush1.bf16.msra.mxu0 %v11672_v45  ;;  %v14028_v45 = vpack.c.bf16 %v1103_v41, %v1102_v40  ;;  %v11851_v40 = vld [vmem:[#allocation10 + $0xec] ss:$48 sps:$4 sm:$0xff]   ;;  %v11840_v41 = vld [vmem:[#allocation10 + $0xe0] ss:$48 sps:$4 sm:$0xff]  }
 0x114   :  { %853 = vmatprep.subr.bf16.mxu0 %v11680_v46  ;;  %v11765_v46 = vld [vmem:[#allocation10 + $0x2b0] ss:$48 sps:$4 sm:$0xff]  }
 0x117   :  { %854 = vmatpush1.bf16.msra.mxu0 %v11678_v47  ;;  %v11770_v47 = vld [vmem:[#allocation10 + $0x254] ss:$48 sps:$4 sm:$0xff]  }
 0x118   :  { %855 = vmatprep.subr.bf16.mxu0 %v11686_v48  ;;  %v11771_v48 = vld [vmem:[#allocation10 + $0x2b8] ss:$48 sps:$4 sm:$0xff]  }
 0x11b   :  { %856 = vmatpush1.bf16.msra.mxu0 %v11684_v49  ;;  %v11779_v49 = vld [vmem:[#allocation10 + $0x25c] ss:$48 sps:$4 sm:$0xff]  }
 0x11c   :  { %857 = vmatprep.subr.bf16.mxu0 %v11692_v50  ;;  %v11768_v50 = vld [vmem:[#allocation10 + $0x250] ss:$48 sps:$4 sm:$0xff]  }
 0x11f   :  { %858 = vmatpush1.bf16.msra.mxu0 %v11690_v51  ;;  %v11776_v51 = vld [vmem:[#allocation10 + $0x1f4] ss:$48 sps:$4 sm:$0xff]  }
 0x120   :  { %1745 = vmatprep.subr.bf16.mxu0 %v11719_v10  ;;  %v11807_v10 = vld [vmem:[#allocation10 + $0x78] ss:$48 sps:$4 sm:$0xff]  }
 0x168   :  { %v298_v52 = vpop.permute.xlu0 %297 }
 0x169   :  { %vm302_vm3 = vcmp.eq.s32.totalorder %v13986_v2, %v298_v52  ;;  %v11777_v52 = vld [vmem:[#allocation10 + $0x258] ss:$48 sps:$4 sm:$0xff]  }
 0x16c   :  { %v301_v55 = vpop.permute.xlu0 %300 }
 0x16d   :  { %vm303_vm4 = vcmp.eq.s32.totalorder %v13986_v2, %v301_v55  ;;  %v11710_v2 = vld [vmem:[#allocation2 + $0x74] ss:$24 sps:$4 sm:$0xff]   ;;  %v11782_v55 = vld [vmem:[#allocation10 + $0x194] ss:$48 sps:$4 sm:$0xff]  }
 0x16e   :  { %vm14009_vm5 = vmpackc.low %vm303_vm4, %vm302_vm3 }
 0x16f   :  { %10412 = vmatmul.mubr.msk.bf16.vlgmr.msra.gmra.mxu1 %vm14009_vm5, %v13792_v58  ;;  %10414 = vmatmul.mubr.msk.bf16.vlgmr.msra.gmra.mxu0 %vm14009_vm5, %v13792_v58 }
 0x170   :  { %887 = vmatpush1.bf16.msra.mxu1 %v11693_v53  ;;  %918 = vmatprep.mubr.bf16.mxu1 %v13790_v1  ;;  %v11785_v53 = vld [vmem:[#allocation10 + $0x1fc] ss:$48 sps:$4 sm:$0xff]  }
 0x171   :  { %888 = vmatprep.subr.bf16.mxu1 %v11698_v54  ;;  %1777 = vmatprep.mubr.bf16.mxu0 %v13790_v1  ;;  %v11774_v54 = vld [vmem:[#allocation10 + $0x1f0] ss:$48 sps:$4 sm:$0xff]  }
 0x172   :  { %1746 = vmatpush1.bf16.msra.mxu0 %v11717_v9  ;;  %v11806_v9 = vld [vmem:[#allocation10 + $0x14] ss:$48 sps:$4 sm:$0xff]  }
 0x173   :  { %1747 = vmatprep.subr.bf16.mxu0 %v11722_v11  ;;  %v11812_v11 = vld [vmem:[#allocation10 + $0x1c] ss:$48 sps:$4 sm:$0xff]  }
 0x174   :  { %889 = vmatpush1.bf16.msra.mxu1 %v11696_v57  ;;  %v11791_v57 = vld [vmem:[#allocation10 + $0x19c] ss:$48 sps:$4 sm:$0xff]  }
 0x175   :  { %890 = vmatprep.subr.bf16.mxu1 %v11701_v59  ;;  %v11788_v59 = vld [vmem:[#allocation10 + $0x134] ss:$48 sps:$4 sm:$0xff]  }
 0x176   :  { %1748 = vmatpush1.bf16.msra.mxu0 %v11720_v14  ;;  %v11815_v14 = vld [vmem:[#allocation10 + $0x2c4] ss:$48 sps:$4 sm:$0xff]  }
 0x177   :  { %1749 = vmatprep.subr.bf16.mxu0 %v11728_v16  ;;  %v11821_v16 = vld [vmem:[#allocation10 + $0x2cc] ss:$48 sps:$4 sm:$0xff]  }
 0x178   :  { %891 = vmatpush1.bf16.msra.mxu1 %v11699_v60  ;;  %v11789_v60 = vld [vmem:[#allocation10 + $0x198] ss:$48 sps:$4 sm:$0xff]  }
 0x179   :  { %892 = vmatprep.subr.bf16.mxu1 %v11704_v61  ;;  %v11797_v61 = vld [vmem:[#allocation10 + $0x13c] ss:$48 sps:$4 sm:$0xff]  }
 0x17a   :  { %1750 = vmatpush1.bf16.msra.mxu0 %v11726_v19  ;;  %v11819_v19 = vld [vmem:[#allocation10 + $0x2c8] ss:$48 sps:$4 sm:$0xff]  }
 0x17b   :  { %1751 = vmatprep.subr.bf16.mxu0 %v11734_v20 }
 0x17c   :  { %893 = vmatpush1.bf16.msra.mxu1 %v11702_v62  ;;  %v11786_v62 = vld [vmem:[#allocation10 + $0x130] ss:$48 sps:$4 sm:$0xff]  }
 0x17d   :  { %894 = vmatprep.subr.bf16.mxu1 %v11707_v63  ;;  %v11794_v63 = vld [vmem:[#allocation10 + $0xd4] ss:$48 sps:$4 sm:$0xff]  }
 0x17e   :  { %1752 = vmatpush1.bf16.msra.mxu0 %v11732_v23  ;;  %v11824_v23 = vld [vmem:[#allocation10 + $0x204] ss:$48 sps:$4 sm:$0xff]  }
 0x17f   :  { %1753 = vmatprep.subr.bf16.mxu0 %v11740_v24  ;;  %v11825_v24 = vld [vmem:[#allocation10 + $0x268] ss:$48 sps:$4 sm:$0xff]  }
 0x180   :  { %895 = vmatpush1.bf16.msra.mxu1 %v11705_v0  ;;  %v11795_v0 = vld [vmem:[#allocation10 + $0x138] ss:$48 sps:$4 sm:$0xff]  }
 0x181   :  { %896 = vmatprep.subr.bf16.mxu1 %v11710_v2  ;;  %v11803_v2 = vld [vmem:[#allocation10 + $0xdc] ss:$48 sps:$4 sm:$0xff]  }
 0x182   :  { %1754 = vmatpush1.bf16.msra.mxu0 %v11738_v27  ;;  %v11822_v27 = vld [vmem:[#allocation10 + $0x200] ss:$48 sps:$4 sm:$0xff]  }
 0x183   :  { %1755 = vmatprep.subr.bf16.mxu0 %v11746_v28  ;;  %v11830_v28 = vld [vmem:[#allocation10 + $0x1a4] ss:$48 sps:$4 sm:$0xff]  }
 0x184   :  { %897 = vmatpush1.bf16.msra.mxu1 %v11708_v4  ;;  %v11792_v4 = vld [vmem:[#allocation10 + $0xd0] ss:$48 sps:$4 sm:$0xff]  }
 0x185   :  { %898 = vmatprep.subr.bf16.mxu1 %v11713_v5  ;;  %v11800_v5 = vld [vmem:[#allocation10 + $0x74] ss:$48 sps:$4 sm:$0xff]  }
 0x186   :  { %1756 = vmatpush1.bf16.msra.mxu0 %v11744_v31  ;;  %v11839_v31 = vld [vmem:[#allocation10 + $0x1ac] ss:$48 sps:$4 sm:$0xff]  }
 0x187   :  { %1757 = vmatprep.subr.bf16.mxu0 %v11752_v32  ;;  %v11828_v32 = vld [vmem:[#allocation10 + $0x1a0] ss:$48 sps:$4 sm:$0xff]  }
 0x188   :  { %899 = vmatpush1.bf16.msra.mxu1 %v11711_v6  ;;  %v11801_v6 = vld [vmem:[#allocation10 + $0xd8] ss:$48 sps:$4 sm:$0xff]  }
 0x189   :  { %900 = vmatprep.subr.bf16.mxu1 %v11716_v7  ;;  %v11809_v7 = vld [vmem:[#allocation10 + $0x7c] ss:$48 sps:$4 sm:$0xff]  }
 0x18a   :  { %1758 = vmatpush1.bf16.msra.mxu0 %v11750_v35 }
 0x18b   :  { %1759 = vmatprep.subr.bf16.mxu0 %v11758_v36  ;;  %v11845_v36 = vld [vmem:[#allocation10 + $0x14c] ss:$48 sps:$4 sm:$0xff]  }
 0x18c   :  { %901 = vmatpush1.bf16.msra.mxu1 %v11714_v8  ;;  %v11798_v8 = vld [vmem:[#allocation10 + $0x70] ss:$48 sps:$4 sm:$0xff]  }
 0x18d   :  { %1788 = vmatprep.subr.bf16.mxu1 %v11725_v13  ;;  %v11810_v13 = vld [vmem:[#allocation10 + $0x18] ss:$48 sps:$4 sm:$0xff]  }
 0x18e   :  { %1760 = vmatpush1.bf16.msra.mxu0 %v11756_v39  ;;  %v11843_v39 = vld [vmem:[#allocation10 + $0x148] ss:$48 sps:$4 sm:$0xff]  }
 0x18f   :  { %10416 = vmatmul.mubr.msk.bf16.vlgmr.msra.gmra.mxu1 %vm14009_vm5, %v13792_v58  ;;  %1831 = vmatprep.subr.bf16.mxu0 %v11767_v43  ;;  %v11780_v58 = vld [vmem:[#allocation10 + $0x190] ss:$48 sps:$4 sm:$0xff]   ;;  %v11849_v43 = vld [vmem:[#allocation10 + $0xe8] ss:$48 sps:$4 sm:$0xff]  }
 0x190   :  { %1820 = vmatprep.mubr.bf16.mxu1 %v13790_v1  ;;  %1789 = vmatpush1.bf16.msra.mxu1 %v11723_v12  ;;  %v11804_v12 = vld [vmem:[#allocation10 + $0x10] ss:$48 sps:$4 sm:$0xff]  }
 0x191   :  { %1790 = vmatprep.subr.bf16.mxu1 %v11731_v15  ;;  %1778 = vmatmul.mubr.bf16.vlgmr.msra.gmra.mxu0 %v14028_v45 }
 0x192   :  { %1832 = vmatpush1.bf16.msra.mxu0 %v11765_v46  ;;  %1863 = vmatprep.mubr.bf16.mxu0 %v13790_v1  ;;  %v11857_v46 = vld [vmem:[#allocation10 + $0x8c] ss:$48 sps:$4 sm:$0xff]  }
 0x193   :  { %1833 = vmatprep.subr.bf16.mxu0 %v11770_v47  ;;  %v11846_v47 = vld [vmem:[#allocation10 + $0x80] ss:$48 sps:$4 sm:$0xff]  }
 0x194   :  { %1791 = vmatpush1.bf16.msra.mxu1 %v11729_v17  ;;  %v11813_v17 = vld [vmem:[#allocation10 + $0x2c0] ss:$48 sps:$4 sm:$0xff]  }
 0x195   :  { %1792 = vmatprep.subr.bf16.mxu1 %v11737_v18  ;;  %v11818_v18 = vld [vmem:[#allocation10 + $0x264] ss:$48 sps:$4 sm:$0xff]  }
 0x196   :  { %1834 = vmatpush1.bf16.msra.mxu0 %v11768_v50 }
 0x197   :  { %1835 = vmatprep.subr.bf16.mxu0 %v11776_v51  ;;  %v11860_v51 = vld [vmem:[#allocation10 + $0x2c] ss:$48 sps:$4 sm:$0xff]  }
 0x198   :  { %1793 = vmatpush1.bf16.msra.mxu1 %v11735_v21  ;;  %v11827_v21 = vld [vmem:[#allocation10 + $0x26c] ss:$48 sps:$4 sm:$0xff]  }
 0x199   :  { %1794 = vmatprep.subr.bf16.mxu1 %v11743_v22  ;;  %v11816_v22 = vld [vmem:[#allocation10 + $0x260] ss:$48 sps:$4 sm:$0xff]  }
 0x19a   :  { %1836 = vmatpush1.bf16.msra.mxu0 %v11774_v54 }
 0x19b   :  { %1837 = vmatprep.subr.bf16.mxu0 %v11782_v55 }
 0x19c   :  { %1795 = vmatpush1.bf16.msra.mxu1 %v11741_v25 }
 0x19d   :  { %1796 = vmatprep.subr.bf16.mxu1 %v11749_v26  ;;  %v11833_v26 = vld [vmem:[#allocation10 + $0x20c] ss:$48 sps:$4 sm:$0xff]  }
 0x19e   :  { %1838 = vmatpush1.bf16.msra.mxu0 %v11780_v58 }
 0x19f   :  { %1839 = vmatprep.subr.bf16.mxu0 %v11788_v59 }
 0x1a0   :  { %1797 = vmatpush1.bf16.msra.mxu1 %v11747_v29  ;;  %v11831_v29 = vld [vmem:[#allocation10 + $0x208] ss:$48 sps:$4 sm:$0xff]  }
 0x1a1   :  { %1798 = vmatprep.subr.bf16.mxu1 %v11755_v30 }
 0x1a2   :  { %1840 = vmatpush1.bf16.msra.mxu0 %v11786_v62 }
 0x1a3   :  { %1841 = vmatprep.subr.bf16.mxu0 %v11794_v63 }
 0x1a4   :  { %1799 = vmatpush1.bf16.msra.mxu1 %v11753_v33  ;;  %v11836_v33 = vld [vmem:[#allocation10 + $0x144] ss:$48 sps:$4 sm:$0xff]  }
 0x1a5   :  { %1800 = vmatprep.subr.bf16.mxu1 %v11761_v34  ;;  %v11837_v34 = vld [vmem:[#allocation10 + $0x1a8] ss:$48 sps:$4 sm:$0xff]  }
 0x1a6   :  { %1842 = vmatpush1.bf16.msra.mxu0 %v11792_v4 }
 0x1a7   :  { %1843 = vmatprep.subr.bf16.mxu0 %v11800_v5 }
 0x1a8   :  { %1801 = vmatpush1.bf16.msra.mxu1 %v11759_v37  ;;  %v11834_v37 = vld [vmem:[#allocation10 + $0x140] ss:$48 sps:$4 sm:$0xff]  }
 0x1a9   :  { %1802 = vmatprep.subr.bf16.mxu1 %v11764_v38  ;;  %v11842_v38 = vld [vmem:[#allocation10 + $0xe4] ss:$48 sps:$4 sm:$0xff]  }
 0x1aa   :  { %1844 = vmatpush1.bf16.msra.mxu0 %v11798_v8 }
 0x1ab   :  { %1845 = vmatprep.subr.bf16.mxu0 %v11806_v9 }
 0x1ac   :  { %1803 = vmatpush1.bf16.msra.mxu1 %v11762_v42  ;;  %v11848_v42 = vld [vmem:[#allocation10 + $0x84] ss:$48 sps:$4 sm:$0xff]  }
 0x1ad   :  { %1874 = vmatprep.subr.bf16.mxu1 %v11773_v44 }
 0x1ae   :  { %1846 = vmatpush1.bf16.msra.mxu0 %v11804_v12 }
 0x1af   :  { %1821 = vmatmul.mubr.bf16.vlgmr.msra.gmra.mxu1 %v14028_v45  ;;  %1917 = vmatprep.subr.bf16.mxu0 %v11815_v14 }
 0x1b0   :  { %1875 = vmatpush1.bf16.msra.mxu1 %v11771_v48  ;;  %1906 = vmatprep.mubr.bf16.mxu1 %v13790_v1  ;;  %v11854_v48 = vld [vmem:[#allocation10 + $0x24] ss:$48 sps:$4 sm:$0xff]  }
 0x1b1   :  { %1876 = vmatprep.subr.bf16.mxu1 %v11779_v49  ;;  %1864 = vmatmul.mubr.bf16.vlgmr.msra.gmra.mxu0 %v14028_v45  ;;  %v11855_v49 = vld [vmem:[#allocation10 + $0x88] ss:$48 sps:$4 sm:$0xff]  }
 0x1b2   :  { %v14034_v15 = vpop.f32.mrf.mxu0  ;;  %1918 = vmatpush1.bf16.msra.mxu0 %v11813_v17  ;;  %1949 = vmatprep.mubr.bf16.mxu0 %v13790_v1 }
 0x1b3   :  { %1919 = vmatprep.subr.bf16.mxu0 %v11818_v18 }
 0x1b4   :  { %1877 = vmatpush1.bf16.msra.mxu1 %v11777_v52  ;;  %v14036_v20 = vpop.f32.mrf.mxu0  ;;  %v11852_v52 = vld [vmem:[#allocation10 + $0x20] ss:$48 sps:$4 sm:$0xff]  }
 0x1b5   :  { %1878 = vmatprep.subr.bf16.mxu1 %v11785_v53  ;;  %v11858_v53 = vld [vmem:[#allocation10 + $0x28] ss:$48 sps:$4 sm:$0xff]  }
 0x1b6   :  { %v14039_v25 = vpop.f32.mrf.mxu0  ;;  %1920 = vmatpush1.bf16.msra.mxu0 %v11816_v22 }
 0x1b7   :  { %1921 = vmatprep.subr.bf16.mxu0 %v11824_v23 }
 0x1b8   :  { %1879 = vmatpush1.bf16.msra.mxu1 %v11783_v56  ;;  %v14044_v30 = vpop.f32.mrf.mxu0 }
 0x1b9   :  { %1880 = vmatprep.subr.bf16.mxu1 %v11791_v57 }
 0x1ba   :  { %v508_v35 = vpop.f32.mrf.mxu0  ;;  %1922 = vmatpush1.bf16.msra.mxu0 %v11822_v27 }
 0x1bb   :  { %1923 = vmatprep.subr.bf16.mxu0 %v11830_v28 }
 0x1bc   :  { %1881 = vmatpush1.bf16.msra.mxu1 %v11789_v60 }
 0x1bd   :  { %1882 = vmatprep.subr.bf16.mxu1 %v11797_v61 }
 0x1be   :  { %1924 = vmatpush1.bf16.msra.mxu0 %v11828_v32  ;;  %v11866_v32 = vld [vmem:[#allocation19 + $0x454] ss:$24 sps:$4 sm:$0xff]  }
 0x1bf   :  { %1925 = vmatprep.subr.bf16.mxu0 %v11836_v33  ;;  %v11869_v33 = vld [vmem:[#allocation19 + $0x124] ss:$24 sps:$4 sm:$0xff]  }
 0x1c0   :  { %1883 = vmatpush1.bf16.msra.mxu1 %v11795_v0 }
 0x1c1   :  { %1884 = vmatprep.subr.bf16.mxu1 %v11803_v2 }
 0x1c2   :  { %1926 = vmatpush1.bf16.msra.mxu0 %v11834_v37  ;;  %v11875_v37 = vld [vmem:[#allocation19 + $0xf4] ss:$24 sps:$4 sm:$0xff]  }
 0x1c3   :  { %1927 = vmatprep.subr.bf16.mxu0 %v11842_v38  ;;  %v11878_v38 = vld [vmem:[#allocation19 + $0x3f4] ss:$24 sps:$4 sm:$0xff]  }
 0x1c4   :  { %1885 = vmatpush1.bf16.msra.mxu1 %v11801_v6 }
 0x1c5   :  { %1886 = vmatprep.subr.bf16.mxu1 %v11809_v7 }
 0x1c6   :  { %1928 = vmatpush1.bf16.msra.mxu0 %v11840_v41  ;;  %v11884_v41 = vld [vmem:[#allocation19 + $0x3c4] ss:$24 sps:$4 sm:$0xff]  }
 0x1c7   :  { %1929 = vmatprep.subr.bf16.mxu0 %v11848_v42  ;;  %v11879_v42 = vld [vmem:[#allocation19 + $0xc0] ss:$24 sps:$4 sm:$0xff]  }
 0x1c8   :  { %1887 = vmatpush1.bf16.msra.mxu1 %v11807_v10 }
 0x1c9   :  { %1888 = vmatprep.subr.bf16.mxu1 %v11812_v11 }
 0x1ca   :  { %1930 = vmatpush1.bf16.msra.mxu0 %v11846_v47  ;;  %v11885_v47 = vld [vmem:[#allocation19 + $0x90] ss:$24 sps:$4 sm:$0xff]  }
 0x1cb   :  { %1931 = vmatprep.subr.bf16.mxu0 %v11854_v48  ;;  %v11888_v48 = vld [vmem:[#allocation19 + $0x390] ss:$24 sps:$4 sm:$0xff]  }
 0x1cc   :  { %1889 = vmatpush1.bf16.msra.mxu1 %v11810_v13 }
 0x1cd   :  { %1960 = vmatprep.subr.bf16.mxu1 %v11821_v16 }
 0x1ce   :  { %1932 = vmatpush1.bf16.msra.mxu0 %v11852_v52  ;;  %v11894_v52 = vld [vmem:[#allocation19 + $0x360] ss:$24 sps:$4 sm:$0xff]  }
 0x1cf   :  { %1907 = vmatmul.mubr.bf16.vlgmr.msra.gmra.mxu1 %v14028_v45 }
 0x1d0   :  { %1961 = vmatpush1.bf16.msra.mxu1 %v11819_v19  ;;  %1992 = vmatprep.mubr.bf16.mxu1 %v13790_v1  ;;  %v510_v1 = vpop.f32.mrf.mxu0 }
 0x1d1   :  { %1962 = vmatprep.subr.bf16.mxu1 %v11827_v21  ;;  %1950 = vmatmul.mubr.bf16.vlgmr.msra.gmra.mxu0 %v14028_v45 }
 0x1d2   :  { %v512_v44 = vpop.f32.mrf.mxu0 }
 0x1d4   :  { %1963 = vmatpush1.bf16.msra.mxu1 %v11825_v24  ;;  %v514_v50 = vpop.f32.mrf.mxu0 }
 0x1d5   :  { %1964 = vmatprep.subr.bf16.mxu1 %v11833_v26 }
 0x1d6   :  { %v551_v54 = vpop.f32.mrf.mxu0 }
 0x1d8   :  { %1965 = vmatpush1.bf16.msra.mxu1 %v11831_v29  ;;  %v553_v55 = vpop.f32.mrf.mxu0  ;;  %v11861_v29 = vld [vmem:[#allocation19 + $0x150] ss:$24 sps:$4 sm:$0xff]  }
 0x1d9   :  { %1966 = vmatprep.subr.bf16.mxu1 %v11839_v31  ;;  %v11864_v31 = vld [vmem:[#allocation19 + $0x450] ss:$24 sps:$4 sm:$0xff]  }
 0x1da   :  { %v555_v57 = vpop.f32.mrf.mxu0 }
 0x1dc   :  { %1967 = vmatpush1.bf16.msra.mxu1 %v11837_v34  ;;  %v557_v59 = vpop.f32.mrf.mxu0  ;;  %v11872_v34 = vld [vmem:[#allocation19 + $0x424] ss:$24 sps:$4 sm:$0xff]  }
 0x1dd   :  { %1968 = vmatprep.subr.bf16.mxu1 %v11845_v36  ;;  %v11870_v36 = vld [vmem:[#allocation19 + $0x420] ss:$24 sps:$4 sm:$0xff]  }
 0x1e0   :  { %1969 = vmatpush1.bf16.msra.mxu1 %v11843_v39  ;;  %v11873_v39 = vld [vmem:[#allocation19 + $0xf0] ss:$24 sps:$4 sm:$0xff]  }
 0x1e1   :  { %1970 = vmatprep.subr.bf16.mxu1 %v11851_v40  ;;  %v11881_v40 = vld [vmem:[#allocation19 + $0xc4] ss:$24 sps:$4 sm:$0xff]  }
 0x1e4   :  { %1971 = vmatpush1.bf16.msra.mxu1 %v11849_v43  ;;  %v11882_v43 = vld [vmem:[#allocation19 + $0x3c0] ss:$24 sps:$4 sm:$0xff]  }
 0x1e5   :  { %1972 = vmatprep.subr.bf16.mxu1 %v11857_v46  ;;  %v11890_v46 = vld [vmem:[#allocation19 + $0x394] ss:$24 sps:$4 sm:$0xff]  }
 0x1e8   :  { %1973 = vmatpush1.bf16.msra.mxu1 %v11855_v49  ;;  %v11893_v49 = vld [vmem:[#allocation19 + $0x64] ss:$24 sps:$4 sm:$0xff]  }
 0x1e9   :  { %1974 = vmatprep.subr.bf16.mxu1 %v11860_v51  ;;  %v11891_v51 = vld [vmem:[#allocation19 + $0x60] ss:$24 sps:$4 sm:$0xff]  }
 0x1ec   :  { %1975 = vmatpush1.bf16.msra.mxu1 %v11858_v53  ;;  %v11899_v53 = vld [vmem:[#allocation19 + $0x34] ss:$24 sps:$4 sm:$0xff]  }
 0x1ed   :  { %4168 = vmatprep.subr.bf16.mxu1 %v11866_v32 }
 0x1ef   :  { %1993 = vmatmul.mubr.bf16.vlgmr.msra.gmra.mxu1 %v14028_v45 }
 0x1f0   :  { %4169 = vmatpush1.bf16.msra.mxu1 %v11864_v31 }
 0x1f1   :  { %4170 = vmatprep.subr.bf16.mxu1 %v11872_v34 }
 0x1f4   :  { %4171 = vmatpush1.bf16.msra.mxu1 %v11870_v36 }
 0x1f5   :  { %4172 = vmatprep.subr.bf16.mxu1 %v11878_v38 }
 0x22f   :  { %v834_v56 = vpop.f32.mrf.mxu1  ;;  %v877_v61 = vpop.f32.mrf.mxu0 }
 0x230   :  { %v14052_v0 = vadd.f32 %v834_v56, %v14034_v15  ;;  %v14059_v6 = vadd.f32 %v877_v61, %v508_v35  ;;  %v11867_v35 = vld [vmem:[#allocation19 + $0x120] ss:$24 sps:$4 sm:$0xff]   ;;  %v11900_v56 = vld [vmem:[#allocation19 + $0x330] ss:$24 sps:$4 sm:$0xff]   ;;  %v11911_v61 = vld [vmem:[#allocation19 + $0x2d4] ss:$24 sps:$4 sm:$0xff]  }
 0x231   :  { %v836_v58 = vpop.f32.mrf.mxu1  ;;  %v879_v2 = vpop.f32.mrf.mxu0 }
 0x232   :  { %v14049_v62 = vadd.f32 %v836_v58, %v14036_v20  ;;  %v14067_v10 = vadd.f32 %v879_v2, %v510_v1  ;;  %v11876_v1 = vld [vmem:[#allocation19 + $0x3f0] ss:$24 sps:$4 sm:$0xff]   ;;  %v11908_v58 = vld [vmem:[#allocation19 + $0x304] ss:$24 sps:$4 sm:$0xff]  }
 0x233   :  { %v838_v60 = vpop.f32.mrf.mxu1  ;;  %v881_v7 = vpop.f32.mrf.mxu0  ;;  %4173 = vmatpush1.bf16.msra.mxu1 %v11876_v1  ;;  %v11909_v2 = vld [vmem:[#allocation19 + $0x2d0] ss:$24 sps:$4 sm:$0xff]  }
 0x234   :  { %v931_v4 = vadd.f32 %v14049_v62, %v14052_v0  ;;  %v14062_v45 = vadd.f32 %v838_v60, %v14039_v25  ;;  %v14069_v11 = vadd.f32 %v881_v7, %v512_v44  ;;  %v11887_v44 = vld [vmem:[#allocation19 + $0x94] ss:$24 sps:$4 sm:$0xff]   ;;  %4174 = vmatprep.subr.bf16.mxu1 %v11884_v41  ;;  %v11906_v60 = vld [vmem:[#allocation19 + $0x300] ss:$24 sps:$4 sm:$0xff]  }
 0x235   :  { %v840_v63 = vpop.f32.mrf.mxu1  ;;  %v883_v12 = vpop.f32.mrf.mxu0 }
 0x236   :  { %v14057_v5 = vadd.f32 %v840_v63, %v14044_v30  ;;  %v932_v8 = vadd.f32 %v931_v4, %v14059_v6  ;;  %v14075_v18 = vadd.f32 %v883_v12, %v514_v50  ;;  %v11863_v30 = vld [vmem:[#allocation19 + $0x154] ss:$24 sps:$4 sm:$0xff]   ;;  %v11896_v50 = vld [vmem:[#allocation19 + $0x364] ss:$24 sps:$4 sm:$0xff]   ;;  %v11912_v4 = vld [vmem:[#allocation19 + $0x5d0] ss:$24 sps:$4 sm:$0xff]  }
 0x237   :  { %4125 = vmatprep.subr.bf16.mxu0 %v11863_v30  ;;  %4175 = vmatpush1.bf16.msra.mxu1 %v11882_v43  ;;  %v11914_v63 = vld [vmem:[#allocation19 + $0x5d4] ss:$24 sps:$4 sm:$0xff]   ;;  %v14095_v12 = vsub.s32 6, %v13988_v3 }
 0x238   :  { %v938_v9 = vadd.f32 %v14057_v5, %v14062_v45  ;;  %v933_v14 = vadd.f32 %v932_v8, %v14067_v10  ;;  %4126 = vmatpush1.bf16.msra.mxu0 %v11861_v29  ;;  %4176 = vmatprep.subr.bf16.mxu1 %v11890_v46 }
 0x239   :  { %4127 = vmatprep.subr.bf16.mxu0 %v11869_v33 }
 0x23a   :  { %v939_v15 = vadd.f32 %v938_v9, %v14069_v11 }
 0x23b   :  { %4177 = vmatpush1.bf16.msra.mxu1 %v11888_v48 }
 0x23c   :  { %v940_v22 = vadd.f32 %v939_v15, %v14075_v18  ;;  %4128 = vmatpush1.bf16.msra.mxu0 %v11867_v35  ;;  %4178 = vmatprep.subr.bf16.mxu1 %v11896_v50 }
 0x23d   :  { %4129 = vmatprep.subr.bf16.mxu0 %v11875_v37 }
 0x23f   :  { %4179 = vmatpush1.bf16.msra.mxu1 %v11894_v52 }
 0x240   :  { %4130 = vmatpush1.bf16.msra.mxu0 %v11873_v39 }
 0x241   :  { %4131 = vmatprep.subr.bf16.mxu0 %v11881_v40 }
 0x244   :  { %4132 = vmatpush1.bf16.msra.mxu0 %v11879_v42 }
 0x245   :  { %4133 = vmatprep.subr.bf16.mxu0 %v11887_v44 }
 0x248   :  { %4134 = vmatpush1.bf16.msra.mxu0 %v11885_v47 }
 0x249   :  { %4135 = vmatprep.subr.bf16.mxu0 %v11893_v49 }
 0x24c   :  { %4136 = vmatpush1.bf16.msra.mxu0 %v11891_v51 }
 0x24d   :  { %4137 = vmatprep.subr.bf16.mxu0 %v11899_v53 }
 0x24f   :  { %v920_v13 = vpop.f32.mrf.mxu1 }
 0x250   :  { %v14073_v16 = vadd.f32 %v920_v13, %v551_v54  ;;  %v11902_v54 = vld [vmem:[#allocation19 + $0x334] ss:$24 sps:$4 sm:$0xff]   ;;  %v14097_v13 = vld [vmem:[#allocation11] sm:$0xff] }
 0x251   :  { %v922_v17 = vpop.f32.mrf.mxu1  ;;  %4180 = vmatprep.subr.bf16.mxu1 %v11902_v54  ;;  %v14103_v15 = vrot.slane %v14097_v13, %v14095_v12 }
 0x252   :  { %v14077_v19 = vadd.f32 %v922_v17, %v553_v55  ;;  %v934_v20 = vadd.f32 %v933_v14, %v14073_v16  ;;  %v11897_v55 = vld [vmem:[#allocation19 + $0x30] ss:$24 sps:$4 sm:$0xff]   ;;  %4181 = vmatpush1.bf16.msra.mxu1 %v11900_v56  ;;  %v14183_v56 = vsub.s32 0, %v13988_v3 }
 0x253   :  { %v924_v21 = vpop.f32.mrf.mxu1  ;;  %4138 = vmatpush1.bf16.msra.mxu0 %v11897_v55  ;;  %4182 = vmatprep.subr.bf16.mxu1 %v11908_v58  ;;  %v11920_v58 = vld [vmem:[#allocation19 + $0x5a4] ss:$24 sps:$4 sm:$0xff]  }
 0x254   :  { %v14081_v23 = vadd.f32 %v924_v21, %v555_v57  ;;  %v935_v24 = vadd.f32 %v934_v20, %v14077_v19  ;;  %v11905_v57 = vld [vmem:[#allocation19 + $0x4] ss:$24 sps:$4 sm:$0xff]   ;;  %15439 = vst [vmem:[#allocation58_spill] sm:$0xff] %v14183_v56 }
 0x255   :  { %v926_v25 = vpop.f32.mrf.mxu1  ;;  %4139 = vmatprep.subr.bf16.mxu0 %v11905_v57  ;;  %v11917_v57 = vld [vmem:[#allocation19 + $0x2a4] ss:$24 sps:$4 sm:$0xff]  }
 0x256   :  { %v941_v26 = vadd.f32 %v940_v22, %v14081_v23  ;;  %v14085_v27 = vadd.f32 %v926_v25, %v557_v59  ;;  %936 = vadd.xlane.f32.xlu1 %v935_v24  ;;  %v11903_v59 = vld [vmem:[#allocation19] ss:$24 sps:$4 sm:$0xff]   ;;  %4183 = vmatpush1.bf16.msra.mxu1 %v11906_v60  ;;  %v14108_v24 = vpop.f32.mrf.mxu0 }
 0x257   :  { %4140 = vmatpush1.bf16.msra.mxu0 %v11903_v59  ;;  %4184 = vmatprep.subr.bf16.mxu1 %v11914_v63  ;;  %15432 = vst [vmem:[#allocation51_spill] sm:$0xff] %v14108_v24  ;;  %v11918_v63 = vld [vmem:[#allocation19 + $0x5a0] ss:$24 sps:$4 sm:$0xff]  }
 0x258   :  { %v942_v28 = vadd.f32 %v941_v26, %v14085_v27  ;;  %4141 = vmatprep.subr.bf16.mxu0 %v11911_v61  ;;  %v14126_v34 = vpop.f32.mrf.mxu0  ;;  %v11915_v61 = vld [vmem:[#allocation19 + $0x2a0] ss:$24 sps:$4 sm:$0xff]  }
 0x259   :  { %15433 = vst [vmem:[#allocation52_spill] sm:$0xff] %v14126_v34 }
 0x25a   :  { %943 = vadd.xlane.f32.xlu1 %v942_v28  ;;  %4185 = vmatpush2.bf16.msra.mxu1 %v11912_v4  ;;  %v14154_v1 = vpop.f32.mrf.mxu0  ;;  %v14191_v4 = vsub.s32 1, %v13988_v3 }
 0x25b   :  { %4142 = vmatpush2.bf16.msra.mxu0 %v11909_v2  ;;  %15434 = vst [vmem:[#allocation53_spill] sm:$0xff] %v14154_v1  ;;  %v14188_v2 = vsub.s32 7, %v13988_v3  ;;  %4186 = vmatprep.subr.bf16.mxu1 %v11920_v58 }
 0x25c   :  { %v14170_v48 = vpop.f32.mrf.mxu0  ;;  %4143 = vmatprep.subr.bf16.mxu0 %v11917_v57  ;;  %15442 = vst [vmem:[#allocation61_spill] sm:$0xff] %v14191_v4 }
 0x25d   :  { %15435 = vst [vmem:[#allocation54_spill] sm:$0xff] %v14170_v48  ;;  %15441 = vst [vmem:[#allocation60_spill] sm:$0xff] %v14188_v2 }
 0x25e   :  { %4187 = vmatpush2.bf16.msra.mxu1 %v11918_v63  ;;  %v11938_v63 = vld [vmem:[#allocation19 + $0x514] ss:$24 sps:$4 sm:$0xff]  }
 0x25f   :  { %4144 = vmatpush2.bf16.msra.mxu0 %v11915_v61 }
 0x26f   :  { %v14088_v7 = vpop.f32.mrf.mxu1 }
 0x270   :  { %15427 = vst [vmem:[#allocation46_spill] sm:$0xff] %v14088_v7 }
 0x271   :  { %v14090_v8 = vpop.f32.mrf.mxu1  ;;  %v14176_v53 = vpop.f32.mrf.mxu0 }
 0x272   :  { %15428 = vst [vmem:[#allocation47_spill] sm:$0xff] %v14090_v8  ;;  %15436 = vst [vmem:[#allocation55_spill] sm:$0xff] %v14176_v53 }
 0x273   :  { %v14092_v9 = vpop.f32.mrf.mxu1  ;;  %v14178_v54 = vpop.f32.mrf.mxu0 }
 0x274   :  { %15429 = vst [vmem:[#allocation48_spill] sm:$0xff] %v14092_v9  ;;  %15437 = vst [vmem:[#allocation56_spill] sm:$0xff] %v14178_v54 }
 0x275   :  { %v14099_v14 = vpop.f32.mrf.mxu1  ;;  %v14180_v55 = vpop.f32.mrf.mxu0 }
 0x276   :  { %15430 = vst [vmem:[#allocation49_spill] sm:$0xff] %v14099_v14  ;;  %15438 = vst [vmem:[#allocation57_spill] sm:$0xff] %v14180_v55 }
 0x277   :  { %v14185_v59 = vpop.f32.mrf.mxu0 }
 0x278   :  { %15440 = vst [vmem:[#allocation59_spill] sm:$0xff] %v14185_v59 }
 0x28f   :  { %v1908_v17 = vpop.f32.mrf.mxu1 }
 0x290   :  { %v14106_v20 = vadd.f32 %v1908_v17, %v14103_v15  ;;  %v14194_v17 = vsub.s32 2, %v13988_v3 }
 0x291   :  { %v1910_v60 = vpop.f32.mrf.mxu1 }
 0x292   :  { %15431 = vst [vmem:[#allocation50_spill] sm:$0xff] %v14106_v20  ;;  %15443 = vst [vmem:[#allocation62_spill] sm:$0xff] %v14194_v17 }
 0x2df   :  { %v937_v21 = vpop.xlane.xlu1 %936 }
 0x2e0   :  { %v946_v22 = vmul.f32 0.0013020834, %v937_v21  ;;  %v1912_v21 = vpop.f32.mrf.mxu1 }
 0x2e2   :  { %v14111_v25 = vsub.f32 %v14052_v0, %v946_v22  ;;  %v14114_v26 = vsub.f32 %v14049_v62, %v946_v22  ;;  %v14117_v28 = vsub.f32 %v14059_v6, %v946_v22  ;;  %v14120_v30 = vsub.f32 %v14067_v10, %v946_v22 }
 0x2e3   :  { %v944_v29 = vpop.xlane.xlu1 %943  ;;  %v14129_v0 = vsub.f32 %v14073_v16, %v946_v22  ;;  %v14143_v37 = vsub.f32 %v14077_v19, %v946_v22  ;;  %v1202_v22 = vld [vmem:[#allocation11 + $0x8] sm:$0xf] }
 0x2e4   :  { %v947_v31 = vmul.f32 0.0013020834, %v944_v29  ;;  %v960_v32 = vmul.f32 %v14111_v25, %v14111_v25  ;;  %v961_v33 = vmul.f32 %v14114_v26, %v14114_v26  ;;  %v962_v62 = vmul.f32 %v14117_v28, %v14117_v28  ;;  %v1951_v29 = vpop.f32.mrf.mxu0 }
 0x2e5   :  { %v963_v16 = vmul.f32 %v14120_v30, %v14120_v30  ;;  %v965_v42 = vmul.f32 %v14143_v37, %v14143_v37 }
 0x2e6   :  { %v972_v6 = vadd.f32 %v961_v33, %v960_v32  ;;  %v14134_v35 = vsub.f32 %v14062_v45, %v947_v31  ;;  %v14137_v10 = vsub.f32 %v14057_v5, %v947_v31  ;;  %v14140_v36 = vsub.f32 %v14069_v11, %v947_v31 }
 0x2e7   :  { %v14148_v39 = vsub.f32 %v14075_v18, %v947_v31  ;;  %v964_v11 = vmul.f32 %v14129_v0, %v14129_v0  ;;  %v14159_v40 = vsub.f32 %v14081_v23, %v947_v31  ;;  %v14166_v44 = vsub.f32 %v14085_v27, %v947_v31 }
 0x2e8   :  { %v973_v38 = vadd.f32 %v972_v6, %v962_v62  ;;  %v966_v45 = vmul.f32 %v14134_v35, %v14134_v35  ;;  %v967_v5 = vmul.f32 %v14137_v10, %v14137_v10  ;;  %v968_v41 = vmul.f32 %v14140_v36, %v14140_v36  ;;  %v11923_v6 = vld [vmem:[#allocation19 + $0x274] ss:$24 sps:$4 sm:$0xff]  }
 0x2e9   :  { %v969_v46 = vmul.f32 %v14148_v39, %v14148_v39  ;;  %v970_v23 = vmul.f32 %v14159_v40, %v14159_v40  ;;  %v971_v51 = vmul.f32 %v14166_v44, %v14166_v44  ;;  %v14197_v31 = vsub.s32 3, %v13988_v3  ;;  %4145 = vmatprep.subr.bf16.mxu0 %v11923_v6  ;;  %v11936_v6 = vld [vmem:[#allocation19 + $0x510] ss:$24 sps:$4 sm:$0xff]  }
 0x2ea   :  { %v974_v19 = vadd.f32 %v973_v38, %v963_v16  ;;  %v979_v18 = vadd.f32 %v967_v5, %v966_v45  ;;  %v1236_v32 = vrot.slane %v14097_v13, %v14188_v2  ;;  %v14202_v33 = vadd.f32 %v1912_v21, %v14103_v15  ;;  %v11926_v16 = vld [vmem:[#allocation19 + $0x574] ss:$24 sps:$4 sm:$0xff]   ;;  %v1914_v38 = vpop.f32.mrf.mxu1  ;;  %v1953_v45 = vpop.f32.mrf.mxu0  ;;  %v11921_v5 = vld [vmem:[#allocation19 + $0x270] ss:$24 sps:$4 sm:$0xff]  }
 0x2eb   :  { %15444 = vst [vmem:[#allocation63_spill] sm:$0xff] %v14197_v31  ;;  %v1240_v62 = vrot.slane %v1202_v22, %v14183_v56  ;;  %4188 = vmatprep.subr.bf16.mxu1 %v11926_v16  ;;  %v1244_v13 = vrot.slane %v1202_v22, %v14191_v4  ;;  %4146 = vmatpush2.bf16.msra.mxu0 %v11921_v5  ;;  %v11944_v5 = vld [vmem:[#allocation19 + $0x4e4] ss:$24 sps:$4 sm:$0xff]  }
 0x2ec   :  { %v975_v43 = vadd.f32 %v974_v19, %v964_v11  ;;  %v980_v47 = vadd.f32 %v979_v18, %v968_v41  ;;  %15445 = vst [vmem:[#allocation64_spill] sm:$0xff] %v14202_v33  ;;  %v11924_v11 = vld [vmem:[#allocation19 + $0x570] ss:$24 sps:$4 sm:$0xff]   ;;  %v14205_v19 = vadd.f32 %v1910_v60, %v1236_v32  ;;  %v14209_v18 = vadd.f32 %v1914_v38, %v1236_v32  ;;  %v1955_v15 = vpop.f32.mrf.mxu0 }
 0x2ed   :  { %v14207_v41 = vadd.f32 %v1951_v29, %v1240_v62  ;;  %4189 = vmatpush2.bf16.msra.mxu1 %v11924_v11  ;;  %v14218_v57 = vadd.f32 %v1953_v45, %v1244_v13  ;;  %v11941_v45 = vld [vmem:[#allocation19 + $0x1e4] ss:$24 sps:$4 sm:$0xff]  }
 0x2ee   :  { %v976_v49 = vadd.f32 %v975_v43, %v965_v42  ;;  %v981_v50 = vadd.f32 %v980_v47, %v969_v46  ;;  %15446 = vst [vmem:[#allocation65_spill] sm:$0xff] %v14205_v19  ;;  %15448 = vst [vmem:[#allocation67_spill] sm:$0xff] %v14209_v18  ;;  %v1248_v42 = vrot.slane %v1202_v22, %v14194_v17  ;;  %v1994_v43 = vpop.f32.mrf.mxu1  ;;  %v11927_v46 = vld [vmem:[#allocation19 + $0x240] ss:$24 sps:$4 sm:$0xff]   ;;  %v11929_v47 = vld [vmem:[#allocation19 + $0x244] ss:$24 sps:$4 sm:$0xff]   ;;  %v1957_v60 = vpop.f32.mrf.mxu0 }
 0x2ef   :  { %15447 = vst [vmem:[#allocation66_spill] sm:$0xff] %v14207_v41  ;;  %15450 = vst [vmem:[#allocation69_spill] sm:$0xff] %v14218_v57  ;;  %4147 = vmatprep.subr.bf16.mxu0 %v11929_v47  ;;  %v14223_v29 = vadd.f32 %v1957_v60, %v1244_v13  ;;  %v11951_v60 = vld [vmem:[#allocation19 + $0x180] ss:$24 sps:$4 sm:$0xff]  }
 0x2f0   :  { %977 = vadd.xlane.f32.xlu0 %v976_v49  ;;  %v982_v52 = vadd.f32 %v981_v50, %v970_v23  ;;  %v11930_v49 = vld [vmem:[#allocation19 + $0x540] ss:$24 sps:$4 sm:$0xff]   ;;  %v2172_v23 = vadd.f32 %v14209_v18, %v14202_v33  ;;  %v14215_v50 = vadd.f32 %v1955_v15, %v1240_v62  ;;  %v14220_v58 = vadd.f32 %v1994_v43, %v1248_v42  ;;  %v1996_v61 = vpop.f32.mrf.mxu1 }
 0x2f1   :  { %15452 = vst [vmem:[#allocation71_spill] sm:$0xff] %v14223_v29  ;;  %4148 = vmatpush2.bf16.msra.mxu0 %v11927_v46  ;;  %v11939_v43 = vld [vmem:[#allocation19 + $0x1e0] ss:$24 sps:$4 sm:$0xff]  }
 0x2f2   :  { %v983_v27 = vadd.f32 %v982_v52, %v971_v51  ;;  %15449 = vst [vmem:[#allocation68_spill] sm:$0xff] %v14215_v50  ;;  %v1252_v51 = vrot.slane %v1202_v22, %v14197_v31  ;;  %v11932_v52 = vld [vmem:[#allocation19 + $0x544] ss:$24 sps:$4 sm:$0xff]   ;;  %15451 = vst [vmem:[#allocation70_spill] sm:$0xff] %v14220_v58  ;;  %v2173_v21 = vadd.f32 %v2172_v23, %v14215_v50  ;;  %v1998_v62 = vpop.f32.mrf.mxu1  ;;  %v11933_v22 = vld [vmem:[#allocation19 + $0x210] ss:$24 sps:$4 sm:$0xff]  }
 0x2f3   :  { %4190 = vmatprep.subr.bf16.mxu1 %v11932_v52  ;;  %v14228_v38 = vadd.f32 %v1998_v62, %v1248_v42  ;;  %v11942_v46 = vld [vmem:[#allocation19 + $0x4e0] ss:$24 sps:$4 sm:$0xff]   ;;  %v11950_v42 = vld [vmem:[#allocation19 + $0x4b4] ss:$24 sps:$4 sm:$0xff]   ;;  %v11945_v23 = vld [vmem:[#allocation19 + $0x1b0] ss:$24 sps:$4 sm:$0xff]  }
 0x2f4   :  { %984 = vadd.xlane.f32.xlu1 %v983_v27  ;;  %v11935_v27 = vld [vmem:[#allocation19 + $0x214] ss:$24 sps:$4 sm:$0xff]   ;;  %v14225_v32 = vadd.f32 %v1996_v61, %v1252_v51  ;;  %4191 = vmatpush2.bf16.msra.mxu1 %v11930_v49  ;;  %v2174_v16 = vadd.f32 %v2173_v21, %v14223_v29  ;;  %v2000_v11 = vpop.f32.mrf.mxu1  ;;  %v11948_v52 = vld [vmem:[#allocation19 + $0x4b0] ss:$24 sps:$4 sm:$0xff]   ;;  %v11954_v61 = vld [vmem:[#allocation19 + $0x480] ss:$24 sps:$4 sm:$0xff]  }
 0x2f5   :  { %15454 = vst [vmem:[#allocation73_spill] sm:$0xff] %v14228_v38  ;;  %4149 = vmatprep.subr.bf16.mxu0 %v11935_v27  ;;  %4192 = vmatprep.subr.bf16.mxu1 %v11938_v63  ;;  %v14231_v15 = vadd.f32 %v2000_v11, %v1252_v51  ;;  %v11947_v49 = vld [vmem:[#allocation19 + $0x1b4] ss:$24 sps:$4 sm:$0xff]   ;;  %v11953_v27 = vld [vmem:[#allocation19 + $0x184] ss:$24 sps:$4 sm:$0xff]   ;;  %v14235_v11 = vsub.s32 5, %v13988_v3 }
 0x2f6   :  { %15453 = vst [vmem:[#allocation72_spill] sm:$0xff] %v14225_v32  ;;  %v2175_v13 = vadd.f32 %v2174_v16, %v14228_v38  ;;  %4150 = vmatpush2.bf16.msra.mxu0 %v11933_v22  ;;  %v11956_v51 = vld [vmem:[#allocation19 + $0x484] ss:$24 sps:$4 sm:$0xff]   ;;  %v11959_v63 = vld [vmem:[#allocation19 + $0x754] ss:$24 sps:$4 sm:$0xff]  }
 0x2f7   :  { %15455 = vst [vmem:[#allocation74_spill] sm:$0xff] %v14231_v15  ;;  %4151 = vmatprep.subr.bf16.mxu0 %v11941_v45  ;;  %v11962_v21 = vld [vmem:[#allocation19 + $0x15c] ss:$24 sps:$4 sm:$0xff]   ;;  %15456 = vst [vmem:[#allocation75_spill] sm:$0xff] %v14235_v11 }
 0x2f8   :  { %4193 = vmatpush2.bf16.msra.mxu1 %v11936_v6  ;;  %v2176_v47 = vadd.f32 %v2175_v13, %v14231_v15  ;;  %v929_v13 = vld [vmem:[#allocation7] sm:$0x3f] }
 0x2f9   :  { %4194 = vmatprep.subr.bf16.mxu1 %v11944_v5 }
 0x2fa   :  { %2177 = vadd.xlane.f32.xlu0 %v2176_v47  ;;  %4152 = vmatpush2.bf16.msra.mxu0 %v11939_v43  ;;  %v14238_v43 = vsub.s32 4, %v13988_v3  ;;  %v1012_v47 = vrot.slane %v929_v13, %v14191_v4 }
 0x2fb   :  { %4153 = vmatprep.subr.bf16.mxu0 %v11947_v49  ;;  %v1020_v49 = vrot.slane %v929_v13, %v14197_v31 }
 0x2fc   :  { %4195 = vmatpush2.bf16.msra.mxu1 %v11942_v46  ;;  %15457 = vst [vmem:[#allocation76_spill] sm:$0xff] %v14238_v43  ;;  %v930_v46 = vld [vmem:[#allocation8] sm:$0x3f]  ;;  %v1024_v3 = vrot.slane %v929_v13, %v14238_v43 }
 0x2fd   :  { %4196 = vmatprep.subr.bf16.mxu1 %v11950_v42  ;;  %v1008_v42 = vrot.slane %v929_v13, %v14183_v56 }
 0x2fe   :  { %4154 = vmatpush2.bf16.msra.mxu0 %v11945_v23  ;;  %v1016_v23 = vrot.slane %v929_v13, %v14194_v17 }
 0x2ff   :  { %4155 = vmatprep.subr.bf16.mxu0 %v11953_v27 }
 0x300   :  { %4197 = vmatpush2.bf16.msra.mxu1 %v11948_v52  ;;  %v1028_v52 = vrot.slane %v929_v13, %v14235_v11 }
 0x301   :  { %4198 = vmatprep.subr.bf16.mxu1 %v11956_v51  ;;  %v1055_v51 = vrot.slane %v930_v46, %v14191_v4 }
 0x302   :  { %4156 = vmatpush2.bf16.msra.mxu0 %v11951_v60  ;;  %v1063_v60 = vrot.slane %v930_v46, %v14197_v31 }
 0x303   :  { %4211 = vmatprep.subr.bf16.mxu0 %v11959_v63 }
 0x304   :  { %4199 = vmatpush2.bf16.msra.mxu1 %v11954_v61  ;;  %v1051_v61 = vrot.slane %v930_v46, %v14183_v56 }
 0x305   :  { %4254 = vmatprep.subr.bf16.mxu1 %v11962_v21 }
 0x379   :  { %v978_v62 = vpop.xlane.xlu0 %977 }
 0x37a   :  { %v986_v22 = vmul.f32 0.0013020834, %v978_v62 }
 0x37c   :  { %v988_v6 = vadd.f32 1e-12, %v986_v22 }
 0x37d   :  { %v985_v16 = vpop.xlane.xlu1 %984 }
 0x37e   :  { %13253 = vrsqrt.f32 %v988_v6  ;;  %v987_v45 = vmul.f32 0.0013020834, %v985_v16  ;;  %v1059_v6 = vrot.slane %v930_v46, %v14194_v17 }
 0x380   :  { %v989_v5 = vadd.f32 1e-12, %v987_v45  ;;  %v1071_v45 = vrot.slane %v930_v46, %v14235_v11 }
 0x382   :  { %13255 = vrsqrt.f32 %v989_v5 }
 0x38b   :  { %v13254_v27 = vpop.eup %13253 }
 0x38c   :  { %v993_v63 = vmul.f32 %v13254_v27, %v14114_v26  ;;  %v995_v21 = vmul.f32 %v13254_v27, %v14120_v30  ;;  %v992_v62 = vmul.f32 %v13254_v27, %v14111_v25  ;;  %v994_v22 = vmul.f32 %v13254_v27, %v14117_v28 }
 0x38d   :  { %v997_v16 = vmul.f32 %v13254_v27, %v14143_v37  ;;  %v996_v5 = vmul.f32 %v13254_v27, %v14129_v0  ;;  %v1067_v30 = vrot.slane %v930_v46, %v14238_v43 }
 0x38e   :  { %v1036_v15 = vmul.f32 %v1012_v47, %v993_v63  ;;  %v1038_v38 = vmul.f32 %v1020_v49, %v995_v21  ;;  %v1035_v29 = vmul.f32 %v1008_v42, %v992_v62  ;;  %v1037_v13 = vmul.f32 %v1016_v23, %v994_v22 }
 0x38f   :  { %v13256_v50 = vpop.eup %13255  ;;  %v1040_v26 = vmul.f32 %v1028_v52, %v997_v16  ;;  %v1039_v18 = vmul.f32 %v1024_v3, %v996_v5  ;;  %v11977_v5 = vld [vmem:[#allocation19 + $0x6c4] ss:$24 sps:$4 sm:$0xff]  }
 0x390   :  { %v999_v25 = vmul.f32 %v13256_v50, %v14137_v10  ;;  %v1079_v28 = vadd.f32 %v1055_v51, %v1036_v15  ;;  %v1001_v33 = vmul.f32 %v13256_v50, %v14148_v39  ;;  %v1081_v32 = vadd.f32 %v1063_v60, %v1038_v38 }
 0x391   :  { %v998_v37 = vmul.f32 %v13256_v50, %v14134_v35  ;;  %v1078_v58 = vadd.f32 %v1051_v61, %v1035_v29  ;;  %v1000_v0 = vmul.f32 %v13256_v50, %v14140_v36  ;;  %v1080_v27 = vadd.f32 %v1059_v6, %v1037_v13  ;;  %v11980_v13 = vld [vmem:[#allocation19 + $0xcc] ss:$24 sps:$4 sm:$0xff]  }
 0x392   :  { %v1042_v63 = vmul.f32 %v1012_v47, %v999_v25  ;;  %1091 = vst [vmem:[#allocation31 + $0x8] sm:$0xff] %v1079_v28  ;;  %v1044_v21 = vmul.f32 %v1020_v49, %v1001_v33  ;;  %1093 = vst [vmem:[#allocation31 + $0x18] sm:$0xff] %v1081_v32  ;;  %v1003_v62 = vmul.f32 %v13256_v50, %v14166_v44  ;;  %v11957_v49 = vld [vmem:[#allocation19 + $0x750] ss:$24 sps:$4 sm:$0xff]   ;;  %v11983_v25 = vld [vmem:[#allocation19 + $0x694] ss:$24 sps:$4 sm:$0xff]  }
 0x393   :  { %v1083_v22 = vadd.f32 %v1071_v45, %v1040_v26  ;;  %v1041_v46 = vmul.f32 %v1008_v42, %v998_v37  ;;  %1090 = vst [vmem:[#allocation31] sm:$0xff] %v1078_v58  ;;  %v1043_v10 = vmul.f32 %v1016_v23, %v1000_v0  ;;  %1092 = vst [vmem:[#allocation31 + $0x10] sm:$0xff] %v1080_v27  ;;  %v11960_v42 = vld [vmem:[#allocation19 + $0x158] ss:$24 sps:$4 sm:$0xff]  }
 0x394   :  { %v1002_v39 = vmul.f32 %v13256_v50, %v14159_v40  ;;  %v14264_v38 = vadd.f32 %v1067_v30, %v1039_v18  ;;  %v1085_v35 = vadd.f32 %v1055_v51, %v1042_v63  ;;  %v1087_v29 = vadd.f32 %v1063_v60, %v1044_v21  ;;  %v11968_v51 = vld [vmem:[#allocation19 + $0x12c] ss:$24 sps:$4 sm:$0xff]   ;;  %v11966_v60 = vld [vmem:[#allocation19 + $0x128] ss:$24 sps:$4 sm:$0xff]   ;;  %v11984_v0 = vld [vmem:[#allocation19 + $0x98] ss:$24 sps:$4 sm:$0xff]  }
 0x395   :  { %v1046_v15 = vmul.f32 %v1028_v52, %v1003_v62  ;;  %1095 = vst [vmem:[#allocation31 + $0x28] sm:$0xff] %v1083_v22  ;;  %v1084_v36 = vadd.f32 %v1051_v61, %v1041_v46  ;;  %v1086_v47 = vadd.f32 %v1059_v6, %v1043_v10  ;;  %v11965_v52 = vld [vmem:[#allocation19 + $0x724] ss:$24 sps:$4 sm:$0xff]   ;;  %v11971_v61 = vld [vmem:[#allocation19 + $0x6f4] ss:$24 sps:$4 sm:$0xff]  }
 0x396   :  { %v1045_v16 = vmul.f32 %v1024_v3, %v1002_v39  ;;  %1094 = vst [vmem:[#allocation31 + $0x20] sm:$0xff] %v14264_v38  ;;  %1097 = vst [vmem:[#allocation31 + $0x38] sm:$0xff] %v1085_v35  ;;  %v14267_v44 = vpack.c.bf16 %v1085_v35, %v1079_v28  ;;  %v14269_v33 = vpack.c.bf16 %v1087_v29, %v1081_v32  ;;  %v11974_v3 = vld [vmem:[#allocation19 + $0xfc] ss:$24 sps:$4 sm:$0xff]   ;;  %v11969_v6 = vld [vmem:[#allocation19 + $0x6f0] ss:$24 sps:$4 sm:$0xff]  }
 0x397   :  { %1099 = vst [vmem:[#allocation31 + $0x48] sm:$0xff] %v1087_v29  ;;  %v1089_v40 = vadd.f32 %v1071_v45, %v1046_v15  ;;  %1096 = vst [vmem:[#allocation31 + $0x30] sm:$0xff] %v1084_v36  ;;  %v14271_v18 = vpack.c.bf16 %v1084_v36, %v1078_v58  ;;  %v14273_v50 = vpack.c.bf16 %v1086_v47, %v1080_v27  ;;  %v11963_v58 = vld [vmem:[#allocation19 + $0x720] ss:$24 sps:$4 sm:$0xff]   ;;  %v11986_v28 = vld [vmem:[#allocation19 + $0x9c] ss:$24 sps:$4 sm:$0xff]  }
 0x398   :  { %1098 = vst [vmem:[#allocation31 + $0x40] sm:$0xff] %v1086_v47  ;;  %v14275_v23 = vadd.f32 %v1067_v30, %v1045_v16  ;;  %4157 = vmatprep.mubr.bf16.mxu0 %v14267_v44  ;;  %4200 = vmatprep.mubr.bf16.mxu1 %v14269_v33  ;;  %v11972_v45 = vld [vmem:[#allocation19 + $0xf8] ss:$24 sps:$4 sm:$0xff]   ;;  %v11978_v30 = vld [vmem:[#allocation19 + $0xc8] ss:$24 sps:$4 sm:$0xff]  }
 0x399   :  { %1101 = vst [vmem:[#allocation31 + $0x58] sm:$0xff] %v1089_v40  ;;  %4158 = vmatmul.mubr.bf16.vlgmr.msra.gmra.mxu0 %v14271_v18  ;;  %4201 = vmatmul.mubr.bf16.vlgmr.msra.gmra.mxu1 %v14273_v50  ;;  %v14281_v32 = vpack.c.bf16 %v1089_v40, %v1083_v22  ;;  %v11975_v26 = vld [vmem:[#allocation19 + $0x6c0] ss:$24 sps:$4 sm:$0xff]   ;;  %v11981_v37 = vld [vmem:[#allocation19 + $0x690] ss:$24 sps:$4 sm:$0xff]  }
 0x39a   :  { %1100 = vst [vmem:[#allocation31 + $0x50] sm:$0xff] %v14275_v23  ;;  %4212 = vmatpush1.bf16.msra.mxu0 %v11957_v49  ;;  %4255 = vmatpush1.bf16.msra.mxu1 %v11960_v42  ;;  %v11989_v27 = vld [vmem:[#allocation19 + $0x664] ss:$24 sps:$4 sm:$0xff]   ;;  %v11987_v21 = vld [vmem:[#allocation19 + $0x660] ss:$24 sps:$4 sm:$0xff]  }
 0x39b   :  { %4243 = vmatprep.mubr.bf16.mxu0 %v14281_v32  ;;  %4286 = vmatprep.mubr.bf16.mxu1 %v14267_v44  ;;  %v11992_v63 = vld [vmem:[#allocation19 + $0x6c] ss:$24 sps:$4 sm:$0xff]   ;;  %v11990_v62 = vld [vmem:[#allocation19 + $0x68] ss:$24 sps:$4 sm:$0xff]   ;;  %v11998_v46 = vld [vmem:[#allocation19 + $0x3c] ss:$24 sps:$4 sm:$0xff]  }
 0x39c   :  { %4213 = vmatprep.subr.bf16.mxu0 %v11965_v52  ;;  %4256 = vmatprep.subr.bf16.mxu1 %v11968_v51  ;;  %v11995_v22 = vld [vmem:[#allocation19 + $0x634] ss:$24 sps:$4 sm:$0xff]   ;;  %v11993_v10 = vld [vmem:[#allocation19 + $0x630] ss:$24 sps:$4 sm:$0xff]   ;;  %v12001_v35 = vld [vmem:[#allocation19 + $0x604] ss:$24 sps:$4 sm:$0xff]  }
 0x39d   :  { %v11996_v39 = vld [vmem:[#allocation19 + $0x38] ss:$24 sps:$4 sm:$0xff]   ;;  %v12004_v29 = vld [vmem:[#allocation19 + $0xc] ss:$24 sps:$4 sm:$0xff]   ;;  %v12002_v36 = vld [vmem:[#allocation19 + $0x8] ss:$24 sps:$4 sm:$0xff]  }
 0x39e   :  { %4214 = vmatpush1.bf16.msra.mxu0 %v11963_v58  ;;  %4257 = vmatpush1.bf16.msra.mxu1 %v11966_v60  ;;  %v11999_v15 = vld [vmem:[#allocation19 + $0x600] ss:$24 sps:$4 sm:$0xff]   ;;  %v12007_v47 = vld [vmem:[#allocation19 + $0x8d4] ss:$24 sps:$4 sm:$0xff]   ;;  %v12005_v49 = vld [vmem:[#allocation19 + $0x8d0] ss:$24 sps:$4 sm:$0xff]  }
 0x39f   :  { %4215 = vmatprep.subr.bf16.mxu0 %v11971_v61  ;;  %4258 = vmatprep.subr.bf16.mxu1 %v11974_v3  ;;  %v12010_v16 = vld [vmem:[#allocation19 + $0x2dc] ss:$24 sps:$4 sm:$0xff]   ;;  %v12008_v42 = vld [vmem:[#allocation19 + $0x2d8] ss:$24 sps:$4 sm:$0xff]   ;;  %v12016_v52 = vld [vmem:[#allocation19 + $0x2ac] ss:$24 sps:$4 sm:$0xff]  }
 0x3a0   :  { %v12013_v40 = vld [vmem:[#allocation19 + $0x8a4] ss:$24 sps:$4 sm:$0xff]   ;;  %v12011_v51 = vld [vmem:[#allocation19 + $0x8a0] ss:$24 sps:$4 sm:$0xff]   ;;  %v12019_v60 = vld [vmem:[#allocation19 + $0x874] ss:$24 sps:$4 sm:$0xff]  }
 0x3a1   :  { %v12014_v58 = vld [vmem:[#allocation19 + $0x2a8] ss:$24 sps:$4 sm:$0xff]   ;;  %v12022_v61 = vld [vmem:[#allocation19 + $0x27c] ss:$24 sps:$4 sm:$0xff]  }
 0x3a2   :  { %4216 = vmatpush1.bf16.msra.mxu0 %v11969_v6  ;;  %4259 = vmatpush1.bf16.msra.mxu1 %v11972_v45  ;;  %v12017_v3 = vld [vmem:[#allocation19 + $0x870] ss:$24 sps:$4 sm:$0xff]   ;;  %v12025_v45 = vld [vmem:[#allocation19 + $0x844] ss:$24 sps:$4 sm:$0xff]  }
 0x3a3   :  { %4217 = vmatprep.subr.bf16.mxu0 %v11977_v5  ;;  %4260 = vmatprep.subr.bf16.mxu1 %v11980_v13  ;;  %v12020_v6 = vld [vmem:[#allocation19 + $0x278] ss:$24 sps:$4 sm:$0xff]   ;;  %v12028_v5 = vld [vmem:[#allocation19 + $0x24c] ss:$24 sps:$4 sm:$0xff]  }
 0x3a4   :  { %v12023_v13 = vld [vmem:[#allocation19 + $0x840] ss:$24 sps:$4 sm:$0xff]  }
 0x3a6   :  { %4218 = vmatpush1.bf16.msra.mxu0 %v11975_v26  ;;  %4261 = vmatpush1.bf16.msra.mxu1 %v11978_v30  ;;  %v12026_v26 = vld [vmem:[#allocation19 + $0x248] ss:$24 sps:$4 sm:$0xff]   ;;  %v12031_v30 = vld [vmem:[#allocation19 + $0x814] ss:$24 sps:$4 sm:$0xff]  }
 0x3a7   :  { %4219 = vmatprep.subr.bf16.mxu0 %v11983_v25  ;;  %4262 = vmatprep.subr.bf16.mxu1 %v11986_v28  ;;  %v12034_v25 = vld [vmem:[#allocation19 + $0x21c] ss:$24 sps:$4 sm:$0xff]   ;;  %v12029_v28 = vld [vmem:[#allocation19 + $0x810] ss:$24 sps:$4 sm:$0xff]  }
 0x3aa   :  { %4220 = vmatpush1.bf16.msra.mxu0 %v11981_v37  ;;  %4263 = vmatpush1.bf16.msra.mxu1 %v11984_v0  ;;  %v12032_v37 = vld [vmem:[#allocation19 + $0x218] ss:$24 sps:$4 sm:$0xff]   ;;  %v12037_v0 = vld [vmem:[#allocation19 + $0x7e4] ss:$24 sps:$4 sm:$0xff]  }
 0x3ab   :  { %4221 = vmatprep.subr.bf16.mxu0 %v11989_v27  ;;  %4264 = vmatprep.subr.bf16.mxu1 %v11992_v63  ;;  %v12040_v27 = vld [vmem:[#allocation19 + $0x1ec] ss:$24 sps:$4 sm:$0xff]   ;;  %v12035_v63 = vld [vmem:[#allocation19 + $0x7e0] ss:$24 sps:$4 sm:$0xff]  }
 0x3ae   :  { %4222 = vmatpush1.bf16.msra.mxu0 %v11987_v21  ;;  %4265 = vmatpush1.bf16.msra.mxu1 %v11990_v62  ;;  %v12038_v21 = vld [vmem:[#allocation19 + $0x1e8] ss:$24 sps:$4 sm:$0xff]   ;;  %v12043_v62 = vld [vmem:[#allocation19 + $0x7b4] ss:$24 sps:$4 sm:$0xff]  }
 0x3af   :  { %4223 = vmatprep.subr.bf16.mxu0 %v11995_v22  ;;  %4266 = vmatprep.subr.bf16.mxu1 %v11998_v46  ;;  %v12046_v22 = vld [vmem:[#allocation19 + $0x1bc] ss:$24 sps:$4 sm:$0xff]   ;;  %v12041_v46 = vld [vmem:[#allocation19 + $0x7b0] ss:$24 sps:$4 sm:$0xff]  }
 0x3b2   :  { %4224 = vmatpush1.bf16.msra.mxu0 %v11993_v10  ;;  %4267 = vmatpush1.bf16.msra.mxu1 %v11996_v39  ;;  %v12044_v10 = vld [vmem:[#allocation19 + $0x1b8] ss:$24 sps:$4 sm:$0xff]   ;;  %v12049_v39 = vld [vmem:[#allocation19 + $0x784] ss:$24 sps:$4 sm:$0xff]  }
 0x3b3   :  { %4225 = vmatprep.subr.bf16.mxu0 %v12001_v35  ;;  %4268 = vmatprep.subr.bf16.mxu1 %v12004_v29  ;;  %v12052_v35 = vld [vmem:[#allocation19 + $0x18c] ss:$24 sps:$4 sm:$0xff]   ;;  %v12047_v29 = vld [vmem:[#allocation19 + $0x780] ss:$24 sps:$4 sm:$0xff]  }
 0x3b6   :  { %4226 = vmatpush1.bf16.msra.mxu0 %v11999_v15  ;;  %4269 = vmatpush1.bf16.msra.mxu1 %v12002_v36  ;;  %v12050_v15 = vld [vmem:[#allocation19 + $0x188] ss:$24 sps:$4 sm:$0xff]   ;;  %v12055_v36 = vld [vmem:[#allocation19 + $0x45c] ss:$24 sps:$4 sm:$0xff]  }
 0x3b7   :  { %4227 = vmatprep.subr.bf16.mxu0 %v12007_v47  ;;  %4270 = vmatprep.subr.bf16.mxu1 %v12010_v16  ;;  %v12058_v47 = vld [vmem:[#allocation19 + $0x75c] ss:$24 sps:$4 sm:$0xff]   ;;  %v12053_v16 = vld [vmem:[#allocation19 + $0x458] ss:$24 sps:$4 sm:$0xff]  }
 0x3ba   :  { %4228 = vmatpush2.bf16.msra.mxu0 %v12005_v49  ;;  %4271 = vmatpush2.bf16.msra.mxu1 %v12008_v42  ;;  %v14288_v49 = vpack.c.bf16 %v14275_v23, %v14264_v38  ;;  %v12056_v42 = vld [vmem:[#allocation19 + $0x758] ss:$24 sps:$4 sm:$0xff]   ;;  %v12070_v38 = vld [vmem:[#allocation19 + $0x6fc] ss:$24 sps:$4 sm:$0xff]  }
 0x3bb   :  { %4229 = vmatprep.subr.bf16.mxu0 %v12013_v40  ;;  %4272 = vmatprep.subr.bf16.mxu1 %v12016_v52  ;;  %v12061_v40 = vld [vmem:[#allocation19 + $0x42c] ss:$24 sps:$4 sm:$0xff]   ;;  %v12065_v23 = vld [vmem:[#allocation19 + $0x3f8] ss:$24 sps:$4 sm:$0xff]  }
 0x3bc   :  { %v12064_v52 = vld [vmem:[#allocation19 + $0x72c] ss:$24 sps:$4 sm:$0xff]  }
 0x3be   :  { %4230 = vmatpush2.bf16.msra.mxu0 %v12011_v51  ;;  %4273 = vmatpush2.bf16.msra.mxu1 %v12014_v58  ;;  %v12059_v51 = vld [vmem:[#allocation19 + $0x428] ss:$24 sps:$4 sm:$0xff]  }
 0x3bf   :  { %4231 = vmatprep.subr.bf16.mxu0 %v12019_v60  ;;  %4274 = vmatprep.subr.bf16.mxu1 %v12022_v61  ;;  %v12062_v58 = vld [vmem:[#allocation19 + $0x728] ss:$24 sps:$4 sm:$0xff]   ;;  %v12067_v60 = vld [vmem:[#allocation19 + $0x3fc] ss:$24 sps:$4 sm:$0xff]   ;;  %v12068_v61 = vld [vmem:[#allocation19 + $0x6f8] ss:$24 sps:$4 sm:$0xff]  }
 0x3c2   :  { %4232 = vmatpush2.bf16.msra.mxu0 %v12017_v3  ;;  %4275 = vmatpush2.bf16.msra.mxu1 %v12020_v6  ;;  %v12073_v3 = vld [vmem:[#allocation19 + $0x3cc] ss:$24 sps:$4 sm:$0xff]  }
 0x3c3   :  { %4233 = vmatprep.subr.bf16.mxu0 %v12025_v45  ;;  %4276 = vmatprep.subr.bf16.mxu1 %v12028_v5  ;;  %v12076_v6 = vld [vmem:[#allocation19 + $0x6cc] ss:$24 sps:$4 sm:$0xff]   ;;  %v12071_v45 = vld [vmem:[#allocation19 + $0x3c8] ss:$24 sps:$4 sm:$0xff]  }
 0x3c4   :  { %v12074_v5 = vld [vmem:[#allocation19 + $0x6c8] ss:$24 sps:$4 sm:$0xff]  }
 0x3c6   :  { %4234 = vmatpush2.bf16.msra.mxu0 %v12023_v13  ;;  %4277 = vmatpush2.bf16.msra.mxu1 %v12026_v26  ;;  %v12079_v13 = vld [vmem:[#allocation19 + $0x39c] ss:$24 sps:$4 sm:$0xff]  }
 0x3c7   :  { %4235 = vmatprep.subr.bf16.mxu0 %v12031_v30  ;;  %4278 = vmatprep.subr.bf16.mxu1 %v12034_v25  ;;  %v12082_v26 = vld [vmem:[#allocation19 + $0x69c] ss:$24 sps:$4 sm:$0xff]   ;;  %v12077_v30 = vld [vmem:[#allocation19 + $0x398] ss:$24 sps:$4 sm:$0xff]  }
 0x3c8   :  { %v12080_v25 = vld [vmem:[#allocation19 + $0x698] ss:$24 sps:$4 sm:$0xff]  }
 0x3ca   :  { %4236 = vmatpush2.bf16.msra.mxu0 %v12029_v28  ;;  %4279 = vmatpush2.bf16.msra.mxu1 %v12032_v37  ;;  %v12085_v28 = vld [vmem:[#allocation19 + $0x36c] ss:$24 sps:$4 sm:$0xff]  }
 0x3cb   :  { %4237 = vmatprep.subr.bf16.mxu0 %v12037_v0  ;;  %4280 = vmatprep.subr.bf16.mxu1 %v12040_v27  ;;  %v12088_v37 = vld [vmem:[#allocation19 + $0x66c] ss:$24 sps:$4 sm:$0xff]   ;;  %v12083_v0 = vld [vmem:[#allocation19 + $0x368] ss:$24 sps:$4 sm:$0xff]  }
 0x3cc   :  { %v12086_v27 = vld [vmem:[#allocation19 + $0x668] ss:$24 sps:$4 sm:$0xff]  }
 0x3ce   :  { %4238 = vmatpush2.bf16.msra.mxu0 %v12035_v63  ;;  %4281 = vmatpush2.bf16.msra.mxu1 %v12038_v21  ;;  %v12091_v63 = vld [vmem:[#allocation19 + $0x33c] ss:$24 sps:$4 sm:$0xff]  }
 0x3cf   :  { %4239 = vmatprep.subr.bf16.mxu0 %v12043_v62  ;;  %4282 = vmatprep.subr.bf16.mxu1 %v12046_v22  ;;  %v12094_v21 = vld [vmem:[#allocation19 + $0x63c] ss:$24 sps:$4 sm:$0xff]   ;;  %v12089_v62 = vld [vmem:[#allocation19 + $0x338] ss:$24 sps:$4 sm:$0xff]  }
 0x3d0   :  { %v12092_v22 = vld [vmem:[#allocation19 + $0x638] ss:$24 sps:$4 sm:$0xff]  }
 0x3d2   :  { %4240 = vmatpush2.bf16.msra.mxu0 %v12041_v46  ;;  %4283 = vmatpush2.bf16.msra.mxu1 %v12044_v10  ;;  %v12097_v46 = vld [vmem:[#allocation19 + $0x30c] ss:$24 sps:$4 sm:$0xff]  }
 0x3d3   :  { %4241 = vmatprep.subr.bf16.mxu0 %v12049_v39  ;;  %4284 = vmatprep.subr.bf16.mxu1 %v12052_v35  ;;  %v12100_v10 = vld [vmem:[#allocation19 + $0x60c] ss:$24 sps:$4 sm:$0xff]   ;;  %v12095_v39 = vld [vmem:[#allocation19 + $0x308] ss:$24 sps:$4 sm:$0xff]  }
 0x3d4   :  { %v12098_v35 = vld [vmem:[#allocation19 + $0x608] ss:$24 sps:$4 sm:$0xff]  }
 0x3d6   :  { %4242 = vmatpush2.bf16.msra.mxu0 %v12047_v29  ;;  %4285 = vmatpush2.bf16.msra.mxu1 %v12050_v15  ;;  %v12103_v29 = vld [vmem:[#allocation19 + $0x5dc] ss:$24 sps:$4 sm:$0xff]  }
 0x3d7   :  { %4297 = vmatprep.subr.bf16.mxu0 %v12055_v36  ;;  %4340 = vmatprep.subr.bf16.mxu1 %v12058_v47  ;;  %v12106_v15 = vld [vmem:[#allocation19 + $0x8dc] ss:$24 sps:$4 sm:$0xff]   ;;  %v12101_v36 = vld [vmem:[#allocation19 + $0x5d8] ss:$24 sps:$4 sm:$0xff]  }
 0x3d8   :  { %v12104_v47 = vld [vmem:[#allocation19 + $0x8d8] ss:$24 sps:$4 sm:$0xff]  }
 0x3d9   :  { %4244 = vmatmul.mubr.bf16.vlgmr.msra.gmra.mxu0 %v14288_v49  ;;  %4287 = vmatmul.mubr.bf16.vlgmr.msra.gmra.mxu1 %v14271_v18 }
 0x3da   :  { %4298 = vmatpush1.bf16.msra.mxu0 %v12053_v16  ;;  %4329 = vmatprep.mubr.bf16.mxu0 %v14269_v33  ;;  %v12109_v16 = vld [vmem:[#allocation19 + $0x5ac] ss:$24 sps:$4 sm:$0xff]  }
 0x3db   :  { %4341 = vmatpush1.bf16.msra.mxu1 %v12056_v42  ;;  %4372 = vmatprep.mubr.bf16.mxu1 %v14281_v32  ;;  %v12112_v42 = vld [vmem:[#allocation19 + $0x8ac] ss:$24 sps:$4 sm:$0xff]  }
 0x3dc   :  { %4299 = vmatprep.subr.bf16.mxu0 %v12061_v40  ;;  %4342 = vmatprep.subr.bf16.mxu1 %v12064_v52  ;;  %v12107_v40 = vld [vmem:[#allocation19 + $0x5a8] ss:$24 sps:$4 sm:$0xff]  }
 0x3dd   :  { %v12110_v52 = vld [vmem:[#allocation19 + $0x8a8] ss:$24 sps:$4 sm:$0xff]  }
 0x3de   :  { %4300 = vmatpush1.bf16.msra.mxu0 %v12059_v51  ;;  %v12115_v51 = vld [vmem:[#allocation19 + $0x57c] ss:$24 sps:$4 sm:$0xff]  }
 0x3df   :  { %4343 = vmatpush1.bf16.msra.mxu1 %v12062_v58  ;;  %4301 = vmatprep.subr.bf16.mxu0 %v12067_v60  ;;  %v12118_v58 = vld [vmem:[#allocation19 + $0x87c] ss:$24 sps:$4 sm:$0xff]   ;;  %v12113_v60 = vld [vmem:[#allocation19 + $0x578] ss:$24 sps:$4 sm:$0xff]  }
 0x3e0   :  { %4344 = vmatprep.subr.bf16.mxu1 %v12070_v38  ;;  %v12116_v38 = vld [vmem:[#allocation19 + $0x878] ss:$24 sps:$4 sm:$0xff]  }
 0x3e2   :  { %4302 = vmatpush1.bf16.msra.mxu0 %v12065_v23  ;;  %v12121_v23 = vld [vmem:[#allocation19 + $0x54c] ss:$24 sps:$4 sm:$0xff]  }
 0x3e3   :  { %4345 = vmatpush1.bf16.msra.mxu1 %v12068_v61  ;;  %4303 = vmatprep.subr.bf16.mxu0 %v12073_v3  ;;  %v12124_v61 = vld [vmem:[#allocation19 + $0x84c] ss:$24 sps:$4 sm:$0xff]   ;;  %v12119_v3 = vld [vmem:[#allocation19 + $0x548] ss:$24 sps:$4 sm:$0xff]  }
 0x3e4   :  { %4346 = vmatprep.subr.bf16.mxu1 %v12076_v6  ;;  %v12122_v6 = vld [vmem:[#allocation19 + $0x848] ss:$24 sps:$4 sm:$0xff]  }
 0x3e6   :  { %4304 = vmatpush1.bf16.msra.mxu0 %v12071_v45  ;;  %v12127_v45 = vld [vmem:[#allocation19 + $0x51c] ss:$24 sps:$4 sm:$0xff]  }
 0x3e7   :  { %4347 = vmatpush1.bf16.msra.mxu1 %v12074_v5  ;;  %4305 = vmatprep.subr.bf16.mxu0 %v12079_v13  ;;  %v12130_v5 = vld [vmem:[#allocation19 + $0x81c] ss:$24 sps:$4 sm:$0xff]   ;;  %v12125_v13 = vld [vmem:[#allocation19 + $0x518] ss:$24 sps:$4 sm:$0xff]  }
 0x3e8   :  { %4348 = vmatprep.subr.bf16.mxu1 %v12082_v26  ;;  %v12128_v26 = vld [vmem:[#allocation19 + $0x818] ss:$24 sps:$4 sm:$0xff]  }
 0x3ea   :  { %4306 = vmatpush1.bf16.msra.mxu0 %v12077_v30  ;;  %v12133_v30 = vld [vmem:[#allocation19 + $0x4ec] ss:$24 sps:$4 sm:$0xff]  }
 0x3eb   :  { %4349 = vmatpush1.bf16.msra.mxu1 %v12080_v25  ;;  %4307 = vmatprep.subr.bf16.mxu0 %v12085_v28  ;;  %v12136_v25 = vld [vmem:[#allocation19 + $0x7ec] ss:$24 sps:$4 sm:$0xff]   ;;  %v12131_v28 = vld [vmem:[#allocation19 + $0x4e8] ss:$24 sps:$4 sm:$0xff]  }
 0x3ec   :  { %4350 = vmatprep.subr.bf16.mxu1 %v12088_v37  ;;  %v12134_v37 = vld [vmem:[#allocation19 + $0x7e8] ss:$24 sps:$4 sm:$0xff]  }
 0x3ee   :  { %4308 = vmatpush1.bf16.msra.mxu0 %v12083_v0  ;;  %v12139_v0 = vld [vmem:[#allocation19 + $0x4bc] ss:$24 sps:$4 sm:$0xff]  }
 0x3ef   :  { %4351 = vmatpush1.bf16.msra.mxu1 %v12086_v27  ;;  %4309 = vmatprep.subr.bf16.mxu0 %v12091_v63  ;;  %v12142_v27 = vld [vmem:[#allocation19 + $0x7bc] ss:$24 sps:$4 sm:$0xff]   ;;  %v12137_v63 = vld [vmem:[#allocation19 + $0x4b8] ss:$24 sps:$4 sm:$0xff]  }
 0x3f0   :  { %4352 = vmatprep.subr.bf16.mxu1 %v12094_v21  ;;  %v12140_v21 = vld [vmem:[#allocation19 + $0x7b8] ss:$24 sps:$4 sm:$0xff]  }
 0x3f2   :  { %4310 = vmatpush1.bf16.msra.mxu0 %v12089_v62  ;;  %v12145_v62 = vld [vmem:[#allocation19 + $0x48c] ss:$24 sps:$4 sm:$0xff]  }
 0x3f3   :  { %4353 = vmatpush1.bf16.msra.mxu1 %v12092_v22  ;;  %4311 = vmatprep.subr.bf16.mxu0 %v12097_v46  ;;  %v12148_v22 = vld [vmem:[#allocation19 + $0x78c] ss:$24 sps:$4 sm:$0xff]   ;;  %v12143_v46 = vld [vmem:[#allocation19 + $0x488] ss:$24 sps:$4 sm:$0xff]  }
 0x3f4   :  { %4354 = vmatprep.subr.bf16.mxu1 %v12100_v10  ;;  %v12146_v10 = vld [vmem:[#allocation19 + $0x788] ss:$24 sps:$4 sm:$0xff]  }
 0x3f6   :  { %4312 = vmatpush1.bf16.msra.mxu0 %v12095_v39  ;;  %v12151_v39 = vld [vmem:[#allocation19 + $0x164] ss:$24 sps:$4 sm:$0xff]  }
 0x3f7   :  { %4355 = vmatpush1.bf16.msra.mxu1 %v12098_v35  ;;  %4313 = vmatprep.subr.bf16.mxu0 %v12103_v29  ;;  %v12154_v35 = vld [vmem:[#allocation19 + $0x464] ss:$24 sps:$4 sm:$0xff]   ;;  %v12149_v29 = vld [vmem:[#allocation19 + $0x160] ss:$24 sps:$4 sm:$0xff]  }
 0x3f8   :  { %4356 = vmatprep.subr.bf16.mxu1 %v12106_v15  ;;  %v12152_v15 = vld [vmem:[#allocation19 + $0x460] ss:$24 sps:$4 sm:$0xff]  }
 0x3fa   :  { %4314 = vmatpush2.bf16.msra.mxu0 %v12101_v36  ;;  %v12157_v36 = vld [vmem:[#allocation19 + $0x134] ss:$24 sps:$4 sm:$0xff]  }
 0x3fb   :  { %4357 = vmatpush2.bf16.msra.mxu1 %v12104_v47  ;;  %4315 = vmatprep.subr.bf16.mxu0 %v12109_v16  ;;  %v12160_v47 = vld [vmem:[#allocation19 + $0x434] ss:$24 sps:$4 sm:$0xff]   ;;  %v12155_v16 = vld [vmem:[#allocation19 + $0x130] ss:$24 sps:$4 sm:$0xff]  }
 0x3fc   :  { %4358 = vmatprep.subr.bf16.mxu1 %v12112_v42  ;;  %v12158_v42 = vld [vmem:[#allocation19 + $0x430] ss:$24 sps:$4 sm:$0xff]  }
 0x3fe   :  { %4316 = vmatpush2.bf16.msra.mxu0 %v12107_v40  ;;  %v12163_v40 = vld [vmem:[#allocation19 + $0x104] ss:$24 sps:$4 sm:$0xff]  }
 0x3ff   :  { %4359 = vmatpush2.bf16.msra.mxu1 %v12110_v52  ;;  %4317 = vmatprep.subr.bf16.mxu0 %v12115_v51  ;;  %v12166_v52 = vld [vmem:[#allocation19 + $0x404] ss:$24 sps:$4 sm:$0xff]   ;;  %v12161_v51 = vld [vmem:[#allocation19 + $0x100] ss:$24 sps:$4 sm:$0xff]  }
 0x400   :  { %4360 = vmatprep.subr.bf16.mxu1 %v12118_v58  ;;  %v12164_v58 = vld [vmem:[#allocation19 + $0x400] ss:$24 sps:$4 sm:$0xff]  }
 0x402   :  { %4318 = vmatpush2.bf16.msra.mxu0 %v12113_v60  ;;  %v12169_v60 = vld [vmem:[#allocation19 + $0xd4] ss:$24 sps:$4 sm:$0xff]  }
 0x403   :  { %4361 = vmatpush2.bf16.msra.mxu1 %v12116_v38  ;;  %4319 = vmatprep.subr.bf16.mxu0 %v12121_v23  ;;  %v12172_v38 = vld [vmem:[#allocation19 + $0x3d4] ss:$24 sps:$4 sm:$0xff]   ;;  %v12167_v23 = vld [vmem:[#allocation19 + $0xd0] ss:$24 sps:$4 sm:$0xff]  }
 0x404   :  { %4362 = vmatprep.subr.bf16.mxu1 %v12124_v61  ;;  %v12175_v61 = vld [vmem:[#allocation19 + $0xa4] ss:$24 sps:$4 sm:$0xff]  }
 0x406   :  { %4320 = vmatpush2.bf16.msra.mxu0 %v12119_v3  ;;  %v12178_v3 = vld [vmem:[#allocation19 + $0x3a4] ss:$24 sps:$4 sm:$0xff]  }
 0x407   :  { %4363 = vmatpush2.bf16.msra.mxu1 %v12122_v6  ;;  %4321 = vmatprep.subr.bf16.mxu0 %v12127_v45  ;;  %v12176_v6 = vld [vmem:[#allocation19 + $0x3a0] ss:$24 sps:$4 sm:$0xff]   ;;  %v12181_v45 = vld [vmem:[#allocation19 + $0x74] ss:$24 sps:$4 sm:$0xff]  }
 0x408   :  { %4364 = vmatprep.subr.bf16.mxu1 %v12130_v5  ;;  %v12184_v5 = vld [vmem:[#allocation19 + $0x374] ss:$24 sps:$4 sm:$0xff]  }
 0x40a   :  { %4322 = vmatpush2.bf16.msra.mxu0 %v12125_v13  ;;  %v12179_v13 = vld [vmem:[#allocation19 + $0x70] ss:$24 sps:$4 sm:$0xff]  }
 0x40b   :  { %4365 = vmatpush2.bf16.msra.mxu1 %v12128_v26  ;;  %4323 = vmatprep.subr.bf16.mxu0 %v12133_v30  ;;  %v12182_v26 = vld [vmem:[#allocation19 + $0x370] ss:$24 sps:$4 sm:$0xff]   ;;  %v12187_v30 = vld [vmem:[#allocation19 + $0x44] ss:$24 sps:$4 sm:$0xff]  }
 0x40c   :  { %4366 = vmatprep.subr.bf16.mxu1 %v12136_v25  ;;  %v12190_v25 = vld [vmem:[#allocation19 + $0x344] ss:$24 sps:$4 sm:$0xff]  }
 0x40e   :  { %4324 = vmatpush2.bf16.msra.mxu0 %v12131_v28  ;;  %v12185_v28 = vld [vmem:[#allocation19 + $0x40] ss:$24 sps:$4 sm:$0xff]  }
 0x40f   :  { %4367 = vmatpush2.bf16.msra.mxu1 %v12134_v37  ;;  %4325 = vmatprep.subr.bf16.mxu0 %v12139_v0  ;;  %v12188_v37 = vld [vmem:[#allocation19 + $0x340] ss:$24 sps:$4 sm:$0xff]   ;;  %v12193_v0 = vld [vmem:[#allocation19 + $0x14] ss:$24 sps:$4 sm:$0xff]  }
 0x410   :  { %4368 = vmatprep.subr.bf16.mxu1 %v12142_v27  ;;  %v12196_v27 = vld [vmem:[#allocation19 + $0x314] ss:$24 sps:$4 sm:$0xff]  }
 0x412   :  { %4326 = vmatpush2.bf16.msra.mxu0 %v12137_v63  ;;  %v12191_v63 = vld [vmem:[#allocation19 + $0x10] ss:$24 sps:$4 sm:$0xff]  }
 0x413   :  { %4369 = vmatpush2.bf16.msra.mxu1 %v12140_v21  ;;  %4327 = vmatprep.subr.bf16.mxu0 %v12145_v62  ;;  %v12194_v21 = vld [vmem:[#allocation19 + $0x310] ss:$24 sps:$4 sm:$0xff]   ;;  %v12199_v62 = vld [vmem:[#allocation19 + $0x2e4] ss:$24 sps:$4 sm:$0xff]  }
 0x414   :  { %4370 = vmatprep.subr.bf16.mxu1 %v12148_v22  ;;  %v12202_v22 = vld [vmem:[#allocation19 + $0x5e4] ss:$24 sps:$4 sm:$0xff]  }
 0x416   :  { %4328 = vmatpush2.bf16.msra.mxu0 %v12143_v46  ;;  %v12197_v46 = vld [vmem:[#allocation19 + $0x2e0] ss:$24 sps:$4 sm:$0xff]  }
 0x417   :  { %4371 = vmatpush2.bf16.msra.mxu1 %v12146_v10  ;;  %4383 = vmatprep.subr.bf16.mxu0 %v12151_v39  ;;  %v12200_v10 = vld [vmem:[#allocation19 + $0x5e0] ss:$24 sps:$4 sm:$0xff]   ;;  %v12205_v39 = vld [vmem:[#allocation19 + $0x2b4] ss:$24 sps:$4 sm:$0xff]  }
 0x418   :  { %4426 = vmatprep.subr.bf16.mxu1 %v12154_v35  ;;  %v12208_v35 = vld [vmem:[#allocation19 + $0x5b4] ss:$24 sps:$4 sm:$0xff]  }
 0x419   :  { %4330 = vmatmul.mubr.bf16.vlgmr.msra.gmra.mxu0 %v14273_v50 }
 0x41a   :  { %4373 = vmatmul.mubr.bf16.vlgmr.msra.gmra.mxu1 %v14288_v49  ;;  %4384 = vmatpush1.bf16.msra.mxu0 %v12149_v29  ;;  %v12203_v29 = vld [vmem:[#allocation19 + $0x2b0] ss:$24 sps:$4 sm:$0xff]  }
 0x41b   :  { %4415 = vmatprep.mubr.bf16.mxu0 %v14267_v44  ;;  %4427 = vmatpush1.bf16.msra.mxu1 %v12152_v15  ;;  %v12170_v44 = vld [vmem:[#allocation19 + $0x3d0] ss:$24 sps:$4 sm:$0xff]  }
 0x41c   :  { %4458 = vmatprep.mubr.bf16.mxu1 %v14269_v33  ;;  %4385 = vmatprep.subr.bf16.mxu0 %v12157_v36  ;;  %v12173_v33 = vld [vmem:[#allocation19 + $0xa0] ss:$24 sps:$4 sm:$0xff]   ;;  %v12206_v15 = vld [vmem:[#allocation19 + $0x5b0] ss:$24 sps:$4 sm:$0xff]   ;;  %v12211_v36 = vld [vmem:[#allocation19 + $0x284] ss:$24 sps:$4 sm:$0xff]  }
 0x41d   :  { %4428 = vmatprep.subr.bf16.mxu1 %v12160_v47  ;;  %v12214_v47 = vld [vmem:[#allocation19 + $0x584] ss:$24 sps:$4 sm:$0xff]  }
 0x41e   :  { %4386 = vmatpush1.bf16.msra.mxu0 %v12155_v16  ;;  %v12209_v16 = vld [vmem:[#allocation19 + $0x280] ss:$24 sps:$4 sm:$0xff]  }
 0x41f   :  { %4429 = vmatpush1.bf16.msra.mxu1 %v12158_v42  ;;  %4387 = vmatprep.subr.bf16.mxu0 %v12163_v40  ;;  %v12212_v42 = vld [vmem:[#allocation19 + $0x580] ss:$24 sps:$4 sm:$0xff]   ;;  %v12217_v40 = vld [vmem:[#allocation19 + $0x254] ss:$24 sps:$4 sm:$0xff]  }
 0x420   :  { %4430 = vmatprep.subr.bf16.mxu1 %v12166_v52  ;;  %v12220_v52 = vld [vmem:[#allocation19 + $0x554] ss:$24 sps:$4 sm:$0xff]  }
 0x422   :  { %4388 = vmatpush1.bf16.msra.mxu0 %v12161_v51  ;;  %v12215_v51 = vld [vmem:[#allocation19 + $0x250] ss:$24 sps:$4 sm:$0xff]  }
 0x423   :  { %4431 = vmatpush1.bf16.msra.mxu1 %v12164_v58  ;;  %4389 = vmatprep.subr.bf16.mxu0 %v12169_v60  ;;  %v12218_v58 = vld [vmem:[#allocation19 + $0x550] ss:$24 sps:$4 sm:$0xff]   ;;  %v12223_v60 = vld [vmem:[#allocation19 + $0x224] ss:$24 sps:$4 sm:$0xff]  }
 0x424   :  { %4432 = vmatprep.subr.bf16.mxu1 %v12172_v38  ;;  %v12226_v38 = vld [vmem:[#allocation19 + $0x524] ss:$24 sps:$4 sm:$0xff]  }
 0x426   :  { %4390 = vmatpush1.bf16.msra.mxu0 %v12167_v23  ;;  %v12221_v23 = vld [vmem:[#allocation19 + $0x220] ss:$24 sps:$4 sm:$0xff]  }
 0x427   :  { %4433 = vmatpush1.bf16.msra.mxu1 %v12170_v44  ;;  %4391 = vmatprep.subr.bf16.mxu0 %v12175_v61  ;;  %v12224_v44 = vld [vmem:[#allocation19 + $0x520] ss:$24 sps:$4 sm:$0xff]   ;;  %v12229_v61 = vld [vmem:[#allocation19 + $0x1f4] ss:$24 sps:$4 sm:$0xff]  }
 0x428   :  { %4434 = vmatprep.subr.bf16.mxu1 %v12178_v3  ;;  %v12232_v3 = vld [vmem:[#allocation19 + $0x4f4] ss:$24 sps:$4 sm:$0xff]  }
 0x42a   :  { %4392 = vmatpush1.bf16.msra.mxu0 %v12173_v33  ;;  %v12227_v33 = vld [vmem:[#allocation19 + $0x1f0] ss:$24 sps:$4 sm:$0xff]  }
 0x42b   :  { %4435 = vmatpush1.bf16.msra.mxu1 %v12176_v6  ;;  %4393 = vmatprep.subr.bf16.mxu0 %v12181_v45  ;;  %v12230_v6 = vld [vmem:[#allocation19 + $0x4f0] ss:$24 sps:$4 sm:$0xff]   ;;  %v12235_v45 = vld [vmem:[#allocation19 + $0x1c4] ss:$24 sps:$4 sm:$0xff]  }
 0x42c   :  { %4436 = vmatprep.subr.bf16.mxu1 %v12184_v5  ;;  %v12238_v5 = vld [vmem:[#allocation19 + $0x4c4] ss:$24 sps:$4 sm:$0xff]  }
 0x42e   :  { %4394 = vmatpush1.bf16.msra.mxu0 %v12179_v13  ;;  %v12233_v13 = vld [vmem:[#allocation19 + $0x1c0] ss:$24 sps:$4 sm:$0xff]  }
 0x42f   :  { %4437 = vmatpush1.bf16.msra.mxu1 %v12182_v26  ;;  %4395 = vmatprep.subr.bf16.mxu0 %v12187_v30  ;;  %v12236_v26 = vld [vmem:[#allocation19 + $0x4c0] ss:$24 sps:$4 sm:$0xff]   ;;  %v12241_v30 = vld [vmem:[#allocation19 + $0x194] ss:$24 sps:$4 sm:$0xff]  }
 0x430   :  { %4438 = vmatprep.subr.bf16.mxu1 %v12190_v25  ;;  %v12244_v25 = vld [vmem:[#allocation19 + $0x494] ss:$24 sps:$4 sm:$0xff]  }
 0x432   :  { %4396 = vmatpush1.bf16.msra.mxu0 %v12185_v28  ;;  %v12239_v28 = vld [vmem:[#allocation19 + $0x190] ss:$24 sps:$4 sm:$0xff]  }
 0x433   :  { %4439 = vmatpush1.bf16.msra.mxu1 %v12188_v37  ;;  %4397 = vmatprep.subr.bf16.mxu0 %v12193_v0  ;;  %v12242_v37 = vld [vmem:[#allocation19 + $0x490] ss:$24 sps:$4 sm:$0xff]   ;;  %v12247_v0 = vld [vmem:[#allocation19 + $0x764] ss:$24 sps:$4 sm:$0xff]  }
 0x434   :  { %4440 = vmatprep.subr.bf16.mxu1 %v12196_v27  ;;  %v12268_v27 = vld [vmem:[#allocation22 + $0x2a4] ss:$48 sps:$4 sm:$0xff]  }
 0x436   :  { %4398 = vmatpush1.bf16.msra.mxu0 %v12191_v63  ;;  %v12245_v63 = vld [vmem:[#allocation19 + $0x760] ss:$24 sps:$4 sm:$0xff]  }
 0x437   :  { %4441 = vmatpush1.bf16.msra.mxu1 %v12194_v21  ;;  %4399 = vmatprep.subr.bf16.mxu0 %v12199_v62  ;;  %v12250_v21 = vld [vmem:[#allocation19 + $0x734] ss:$24 sps:$4 sm:$0xff]  }
 0x438   :  { %4442 = vmatprep.subr.bf16.mxu1 %v12202_v22  ;;  %v12266_v62 = vld [vmem:[#allocation22 + $0x2a0] ss:$48 sps:$4 sm:$0xff]   ;;  %v12274_v22 = vld [vmem:[#allocation22 + $0x244] ss:$48 sps:$4 sm:$0xff]  }
 0x43a   :  { %4400 = vmatpush2.bf16.msra.mxu0 %v12197_v46  ;;  %v12248_v46 = vld [vmem:[#allocation19 + $0x730] ss:$24 sps:$4 sm:$0xff]  }
 0x43b   :  { %4443 = vmatpush2.bf16.msra.mxu1 %v12200_v10  ;;  %4401 = vmatprep.subr.bf16.mxu0 %v12205_v39  ;;  %v12253_v10 = vld [vmem:[#allocation19 + $0x704] ss:$24 sps:$4 sm:$0xff]  }
 0x43c   :  { %4444 = vmatprep.subr.bf16.mxu1 %v12208_v35  ;;  %v12272_v39 = vld [vmem:[#allocation22 + $0x240] ss:$48 sps:$4 sm:$0xff]   ;;  %v12280_v35 = vld [vmem:[#allocation22 + $0x1e4] ss:$48 sps:$4 sm:$0xff]  }
 0x43e   :  { %4402 = vmatpush2.bf16.msra.mxu0 %v12203_v29  ;;  %v12251_v29 = vld [vmem:[#allocation19 + $0x700] ss:$24 sps:$4 sm:$0xff]  }
 0x43f   :  { %4445 = vmatpush2.bf16.msra.mxu1 %v12206_v15  ;;  %4403 = vmatprep.subr.bf16.mxu0 %v12211_v36  ;;  %v12256_v15 = vld [vmem:[#allocation19 + $0x6d4] ss:$24 sps:$4 sm:$0xff]  }
 0x440   :  { %4446 = vmatprep.subr.bf16.mxu1 %v12214_v47  ;;  %v12278_v36 = vld [vmem:[#allocation22 + $0x1e0] ss:$48 sps:$4 sm:$0xff]  }
 0x441   :  { %v12259_v47 = vld [vmem:[#allocation19 + $0x6a4] ss:$24 sps:$4 sm:$0xff]  }
 0x442   :  { %4404 = vmatpush2.bf16.msra.mxu0 %v12209_v16  ;;  %v12292_v16 = vld [vmem:[#allocation22 + $0x124] ss:$48 sps:$4 sm:$0xff]  }
 0x443   :  { %4447 = vmatpush2.bf16.msra.mxu1 %v12212_v42  ;;  %4405 = vmatprep.subr.bf16.mxu0 %v12217_v40  ;;  %v12257_v42 = vld [vmem:[#allocation19 + $0x6a0] ss:$24 sps:$4 sm:$0xff]   ;;  %v12262_v40 = vld [vmem:[#allocation19 + $0x674] ss:$24 sps:$4 sm:$0xff]  }
 0x444   :  { %4448 = vmatprep.subr.bf16.mxu1 %v12220_v52  ;;  %v12290_v52 = vld [vmem:[#allocation22 + $0x120] ss:$48 sps:$4 sm:$0xff]  }
 0x446   :  { %4406 = vmatpush2.bf16.msra.mxu0 %v12215_v51  ;;  %v12298_v51 = vld [vmem:[#allocation22 + $0xc4] ss:$48 sps:$4 sm:$0xff]  }
 0x447   :  { %4449 = vmatpush2.bf16.msra.mxu1 %v12218_v58  ;;  %4407 = vmatprep.subr.bf16.mxu0 %v12223_v60  ;;  %v12260_v58 = vld [vmem:[#allocation19 + $0x670] ss:$24 sps:$4 sm:$0xff]   ;;  %v12265_v60 = vld [vmem:[#allocation19 + $0x644] ss:$24 sps:$4 sm:$0xff]  }
 0x448   :  { %4450 = vmatprep.subr.bf16.mxu1 %v12226_v38  ;;  %v12296_v38 = vld [vmem:[#allocation22 + $0xc0] ss:$48 sps:$4 sm:$0xff]  }
 0x44a   :  { %4408 = vmatpush2.bf16.msra.mxu0 %v12221_v23  ;;  %v12304_v23 = vld [vmem:[#allocation22 + $0x64] ss:$48 sps:$4 sm:$0xff]  }
 0x44b   :  { %4451 = vmatpush2.bf16.msra.mxu1 %v12224_v44  ;;  %4409 = vmatprep.subr.bf16.mxu0 %v12229_v61  ;;  %v12263_v44 = vld [vmem:[#allocation19 + $0x640] ss:$24 sps:$4 sm:$0xff]   ;;  %v12271_v61 = vld [vmem:[#allocation19 + $0x614] ss:$24 sps:$4 sm:$0xff]  }
 0x44c   :  { %4452 = vmatprep.subr.bf16.mxu1 %v12232_v3  ;;  %v12302_v3 = vld [vmem:[#allocation22 + $0x60] ss:$48 sps:$4 sm:$0xff]  }
 0x44e   :  { %4410 = vmatpush2.bf16.msra.mxu0 %v12227_v33  ;;  %v12310_v33 = vld [vmem:[#allocation22 + $0x4] ss:$48 sps:$4 sm:$0xff]  }
 0x44f   :  { %4453 = vmatpush2.bf16.msra.mxu1 %v12230_v6  ;;  %4411 = vmatprep.subr.bf16.mxu0 %v12235_v45  ;;  %v12269_v6 = vld [vmem:[#allocation19 + $0x610] ss:$24 sps:$4 sm:$0xff]   ;;  %v12277_v45 = vld [vmem:[#allocation19 + $0x8e4] ss:$24 sps:$4 sm:$0xff]  }
 0x450   :  { %4454 = vmatprep.subr.bf16.mxu1 %v12238_v5  ;;  %v12308_v5 = vld [vmem:[#allocation22] ss:$48 sps:$4 sm:$0xff]  }
 0x452   :  { %4412 = vmatpush2.bf16.msra.mxu0 %v12233_v13  ;;  %v12316_v13 = vld [vmem:[#allocation22 + $0x5a4] ss:$48 sps:$4 sm:$0xff]  }
 0x453   :  { %4455 = vmatpush2.bf16.msra.mxu1 %v12236_v26  ;;  %4413 = vmatprep.subr.bf16.mxu0 %v12241_v30  ;;  %v12275_v26 = vld [vmem:[#allocation19 + $0x8e0] ss:$24 sps:$4 sm:$0xff]   ;;  %v12283_v30 = vld [vmem:[#allocation19 + $0x8b4] ss:$24 sps:$4 sm:$0xff]  }
 0x454   :  { %4456 = vmatprep.subr.bf16.mxu1 %v12244_v25  ;;  %v12314_v25 = vld [vmem:[#allocation22 + $0x5a0] ss:$48 sps:$4 sm:$0xff]  }
 0x456   :  { %4414 = vmatpush2.bf16.msra.mxu0 %v12239_v28  ;;  %v12322_v28 = vld [vmem:[#allocation22 + $0x544] ss:$48 sps:$4 sm:$0xff]  }
 0x457   :  { %4457 = vmatpush2.bf16.msra.mxu1 %v12242_v37  ;;  %4469 = vmatprep.subr.bf16.mxu0 %v12247_v0  ;;  %v12281_v37 = vld [vmem:[#allocation19 + $0x8b0] ss:$24 sps:$4 sm:$0xff]   ;;  %v12289_v0 = vld [vmem:[#allocation19 + $0x884] ss:$24 sps:$4 sm:$0xff]  }
 0x458   :  { %8062 = vmatprep.subr.bf16.mxu1 %v12268_v27  ;;  %v12320_v27 = vld [vmem:[#allocation22 + $0x540] ss:$48 sps:$4 sm:$0xff]  }
 0x459   :  { %4416 = vmatmul.mubr.bf16.vlgmr.msra.gmra.mxu0 %v14271_v18  ;;  %v12286_v18 = vld [vmem:[#allocation22 + $0x184] ss:$48 sps:$4 sm:$0xff]  }
 0x45a   :  { %4459 = vmatmul.mubr.bf16.vlgmr.msra.gmra.mxu1 %v14273_v50  ;;  %4470 = vmatpush1.bf16.msra.mxu0 %v12245_v63  ;;  %v12254_v50 = vld [vmem:[#allocation19 + $0x6d0] ss:$24 sps:$4 sm:$0xff]  }
 0x45b   :  { %4501 = vmatprep.mubr.bf16.mxu0 %v14281_v32  ;;  %4471 = vmatprep.subr.bf16.mxu0 %v12250_v21  ;;  %v12284_v32 = vld [vmem:[#allocation22 + $0x180] ss:$48 sps:$4 sm:$0xff]   ;;  %v12325_v63 = vld [vmem:[#allocation22 + $0x4e4] ss:$48 sps:$4 sm:$0xff]  }
 0x45c   :  { %8063 = vmatpush1.bf16.msra.mxu1 %v12266_v62  ;;  %v12287_v21 = vld [vmem:[#allocation19 + $0x880] ss:$24 sps:$4 sm:$0xff]   ;;  %v12295_v62 = vld [vmem:[#allocation19 + $0x854] ss:$24 sps:$4 sm:$0xff]  }
 0x45d   :  { %8064 = vmatprep.subr.bf16.mxu1 %v12274_v22  ;;  %v12323_v22 = vld [vmem:[#allocation22 + $0x4e0] ss:$48 sps:$4 sm:$0xff]  }
 0x45e   :  { %4472 = vmatpush1.bf16.msra.mxu0 %v12248_v46  ;;  %v12328_v46 = vld [vmem:[#allocation22 + $0x484] ss:$48 sps:$4 sm:$0xff]  }
 0x45f   :  { %4473 = vmatprep.subr.bf16.mxu0 %v12253_v10  ;;  %v12293_v10 = vld [vmem:[#allocation19 + $0x850] ss:$24 sps:$4 sm:$0xff]  }
 0x460   :  { %8065 = vmatpush1.bf16.msra.mxu1 %v12272_v39  ;;  %v12301_v39 = vld [vmem:[#allocation19 + $0x824] ss:$24 sps:$4 sm:$0xff]  }
 0x461   :  { %8066 = vmatprep.subr.bf16.mxu1 %v12280_v35  ;;  %v12326_v35 = vld [vmem:[#allocation22 + $0x480] ss:$48 sps:$4 sm:$0xff]  }
 0x462   :  { %4474 = vmatpush1.bf16.msra.mxu0 %v12251_v29  ;;  %v12331_v29 = vld [vmem:[#allocation22 + $0x424] ss:$48 sps:$4 sm:$0xff]  }
 0x463   :  { %4475 = vmatprep.subr.bf16.mxu0 %v12256_v15  ;;  %v12299_v15 = vld [vmem:[#allocation19 + $0x820] ss:$24 sps:$4 sm:$0xff]  }
 0x464   :  { %8067 = vmatpush1.bf16.msra.mxu1 %v12278_v36  ;;  %v12307_v36 = vld [vmem:[#allocation19 + $0x7f4] ss:$24 sps:$4 sm:$0xff]  }
 0x465   :  { %8068 = vmatprep.subr.bf16.mxu1 %v12286_v18  ;;  %v12329_v18 = vld [vmem:[#allocation22 + $0x420] ss:$48 sps:$4 sm:$0xff]  }
 0x466   :  { %4476 = vmatpush1.bf16.msra.mxu0 %v12254_v50  ;;  %v12334_v50 = vld [vmem:[#allocation22 + $0x3c4] ss:$48 sps:$4 sm:$0xff]  }
 0x467   :  { %4477 = vmatprep.subr.bf16.mxu0 %v12259_v47  ;;  %v12305_v47 = vld [vmem:[#allocation19 + $0x7f0] ss:$24 sps:$4 sm:$0xff]  }
 0x468   :  { %8069 = vmatpush1.bf16.msra.mxu1 %v12284_v32  ;;  %v4159_v32 = vpop.f32.mrf.mxu0 }
 0x469   :  { %8070 = vmatprep.subr.bf16.mxu1 %v12292_v16  ;;  %v12313_v16 = vld [vmem:[#allocation19 + $0x7c4] ss:$24 sps:$4 sm:$0xff]  }
 0x46a   :  { %4478 = vmatpush1.bf16.msra.mxu0 %v12257_v42  ;;  %v12332_v42 = vld [vmem:[#allocation22 + $0x3c0] ss:$48 sps:$4 sm:$0xff]  }
 0x46b   :  { %4479 = vmatprep.subr.bf16.mxu0 %v12262_v40  ;;  %v14301_v40 = vld [vmem:[#allocation20] sm:$0x3f] }
 0x46c   :  { %8071 = vmatpush1.bf16.msra.mxu1 %v12290_v52  ;;  %v12337_v52 = vld [vmem:[#allocation22 + $0x364] ss:$48 sps:$4 sm:$0xff]  }
 0x46d   :  { %8072 = vmatprep.subr.bf16.mxu1 %v12298_v51  ;;  %v12311_v51 = vld [vmem:[#allocation19 + $0x7c0] ss:$24 sps:$4 sm:$0xff]  }
 0x46e   :  { %4480 = vmatpush1.bf16.msra.mxu0 %v12260_v58  ;;  %v4161_v58 = vpop.f32.mrf.mxu0 }
 0x46f   :  { %4481 = vmatprep.subr.bf16.mxu0 %v12265_v60  ;;  %v12319_v60 = vld [vmem:[#allocation19 + $0x794] ss:$24 sps:$4 sm:$0xff]  }
 0x470   :  { %8073 = vmatpush1.bf16.msra.mxu1 %v12296_v38  ;;  %v2658_v38 = vrot.slane %v14301_v40, %v14183_v56 }
 0x471   :  { %8074 = vmatprep.subr.bf16.mxu1 %v12304_v23  ;;  %v12335_v23 = vld [vmem:[#allocation22 + $0x360] ss:$48 sps:$4 sm:$0xff]  }
 0x472   :  { %4482 = vmatpush1.bf16.msra.mxu0 %v12263_v44  ;;  %v4202_v44 = vpop.f32.mrf.mxu1 }
 0x473   :  { %4483 = vmatprep.subr.bf16.mxu0 %v12271_v61  ;;  %v12340_v61 = vld [vmem:[#allocation22 + $0x304] ss:$48 sps:$4 sm:$0xff]  }
 0x474   :  { %8075 = vmatpush1.bf16.msra.mxu1 %v12302_v3  ;;  %v2662_v3 = vrot.slane %v14301_v40, %v14191_v4 }
 0x475   :  { %8076 = vmatprep.subr.bf16.mxu1 %v12310_v33  ;;  %v12317_v33 = vld [vmem:[#allocation19 + $0x790] ss:$24 sps:$4 sm:$0xff]  }
 0x476   :  { %4484 = vmatpush1.bf16.msra.mxu0 %v12269_v6  ;;  %v4163_v6 = vpop.f32.mrf.mxu0 }
 0x477   :  { %4485 = vmatprep.subr.bf16.mxu0 %v12277_v45  ;;  %v12343_v45 = vld [vmem:[#allocation22 + $0x8a4] ss:$48 sps:$4 sm:$0xff]  }
 0x478   :  { %8077 = vmatpush1.bf16.msra.mxu1 %v12308_v5  ;;  %v4160_v5 = vadd.f32 %v4159_v32, %v2658_v38  ;;  %v12347_v32 = vld [vmem:[#allocation22 + $0x7e0] ss:$48 sps:$4 sm:$0xff]  }
 0x479   :  { %8078 = vmatprep.subr.bf16.mxu1 %v12316_v13  ;;  %v12338_v13 = vld [vmem:[#allocation22 + $0x300] ss:$48 sps:$4 sm:$0xff]  }
 0x47a   :  { %4486 = vmatpush2.bf16.msra.mxu0 %v12275_v26  ;;  %v4204_v26 = vpop.f32.mrf.mxu1 }
 0x47b   :  { %4487 = vmatprep.subr.bf16.mxu0 %v12283_v30  ;;  %v4162_v30 = vadd.f32 %v4161_v58, %v2662_v3  ;;  %v12353_v58 = vld [vmem:[#allocation22 + $0x720] ss:$48 sps:$4 sm:$0xff]  }
 0x47c   :  { %8079 = vmatpush2.bf16.msra.mxu1 %v12314_v25  ;;  %v12341_v25 = vld [vmem:[#allocation22 + $0x8a0] ss:$48 sps:$4 sm:$0xff]  }
 0x47d   :  { %8080 = vmatprep.subr.bf16.mxu1 %v12322_v28  ;;  %v4165_v28 = vpop.f32.mrf.mxu0 }
 0x47e   :  { %4488 = vmatpush2.bf16.msra.mxu0 %v12281_v37  ;;  %v12346_v37 = vld [vmem:[#allocation22 + $0x844] ss:$48 sps:$4 sm:$0xff]  }
 0x47f   :  { %4489 = vmatprep.subr.bf16.mxu0 %v12289_v0  ;;  %v4203_v0 = vadd.f32 %v4202_v44, %v4160_v5 }
 0x480   :  { %8081 = vmatpush2.bf16.msra.mxu1 %v12320_v27  ;;  %v4164_v27 = vadd.f32 %v4163_v6, %v2658_v38 }
 0x481   :  { %8082 = vmatprep.subr.bf16.mxu1 %v12325_v63  ;;  %v4206_v63 = vpop.f32.mrf.mxu1 }
 0x482   :  { %4490 = vmatpush2.bf16.msra.mxu0 %v12287_v21 }
 0x483   :  { %4491 = vmatprep.subr.bf16.mxu0 %v12295_v62  ;;  %v4205_v62 = vadd.f32 %v4204_v26, %v4162_v30  ;;  %v12362_v26 = vld [vmem:[#allocation22 + $0x600] ss:$48 sps:$4 sm:$0xff]  }
 0x484   :  { %8083 = vmatpush2.bf16.msra.mxu1 %v12323_v22  ;;  %v4166_v22 = vadd.f32 %v4165_v28, %v2662_v3  ;;  %v12437_v30 = vld [vmem:[#allocation22 + $0xea0] ss:$48 sps:$4 sm:$0xff]   ;;  %v12367_v28 = vld [vmem:[#allocation22 + $0xba4] ss:$48 sps:$4 sm:$0xff]  }
 0x485   :  { %8084 = vmatprep.subr.bf16.mxu1 %v12328_v46 }
 0x486   :  { %4492 = vmatpush2.bf16.msra.mxu0 %v12293_v10  ;;  %v12344_v10 = vld [vmem:[#allocation22 + $0x840] ss:$48 sps:$4 sm:$0xff]  }
 0x487   :  { %4493 = vmatprep.subr.bf16.mxu0 %v12301_v39 }
 0x488   :  { %8085 = vmatpush2.bf16.msra.mxu1 %v12326_v35  ;;  %v12349_v35 = vld [vmem:[#allocation22 + $0x7e4] ss:$48 sps:$4 sm:$0xff]  }
 0x489   :  { %8086 = vmatprep.subr.bf16.mxu1 %v12331_v29  ;;  %v4207_v29 = vadd.f32 %v4206_v63, %v4164_v27  ;;  %v12445_v27 = vld [vmem:[#allocation22 + $0xe44] ss:$48 sps:$4 sm:$0xff]  }
 0x48a   :  { %4494 = vmatpush2.bf16.msra.mxu0 %v12299_v15  ;;  %v12370_v63 = vld [vmem:[#allocation22 + $0xb44] ss:$48 sps:$4 sm:$0xff]  }
 0x48b   :  { %4495 = vmatprep.subr.bf16.mxu0 %v12307_v36  ;;  %v4208_v36 = vpop.f32.mrf.mxu1 }
 0x48c   :  { %8087 = vmatpush2.bf16.msra.mxu1 %v12329_v18 }
 0x48d   :  { %8088 = vmatprep.subr.bf16.mxu1 %v12334_v50  ;;  %v4209_v50 = vadd.f32 %v4208_v36, %v4166_v22  ;;  %v12451_v22 = vld [vmem:[#allocation22 + $0xde4] ss:$48 sps:$4 sm:$0xff]   ;;  %v12461_v36 = vld [vmem:[#allocation22 + $0xd20] ss:$48 sps:$4 sm:$0xff]  }
 0x48e   :  { %4496 = vmatpush2.bf16.msra.mxu0 %v12305_v47 }
 0x48f   :  { %4497 = vmatprep.subr.bf16.mxu0 %v12313_v16 }
 0x490   :  { %8089 = vmatpush2.bf16.msra.mxu1 %v12332_v42 }
 0x491   :  { %8090 = vmatprep.subr.bf16.mxu1 %v12337_v52  ;;  %v12350_v52 = vld [vmem:[#allocation22 + $0x780] ss:$48 sps:$4 sm:$0xff]  }
 0x492   :  { %4498 = vmatpush2.bf16.msra.mxu0 %v12311_v51  ;;  %v12355_v51 = vld [vmem:[#allocation22 + $0x724] ss:$48 sps:$4 sm:$0xff]  }
 0x493   :  { %4499 = vmatprep.subr.bf16.mxu0 %v12319_v60  ;;  %v12358_v60 = vld [vmem:[#allocation22 + $0x6c4] ss:$48 sps:$4 sm:$0xff]  }
 0x494   :  { %8091 = vmatpush2.bf16.msra.mxu1 %v12335_v23  ;;  %v12356_v23 = vld [vmem:[#allocation22 + $0x6c0] ss:$48 sps:$4 sm:$0xff]  }
 0x495   :  { %8092 = vmatprep.subr.bf16.mxu1 %v12340_v61  ;;  %v12361_v61 = vld [vmem:[#allocation22 + $0x664] ss:$48 sps:$4 sm:$0xff]  }
 0x496   :  { %4500 = vmatpush2.bf16.msra.mxu0 %v12317_v33  ;;  %v12359_v33 = vld [vmem:[#allocation22 + $0x660] ss:$48 sps:$4 sm:$0xff]  }
 0x497   :  { %8105 = vmatprep.subr.bf16.mxu0 %v12343_v45  ;;  %v12364_v45 = vld [vmem:[#allocation22 + $0x604] ss:$48 sps:$4 sm:$0xff]  }
 0x498   :  { %8093 = vmatpush2.bf16.msra.mxu1 %v12338_v13 }
 0x499   :  { %v4245_v21 = vpop.f32.mrf.mxu0  ;;  %4502 = vmatmul.mubr.bf16.vlgmr.msra.gmra.mxu0 %v14288_v49  ;;  %v12352_v49 = vld [vmem:[#allocation22 + $0x784] ss:$48 sps:$4 sm:$0xff]  }
 0x49a   :  { %v4246_v46 = vadd.f32 %v4245_v21, %v4203_v0  ;;  %8106 = vmatpush1.bf16.msra.mxu0 %v12341_v25  ;;  %v12439_v25 = vld [vmem:[#allocation22 + $0xea4] ss:$48 sps:$4 sm:$0xff]   ;;  %v12443_v0 = vld [vmem:[#allocation22 + $0xe40] ss:$48 sps:$4 sm:$0xff]  }
 0x49b   :  { %v4247_v39 = vpop.f32.mrf.mxu0  ;;  %8107 = vmatprep.subr.bf16.mxu0 %v12346_v37  ;;  %8148 = vmatprep.subr.bf16.mxu1 %v12439_v25  ;;  %v12365_v37 = vld [vmem:[#allocation22 + $0xba0] ss:$48 sps:$4 sm:$0xff]  }
 0x49c   :  { %13257 = vtanh.f32 %v4246_v46  ;;  %v4248_v15 = vadd.f32 %v4247_v39, %v4205_v62  ;;  %v12368_v21 = vld [vmem:[#allocation22 + $0xb40] ss:$48 sps:$4 sm:$0xff]   ;;  %v12373_v46 = vld [vmem:[#allocation22 + $0xae4] ss:$48 sps:$4 sm:$0xff]  }
 0x49d   :  { %v4249_v18 = vpop.f32.mrf.mxu0  ;;  %v12449_v62 = vld [vmem:[#allocation22 + $0xde0] ss:$48 sps:$4 sm:$0xff]  }
 0x49e   :  { %13259 = vtanh.f32 %v4248_v15  ;;  %v4250_v47 = vadd.f32 %v4249_v18, %v4207_v29  ;;  %8108 = vmatpush1.bf16.msra.mxu0 %v12344_v10  ;;  %v12371_v10 = vld [vmem:[#allocation22 + $0xae0] ss:$48 sps:$4 sm:$0xff]   ;;  %v12376_v29 = vld [vmem:[#allocation22 + $0xa84] ss:$48 sps:$4 sm:$0xff]  }
 0x49f   :  { %v4251_v16 = vpop.f32.mrf.mxu0  ;;  %8109 = vmatprep.subr.bf16.mxu0 %v12349_v35  ;;  %v12455_v39 = vld [vmem:[#allocation22 + $0xd80] ss:$48 sps:$4 sm:$0xff]   ;;  %v12457_v35 = vld [vmem:[#allocation22 + $0xd84] ss:$48 sps:$4 sm:$0xff]  }
 0x4a0   :  { %13261 = vtanh.f32 %v4250_v47  ;;  %v4252_v42 = vadd.f32 %v4251_v16, %v4209_v50  ;;  %v12374_v15 = vld [vmem:[#allocation22 + $0xa80] ss:$48 sps:$4 sm:$0xff]   ;;  %v12463_v18 = vld [vmem:[#allocation22 + $0xd24] ss:$48 sps:$4 sm:$0xff]  }
 0x4a1   :  { %v12379_v50 = vld [vmem:[#allocation22 + $0xa24] ss:$48 sps:$4 sm:$0xff]   ;;  %v12377_v47 = vld [vmem:[#allocation22 + $0xa20] ss:$48 sps:$4 sm:$0xff]  }
 0x4a2   :  { %13263 = vtanh.f32 %v4252_v42  ;;  %8110 = vmatpush1.bf16.msra.mxu0 %v12347_v32  ;;  %v12467_v32 = vld [vmem:[#allocation22 + $0xcc0] ss:$48 sps:$4 sm:$0xff]   ;;  %v12469_v16 = vld [vmem:[#allocation22 + $0xcc4] ss:$48 sps:$4 sm:$0xff]  }
 0x4a3   :  { %8111 = vmatprep.subr.bf16.mxu0 %v12352_v49  ;;  %v12382_v49 = vld [vmem:[#allocation22 + $0x9c4] ss:$48 sps:$4 sm:$0xff]   ;;  %v12380_v42 = vld [vmem:[#allocation22 + $0x9c0] ss:$48 sps:$4 sm:$0xff]  }
 0x4a6   :  { %8112 = vmatpush1.bf16.msra.mxu0 %v12350_v52  ;;  %v12473_v52 = vld [vmem:[#allocation22 + $0xc60] ss:$48 sps:$4 sm:$0xff]  }
 0x4a7   :  { %8113 = vmatprep.subr.bf16.mxu0 %v12355_v51  ;;  %v12475_v51 = vld [vmem:[#allocation22 + $0xc64] ss:$48 sps:$4 sm:$0xff]  }
 0x4a9   :  { %v13258_v38 = vpop.eup %13257 }
 0x4aa   :  { %4524 = vst [vmem:[%s15350_s22] sm:$0xff] %v13258_v38  ;;  %8114 = vmatpush1.bf16.msra.mxu0 %v12353_v58  ;;  %v12385_v58 = vld [vmem:[#allocation22 + $0x964] ss:$48 sps:$4 sm:$0xff]  }
 0x4ab   :  { %v13260_v44 = vpop.eup %13259  ;;  %8115 = vmatprep.subr.bf16.mxu0 %v12358_v60  ;;  %v4288_v60 = vpop.f32.mrf.mxu1 }
 0x4ac   :  { %4525 = vst [vmem:[%s15350_s22 + $0x8] sm:$0xff] %v13260_v44 }
 0x4ad   :  { %v13262_v3 = vpop.eup %13261 }
 0x4ae   :  { %4530 = vst [vmem:[%s15350_s22 + $0x30] sm:$0xff] %v13262_v3  ;;  %8116 = vmatpush1.bf16.msra.mxu0 %v12356_v23  ;;  %v14322_v13 = vpack.c.bf16 %v13262_v3, %v13258_v38  ;;  %v12383_v38 = vld [vmem:[#allocation22 + $0x960] ss:$48 sps:$4 sm:$0xff]   ;;  %v4290_v3 = vpop.f32.mrf.mxu1 }
 0x4af   :  { %v13264_v6 = vpop.eup %13263  ;;  %8117 = vmatprep.subr.bf16.mxu0 %v12361_v61  ;;  %v12479_v23 = vld [vmem:[#allocation22 + $0xc00] ss:$48 sps:$4 sm:$0xff]   ;;  %v12388_v61 = vld [vmem:[#allocation22 + $0x904] ss:$48 sps:$4 sm:$0xff]  }
 0x4b0   :  { %4531 = vst [vmem:[%s15350_s22 + $0x38] sm:$0xff] %v13264_v6  ;;  %v14320_v5 = vpack.c.bf16 %v13264_v6, %v13260_v44  ;;  %v12481_v44 = vld [vmem:[#allocation22 + $0xc04] ss:$48 sps:$4 sm:$0xff]   ;;  %v12485_v6 = vld [vmem:[#allocation22 + $0x11a0] ss:$48 sps:$4 sm:$0xff]   ;;  %v4292_v25 = vpop.f32.mrf.mxu1 }
 0x4b2   :  { %8094 = vmatprep.mubr.bf16.mxu1 %v14320_v5  ;;  %8118 = vmatpush1.bf16.msra.mxu0 %v12359_v33  ;;  %v12386_v33 = vld [vmem:[#allocation22 + $0x900] ss:$48 sps:$4 sm:$0xff]  }
 0x4b3   :  { %8095 = vmatmul.mubr.bf16.vlgmr.msra.gmra.mxu1 %v14322_v13  ;;  %8119 = vmatprep.subr.bf16.mxu0 %v12364_v45  ;;  %v12487_v45 = vld [vmem:[#allocation22 + $0x11a4] ss:$48 sps:$4 sm:$0xff]  }
 0x4b4   :  { %8149 = vmatpush1.bf16.msra.mxu1 %v12437_v30  ;;  %v2666_v30 = vrot.slane %v14301_v40, %v14194_v17 }
 0x4b5   :  { %8150 = vmatprep.subr.bf16.mxu1 %v12445_v27 }
 0x4b6   :  { %8120 = vmatpush1.bf16.msra.mxu0 %v12362_v26  ;;  %v12391_v26 = vld [vmem:[#allocation22 + $0x2ac] ss:$48 sps:$4 sm:$0xff]   ;;  %v4289_v27 = vadd.f32 %v4288_v60, %v2666_v30 }
 0x4b7   :  { %8121 = vmatprep.subr.bf16.mxu0 %v12367_v28  ;;  %v2670_v28 = vrot.slane %v14301_v40, %v14197_v31 }
 0x4b8   :  { %8151 = vmatpush1.bf16.msra.mxu1 %v12443_v0  ;;  %v12493_v0 = vld [vmem:[#allocation22 + $0x1144] ss:$48 sps:$4 sm:$0xff]  }
 0x4b9   :  { %8152 = vmatprep.subr.bf16.mxu1 %v12451_v22 }
 0x4ba   :  { %8122 = vmatpush2.bf16.msra.mxu0 %v12365_v37  ;;  %v12491_v37 = vld [vmem:[#allocation22 + $0x1140] ss:$48 sps:$4 sm:$0xff]  }
 0x4bb   :  { %8123 = vmatprep.subr.bf16.mxu0 %v12370_v63  ;;  %v4294_v63 = vpop.f32.mrf.mxu1 }
 0x4bc   :  { %8153 = vmatpush1.bf16.msra.mxu1 %v12449_v62  ;;  %v4291_v62 = vadd.f32 %v4290_v3, %v2670_v28  ;;  %v12517_v3 = vld [vmem:[#allocation22 + $0xfc4] ss:$48 sps:$4 sm:$0xff]  }
 0x4bd   :  { %8154 = vmatprep.subr.bf16.mxu1 %v12457_v35  ;;  %v12497_v35 = vld [vmem:[#allocation22 + $0x10e0] ss:$48 sps:$4 sm:$0xff]  }
 0x4be   :  { %8124 = vmatpush2.bf16.msra.mxu0 %v12368_v21 }
 0x4bf   :  { %8125 = vmatprep.subr.bf16.mxu0 %v12373_v46 }
 0x4c0   :  { %8155 = vmatpush1.bf16.msra.mxu1 %v12455_v39 }
 0x4c1   :  { %8156 = vmatprep.subr.bf16.mxu1 %v12463_v18 }
 0x4c2   :  { %8126 = vmatpush2.bf16.msra.mxu0 %v12371_v10  ;;  %v12499_v10 = vld [vmem:[#allocation22 + $0x10e4] ss:$48 sps:$4 sm:$0xff]  }
 0x4c3   :  { %8127 = vmatprep.subr.bf16.mxu0 %v12376_v29  ;;  %v4293_v29 = vadd.f32 %v4292_v25, %v2666_v30  ;;  %v12529_v25 = vld [vmem:[#allocation22 + $0xf04] ss:$48 sps:$4 sm:$0xff]  }
 0x4c4   :  { %8157 = vmatpush1.bf16.msra.mxu1 %v12461_v36 }
 0x4c5   :  { %8158 = vmatprep.subr.bf16.mxu1 %v12469_v16 }
 0x4c6   :  { %8128 = vmatpush2.bf16.msra.mxu0 %v12374_v15 }
 0x4c7   :  { %8129 = vmatprep.subr.bf16.mxu0 %v12379_v50 }
 0x4c8   :  { %8159 = vmatpush1.bf16.msra.mxu1 %v12467_v32 }
 0x4c9   :  { %8160 = vmatprep.subr.bf16.mxu1 %v12475_v51  ;;  %v12503_v51 = vld [vmem:[#allocation22 + $0x1080] ss:$48 sps:$4 sm:$0xff]  }
 0x4ca   :  { %8130 = vmatpush2.bf16.msra.mxu0 %v12377_v47  ;;  %v4295_v47 = vadd.f32 %v4294_v63, %v2670_v28  ;;  %v12389_v63 = vld [vmem:[#allocation22 + $0x2a8] ss:$48 sps:$4 sm:$0xff]  }
 0x4cb   :  { %8131 = vmatprep.subr.bf16.mxu0 %v12382_v49 }
 0x4cc   :  { %8161 = vmatpush1.bf16.msra.mxu1 %v12473_v52 }
 0x4cd   :  { %8162 = vmatprep.subr.bf16.mxu1 %v12481_v44  ;;  %v12511_v44 = vld [vmem:[#allocation22 + $0x1024] ss:$48 sps:$4 sm:$0xff]  }
 0x4ce   :  { %8132 = vmatpush2.bf16.msra.mxu0 %v12380_v42  ;;  %v12505_v42 = vld [vmem:[#allocation22 + $0x1084] ss:$48 sps:$4 sm:$0xff]  }
 0x4cf   :  { %8133 = vmatprep.subr.bf16.mxu0 %v12385_v58 }
 0x4d0   :  { %8163 = vmatpush1.bf16.msra.mxu1 %v12479_v23 }
 0x4d1   :  { %8164 = vmatprep.subr.bf16.mxu1 %v12487_v45 }
 0x4d2   :  { %8134 = vmatpush2.bf16.msra.mxu0 %v12383_v38 }
 0x4d3   :  { %8135 = vmatprep.subr.bf16.mxu0 %v12388_v61  ;;  %v12509_v61 = vld [vmem:[#allocation22 + $0x1020] ss:$48 sps:$4 sm:$0xff]  }
 0x4d4   :  { %8165 = vmatpush2.bf16.msra.mxu1 %v12485_v6  ;;  %v12523_v6 = vld [vmem:[#allocation22 + $0xf64] ss:$48 sps:$4 sm:$0xff]  }
 0x4d5   :  { %8166 = vmatprep.subr.bf16.mxu1 %v12493_v0 }
 0x4d6   :  { %8136 = vmatpush2.bf16.msra.mxu0 %v12386_v33  ;;  %v12515_v33 = vld [vmem:[#allocation22 + $0xfc0] ss:$48 sps:$4 sm:$0xff]  }
 0x4d7   :  { %8191 = vmatprep.subr.bf16.mxu0 %v12391_v26  ;;  %v12521_v26 = vld [vmem:[#allocation22 + $0xf60] ss:$48 sps:$4 sm:$0xff]  }
 0x4d8   :  { %8167 = vmatpush2.bf16.msra.mxu1 %v12491_v37  ;;  %v12527_v37 = vld [vmem:[#allocation22 + $0xf00] ss:$48 sps:$4 sm:$0xff]  }
 0x4d9   :  { %v4331_v21 = vpop.f32.mrf.mxu0  ;;  %8168 = vmatprep.subr.bf16.mxu1 %v12499_v10  ;;  %v12397_v10 = vld [vmem:[#allocation22 + $0x1ec] ss:$48 sps:$4 sm:$0xff]  }
 0x4da   :  { %v4332_v22 = vadd.f32 %v4331_v21, %v4289_v27  ;;  %v4374_v46 = vpop.f32.mrf.mxu1  ;;  %v12535_v21 = vld [vmem:[#allocation22 + $0x8ac] ss:$48 sps:$4 sm:$0xff]  }
 0x4db   :  { %v4333_v39 = vpop.f32.mrf.mxu0 }
 0x4dc   :  { %v4375_v15 = vadd.f32 %v4374_v46, %v4332_v22  ;;  %v4334_v36 = vadd.f32 %v4333_v39, %v4291_v62  ;;  %v4376_v18 = vpop.f32.mrf.mxu1  ;;  %8169 = vmatpush2.bf16.msra.mxu1 %v12497_v35  ;;  %v12394_v22 = vld [vmem:[#allocation22 + $0x24c] ss:$48 sps:$4 sm:$0xff]   ;;  %v12392_v46 = vld [vmem:[#allocation22 + $0x248] ss:$48 sps:$4 sm:$0xff]  }
 0x4dd   :  { %v4335_v50 = vpop.f32.mrf.mxu0  ;;  %8170 = vmatprep.subr.bf16.mxu1 %v12505_v42  ;;  %v12395_v39 = vld [vmem:[#allocation22 + $0x1e8] ss:$48 sps:$4 sm:$0xff]   ;;  %v12400_v35 = vld [vmem:[#allocation22 + $0x18c] ss:$48 sps:$4 sm:$0xff]  }
 0x4de   :  { %13265 = vtanh.f32 %v4375_v15  ;;  %v4377_v32 = vadd.f32 %v4376_v18, %v4334_v36  ;;  %v4336_v16 = vadd.f32 %v4335_v50, %v4293_v29  ;;  %v4378_v49 = vpop.f32.mrf.mxu1  ;;  %v12398_v29 = vld [vmem:[#allocation22 + $0x188] ss:$48 sps:$4 sm:$0xff]   ;;  %v12403_v15 = vld [vmem:[#allocation22 + $0x12c] ss:$48 sps:$4 sm:$0xff]  }
 0x4df   :  { %v4337_v52 = vpop.f32.mrf.mxu0  ;;  %v12401_v36 = vld [vmem:[#allocation22 + $0x128] ss:$48 sps:$4 sm:$0xff]   ;;  %v12406_v18 = vld [vmem:[#allocation22 + $0xcc] ss:$48 sps:$4 sm:$0xff]  }
 0x4e0   :  { %13267 = vtanh.f32 %v4377_v32  ;;  %v4379_v58 = vadd.f32 %v4378_v49, %v4336_v16  ;;  %v4338_v60 = vadd.f32 %v4337_v52, %v4295_v47  ;;  %v4380_v38 = vpop.f32.mrf.mxu1  ;;  %8171 = vmatpush2.bf16.msra.mxu1 %v12503_v51  ;;  %v12404_v50 = vld [vmem:[#allocation22 + $0xc8] ss:$48 sps:$4 sm:$0xff]   ;;  %v12409_v47 = vld [vmem:[#allocation22 + $0x6c] ss:$48 sps:$4 sm:$0xff]  }
 0x4e1   :  { %8172 = vmatprep.subr.bf16.mxu1 %v12511_v44  ;;  %v12407_v32 = vld [vmem:[#allocation22 + $0x68] ss:$48 sps:$4 sm:$0xff]   ;;  %v12412_v16 = vld [vmem:[#allocation22 + $0xc] ss:$48 sps:$4 sm:$0xff]  }
 0x4e2   :  { %13269 = vtanh.f32 %v4379_v58  ;;  %v4381_v23 = vadd.f32 %v4380_v38, %v4338_v60  ;;  %v12410_v49 = vld [vmem:[#allocation22 + $0x8] ss:$48 sps:$4 sm:$0xff]   ;;  %v12415_v42 = vld [vmem:[#allocation22 + $0x5ac] ss:$48 sps:$4 sm:$0xff]  }
 0x4e3   :  { %v12413_v52 = vld [vmem:[#allocation22 + $0x5a8] ss:$48 sps:$4 sm:$0xff]   ;;  %v12418_v51 = vld [vmem:[#allocation22 + $0x54c] ss:$48 sps:$4 sm:$0xff]  }
 0x4e4   :  { %13271 = vtanh.f32 %v4381_v23  ;;  %8173 = vmatpush2.bf16.msra.mxu1 %v12509_v61  ;;  %v12416_v58 = vld [vmem:[#allocation22 + $0x548] ss:$48 sps:$4 sm:$0xff]   ;;  %v12421_v60 = vld [vmem:[#allocation22 + $0x4ec] ss:$48 sps:$4 sm:$0xff]  }
 0x4e5   :  { %8174 = vmatprep.subr.bf16.mxu1 %v12517_v3  ;;  %v12419_v38 = vld [vmem:[#allocation22 + $0x4e8] ss:$48 sps:$4 sm:$0xff]   ;;  %v12424_v23 = vld [vmem:[#allocation22 + $0x48c] ss:$48 sps:$4 sm:$0xff]  }
 0x4e6   :  { %v12422_v44 = vld [vmem:[#allocation22 + $0x488] ss:$48 sps:$4 sm:$0xff]   ;;  %v12427_v61 = vld [vmem:[#allocation22 + $0x42c] ss:$48 sps:$4 sm:$0xff]  }
 0x4e7   :  { %v12425_v3 = vld [vmem:[#allocation22 + $0x428] ss:$48 sps:$4 sm:$0xff]  }
 0x4e8   :  { %8175 = vmatpush2.bf16.msra.mxu1 %v12515_v33  ;;  %v12430_v33 = vld [vmem:[#allocation22 + $0x3cc] ss:$48 sps:$4 sm:$0xff]  }
 0x4e9   :  { %8176 = vmatprep.subr.bf16.mxu1 %v12523_v6  ;;  %v12428_v6 = vld [vmem:[#allocation22 + $0x3c8] ss:$48 sps:$4 sm:$0xff]  }
 0x4eb   :  { %v13266_v45 = vpop.eup %13265 }
 0x4ec   :  { %4526 = vst [vmem:[%s15350_s22 + $0x10] sm:$0xff] %v13266_v45  ;;  %8177 = vmatpush2.bf16.msra.mxu1 %v12521_v26  ;;  %v12431_v26 = vld [vmem:[#allocation22 + $0x368] ss:$48 sps:$4 sm:$0xff]  }
 0x4ed   :  { %v13268_v30 = vpop.eup %13267  ;;  %8178 = vmatprep.subr.bf16.mxu1 %v12529_v25  ;;  %v12434_v25 = vld [vmem:[#allocation22 + $0x308] ss:$48 sps:$4 sm:$0xff]  }
 0x4ee   :  { %4527 = vst [vmem:[%s15350_s22 + $0x18] sm:$0xff] %v13268_v30 }
 0x4ef   :  { %v13270_v28 = vpop.eup %13269 }
 0x4f0   :  { %4532 = vst [vmem:[%s15350_s22 + $0x40] sm:$0xff] %v13270_v28  ;;  %8179 = vmatpush2.bf16.msra.mxu1 %v12527_v37  ;;  %v14344_v62 = vpack.c.bf16 %v13270_v28, %v13266_v45  ;;  %v12433_v45 = vld [vmem:[#allocation22 + $0x36c] ss:$48 sps:$4 sm:$0xff]   ;;  %v12440_v37 = vld [vmem:[#allocation22 + $0xea8] ss:$48 sps:$4 sm:$0xff]  }
 0x4f1   :  { %v13272_v0 = vpop.eup %13271  ;;  %8234 = vmatprep.subr.bf16.mxu1 %v12535_v21  ;;  %v12442_v28 = vld [vmem:[#allocation22 + $0xeac] ss:$48 sps:$4 sm:$0xff]  }
 0x4f2   :  { %4533 = vst [vmem:[%s15350_s22 + $0x48] sm:$0xff] %v13272_v0  ;;  %v14342_v27 = vpack.c.bf16 %v13272_v0, %v13268_v30  ;;  %v12436_v30 = vld [vmem:[#allocation22 + $0x30c] ss:$48 sps:$4 sm:$0xff]  }
 0x4f3   :  { %v12448_v0 = vld [vmem:[#allocation22 + $0xe4c] ss:$48 sps:$4 sm:$0xff]  }
 0x4f4   :  { %8137 = vmatprep.mubr.bf16.mxu0 %v14342_v27  ;;  %v12454_v21 = vld [vmem:[#allocation22 + $0xdec] ss:$48 sps:$4 sm:$0xff]  }
 0x4f5   :  { %8138 = vmatmul.mubr.bf16.vlgmr.msra.gmra.mxu0 %v14344_v62 }
 0x4f6   :  { %8192 = vmatpush1.bf16.msra.mxu0 %v12389_v63  ;;  %8223 = vmatprep.mubr.bf16.mxu0 %v14320_v5  ;;  %v12446_v63 = vld [vmem:[#allocation22 + $0xe48] ss:$48 sps:$4 sm:$0xff]  }
 0x4f7   :  { %8193 = vmatprep.subr.bf16.mxu0 %v12394_v22  ;;  %v12452_v22 = vld [vmem:[#allocation22 + $0xde8] ss:$48 sps:$4 sm:$0xff]  }
 0x4fa   :  { %8194 = vmatpush1.bf16.msra.mxu0 %v12392_v46  ;;  %v12460_v46 = vld [vmem:[#allocation22 + $0xd8c] ss:$48 sps:$4 sm:$0xff]  }
 0x4fb   :  { %8195 = vmatprep.subr.bf16.mxu0 %v12397_v10  ;;  %v12458_v10 = vld [vmem:[#allocation22 + $0xd88] ss:$48 sps:$4 sm:$0xff]  }
 0x4fe   :  { %8196 = vmatpush1.bf16.msra.mxu0 %v12395_v39  ;;  %v12466_v39 = vld [vmem:[#allocation22 + $0xd2c] ss:$48 sps:$4 sm:$0xff]  }
 0x4ff   :  { %8197 = vmatprep.subr.bf16.mxu0 %v12400_v35  ;;  %v12464_v35 = vld [vmem:[#allocation22 + $0xd28] ss:$48 sps:$4 sm:$0xff]  }
 0x502   :  { %8198 = vmatpush1.bf16.msra.mxu0 %v12398_v29  ;;  %v12472_v29 = vld [vmem:[#allocation22 + $0xccc] ss:$48 sps:$4 sm:$0xff]  }
 0x503   :  { %8199 = vmatprep.subr.bf16.mxu0 %v12403_v15  ;;  %v12470_v15 = vld [vmem:[#allocation22 + $0xcc8] ss:$48 sps:$4 sm:$0xff]  }
 0x506   :  { %8200 = vmatpush1.bf16.msra.mxu0 %v12401_v36  ;;  %v12478_v36 = vld [vmem:[#allocation22 + $0xc6c] ss:$48 sps:$4 sm:$0xff]  }
 0x507   :  { %8201 = vmatprep.subr.bf16.mxu0 %v12406_v18  ;;  %v12476_v18 = vld [vmem:[#allocation22 + $0xc68] ss:$48 sps:$4 sm:$0xff]  }
 0x50a   :  { %8202 = vmatpush1.bf16.msra.mxu0 %v12404_v50 }
 0x50b   :  { %8203 = vmatprep.subr.bf16.mxu0 %v12409_v47  ;;  %v12484_v47 = vld [vmem:[#allocation22 + $0xc0c] ss:$48 sps:$4 sm:$0xff]  }
 0x50e   :  { %8204 = vmatpush1.bf16.msra.mxu0 %v12407_v32  ;;  %v12482_v32 = vld [vmem:[#allocation22 + $0xc08] ss:$48 sps:$4 sm:$0xff]  }
 0x50f   :  { %8205 = vmatprep.subr.bf16.mxu0 %v12412_v16 }
 0x512   :  { %8206 = vmatpush1.bf16.msra.mxu0 %v12410_v49  ;;  %v12490_v49 = vld [vmem:[#allocation22 + $0x11ac] ss:$48 sps:$4 sm:$0xff]  }
 0x513   :  { %8207 = vmatprep.subr.bf16.mxu0 %v12415_v42  ;;  %v2674_v42 = vrot.slane %v14301_v40, %v14238_v43 }
 0x516   :  { %8208 = vmatpush2.bf16.msra.mxu0 %v12413_v52 }
 0x517   :  { %8209 = vmatprep.subr.bf16.mxu0 %v12418_v51  ;;  %v2678_v51 = vrot.slane %v14301_v40, %v14235_v11 }
 0x519   :  { %v4417_v50 = vpop.f32.mrf.mxu0 }
 0x51a   :  { %8210 = vmatpush2.bf16.msra.mxu0 %v12416_v58  ;;  %v4460_v52 = vpop.f32.mrf.mxu1  ;;  %v12488_v58 = vld [vmem:[#allocation22 + $0x11a8] ss:$48 sps:$4 sm:$0xff]  }
 0x51b   :  { %8211 = vmatprep.subr.bf16.mxu0 %v12421_v60  ;;  %v4419_v16 = vpop.f32.mrf.mxu0 }
 0x51d   :  { %v4421_v60 = vpop.f32.mrf.mxu0 }
 0x51e   :  { %8212 = vmatpush2.bf16.msra.mxu0 %v12419_v38  ;;  %v12496_v38 = vld [vmem:[#allocation22 + $0x114c] ss:$48 sps:$4 sm:$0xff]  }
 0x51f   :  { %8213 = vmatprep.subr.bf16.mxu0 %v12424_v23  ;;  %v4418_v23 = vadd.f32 %v4417_v50, %v2674_v42 }
 0x522   :  { %8214 = vmatpush2.bf16.msra.mxu0 %v12422_v44  ;;  %v4462_v44 = vpop.f32.mrf.mxu1 }
 0x523   :  { %8215 = vmatprep.subr.bf16.mxu0 %v12427_v61  ;;  %v4420_v61 = vadd.f32 %v4419_v16, %v2678_v51  ;;  %v12518_v16 = vld [vmem:[#allocation22 + $0xfc8] ss:$48 sps:$4 sm:$0xff]  }
 0x526   :  { %8216 = vmatpush2.bf16.msra.mxu0 %v12425_v3  ;;  %v12494_v3 = vld [vmem:[#allocation22 + $0x1148] ss:$48 sps:$4 sm:$0xff]  }
 0x527   :  { %8217 = vmatprep.subr.bf16.mxu0 %v12430_v33  ;;  %v4423_v33 = vpop.f32.mrf.mxu0 }
 0x52a   :  { %8218 = vmatpush2.bf16.msra.mxu0 %v12428_v6  ;;  %v12502_v6 = vld [vmem:[#allocation22 + $0x10ec] ss:$48 sps:$4 sm:$0xff]  }
 0x52b   :  { %8219 = vmatprep.subr.bf16.mxu0 %v12433_v45  ;;  %v4461_v45 = vadd.f32 %v4460_v52, %v4418_v23  ;;  %v12524_v52 = vld [vmem:[#allocation22 + $0xf68] ss:$48 sps:$4 sm:$0xff]  }
 0x52e   :  { %8220 = vmatpush2.bf16.msra.mxu0 %v12431_v26  ;;  %v4422_v26 = vadd.f32 %v4421_v60, %v2674_v42 }
 0x52f   :  { %8221 = vmatprep.subr.bf16.mxu0 %v12436_v30  ;;  %v4464_v30 = vpop.f32.mrf.mxu1 }
 0x532   :  { %8222 = vmatpush2.bf16.msra.mxu0 %v12434_v25 }
 0x533   :  { %8277 = vmatprep.subr.bf16.mxu0 %v12442_v28  ;;  %v4463_v28 = vadd.f32 %v4462_v44, %v4420_v61  ;;  %v12533_v61 = vld [vmem:[#allocation22 + $0x8a8] ss:$48 sps:$4 sm:$0xff]  }
 0x535   :  { %8224 = vmatmul.mubr.bf16.vlgmr.msra.gmra.mxu0 %v14322_v13 }
 0x536   :  { %8278 = vmatpush1.bf16.msra.mxu0 %v12440_v37  ;;  %v4424_v37 = vadd.f32 %v4423_v33, %v2678_v51  ;;  %v12538_v33 = vld [vmem:[#allocation22 + $0x8b4] ss:$48 sps:$4 sm:$0xff]  }
 0x537   :  { %8279 = vmatprep.subr.bf16.mxu0 %v12448_v0  ;;  %v12500_v0 = vld [vmem:[#allocation22 + $0x10e8] ss:$48 sps:$4 sm:$0xff]  }
 0x53a   :  { %8280 = vmatpush1.bf16.msra.mxu0 %v12446_v63 }
 0x53b   :  { %8281 = vmatprep.subr.bf16.mxu0 %v12454_v21  ;;  %v12508_v21 = vld [vmem:[#allocation22 + $0x108c] ss:$48 sps:$4 sm:$0xff]  }
 0x53e   :  { %8282 = vmatpush1.bf16.msra.mxu0 %v12452_v22  ;;  %v4465_v22 = vadd.f32 %v4464_v30, %v4422_v26  ;;  %v12544_v26 = vld [vmem:[#allocation22 + $0x854] ss:$48 sps:$4 sm:$0xff]   ;;  %v12539_v30 = vld [vmem:[#allocation22 + $0x848] ss:$48 sps:$4 sm:$0xff]  }
 0x53f   :  { %8283 = vmatprep.subr.bf16.mxu0 %v12460_v46 }
 0x542   :  { %8284 = vmatpush1.bf16.msra.mxu0 %v12458_v10  ;;  %v4466_v10 = vpop.f32.mrf.mxu1 }
 0x543   :  { %8285 = vmatprep.subr.bf16.mxu0 %v12466_v39 }
 0x546   :  { %8286 = vmatpush1.bf16.msra.mxu0 %v12464_v35  ;;  %v4467_v35 = vadd.f32 %v4466_v10, %v4424_v37  ;;  %v12550_v37 = vld [vmem:[#allocation22 + $0x7f4] ss:$48 sps:$4 sm:$0xff]   ;;  %v12554_v10 = vld [vmem:[#allocation22 + $0x790] ss:$48 sps:$4 sm:$0xff]  }
 0x547   :  { %8287 = vmatprep.subr.bf16.mxu0 %v12472_v29 }
 0x54a   :  { %8288 = vmatpush1.bf16.msra.mxu0 %v12470_v15  ;;  %v12506_v15 = vld [vmem:[#allocation22 + $0x1088] ss:$48 sps:$4 sm:$0xff]  }
 0x54b   :  { %8289 = vmatprep.subr.bf16.mxu0 %v12478_v36 }
 0x54e   :  { %8290 = vmatpush1.bf16.msra.mxu0 %v12476_v18  ;;  %v12514_v18 = vld [vmem:[#allocation22 + $0x102c] ss:$48 sps:$4 sm:$0xff]  }
 0x54f   :  { %8291 = vmatprep.subr.bf16.mxu0 %v12484_v47  ;;  %v12512_v47 = vld [vmem:[#allocation22 + $0x1028] ss:$48 sps:$4 sm:$0xff]  }
 0x552   :  { %8292 = vmatpush1.bf16.msra.mxu0 %v12482_v32  ;;  %v12520_v32 = vld [vmem:[#allocation22 + $0xfcc] ss:$48 sps:$4 sm:$0xff]  }
 0x553   :  { %8293 = vmatprep.subr.bf16.mxu0 %v12490_v49  ;;  %v12526_v49 = vld [vmem:[#allocation22 + $0xf6c] ss:$48 sps:$4 sm:$0xff]  }
 0x556   :  { %8294 = vmatpush2.bf16.msra.mxu0 %v12488_v58  ;;  %v12532_v58 = vld [vmem:[#allocation22 + $0xf0c] ss:$48 sps:$4 sm:$0xff]  }
 0x557   :  { %8295 = vmatprep.subr.bf16.mxu0 %v12496_v38  ;;  %v12530_v38 = vld [vmem:[#allocation22 + $0xf08] ss:$48 sps:$4 sm:$0xff]  }
 0x559   :  { %v4503_v25 = vpop.f32.mrf.mxu0 }
 0x55a   :  { %v4504_v40 = vadd.f32 %v4503_v25, %v4461_v45  ;;  %8296 = vmatpush2.bf16.msra.mxu0 %v12494_v3  ;;  %v12541_v45 = vld [vmem:[#allocation22 + $0x84c] ss:$48 sps:$4 sm:$0xff]  }
 0x55b   :  { %v4505_v63 = vpop.f32.mrf.mxu0  ;;  %8297 = vmatprep.subr.bf16.mxu0 %v12502_v6  ;;  %v12536_v6 = vld [vmem:[#allocation22 + $0x8b0] ss:$48 sps:$4 sm:$0xff]   ;;  %v12547_v25 = vld [vmem:[#allocation22 + $0x7ec] ss:$48 sps:$4 sm:$0xff]  }
 0x55c   :  { %13273 = vtanh.f32 %v4504_v40  ;;  %v4506_v46 = vadd.f32 %v4505_v63, %v4463_v28  ;;  %v12542_v28 = vld [vmem:[#allocation22 + $0x850] ss:$48 sps:$4 sm:$0xff]   ;;  %v12545_v40 = vld [vmem:[#allocation22 + $0x7e8] ss:$48 sps:$4 sm:$0xff]  }
 0x55d   :  { %v4507_v39 = vpop.f32.mrf.mxu0  ;;  %v12548_v63 = vld [vmem:[#allocation22 + $0x7f0] ss:$48 sps:$4 sm:$0xff]  }
 0x55e   :  { %13275 = vtanh.f32 %v4506_v46  ;;  %v4508_v29 = vadd.f32 %v4507_v39, %v4465_v22  ;;  %8298 = vmatpush2.bf16.msra.mxu0 %v12500_v0  ;;  %v12553_v0 = vld [vmem:[#allocation22 + $0x78c] ss:$48 sps:$4 sm:$0xff]   ;;  %v12551_v22 = vld [vmem:[#allocation22 + $0x788] ss:$48 sps:$4 sm:$0xff]   ;;  %v12562_v39 = vld [vmem:[#allocation22 + $0x734] ss:$48 sps:$4 sm:$0xff]  }
 0x55f   :  { %v4509_v36 = vpop.f32.mrf.mxu0  ;;  %8299 = vmatprep.subr.bf16.mxu0 %v12508_v21  ;;  %v12556_v21 = vld [vmem:[#allocation22 + $0x794] ss:$48 sps:$4 sm:$0xff]   ;;  %v12559_v46 = vld [vmem:[#allocation22 + $0x72c] ss:$48 sps:$4 sm:$0xff]  }
 0x560   :  { %13277 = vtanh.f32 %v4508_v29  ;;  %v4510_v50 = vadd.f32 %v4509_v36, %v4467_v35  ;;  %v12557_v35 = vld [vmem:[#allocation22 + $0x728] ss:$48 sps:$4 sm:$0xff]   ;;  %v12565_v29 = vld [vmem:[#allocation22 + $0x6cc] ss:$48 sps:$4 sm:$0xff]   ;;  %v12568_v36 = vld [vmem:[#allocation22 + $0x6d4] ss:$48 sps:$4 sm:$0xff]  }
 0x562   :  { %13279 = vtanh.f32 %v4510_v50  ;;  %8300 = vmatpush2.bf16.msra.mxu0 %v12506_v15  ;;  %v12560_v15 = vld [vmem:[#allocation22 + $0x730] ss:$48 sps:$4 sm:$0xff]   ;;  %v12571_v50 = vld [vmem:[#allocation22 + $0x66c] ss:$48 sps:$4 sm:$0xff]  }
 0x563   :  { %8301 = vmatprep.subr.bf16.mxu0 %v12514_v18  ;;  %v12563_v18 = vld [vmem:[#allocation22 + $0x6c8] ss:$48 sps:$4 sm:$0xff]  }
 0x566   :  { %8302 = vmatpush2.bf16.msra.mxu0 %v12512_v47  ;;  %v12566_v47 = vld [vmem:[#allocation22 + $0x6d0] ss:$48 sps:$4 sm:$0xff]  }
 0x567   :  { %8303 = vmatprep.subr.bf16.mxu0 %v12520_v32  ;;  %v12574_v32 = vld [vmem:[#allocation22 + $0x674] ss:$48 sps:$4 sm:$0xff]  }
 0x569   :  { %v13274_v42 = vpop.eup %13273 }
 0x56a   :  { %4528 = vst [vmem:[%s15350_s22 + $0x20] sm:$0xff] %v13274_v42  ;;  %8304 = vmatpush2.bf16.msra.mxu0 %v12518_v16  ;;  %v12569_v16 = vld [vmem:[#allocation22 + $0x668] ss:$48 sps:$4 sm:$0xff]  }
 0x56b   :  { %v13276_v51 = vpop.eup %13275  ;;  %8305 = vmatprep.subr.bf16.mxu0 %v12526_v49  ;;  %v12577_v49 = vld [vmem:[#allocation22 + $0x60c] ss:$48 sps:$4 sm:$0xff]  }
 0x56c   :  { %4529 = vst [vmem:[%s15350_s22 + $0x28] sm:$0xff] %v13276_v51 }
 0x56d   :  { %v13278_v60 = vpop.eup %13277 }
 0x56e   :  { %4534 = vst [vmem:[%s15350_s22 + $0x50] sm:$0xff] %v13278_v60  ;;  %8306 = vmatpush2.bf16.msra.mxu0 %v12524_v52  ;;  %v14368_v3 = vpack.c.bf16 %v13278_v60, %v13274_v42  ;;  %v12572_v42 = vld [vmem:[#allocation22 + $0x670] ss:$48 sps:$4 sm:$0xff]   ;;  %v12580_v52 = vld [vmem:[#allocation22 + $0x614] ss:$48 sps:$4 sm:$0xff]  }
 0x56f   :  { %v13280_v23 = vpop.eup %13279  ;;  %8307 = vmatprep.subr.bf16.mxu0 %v12532_v58  ;;  %v12583_v58 = vld [vmem:[#allocation22 + $0xbac] ss:$48 sps:$4 sm:$0xff]   ;;  %v12578_v60 = vld [vmem:[#allocation22 + $0x610] ss:$48 sps:$4 sm:$0xff]  }
 0x570   :  { %4535 = vst [vmem:[%s15350_s22 + $0x58] sm:$0xff] %v13280_v23  ;;  %v14366_v44 = vpack.c.bf16 %v13280_v23, %v13276_v51  ;;  %v12575_v51 = vld [vmem:[#allocation22 + $0x608] ss:$48 sps:$4 sm:$0xff]   ;;  %s13793_s22 = smov [#allocation31]  }
 0x571   :  { %v12581_v23 = vld [vmem:[#allocation22 + $0xba8] ss:$48 sps:$4 sm:$0xff]   ;;  %s10305_s4 = sshll.u32 %s13793_s22, 4  ;;  %s10306_s4 = int_to_ptr.vmem [resolvable:$true] %s10305_s4 }
 0x572   :  { %8308 = vmatpush2.bf16.msra.mxu0 %v12530_v38  ;;  %8180 = vmatprep.mubr.bf16.mxu1 %v14366_v44  ;;  %v12586_v38 = vld [vmem:[#allocation22 + $0xbb4] ss:$48 sps:$4 sm:$0xff]   ;;  %s13702_s24 = scalar_lea.vmem %s10306_s4, 1536  ;;  %p13707_p7 = scmp.lt.s32.totalorder %s10306_s4, %s10306_s4 }
 0x573   :  { %8309 = vmatprep.mubr.bf16.mxu0 %v14366_v44  ;;  %8181 = vmatmul.mubr.bf16.vlgmr.msra.gmra.mxu1 %v14368_v3  ;;  %p13703_p6 = scmp.ne.s32.totalorder %s10306_s4, %s13702_s24  ;;  %p13708_p8 = scmp.lt.s32.totalorder %s13702_s24, %s13702_s24 }
 0x574   :  { %8235 = vmatpush1.bf16.msra.mxu1 %v12533_v61  ;;  %8266 = vmatprep.mubr.bf16.mxu1 %v14342_v27  ;;  %v12589_v61 = vld [vmem:[#allocation22 + $0xb4c] ss:$48 sps:$4 sm:$0xff]  }
 0x575   :  { %8310 = vmatmul.mubr.bf16.vlgmr.msra.gmra.mxu0 %v14368_v3  ;;  %8363 = vmatprep.subr.bf16.mxu0 %v12538_v33  ;;  %v12584_v33 = vld [vmem:[#allocation22 + $0xbb0] ss:$48 sps:$4 sm:$0xff]   ;;  %p13709_p9 = por %p13708_p8, %p13707_p7 }
 0x576   :  { %8364 = vmatpush1.bf16.msra.mxu0 %v12536_v6  ;;  %8395 = vmatprep.mubr.bf16.mxu0 %v14342_v27  ;;  %v12592_v6 = vld [vmem:[#allocation22 + $0xb54] ss:$48 sps:$4 sm:$0xff]  }
 0x577   :  { %8236 = vmatprep.subr.bf16.mxu1 %v12541_v45  ;;  %8365 = vmatprep.subr.bf16.mxu0 %v12544_v26  ;;  %v12587_v45 = vld [vmem:[#allocation22 + $0xb48] ss:$48 sps:$4 sm:$0xff]   ;;  %v12595_v26 = vld [vmem:[#allocation22 + $0xaec] ss:$48 sps:$4 sm:$0xff]   ;;  %p13710_p10 = pnand %p13709_p9, %p13703_p6 }
 0x578   :  { %8237 = vmatpush1.bf16.msra.mxu1 %v12539_v30  ;;  %v12590_v30 = vld [vmem:[#allocation22 + $0xb50] ss:$48 sps:$4 sm:$0xff]  }
 0x579   :  { %8238 = vmatprep.subr.bf16.mxu1 %v12547_v25  ;;  %v12598_v25 = vld [vmem:[#allocation22 + $0xaf4] ss:$48 sps:$4 sm:$0xff]  }
 0x57a   :  { %8366 = vmatpush1.bf16.msra.mxu0 %v12542_v28  ;;  %v12593_v28 = vld [vmem:[#allocation22 + $0xae8] ss:$48 sps:$4 sm:$0xff]  }
 0x57b   :  { %8367 = vmatprep.subr.bf16.mxu0 %v12550_v37  ;;  %v12601_v37 = vld [vmem:[#allocation22 + $0xa8c] ss:$48 sps:$4 sm:$0xff]  }
 0x57c   :  { %8239 = vmatpush1.bf16.msra.mxu1 %v12545_v40  ;;  %v12596_v40 = vld [vmem:[#allocation22 + $0xaf0] ss:$48 sps:$4 sm:$0xff]  }
 0x57d   :  { %8240 = vmatprep.subr.bf16.mxu1 %v12553_v0  ;;  %v12604_v0 = vld [vmem:[#allocation22 + $0xa94] ss:$48 sps:$4 sm:$0xff]  }
 0x57e   :  { %8368 = vmatpush1.bf16.msra.mxu0 %v12548_v63  ;;  %v12599_v63 = vld [vmem:[#allocation22 + $0xa88] ss:$48 sps:$4 sm:$0xff]  }
 0x57f   :  { %8369 = vmatprep.subr.bf16.mxu0 %v12556_v21  ;;  %v12607_v21 = vld [vmem:[#allocation22 + $0xa2c] ss:$48 sps:$4 sm:$0xff]  }
 0x580   :  { %8241 = vmatpush1.bf16.msra.mxu1 %v12551_v22  ;;  %v12602_v22 = vld [vmem:[#allocation22 + $0xa90] ss:$48 sps:$4 sm:$0xff]  }
 0x581   :  { %8242 = vmatprep.subr.bf16.mxu1 %v12559_v46  ;;  %v12610_v46 = vld [vmem:[#allocation22 + $0xa34] ss:$48 sps:$4 sm:$0xff]  }
 0x582   :  { %8370 = vmatpush1.bf16.msra.mxu0 %v12554_v10  ;;  %v12605_v10 = vld [vmem:[#allocation22 + $0xa28] ss:$48 sps:$4 sm:$0xff]  }
 0x583   :  { %8371 = vmatprep.subr.bf16.mxu0 %v12562_v39  ;;  %v12613_v39 = vld [vmem:[#allocation22 + $0x9cc] ss:$48 sps:$4 sm:$0xff]  }
 0x584   :  { %8243 = vmatpush1.bf16.msra.mxu1 %v12557_v35  ;;  %v12608_v35 = vld [vmem:[#allocation22 + $0xa30] ss:$48 sps:$4 sm:$0xff]  }
 0x585   :  { %8244 = vmatprep.subr.bf16.mxu1 %v12565_v29  ;;  %v12616_v29 = vld [vmem:[#allocation22 + $0x9d4] ss:$48 sps:$4 sm:$0xff]  }
 0x586   :  { %8372 = vmatpush1.bf16.msra.mxu0 %v12560_v15  ;;  %v12611_v15 = vld [vmem:[#allocation22 + $0x9c8] ss:$48 sps:$4 sm:$0xff]  }
 0x587   :  { %8373 = vmatprep.subr.bf16.mxu0 %v12568_v36  ;;  %v12619_v36 = vld [vmem:[#allocation22 + $0x96c] ss:$48 sps:$4 sm:$0xff]  }
 0x588   :  { %8245 = vmatpush1.bf16.msra.mxu1 %v12563_v18  ;;  %v12614_v18 = vld [vmem:[#allocation22 + $0x9d0] ss:$48 sps:$4 sm:$0xff]  }
 0x589   :  { %8246 = vmatprep.subr.bf16.mxu1 %v12571_v50  ;;  %v12622_v50 = vld [vmem:[#allocation22 + $0x974] ss:$48 sps:$4 sm:$0xff]  }
 0x58a   :  { %8374 = vmatpush1.bf16.msra.mxu0 %v12566_v47  ;;  %v12617_v47 = vld [vmem:[#allocation22 + $0x968] ss:$48 sps:$4 sm:$0xff]  }
 0x58b   :  { %8375 = vmatprep.subr.bf16.mxu0 %v12574_v32  ;;  %v12625_v32 = vld [vmem:[#allocation22 + $0x90c] ss:$48 sps:$4 sm:$0xff]  }
 0x58c   :  { %8247 = vmatpush1.bf16.msra.mxu1 %v12569_v16  ;;  %v12620_v16 = vld [vmem:[#allocation22 + $0x970] ss:$48 sps:$4 sm:$0xff]  }
 0x58d   :  { %8248 = vmatprep.subr.bf16.mxu1 %v12577_v49  ;;  %v12628_v49 = vld [vmem:[#allocation22 + $0x914] ss:$48 sps:$4 sm:$0xff]  }
 0x58e   :  { %8376 = vmatpush1.bf16.msra.mxu0 %v12572_v42  ;;  %v12623_v42 = vld [vmem:[#allocation22 + $0x908] ss:$48 sps:$4 sm:$0xff]  }
 0x58f   :  { %8377 = vmatprep.subr.bf16.mxu0 %v12580_v52  ;;  %v12631_v52 = vld [vmem:[#allocation22 + $0x2b4] ss:$48 sps:$4 sm:$0xff]  }
 0x590   :  { %8249 = vmatpush1.bf16.msra.mxu1 %v12575_v51  ;;  %v12626_v51 = vld [vmem:[#allocation22 + $0x910] ss:$48 sps:$4 sm:$0xff]  }
 0x591   :  { %8250 = vmatprep.subr.bf16.mxu1 %v12583_v58  ;;  %v12634_v58 = vld [vmem:[#allocation22 + $0x2bc] ss:$48 sps:$4 sm:$0xff]  }
 0x592   :  { %8378 = vmatpush1.bf16.msra.mxu0 %v12578_v60  ;;  %v12629_v60 = vld [vmem:[#allocation22 + $0x2b0] ss:$48 sps:$4 sm:$0xff]  }
 0x593   :  { %8379 = vmatprep.subr.bf16.mxu0 %v12586_v38  ;;  %v12637_v38 = vld [vmem:[#allocation22 + $0x254] ss:$48 sps:$4 sm:$0xff]  }
 0x594   :  { %8251 = vmatpush2.bf16.msra.mxu1 %v12581_v23  ;;  %v12632_v23 = vld [vmem:[#allocation22 + $0x2b8] ss:$48 sps:$4 sm:$0xff]  }
 0x595   :  { %8252 = vmatprep.subr.bf16.mxu1 %v12589_v61  ;;  %v12640_v61 = vld [vmem:[#allocation22 + $0x25c] ss:$48 sps:$4 sm:$0xff]  }
 0x596   :  { %8380 = vmatpush2.bf16.msra.mxu0 %v12584_v33  ;;  %v12635_v33 = vld [vmem:[#allocation22 + $0x250] ss:$48 sps:$4 sm:$0xff]  }
 0x597   :  { %8381 = vmatprep.subr.bf16.mxu0 %v12592_v6  ;;  %v12643_v6 = vld [vmem:[#allocation22 + $0x1f4] ss:$48 sps:$4 sm:$0xff]  }
 0x598   :  { %8253 = vmatpush2.bf16.msra.mxu1 %v12587_v45  ;;  %v12638_v45 = vld [vmem:[#allocation22 + $0x258] ss:$48 sps:$4 sm:$0xff]  }
 0x599   :  { %8254 = vmatprep.subr.bf16.mxu1 %v12595_v26  ;;  %v12646_v26 = vld [vmem:[#allocation22 + $0x1fc] ss:$48 sps:$4 sm:$0xff]  }
 0x59a   :  { %8382 = vmatpush2.bf16.msra.mxu0 %v12590_v30  ;;  %v12641_v30 = vld [vmem:[#allocation22 + $0x1f0] ss:$48 sps:$4 sm:$0xff]  }
 0x59b   :  { %8383 = vmatprep.subr.bf16.mxu0 %v12598_v25  ;;  %v12649_v25 = vld [vmem:[#allocation22 + $0x194] ss:$48 sps:$4 sm:$0xff]  }
 0x59c   :  { %8255 = vmatpush2.bf16.msra.mxu1 %v12593_v28  ;;  %v12644_v28 = vld [vmem:[#allocation22 + $0x1f8] ss:$48 sps:$4 sm:$0xff]  }
 0x59d   :  { %8256 = vmatprep.subr.bf16.mxu1 %v12601_v37  ;;  %v12652_v37 = vld [vmem:[#allocation22 + $0x19c] ss:$48 sps:$4 sm:$0xff]  }
 0x59e   :  { %8384 = vmatpush2.bf16.msra.mxu0 %v12596_v40  ;;  %v12647_v40 = vld [vmem:[#allocation22 + $0x190] ss:$48 sps:$4 sm:$0xff]  }
 0x59f   :  { %8385 = vmatprep.subr.bf16.mxu0 %v12604_v0  ;;  %v12655_v0 = vld [vmem:[#allocation22 + $0x134] ss:$48 sps:$4 sm:$0xff]  }
 0x5a0   :  { %8257 = vmatpush2.bf16.msra.mxu1 %v12599_v63  ;;  %v12650_v63 = vld [vmem:[#allocation22 + $0x198] ss:$48 sps:$4 sm:$0xff]  }
 0x5a1   :  { %8258 = vmatprep.subr.bf16.mxu1 %v12607_v21  ;;  %v12658_v21 = vld [vmem:[#allocation22 + $0x13c] ss:$48 sps:$4 sm:$0xff]  }
 0x5a2   :  { %8386 = vmatpush2.bf16.msra.mxu0 %v12602_v22  ;;  %v12653_v22 = vld [vmem:[#allocation22 + $0x130] ss:$48 sps:$4 sm:$0xff]  }
 0x5a3   :  { %8387 = vmatprep.subr.bf16.mxu0 %v12610_v46  ;;  %v12661_v46 = vld [vmem:[#allocation22 + $0xd4] ss:$48 sps:$4 sm:$0xff]  }
 0x5a4   :  { %8259 = vmatpush2.bf16.msra.mxu1 %v12605_v10  ;;  %v12656_v10 = vld [vmem:[#allocation22 + $0x138] ss:$48 sps:$4 sm:$0xff]  }
 0x5a5   :  { %8260 = vmatprep.subr.bf16.mxu1 %v12613_v39  ;;  %v12664_v39 = vld [vmem:[#allocation22 + $0xdc] ss:$48 sps:$4 sm:$0xff]  }
 0x5a6   :  { %8388 = vmatpush2.bf16.msra.mxu0 %v12608_v35  ;;  %v12659_v35 = vld [vmem:[#allocation22 + $0xd0] ss:$48 sps:$4 sm:$0xff]  }
 0x5a7   :  { %8389 = vmatprep.subr.bf16.mxu0 %v12616_v29  ;;  %v12667_v29 = vld [vmem:[#allocation22 + $0x74] ss:$48 sps:$4 sm:$0xff]  }
 0x5a8   :  { %8261 = vmatpush2.bf16.msra.mxu1 %v12611_v15  ;;  %v12662_v15 = vld [vmem:[#allocation22 + $0xd8] ss:$48 sps:$4 sm:$0xff]  }
 0x5a9   :  { %8262 = vmatprep.subr.bf16.mxu1 %v12619_v36  ;;  %v12670_v36 = vld [vmem:[#allocation22 + $0x7c] ss:$48 sps:$4 sm:$0xff]  }
 0x5aa   :  { %8390 = vmatpush2.bf16.msra.mxu0 %v12614_v18  ;;  %v12665_v18 = vld [vmem:[#allocation22 + $0x70] ss:$48 sps:$4 sm:$0xff]  }
 0x5ab   :  { %8391 = vmatprep.subr.bf16.mxu0 %v12622_v50  ;;  %v12673_v50 = vld [vmem:[#allocation22 + $0x14] ss:$48 sps:$4 sm:$0xff]  }
 0x5ac   :  { %8263 = vmatpush2.bf16.msra.mxu1 %v12617_v47  ;;  %v12668_v47 = vld [vmem:[#allocation22 + $0x78] ss:$48 sps:$4 sm:$0xff]  }
 0x5ad   :  { %8264 = vmatprep.subr.bf16.mxu1 %v12625_v32  ;;  %v12676_v32 = vld [vmem:[#allocation22 + $0x1c] ss:$48 sps:$4 sm:$0xff]  }
 0x5ae   :  { %8392 = vmatpush2.bf16.msra.mxu0 %v12620_v16  ;;  %v12671_v16 = vld [vmem:[#allocation22 + $0x10] ss:$48 sps:$4 sm:$0xff]  }
 0x5af   :  { %8393 = vmatprep.subr.bf16.mxu0 %v12628_v49  ;;  %v12679_v49 = vld [vmem:[#allocation22 + $0x5b4] ss:$48 sps:$4 sm:$0xff]  }
 0x5b0   :  { %8265 = vmatpush2.bf16.msra.mxu1 %v12623_v42  ;;  %v12674_v42 = vld [vmem:[#allocation22 + $0x18] ss:$48 sps:$4 sm:$0xff]  }
 0x5b1   :  { %8320 = vmatprep.subr.bf16.mxu1 %v12631_v52  ;;  %v12682_v52 = vld [vmem:[#allocation22 + $0x5bc] ss:$48 sps:$4 sm:$0xff]  }
 0x5b2   :  { %8394 = vmatpush2.bf16.msra.mxu0 %v12626_v51  ;;  %v12677_v51 = vld [vmem:[#allocation22 + $0x5b0] ss:$48 sps:$4 sm:$0xff]  }
 0x5b3   :  { %8267 = vmatmul.mubr.bf16.vlgmr.msra.gmra.mxu1 %v14344_v62  ;;  %8449 = vmatprep.subr.bf16.mxu0 %v12634_v58  ;;  %v12685_v58 = vld [vmem:[#allocation22 + $0x554] ss:$48 sps:$4 sm:$0xff]  }
 0x5b4   :  { %8321 = vmatpush1.bf16.msra.mxu1 %v12629_v60  ;;  %8352 = vmatprep.mubr.bf16.mxu1 %v14320_v5  ;;  %v12680_v60 = vld [vmem:[#allocation22 + $0x5b8] ss:$48 sps:$4 sm:$0xff]  }
 0x5b5   :  { %8396 = vmatmul.mubr.bf16.vlgmr.msra.gmra.mxu0 %v14344_v62  ;;  %8322 = vmatprep.subr.bf16.mxu1 %v12637_v38  ;;  %v12688_v38 = vld [vmem:[#allocation22 + $0x55c] ss:$48 sps:$4 sm:$0xff]  }
 0x5b6   :  { %8450 = vmatpush1.bf16.msra.mxu0 %v12632_v23  ;;  %8481 = vmatprep.mubr.bf16.mxu0 %v14320_v5  ;;  %v12683_v23 = vld [vmem:[#allocation22 + $0x550] ss:$48 sps:$4 sm:$0xff]  }
 0x5b7   :  { %8451 = vmatprep.subr.bf16.mxu0 %v12640_v61  ;;  %v12691_v61 = vld [vmem:[#allocation22 + $0x4f4] ss:$48 sps:$4 sm:$0xff]  }
 0x5b8   :  { %8323 = vmatpush1.bf16.msra.mxu1 %v12635_v33  ;;  %v12686_v33 = vld [vmem:[#allocation22 + $0x558] ss:$48 sps:$4 sm:$0xff]  }
 0x5b9   :  { %8324 = vmatprep.subr.bf16.mxu1 %v12643_v6  ;;  %v12694_v6 = vld [vmem:[#allocation22 + $0x4fc] ss:$48 sps:$4 sm:$0xff]  }
 0x5ba   :  { %8452 = vmatpush1.bf16.msra.mxu0 %v12638_v45  ;;  %v12689_v45 = vld [vmem:[#allocation22 + $0x4f0] ss:$48 sps:$4 sm:$0xff]  }
 0x5bb   :  { %8453 = vmatprep.subr.bf16.mxu0 %v12646_v26  ;;  %v12697_v26 = vld [vmem:[#allocation22 + $0x494] ss:$48 sps:$4 sm:$0xff]  }
 0x5bc   :  { %8325 = vmatpush1.bf16.msra.mxu1 %v12641_v30  ;;  %v12692_v30 = vld [vmem:[#allocation22 + $0x4f8] ss:$48 sps:$4 sm:$0xff]  }
 0x5bd   :  { %8326 = vmatprep.subr.bf16.mxu1 %v12649_v25  ;;  %v12700_v25 = vld [vmem:[#allocation22 + $0x49c] ss:$48 sps:$4 sm:$0xff]  }
 0x5be   :  { %8454 = vmatpush1.bf16.msra.mxu0 %v12644_v28  ;;  %v12695_v28 = vld [vmem:[#allocation22 + $0x490] ss:$48 sps:$4 sm:$0xff]  }
 0x5bf   :  { %8455 = vmatprep.subr.bf16.mxu0 %v12652_v37  ;;  %v12703_v37 = vld [vmem:[#allocation22 + $0x434] ss:$48 sps:$4 sm:$0xff]  }
 0x5c0   :  { %8327 = vmatpush1.bf16.msra.mxu1 %v12647_v40  ;;  %v12698_v40 = vld [vmem:[#allocation22 + $0x498] ss:$48 sps:$4 sm:$0xff]  }
 0x5c1   :  { %8328 = vmatprep.subr.bf16.mxu1 %v12655_v0  ;;  %v12706_v0 = vld [vmem:[#allocation22 + $0x43c] ss:$48 sps:$4 sm:$0xff]  }
 0x5c2   :  { %8456 = vmatpush1.bf16.msra.mxu0 %v12650_v63  ;;  %v12701_v63 = vld [vmem:[#allocation22 + $0x430] ss:$48 sps:$4 sm:$0xff]  }
 0x5c3   :  { %8457 = vmatprep.subr.bf16.mxu0 %v12658_v21  ;;  %v12709_v21 = vld [vmem:[#allocation22 + $0x3d4] ss:$48 sps:$4 sm:$0xff]  }
 0x5c4   :  { %8329 = vmatpush1.bf16.msra.mxu1 %v12653_v22  ;;  %v12704_v22 = vld [vmem:[#allocation22 + $0x438] ss:$48 sps:$4 sm:$0xff]  }
 0x5c5   :  { %8330 = vmatprep.subr.bf16.mxu1 %v12661_v46  ;;  %v12712_v46 = vld [vmem:[#allocation22 + $0x3dc] ss:$48 sps:$4 sm:$0xff]  }
 0x5c6   :  { %8458 = vmatpush1.bf16.msra.mxu0 %v12656_v10  ;;  %v12707_v10 = vld [vmem:[#allocation22 + $0x3d0] ss:$48 sps:$4 sm:$0xff]  }
 0x5c7   :  { %8459 = vmatprep.subr.bf16.mxu0 %v12664_v39  ;;  %v12715_v39 = vld [vmem:[#allocation22 + $0x374] ss:$48 sps:$4 sm:$0xff]  }
 0x5c8   :  { %8331 = vmatpush1.bf16.msra.mxu1 %v12659_v35  ;;  %v12710_v35 = vld [vmem:[#allocation22 + $0x3d8] ss:$48 sps:$4 sm:$0xff]  }
 0x5c9   :  { %8332 = vmatprep.subr.bf16.mxu1 %v12667_v29  ;;  %v12718_v29 = vld [vmem:[#allocation22 + $0x37c] ss:$48 sps:$4 sm:$0xff]  }
 0x5ca   :  { %8460 = vmatpush1.bf16.msra.mxu0 %v12662_v15  ;;  %v12713_v15 = vld [vmem:[#allocation22 + $0x370] ss:$48 sps:$4 sm:$0xff]  }
 0x5cb   :  { %8461 = vmatprep.subr.bf16.mxu0 %v12670_v36  ;;  %v12721_v36 = vld [vmem:[#allocation22 + $0x314] ss:$48 sps:$4 sm:$0xff]  }
 0x5cc   :  { %8333 = vmatpush1.bf16.msra.mxu1 %v12665_v18  ;;  %v12716_v18 = vld [vmem:[#allocation22 + $0x378] ss:$48 sps:$4 sm:$0xff]  }
 0x5cd   :  { %8334 = vmatprep.subr.bf16.mxu1 %v12673_v50  ;;  %v12724_v50 = vld [vmem:[#allocation22 + $0x31c] ss:$48 sps:$4 sm:$0xff]  }
 0x5ce   :  { %8462 = vmatpush1.bf16.msra.mxu0 %v12668_v47  ;;  %v12719_v47 = vld [vmem:[#allocation22 + $0x310] ss:$48 sps:$4 sm:$0xff]  }
 0x5cf   :  { %8463 = vmatprep.subr.bf16.mxu0 %v12676_v32  ;;  %v12727_v32 = vld [vmem:[#allocation22 + $0xeb4] ss:$48 sps:$4 sm:$0xff]  }
 0x5d0   :  { %8335 = vmatpush1.bf16.msra.mxu1 %v12671_v16  ;;  %v12722_v16 = vld [vmem:[#allocation22 + $0x318] ss:$48 sps:$4 sm:$0xff]  }
 0x5d1   :  { %8336 = vmatprep.subr.bf16.mxu1 %v12679_v49  ;;  %v12730_v49 = vld [vmem:[#allocation22 + $0xebc] ss:$48 sps:$4 sm:$0xff]  }
 0x5d2   :  { %8464 = vmatpush1.bf16.msra.mxu0 %v12674_v42  ;;  %v12725_v42 = vld [vmem:[#allocation22 + $0xeb0] ss:$48 sps:$4 sm:$0xff]  }
 0x5d3   :  { %8465 = vmatprep.subr.bf16.mxu0 %v12682_v52  ;;  %v12733_v52 = vld [vmem:[#allocation22 + $0xe54] ss:$48 sps:$4 sm:$0xff]  }
 0x5d4   :  { %8337 = vmatpush2.bf16.msra.mxu1 %v12677_v51  ;;  %v12728_v51 = vld [vmem:[#allocation22 + $0xeb8] ss:$48 sps:$4 sm:$0xff]  }
 0x5d5   :  { %8338 = vmatprep.subr.bf16.mxu1 %v12685_v58  ;;  %v12736_v58 = vld [vmem:[#allocation22 + $0xe5c] ss:$48 sps:$4 sm:$0xff]  }
 0x5d6   :  { %8466 = vmatpush2.bf16.msra.mxu0 %v12680_v60  ;;  %v12731_v60 = vld [vmem:[#allocation22 + $0xe50] ss:$48 sps:$4 sm:$0xff]  }
 0x5d7   :  { %8467 = vmatprep.subr.bf16.mxu0 %v12688_v38  ;;  %v12739_v38 = vld [vmem:[#allocation22 + $0xdf4] ss:$48 sps:$4 sm:$0xff]  }
 0x5d8   :  { %8339 = vmatpush2.bf16.msra.mxu1 %v12683_v23  ;;  %v12734_v23 = vld [vmem:[#allocation22 + $0xe58] ss:$48 sps:$4 sm:$0xff]  }
 0x5d9   :  { %8340 = vmatprep.subr.bf16.mxu1 %v12691_v61  ;;  %v12742_v61 = vld [vmem:[#allocation22 + $0xdfc] ss:$48 sps:$4 sm:$0xff]  }
 0x5da   :  { %8468 = vmatpush2.bf16.msra.mxu0 %v12686_v33  ;;  %v12737_v33 = vld [vmem:[#allocation22 + $0xdf0] ss:$48 sps:$4 sm:$0xff]  }
 0x5db   :  { %8469 = vmatprep.subr.bf16.mxu0 %v12694_v6  ;;  %v12745_v6 = vld [vmem:[#allocation22 + $0xd94] ss:$48 sps:$4 sm:$0xff]  }
 0x5dc   :  { %8341 = vmatpush2.bf16.msra.mxu1 %v12689_v45  ;;  %v12740_v45 = vld [vmem:[#allocation22 + $0xdf8] ss:$48 sps:$4 sm:$0xff]  }
 0x5dd   :  { %8342 = vmatprep.subr.bf16.mxu1 %v12697_v26  ;;  %v12748_v26 = vld [vmem:[#allocation22 + $0xd9c] ss:$48 sps:$4 sm:$0xff]  }
 0x5de   :  { %8470 = vmatpush2.bf16.msra.mxu0 %v12692_v30  ;;  %v12743_v30 = vld [vmem:[#allocation22 + $0xd90] ss:$48 sps:$4 sm:$0xff]  }
 0x5df   :  { %8471 = vmatprep.subr.bf16.mxu0 %v12700_v25  ;;  %v12751_v25 = vld [vmem:[#allocation22 + $0xd34] ss:$48 sps:$4 sm:$0xff]  }
 0x5e0   :  { %8343 = vmatpush2.bf16.msra.mxu1 %v12695_v28  ;;  %v12746_v28 = vld [vmem:[#allocation22 + $0xd98] ss:$48 sps:$4 sm:$0xff]  }
 0x5e1   :  { %8344 = vmatprep.subr.bf16.mxu1 %v12703_v37  ;;  %v12754_v37 = vld [vmem:[#allocation22 + $0xd3c] ss:$48 sps:$4 sm:$0xff]  }
 0x5e2   :  { %8472 = vmatpush2.bf16.msra.mxu0 %v12698_v40  ;;  %v12749_v40 = vld [vmem:[#allocation22 + $0xd30] ss:$48 sps:$4 sm:$0xff]  }
 0x5e3   :  { %8473 = vmatprep.subr.bf16.mxu0 %v12706_v0  ;;  %v12757_v0 = vld [vmem:[#allocation22 + $0xcd4] ss:$48 sps:$4 sm:$0xff]  }
 0x5e4   :  { %8345 = vmatpush2.bf16.msra.mxu1 %v12701_v63  ;;  %v12752_v63 = vld [vmem:[#allocation22 + $0xd38] ss:$48 sps:$4 sm:$0xff]  }
 0x5e5   :  { %8346 = vmatprep.subr.bf16.mxu1 %v12709_v21  ;;  %v12760_v21 = vld [vmem:[#allocation22 + $0xcdc] ss:$48 sps:$4 sm:$0xff]  }
 0x5e6   :  { %8474 = vmatpush2.bf16.msra.mxu0 %v12704_v22  ;;  %v12755_v22 = vld [vmem:[#allocation22 + $0xcd0] ss:$48 sps:$4 sm:$0xff]  }
 0x5e7   :  { %8475 = vmatprep.subr.bf16.mxu0 %v12712_v46  ;;  %v12763_v46 = vld [vmem:[#allocation22 + $0xc74] ss:$48 sps:$4 sm:$0xff]  }
 0x5e8   :  { %8347 = vmatpush2.bf16.msra.mxu1 %v12707_v10  ;;  %v12758_v10 = vld [vmem:[#allocation22 + $0xcd8] ss:$48 sps:$4 sm:$0xff]  }
 0x5e9   :  { %8348 = vmatprep.subr.bf16.mxu1 %v12715_v39  ;;  %v12766_v39 = vld [vmem:[#allocation22 + $0xc7c] ss:$48 sps:$4 sm:$0xff]  }
 0x5ea   :  { %8476 = vmatpush2.bf16.msra.mxu0 %v12710_v35  ;;  %v12761_v35 = vld [vmem:[#allocation22 + $0xc70] ss:$48 sps:$4 sm:$0xff]  }
 0x5eb   :  { %8477 = vmatprep.subr.bf16.mxu0 %v12718_v29  ;;  %v12769_v29 = vld [vmem:[#allocation22 + $0xc14] ss:$48 sps:$4 sm:$0xff]  }
 0x5ec   :  { %8349 = vmatpush2.bf16.msra.mxu1 %v12713_v15  ;;  %v12764_v15 = vld [vmem:[#allocation22 + $0xc78] ss:$48 sps:$4 sm:$0xff]  }
 0x5ed   :  { %8350 = vmatprep.subr.bf16.mxu1 %v12721_v36  ;;  %v12772_v36 = vld [vmem:[#allocation22 + $0xc1c] ss:$48 sps:$4 sm:$0xff]  }
 0x5ee   :  { %8478 = vmatpush2.bf16.msra.mxu0 %v12716_v18  ;;  %v12767_v18 = vld [vmem:[#allocation22 + $0xc10] ss:$48 sps:$4 sm:$0xff]  }
 0x5ef   :  { %8479 = vmatprep.subr.bf16.mxu0 %v12724_v50  ;;  %v12775_v50 = vld [vmem:[#allocation22 + $0x11b4] ss:$48 sps:$4 sm:$0xff]  }
 0x5f0   :  { %8351 = vmatpush2.bf16.msra.mxu1 %v12719_v47  ;;  %v12770_v47 = vld [vmem:[#allocation22 + $0xc18] ss:$48 sps:$4 sm:$0xff]  }
 0x5f1   :  { %8406 = vmatprep.subr.bf16.mxu1 %v12727_v32  ;;  %v12778_v32 = vld [vmem:[#allocation22 + $0x11bc] ss:$48 sps:$4 sm:$0xff]  }
 0x5f2   :  { %8480 = vmatpush2.bf16.msra.mxu0 %v12722_v16  ;;  %v12773_v16 = vld [vmem:[#allocation22 + $0x11b0] ss:$48 sps:$4 sm:$0xff]  }
 0x5f3   :  { %8353 = vmatmul.mubr.bf16.vlgmr.msra.gmra.mxu1 %v14322_v13  ;;  %8535 = vmatprep.subr.bf16.mxu0 %v12730_v49  ;;  %v12781_v49 = vld [vmem:[#allocation22 + $0x1154] ss:$48 sps:$4 sm:$0xff]  }
 0x5f4   :  { %8407 = vmatpush1.bf16.msra.mxu1 %v12725_v42  ;;  %8438 = vmatprep.mubr.bf16.mxu1 %v14366_v44  ;;  %v12776_v42 = vld [vmem:[#allocation22 + $0x11b8] ss:$48 sps:$4 sm:$0xff]  }
 0x5f5   :  { %8482 = vmatmul.mubr.bf16.vlgmr.msra.gmra.mxu0 %v14322_v13  ;;  %8408 = vmatprep.subr.bf16.mxu1 %v12733_v52  ;;  %v12784_v52 = vld [vmem:[#allocation22 + $0x115c] ss:$48 sps:$4 sm:$0xff]  }
 0x5f6   :  { %8536 = vmatpush1.bf16.msra.mxu0 %v12728_v51  ;;  %8567 = vmatprep.mubr.bf16.mxu0 %v14366_v44  ;;  %v12779_v51 = vld [vmem:[#allocation22 + $0x1150] ss:$48 sps:$4 sm:$0xff]  }
 0x5f7   :  { %8537 = vmatprep.subr.bf16.mxu0 %v12736_v58  ;;  %v12787_v58 = vld [vmem:[#allocation22 + $0x10f4] ss:$48 sps:$4 sm:$0xff]  }
 0x5f8   :  { %8409 = vmatpush1.bf16.msra.mxu1 %v12731_v60  ;;  %v12782_v60 = vld [vmem:[#allocation22 + $0x1158] ss:$48 sps:$4 sm:$0xff]  }
 0x5f9   :  { %8410 = vmatprep.subr.bf16.mxu1 %v12739_v38  ;;  %v12790_v38 = vld [vmem:[#allocation22 + $0x10fc] ss:$48 sps:$4 sm:$0xff]  }
 0x5fa   :  { %8538 = vmatpush1.bf16.msra.mxu0 %v12734_v23  ;;  %v12785_v23 = vld [vmem:[#allocation22 + $0x10f0] ss:$48 sps:$4 sm:$0xff]  }
 0x5fb   :  { %8539 = vmatprep.subr.bf16.mxu0 %v12742_v61  ;;  %v12793_v61 = vld [vmem:[#allocation22 + $0x1094] ss:$48 sps:$4 sm:$0xff]  }
 0x5fc   :  { %8411 = vmatpush1.bf16.msra.mxu1 %v12737_v33  ;;  %v12788_v33 = vld [vmem:[#allocation22 + $0x10f8] ss:$48 sps:$4 sm:$0xff]  }
 0x5fd   :  { %8412 = vmatprep.subr.bf16.mxu1 %v12745_v6  ;;  %v12796_v6 = vld [vmem:[#allocation22 + $0x109c] ss:$48 sps:$4 sm:$0xff]  }
 0x5fe   :  { %8540 = vmatpush1.bf16.msra.mxu0 %v12740_v45  ;;  %v12791_v45 = vld [vmem:[#allocation22 + $0x1090] ss:$48 sps:$4 sm:$0xff]  }
 0x5ff   :  { %8541 = vmatprep.subr.bf16.mxu0 %v12748_v26  ;;  %v12799_v26 = vld [vmem:[#allocation22 + $0x1034] ss:$48 sps:$4 sm:$0xff]  }
 0x600   :  { %8413 = vmatpush1.bf16.msra.mxu1 %v12743_v30  ;;  %v12794_v30 = vld [vmem:[#allocation22 + $0x1098] ss:$48 sps:$4 sm:$0xff]  }
 0x601   :  { %8414 = vmatprep.subr.bf16.mxu1 %v12751_v25  ;;  %v12802_v25 = vld [vmem:[#allocation22 + $0x103c] ss:$48 sps:$4 sm:$0xff]  }
 0x602   :  { %8542 = vmatpush1.bf16.msra.mxu0 %v12746_v28  ;;  %v12797_v28 = vld [vmem:[#allocation22 + $0x1030] ss:$48 sps:$4 sm:$0xff]  }
 0x603   :  { %8543 = vmatprep.subr.bf16.mxu0 %v12754_v37  ;;  %v12805_v37 = vld [vmem:[#allocation22 + $0xfd4] ss:$48 sps:$4 sm:$0xff]  }
 0x604   :  { %8415 = vmatpush1.bf16.msra.mxu1 %v12749_v40  ;;  %v12800_v40 = vld [vmem:[#allocation22 + $0x1038] ss:$48 sps:$4 sm:$0xff]  }
 0x605   :  { %8416 = vmatprep.subr.bf16.mxu1 %v12757_v0  ;;  %v12808_v0 = vld [vmem:[#allocation22 + $0xfdc] ss:$48 sps:$4 sm:$0xff]  }
 0x606   :  { %8544 = vmatpush1.bf16.msra.mxu0 %v12752_v63  ;;  %v12803_v63 = vld [vmem:[#allocation22 + $0xfd0] ss:$48 sps:$4 sm:$0xff]  }
 0x607   :  { %8545 = vmatprep.subr.bf16.mxu0 %v12760_v21  ;;  %v12811_v21 = vld [vmem:[#allocation22 + $0xf74] ss:$48 sps:$4 sm:$0xff]  }
 0x608   :  { %8417 = vmatpush1.bf16.msra.mxu1 %v12755_v22  ;;  %v12806_v22 = vld [vmem:[#allocation22 + $0xfd8] ss:$48 sps:$4 sm:$0xff]  }
 0x609   :  { %8418 = vmatprep.subr.bf16.mxu1 %v12763_v46  ;;  %v12814_v46 = vld [vmem:[#allocation22 + $0xf7c] ss:$48 sps:$4 sm:$0xff]  }
 0x60a   :  { %8546 = vmatpush1.bf16.msra.mxu0 %v12758_v10  ;;  %v12809_v10 = vld [vmem:[#allocation22 + $0xf70] ss:$48 sps:$4 sm:$0xff]  }
 0x60b   :  { %8547 = vmatprep.subr.bf16.mxu0 %v12766_v39  ;;  %v12817_v39 = vld [vmem:[#allocation22 + $0xf14] ss:$48 sps:$4 sm:$0xff]  }
 0x60c   :  { %8419 = vmatpush1.bf16.msra.mxu1 %v12761_v35  ;;  %v12812_v35 = vld [vmem:[#allocation22 + $0xf78] ss:$48 sps:$4 sm:$0xff]  }
 0x60d   :  { %8420 = vmatprep.subr.bf16.mxu1 %v12769_v29  ;;  %v12820_v29 = vld [vmem:[#allocation22 + $0xf1c] ss:$48 sps:$4 sm:$0xff]  }
 0x60e   :  { %8548 = vmatpush1.bf16.msra.mxu0 %v12764_v15  ;;  %v12815_v15 = vld [vmem:[#allocation22 + $0xf10] ss:$48 sps:$4 sm:$0xff]  }
 0x60f   :  { %8549 = vmatprep.subr.bf16.mxu0 %v12772_v36  ;;  %v12823_v36 = vld [vmem:[#allocation22 + $0x8bc] ss:$48 sps:$4 sm:$0xff]  }
 0x610   :  { %8421 = vmatpush1.bf16.msra.mxu1 %v12767_v18  ;;  %v12818_v18 = vld [vmem:[#allocation22 + $0xf18] ss:$48 sps:$4 sm:$0xff]  }
 0x611   :  { %8422 = vmatprep.subr.bf16.mxu1 %v12775_v50  ;;  %v12826_v50 = vld [vmem:[#allocation22 + $0x8c4] ss:$48 sps:$4 sm:$0xff]  }
 0x612   :  { %8550 = vmatpush1.bf16.msra.mxu0 %v12770_v47  ;;  %v12821_v47 = vld [vmem:[#allocation22 + $0x8b8] ss:$48 sps:$4 sm:$0xff]  }
 0x613   :  { %8551 = vmatprep.subr.bf16.mxu0 %v12778_v32  ;;  %v12829_v32 = vld [vmem:[#allocation22 + $0x85c] ss:$48 sps:$4 sm:$0xff]  }
 0x614   :  { %8423 = vmatpush2.bf16.msra.mxu1 %v12773_v16  ;;  %v12824_v16 = vld [vmem:[#allocation22 + $0x8c0] ss:$48 sps:$4 sm:$0xff]  }
 0x615   :  { %8424 = vmatprep.subr.bf16.mxu1 %v12781_v49  ;;  %v12832_v49 = vld [vmem:[#allocation22 + $0x864] ss:$48 sps:$4 sm:$0xff]  }
 0x616   :  { %8552 = vmatpush2.bf16.msra.mxu0 %v12776_v42  ;;  %v12827_v42 = vld [vmem:[#allocation22 + $0x858] ss:$48 sps:$4 sm:$0xff]  }
 0x617   :  { %8553 = vmatprep.subr.bf16.mxu0 %v12784_v52  ;;  %v12835_v52 = vld [vmem:[#allocation22 + $0x7fc] ss:$48 sps:$4 sm:$0xff]  }
 0x618   :  { %8425 = vmatpush2.bf16.msra.mxu1 %v12779_v51  ;;  %v12830_v51 = vld [vmem:[#allocation22 + $0x860] ss:$48 sps:$4 sm:$0xff]  }
 0x619   :  { %8426 = vmatprep.subr.bf16.mxu1 %v12787_v58  ;;  %v12838_v58 = vld [vmem:[#allocation22 + $0x804] ss:$48 sps:$4 sm:$0xff]  }
 0x61a   :  { %8554 = vmatpush2.bf16.msra.mxu0 %v12782_v60  ;;  %v12833_v60 = vld [vmem:[#allocation22 + $0x7f8] ss:$48 sps:$4 sm:$0xff]  }
 0x61b   :  { %8555 = vmatprep.subr.bf16.mxu0 %v12790_v38  ;;  %v12841_v38 = vld [vmem:[#allocation22 + $0x79c] ss:$48 sps:$4 sm:$0xff]  }
 0x61c   :  { %8427 = vmatpush2.bf16.msra.mxu1 %v12785_v23  ;;  %v12836_v23 = vld [vmem:[#allocation22 + $0x800] ss:$48 sps:$4 sm:$0xff]  }
 0x61d   :  { %8428 = vmatprep.subr.bf16.mxu1 %v12793_v61  ;;  %v12844_v61 = vld [vmem:[#allocation22 + $0x7a4] ss:$48 sps:$4 sm:$0xff]  }
 0x61e   :  { %8556 = vmatpush2.bf16.msra.mxu0 %v12788_v33  ;;  %v12839_v33 = vld [vmem:[#allocation22 + $0x798] ss:$48 sps:$4 sm:$0xff]  }
 0x61f   :  { %8557 = vmatprep.subr.bf16.mxu0 %v12796_v6  ;;  %v12847_v6 = vld [vmem:[#allocation22 + $0x73c] ss:$48 sps:$4 sm:$0xff]  }
 0x620   :  { %8429 = vmatpush2.bf16.msra.mxu1 %v12791_v45  ;;  %v12842_v45 = vld [vmem:[#allocation22 + $0x7a0] ss:$48 sps:$4 sm:$0xff]  }
 0x621   :  { %8430 = vmatprep.subr.bf16.mxu1 %v12799_v26  ;;  %v12850_v26 = vld [vmem:[#allocation22 + $0x744] ss:$48 sps:$4 sm:$0xff]  }
 0x622   :  { %8558 = vmatpush2.bf16.msra.mxu0 %v12794_v30  ;;  %v12845_v30 = vld [vmem:[#allocation22 + $0x738] ss:$48 sps:$4 sm:$0xff]  }
 0x623   :  { %8559 = vmatprep.subr.bf16.mxu0 %v12802_v25  ;;  %v12853_v25 = vld [vmem:[#allocation22 + $0x6dc] ss:$48 sps:$4 sm:$0xff]  }
 0x624   :  { %8431 = vmatpush2.bf16.msra.mxu1 %v12797_v28  ;;  %v12848_v28 = vld [vmem:[#allocation22 + $0x740] ss:$48 sps:$4 sm:$0xff]  }
 0x625   :  { %8432 = vmatprep.subr.bf16.mxu1 %v12805_v37  ;;  %v12856_v37 = vld [vmem:[#allocation22 + $0x6e4] ss:$48 sps:$4 sm:$0xff]  }
 0x626   :  { %8560 = vmatpush2.bf16.msra.mxu0 %v12800_v40  ;;  %v12851_v40 = vld [vmem:[#allocation22 + $0x6d8] ss:$48 sps:$4 sm:$0xff]  }
 0x627   :  { %8561 = vmatprep.subr.bf16.mxu0 %v12808_v0  ;;  %v12859_v0 = vld [vmem:[#allocation22 + $0x67c] ss:$48 sps:$4 sm:$0xff]  }
 0x628   :  { %8433 = vmatpush2.bf16.msra.mxu1 %v12803_v63  ;;  %v12854_v63 = vld [vmem:[#allocation22 + $0x6e0] ss:$48 sps:$4 sm:$0xff]  }
 0x629   :  { %8434 = vmatprep.subr.bf16.mxu1 %v12811_v21  ;;  %v12862_v21 = vld [vmem:[#allocation22 + $0x684] ss:$48 sps:$4 sm:$0xff]  }
 0x62a   :  { %8562 = vmatpush2.bf16.msra.mxu0 %v12806_v22  ;;  %v12857_v22 = vld [vmem:[#allocation22 + $0x678] ss:$48 sps:$4 sm:$0xff]  }
 0x62b   :  { %8563 = vmatprep.subr.bf16.mxu0 %v12814_v46  ;;  %v12865_v46 = vld [vmem:[#allocation22 + $0x61c] ss:$48 sps:$4 sm:$0xff]  }
 0x62c   :  { %8435 = vmatpush2.bf16.msra.mxu1 %v12809_v10  ;;  %v12860_v10 = vld [vmem:[#allocation22 + $0x680] ss:$48 sps:$4 sm:$0xff]  }
 0x62d   :  { %8436 = vmatprep.subr.bf16.mxu1 %v12817_v39  ;;  %v12868_v39 = vld [vmem:[#allocation22 + $0x624] ss:$48 sps:$4 sm:$0xff]  }
 0x62e   :  { %8564 = vmatpush2.bf16.msra.mxu0 %v12812_v35  ;;  %v12863_v35 = vld [vmem:[#allocation22 + $0x618] ss:$48 sps:$4 sm:$0xff]  }
 0x62f   :  { %8565 = vmatprep.subr.bf16.mxu0 %v12820_v29  ;;  %v12871_v29 = vld [vmem:[#allocation22 + $0xbbc] ss:$48 sps:$4 sm:$0xff]  }
 0x630   :  { %8437 = vmatpush2.bf16.msra.mxu1 %v12815_v15  ;;  %v12866_v15 = vld [vmem:[#allocation22 + $0x620] ss:$48 sps:$4 sm:$0xff]  }
 0x631   :  { %8492 = vmatprep.subr.bf16.mxu1 %v12823_v36  ;;  %v12874_v36 = vld [vmem:[#allocation22 + $0xbc4] ss:$48 sps:$4 sm:$0xff]  }
 0x632   :  { %8566 = vmatpush2.bf16.msra.mxu0 %v12818_v18  ;;  %v12869_v18 = vld [vmem:[#allocation22 + $0xbb8] ss:$48 sps:$4 sm:$0xff]  }
 0x633   :  { %8439 = vmatmul.mubr.bf16.vlgmr.msra.gmra.mxu1 %v14368_v3  ;;  %8621 = vmatprep.subr.bf16.mxu0 %v12826_v50  ;;  %v12877_v50 = vld [vmem:[#allocation22 + $0xb5c] ss:$48 sps:$4 sm:$0xff]  }
 0x634   :  { %8493 = vmatpush1.bf16.msra.mxu1 %v12821_v47  ;;  %8524 = vmatprep.mubr.bf16.mxu1 %v14342_v27  ;;  %v12872_v47 = vld [vmem:[#allocation22 + $0xbc0] ss:$48 sps:$4 sm:$0xff]  }
 0x635   :  { %8568 = vmatmul.mubr.bf16.vlgmr.msra.gmra.mxu0 %v14368_v3  ;;  %8494 = vmatprep.subr.bf16.mxu1 %v12829_v32  ;;  %v12880_v32 = vld [vmem:[#allocation22 + $0xb64] ss:$48 sps:$4 sm:$0xff]  }
 0x636   :  { %8622 = vmatpush1.bf16.msra.mxu0 %v12824_v16  ;;  %8653 = vmatprep.mubr.bf16.mxu0 %v14342_v27  ;;  %v12875_v16 = vld [vmem:[#allocation22 + $0xb58] ss:$48 sps:$4 sm:$0xff]  }
 0x637   :  { %8623 = vmatprep.subr.bf16.mxu0 %v12832_v49  ;;  %v12883_v49 = vld [vmem:[#allocation22 + $0xafc] ss:$48 sps:$4 sm:$0xff]  }
 0x638   :  { %8495 = vmatpush1.bf16.msra.mxu1 %v12827_v42  ;;  %v12878_v42 = vld [vmem:[#allocation22 + $0xb60] ss:$48 sps:$4 sm:$0xff]  }
 0x639   :  { %8496 = vmatprep.subr.bf16.mxu1 %v12835_v52  ;;  %v12886_v52 = vld [vmem:[#allocation22 + $0xb04] ss:$48 sps:$4 sm:$0xff]  }
 0x63a   :  { %8624 = vmatpush1.bf16.msra.mxu0 %v12830_v51  ;;  %v12881_v51 = vld [vmem:[#allocation22 + $0xaf8] ss:$48 sps:$4 sm:$0xff]  }
 0x63b   :  { %8625 = vmatprep.subr.bf16.mxu0 %v12838_v58  ;;  %v12889_v58 = vld [vmem:[#allocation22 + $0xa9c] ss:$48 sps:$4 sm:$0xff]  }
 0x63c   :  { %8497 = vmatpush1.bf16.msra.mxu1 %v12833_v60  ;;  %v12884_v60 = vld [vmem:[#allocation22 + $0xb00] ss:$48 sps:$4 sm:$0xff]  }
 0x63d   :  { %8498 = vmatprep.subr.bf16.mxu1 %v12841_v38  ;;  %v12892_v38 = vld [vmem:[#allocation22 + $0xaa4] ss:$48 sps:$4 sm:$0xff]  }
 0x63e   :  { %8626 = vmatpush1.bf16.msra.mxu0 %v12836_v23  ;;  %v12887_v23 = vld [vmem:[#allocation22 + $0xa98] ss:$48 sps:$4 sm:$0xff]  }
 0x63f   :  { %8627 = vmatprep.subr.bf16.mxu0 %v12844_v61  ;;  %v12895_v61 = vld [vmem:[#allocation22 + $0xa3c] ss:$48 sps:$4 sm:$0xff]  }
 0x640   :  { %8499 = vmatpush1.bf16.msra.mxu1 %v12839_v33  ;;  %v12890_v33 = vld [vmem:[#allocation22 + $0xaa0] ss:$48 sps:$4 sm:$0xff]  }
 0x641   :  { %8500 = vmatprep.subr.bf16.mxu1 %v12847_v6  ;;  %v12898_v6 = vld [vmem:[#allocation22 + $0xa44] ss:$48 sps:$4 sm:$0xff]  }
 0x642   :  { %8628 = vmatpush1.bf16.msra.mxu0 %v12842_v45  ;;  %v12893_v45 = vld [vmem:[#allocation22 + $0xa38] ss:$48 sps:$4 sm:$0xff]  }
 0x643   :  { %8629 = vmatprep.subr.bf16.mxu0 %v12850_v26  ;;  %v12901_v26 = vld [vmem:[#allocation22 + $0x9dc] ss:$48 sps:$4 sm:$0xff]  }
 0x644   :  { %8501 = vmatpush1.bf16.msra.mxu1 %v12845_v30  ;;  %v12896_v30 = vld [vmem:[#allocation22 + $0xa40] ss:$48 sps:$4 sm:$0xff]  }
 0x645   :  { %8502 = vmatprep.subr.bf16.mxu1 %v12853_v25  ;;  %v12904_v25 = vld [vmem:[#allocation22 + $0x9e4] ss:$48 sps:$4 sm:$0xff]  }
 0x646   :  { %8630 = vmatpush1.bf16.msra.mxu0 %v12848_v28  ;;  %v12899_v28 = vld [vmem:[#allocation22 + $0x9d8] ss:$48 sps:$4 sm:$0xff]  }
 0x647   :  { %8631 = vmatprep.subr.bf16.mxu0 %v12856_v37  ;;  %v12907_v37 = vld [vmem:[#allocation22 + $0x97c] ss:$48 sps:$4 sm:$0xff]  }
 0x648   :  { %8503 = vmatpush1.bf16.msra.mxu1 %v12851_v40  ;;  %v12902_v40 = vld [vmem:[#allocation22 + $0x9e0] ss:$48 sps:$4 sm:$0xff]  }
 0x649   :  { %8504 = vmatprep.subr.bf16.mxu1 %v12859_v0  ;;  %v12910_v0 = vld [vmem:[#allocation22 + $0x984] ss:$48 sps:$4 sm:$0xff]  }
 0x64a   :  { %8632 = vmatpush1.bf16.msra.mxu0 %v12854_v63  ;;  %v12905_v63 = vld [vmem:[#allocation22 + $0x978] ss:$48 sps:$4 sm:$0xff]  }
 0x64b   :  { %8633 = vmatprep.subr.bf16.mxu0 %v12862_v21  ;;  %v12913_v21 = vld [vmem:[#allocation22 + $0x91c] ss:$48 sps:$4 sm:$0xff]  }
 0x64c   :  { %8505 = vmatpush1.bf16.msra.mxu1 %v12857_v22  ;;  %v12908_v22 = vld [vmem:[#allocation22 + $0x980] ss:$48 sps:$4 sm:$0xff]  }
 0x64d   :  { %8506 = vmatprep.subr.bf16.mxu1 %v12865_v46  ;;  %v12916_v46 = vld [vmem:[#allocation22 + $0x924] ss:$48 sps:$4 sm:$0xff]  }
 0x64e   :  { %8634 = vmatpush1.bf16.msra.mxu0 %v12860_v10  ;;  %v12911_v10 = vld [vmem:[#allocation22 + $0x918] ss:$48 sps:$4 sm:$0xff]  }
 0x64f   :  { %8635 = vmatprep.subr.bf16.mxu0 %v12868_v39  ;;  %v12919_v39 = vld [vmem:[#allocation22 + $0x2c4] ss:$48 sps:$4 sm:$0xff]  }
 0x650   :  { %8507 = vmatpush1.bf16.msra.mxu1 %v12863_v35  ;;  %v12914_v35 = vld [vmem:[#allocation22 + $0x920] ss:$48 sps:$4 sm:$0xff]  }
 0x651   :  { %8508 = vmatprep.subr.bf16.mxu1 %v12871_v29  ;;  %v12922_v29 = vld [vmem:[#allocation22 + $0x2cc] ss:$48 sps:$4 sm:$0xff]  }
 0x652   :  { %8636 = vmatpush1.bf16.msra.mxu0 %v12866_v15  ;;  %v12917_v15 = vld [vmem:[#allocation22 + $0x2c0] ss:$48 sps:$4 sm:$0xff]  }
 0x653   :  { %8637 = vmatprep.subr.bf16.mxu0 %v12874_v36  ;;  %v12925_v36 = vld [vmem:[#allocation22 + $0x264] ss:$48 sps:$4 sm:$0xff]  }
 0x654   :  { %8509 = vmatpush2.bf16.msra.mxu1 %v12869_v18  ;;  %v12920_v18 = vld [vmem:[#allocation22 + $0x2c8] ss:$48 sps:$4 sm:$0xff]  }
 0x655   :  { %8510 = vmatprep.subr.bf16.mxu1 %v12877_v50  ;;  %v12928_v50 = vld [vmem:[#allocation22 + $0x26c] ss:$48 sps:$4 sm:$0xff]  }
 0x656   :  { %8638 = vmatpush2.bf16.msra.mxu0 %v12872_v47  ;;  %v12923_v47 = vld [vmem:[#allocation22 + $0x260] ss:$48 sps:$4 sm:$0xff]  }
 0x657   :  { %8639 = vmatprep.subr.bf16.mxu0 %v12880_v32  ;;  %v12931_v32 = vld [vmem:[#allocation22 + $0x204] ss:$48 sps:$4 sm:$0xff]  }
 0x658   :  { %8511 = vmatpush2.bf16.msra.mxu1 %v12875_v16  ;;  %v12926_v16 = vld [vmem:[#allocation22 + $0x268] ss:$48 sps:$4 sm:$0xff]  }
 0x659   :  { %8512 = vmatprep.subr.bf16.mxu1 %v12883_v49  ;;  %v12934_v49 = vld [vmem:[#allocation22 + $0x20c] ss:$48 sps:$4 sm:$0xff]  }
 0x65a   :  { %8640 = vmatpush2.bf16.msra.mxu0 %v12878_v42  ;;  %v12929_v42 = vld [vmem:[#allocation22 + $0x200] ss:$48 sps:$4 sm:$0xff]  }
 0x65b   :  { %8641 = vmatprep.subr.bf16.mxu0 %v12886_v52  ;;  %v12937_v52 = vld [vmem:[#allocation22 + $0x1a4] ss:$48 sps:$4 sm:$0xff]  }
 0x65c   :  { %8513 = vmatpush2.bf16.msra.mxu1 %v12881_v51  ;;  %v12932_v51 = vld [vmem:[#allocation22 + $0x208] ss:$48 sps:$4 sm:$0xff]  }
 0x65d   :  { %8514 = vmatprep.subr.bf16.mxu1 %v12889_v58  ;;  %v12940_v58 = vld [vmem:[#allocation22 + $0x1ac] ss:$48 sps:$4 sm:$0xff]  }
 0x65e   :  { %8642 = vmatpush2.bf16.msra.mxu0 %v12884_v60  ;;  %v12935_v60 = vld [vmem:[#allocation22 + $0x1a0] ss:$48 sps:$4 sm:$0xff]  }
 0x65f   :  { %8643 = vmatprep.subr.bf16.mxu0 %v12892_v38  ;;  %v12943_v38 = vld [vmem:[#allocation22 + $0x144] ss:$48 sps:$4 sm:$0xff]  }
 0x660   :  { %8515 = vmatpush2.bf16.msra.mxu1 %v12887_v23  ;;  %v12938_v23 = vld [vmem:[#allocation22 + $0x1a8] ss:$48 sps:$4 sm:$0xff]  }
 0x661   :  { %8516 = vmatprep.subr.bf16.mxu1 %v12895_v61  ;;  %v12946_v61 = vld [vmem:[#allocation22 + $0x14c] ss:$48 sps:$4 sm:$0xff]  }
 0x662   :  { %8644 = vmatpush2.bf16.msra.mxu0 %v12890_v33  ;;  %v12949_v33 = vld [vmem:[#allocation22 + $0xe4] ss:$48 sps:$4 sm:$0xff]  }
 0x663   :  { %8645 = vmatprep.subr.bf16.mxu0 %v12898_v6  ;;  %v12944_v6 = vld [vmem:[#allocation22 + $0x148] ss:$48 sps:$4 sm:$0xff]  }
 0x664   :  { %8517 = vmatpush2.bf16.msra.mxu1 %v12893_v45  ;;  %v12952_v45 = vld [vmem:[#allocation22 + $0xec] ss:$48 sps:$4 sm:$0xff]  }
 0x665   :  { %8518 = vmatprep.subr.bf16.mxu1 %v12901_v26  ;;  %v12947_v26 = vld [vmem:[#allocation22 + $0xe0] ss:$48 sps:$4 sm:$0xff]  }
 0x666   :  { %8646 = vmatpush2.bf16.msra.mxu0 %v12896_v30  ;;  %v12955_v30 = vld [vmem:[#allocation22 + $0x84] ss:$48 sps:$4 sm:$0xff]  }
 0x667   :  { %8647 = vmatprep.subr.bf16.mxu0 %v12904_v25  ;;  %v12950_v25 = vld [vmem:[#allocation22 + $0xe8] ss:$48 sps:$4 sm:$0xff]  }
 0x668   :  { %8519 = vmatpush2.bf16.msra.mxu1 %v12899_v28  ;;  %v12958_v28 = vld [vmem:[#allocation22 + $0x8c] ss:$48 sps:$4 sm:$0xff]  }
 0x669   :  { %8520 = vmatprep.subr.bf16.mxu1 %v12907_v37  ;;  %v12953_v37 = vld [vmem:[#allocation22 + $0x80] ss:$48 sps:$4 sm:$0xff]  }
 0x66a   :  { %8648 = vmatpush2.bf16.msra.mxu0 %v12902_v40  ;;  %v12961_v40 = vld [vmem:[#allocation22 + $0x24] ss:$48 sps:$4 sm:$0xff]  }
 0x66b   :  { %8649 = vmatprep.subr.bf16.mxu0 %v12910_v0  ;;  %v12956_v0 = vld [vmem:[#allocation22 + $0x88] ss:$48 sps:$4 sm:$0xff]  }
 0x66c   :  { %8521 = vmatpush2.bf16.msra.mxu1 %v12905_v63  ;;  %v12964_v63 = vld [vmem:[#allocation22 + $0x2c] ss:$48 sps:$4 sm:$0xff]  }
 0x66d   :  { %8522 = vmatprep.subr.bf16.mxu1 %v12913_v21  ;;  %v12959_v21 = vld [vmem:[#allocation22 + $0x20] ss:$48 sps:$4 sm:$0xff]  }
 0x66e   :  { %8650 = vmatpush2.bf16.msra.mxu0 %v12908_v22  ;;  %v12967_v22 = vld [vmem:[#allocation22 + $0x5c4] ss:$48 sps:$4 sm:$0xff]  }
 0x66f   :  { %8651 = vmatprep.subr.bf16.mxu0 %v12916_v46  ;;  %v12962_v46 = vld [vmem:[#allocation22 + $0x28] ss:$48 sps:$4 sm:$0xff]  }
 0x670   :  { %8523 = vmatpush2.bf16.msra.mxu1 %v12911_v10  ;;  %v12970_v10 = vld [vmem:[#allocation22 + $0x5cc] ss:$48 sps:$4 sm:$0xff]  }
 0x671   :  { %8578 = vmatprep.subr.bf16.mxu1 %v12919_v39  ;;  %v12965_v39 = vld [vmem:[#allocation22 + $0x5c0] ss:$48 sps:$4 sm:$0xff]  }
 0x672   :  { %8652 = vmatpush2.bf16.msra.mxu0 %v12914_v35  ;;  %v12973_v35 = vld [vmem:[#allocation22 + $0x564] ss:$48 sps:$4 sm:$0xff]  }
 0x673   :  { %8525 = vmatmul.mubr.bf16.vlgmr.msra.gmra.mxu1 %v14344_v62  ;;  %8707 = vmatprep.subr.bf16.mxu0 %v12922_v29  ;;  %v12968_v29 = vld [vmem:[#allocation22 + $0x5c8] ss:$48 sps:$4 sm:$0xff]  }
 0x674   :  { %8579 = vmatpush1.bf16.msra.mxu1 %v12917_v15  ;;  %8610 = vmatprep.mubr.bf16.mxu1 %v14320_v5  ;;  %v12976_v15 = vld [vmem:[#allocation22 + $0x56c] ss:$48 sps:$4 sm:$0xff]  }
 0x675   :  { %8654 = vmatmul.mubr.bf16.vlgmr.msra.gmra.mxu0 %v14344_v62  ;;  %8580 = vmatprep.subr.bf16.mxu1 %v12925_v36  ;;  %v12971_v36 = vld [vmem:[#allocation22 + $0x560] ss:$48 sps:$4 sm:$0xff]  }
 0x676   :  { %8708 = vmatpush1.bf16.msra.mxu0 %v12920_v18  ;;  %8739 = vmatprep.mubr.bf16.mxu0 %v14320_v5  ;;  %v12941_v5 = vld [vmem:[#allocation22 + $0x140] ss:$48 sps:$4 sm:$0xff]   ;;  %v12979_v18 = vld [vmem:[#allocation22 + $0x504] ss:$48 sps:$4 sm:$0xff]  }
 0x677   :  { %8709 = vmatprep.subr.bf16.mxu0 %v12928_v50  ;;  %v12974_v50 = vld [vmem:[#allocation22 + $0x568] ss:$48 sps:$4 sm:$0xff]  }
 0x678   :  { %8581 = vmatpush1.bf16.msra.mxu1 %v12923_v47  ;;  %v12982_v47 = vld [vmem:[#allocation22 + $0x50c] ss:$48 sps:$4 sm:$0xff]  }
 0x679   :  { %8582 = vmatprep.subr.bf16.mxu1 %v12931_v32  ;;  %v12977_v32 = vld [vmem:[#allocation22 + $0x500] ss:$48 sps:$4 sm:$0xff]  }
 0x67a   :  { %8710 = vmatpush1.bf16.msra.mxu0 %v12926_v16  ;;  %v12985_v16 = vld [vmem:[#allocation22 + $0x4a4] ss:$48 sps:$4 sm:$0xff]  }
 0x67b   :  { %8711 = vmatprep.subr.bf16.mxu0 %v12934_v49  ;;  %v12980_v49 = vld [vmem:[#allocation22 + $0x508] ss:$48 sps:$4 sm:$0xff]  }
 0x67c   :  { %8583 = vmatpush1.bf16.msra.mxu1 %v12929_v42  ;;  %v12988_v42 = vld [vmem:[#allocation22 + $0x4ac] ss:$48 sps:$4 sm:$0xff]  }
 0x67d   :  { %8584 = vmatprep.subr.bf16.mxu1 %v12937_v52  ;;  %v12983_v52 = vld [vmem:[#allocation22 + $0x4a0] ss:$48 sps:$4 sm:$0xff]  }
 0x67e   :  { %8712 = vmatpush1.bf16.msra.mxu0 %v12932_v51  ;;  %v12991_v51 = vld [vmem:[#allocation22 + $0x444] ss:$48 sps:$4 sm:$0xff]  }
 0x67f   :  { %8713 = vmatprep.subr.bf16.mxu0 %v12940_v58  ;;  %v12986_v58 = vld [vmem:[#allocation22 + $0x4a8] ss:$48 sps:$4 sm:$0xff]  }
 0x680   :  { %8585 = vmatpush1.bf16.msra.mxu1 %v12935_v60  ;;  %v12994_v60 = vld [vmem:[#allocation22 + $0x44c] ss:$48 sps:$4 sm:$0xff]  }
 0x681   :  { %8586 = vmatprep.subr.bf16.mxu1 %v12943_v38  ;;  %v12989_v38 = vld [vmem:[#allocation22 + $0x440] ss:$48 sps:$4 sm:$0xff]  }
 0x682   :  { %8714 = vmatpush1.bf16.msra.mxu0 %v12938_v23  ;;  %v12997_v23 = vld [vmem:[#allocation22 + $0x3e4] ss:$48 sps:$4 sm:$0xff]  }
 0x683   :  { %8715 = vmatprep.subr.bf16.mxu0 %v12946_v61  ;;  %v12992_v61 = vld [vmem:[#allocation22 + $0x448] ss:$48 sps:$4 sm:$0xff]  }
 0x684   :  { %8587 = vmatpush1.bf16.msra.mxu1 %v12941_v5  ;;  %v13000_v5 = vld [vmem:[#allocation22 + $0x3ec] ss:$48 sps:$4 sm:$0xff]  }
 0x685   :  { %8588 = vmatprep.subr.bf16.mxu1 %v12949_v33  ;;  %v12995_v33 = vld [vmem:[#allocation22 + $0x3e0] ss:$48 sps:$4 sm:$0xff]  }
 0x686   :  { %8716 = vmatpush1.bf16.msra.mxu0 %v12944_v6  ;;  %v13003_v6 = vld [vmem:[#allocation22 + $0x384] ss:$48 sps:$4 sm:$0xff]  }
 0x687   :  { %8717 = vmatprep.subr.bf16.mxu0 %v12952_v45  ;;  %v12998_v45 = vld [vmem:[#allocation22 + $0x3e8] ss:$48 sps:$4 sm:$0xff]  }
 0x688   :  { %8589 = vmatpush1.bf16.msra.mxu1 %v12947_v26  ;;  %v13006_v26 = vld [vmem:[#allocation22 + $0x38c] ss:$48 sps:$4 sm:$0xff]  }
 0x689   :  { %8590 = vmatprep.subr.bf16.mxu1 %v12955_v30  ;;  %v13001_v30 = vld [vmem:[#allocation22 + $0x380] ss:$48 sps:$4 sm:$0xff]  }
 0x68a   :  { %8718 = vmatpush1.bf16.msra.mxu0 %v12950_v25  ;;  %v13009_v25 = vld [vmem:[#allocation22 + $0x324] ss:$48 sps:$4 sm:$0xff]  }
 0x68b   :  { %8719 = vmatprep.subr.bf16.mxu0 %v12958_v28  ;;  %v13004_v28 = vld [vmem:[#allocation22 + $0x388] ss:$48 sps:$4 sm:$0xff]  }
 0x68c   :  { %8591 = vmatpush1.bf16.msra.mxu1 %v12953_v37  ;;  %v13012_v37 = vld [vmem:[#allocation22 + $0x32c] ss:$48 sps:$4 sm:$0xff]  }
 0x68d   :  { %8592 = vmatprep.subr.bf16.mxu1 %v12961_v40  ;;  %v13007_v40 = vld [vmem:[#allocation22 + $0x320] ss:$48 sps:$4 sm:$0xff]  }
 0x68e   :  { %8720 = vmatpush1.bf16.msra.mxu0 %v12956_v0  ;;  %v13015_v0 = vld [vmem:[#allocation22 + $0xec4] ss:$48 sps:$4 sm:$0xff]  }
 0x68f   :  { %8721 = vmatprep.subr.bf16.mxu0 %v12964_v63  ;;  %v13010_v63 = vld [vmem:[#allocation22 + $0x328] ss:$48 sps:$4 sm:$0xff]  }
 0x690   :  { %8593 = vmatpush1.bf16.msra.mxu1 %v12959_v21  ;;  %v13018_v21 = vld [vmem:[#allocation22 + $0xecc] ss:$48 sps:$4 sm:$0xff]  }
 0x691   :  { %8594 = vmatprep.subr.bf16.mxu1 %v12967_v22  ;;  %v13013_v22 = vld [vmem:[#allocation22 + $0xec0] ss:$48 sps:$4 sm:$0xff]  }
 0x692   :  { %8722 = vmatpush1.bf16.msra.mxu0 %v12962_v46  ;;  %v13021_v46 = vld [vmem:[#allocation22 + $0xe64] ss:$48 sps:$4 sm:$0xff]  }
 0x693   :  { %8723 = vmatprep.subr.bf16.mxu0 %v12970_v10  ;;  %v13016_v10 = vld [vmem:[#allocation22 + $0xec8] ss:$48 sps:$4 sm:$0xff]  }
 0x694   :  { %8595 = vmatpush2.bf16.msra.mxu1 %v12965_v39  ;;  %v13024_v39 = vld [vmem:[#allocation22 + $0xe6c] ss:$48 sps:$4 sm:$0xff]  }
 0x695   :  { %8596 = vmatprep.subr.bf16.mxu1 %v12973_v35  ;;  %v13019_v35 = vld [vmem:[#allocation22 + $0xe60] ss:$48 sps:$4 sm:$0xff]  }
 0x696   :  { %8724 = vmatpush2.bf16.msra.mxu0 %v12968_v29  ;;  %v13027_v29 = vld [vmem:[#allocation22 + $0xe04] ss:$48 sps:$4 sm:$0xff]  }
 0x697   :  { %8725 = vmatprep.subr.bf16.mxu0 %v12976_v15  ;;  %v13022_v15 = vld [vmem:[#allocation22 + $0xe68] ss:$48 sps:$4 sm:$0xff]  }
 0x698   :  { %8597 = vmatpush2.bf16.msra.mxu1 %v12971_v36  ;;  %v13030_v36 = vld [vmem:[#allocation22 + $0xe0c] ss:$48 sps:$4 sm:$0xff]  }
 0x699   :  { %8598 = vmatprep.subr.bf16.mxu1 %v12979_v18  ;;  %v13025_v18 = vld [vmem:[#allocation22 + $0xe00] ss:$48 sps:$4 sm:$0xff]  }
 0x69a   :  { %8726 = vmatpush2.bf16.msra.mxu0 %v12974_v50  ;;  %v13033_v50 = vld [vmem:[#allocation22 + $0xda4] ss:$48 sps:$4 sm:$0xff]  }
 0x69b   :  { %8727 = vmatprep.subr.bf16.mxu0 %v12982_v47  ;;  %v13028_v47 = vld [vmem:[#allocation22 + $0xe08] ss:$48 sps:$4 sm:$0xff]  }
 0x69c   :  { %8599 = vmatpush2.bf16.msra.mxu1 %v12977_v32  ;;  %v13036_v32 = vld [vmem:[#allocation22 + $0xdac] ss:$48 sps:$4 sm:$0xff]  }
 0x69d   :  { %8600 = vmatprep.subr.bf16.mxu1 %v12985_v16  ;;  %v13031_v16 = vld [vmem:[#allocation22 + $0xda0] ss:$48 sps:$4 sm:$0xff]  }
 0x69e   :  { %8728 = vmatpush2.bf16.msra.mxu0 %v12980_v49  ;;  %v13034_v49 = vld [vmem:[#allocation22 + $0xda8] ss:$48 sps:$4 sm:$0xff]  }
 0x69f   :  { %8729 = vmatprep.subr.bf16.mxu0 %v12988_v42  ;;  %v13042_v42 = vld [vmem:[#allocation22 + $0xd4c] ss:$48 sps:$4 sm:$0xff]  }
 0x6a0   :  { %8601 = vmatpush2.bf16.msra.mxu1 %v12983_v52  ;;  %v13045_v52 = vld [vmem:[#allocation22 + $0xce4] ss:$48 sps:$4 sm:$0xff]  }
 0x6a1   :  { %8602 = vmatprep.subr.bf16.mxu1 %v12991_v51  ;;  %v13040_v51 = vld [vmem:[#allocation22 + $0xd48] ss:$48 sps:$4 sm:$0xff]  }
 0x6a2   :  { %8730 = vmatpush2.bf16.msra.mxu0 %v12986_v58  ;;  %v13048_v58 = vld [vmem:[#allocation22 + $0xcec] ss:$48 sps:$4 sm:$0xff]  }
 0x6a3   :  { %8731 = vmatprep.subr.bf16.mxu0 %v12994_v60  ;;  %v13043_v60 = vld [vmem:[#allocation22 + $0xce0] ss:$48 sps:$4 sm:$0xff]  }
 0x6a4   :  { %8603 = vmatpush2.bf16.msra.mxu1 %v12989_v38  ;;  %v13051_v38 = vld [vmem:[#allocation22 + $0xc84] ss:$48 sps:$4 sm:$0xff]  }
 0x6a5   :  { %8604 = vmatprep.subr.bf16.mxu1 %v12997_v23  ;;  %v13046_v23 = vld [vmem:[#allocation22 + $0xce8] ss:$48 sps:$4 sm:$0xff]  }
 0x6a6   :  { %8732 = vmatpush2.bf16.msra.mxu0 %v12992_v61  ;;  %v13054_v61 = vld [vmem:[#allocation22 + $0xc8c] ss:$48 sps:$4 sm:$0xff]  }
 0x6a7   :  { %8733 = vmatprep.subr.bf16.mxu0 %v13000_v5  ;;  %v13049_v5 = vld [vmem:[#allocation22 + $0xc80] ss:$48 sps:$4 sm:$0xff]  }
 0x6a8   :  { %8605 = vmatpush2.bf16.msra.mxu1 %v12995_v33  ;;  %v13057_v33 = vld [vmem:[#allocation22 + $0xc24] ss:$48 sps:$4 sm:$0xff]  }
 0x6a9   :  { %8606 = vmatprep.subr.bf16.mxu1 %v13003_v6  ;;  %v13052_v6 = vld [vmem:[#allocation22 + $0xc88] ss:$48 sps:$4 sm:$0xff]  }
 0x6aa   :  { %8734 = vmatpush2.bf16.msra.mxu0 %v12998_v45  ;;  %v13060_v45 = vld [vmem:[#allocation22 + $0xc2c] ss:$48 sps:$4 sm:$0xff]  }
 0x6ab   :  { %8735 = vmatprep.subr.bf16.mxu0 %v13006_v26  ;;  %v13055_v26 = vld [vmem:[#allocation22 + $0xc20] ss:$48 sps:$4 sm:$0xff]  }
 0x6ac   :  { %8607 = vmatpush2.bf16.msra.mxu1 %v13001_v30  ;;  %v13063_v30 = vld [vmem:[#allocation22 + $0x11c4] ss:$48 sps:$4 sm:$0xff]  }
 0x6ad   :  { %8608 = vmatprep.subr.bf16.mxu1 %v13009_v25  ;;  %v13058_v25 = vld [vmem:[#allocation22 + $0xc28] ss:$48 sps:$4 sm:$0xff]  }
 0x6ae   :  { %8736 = vmatpush2.bf16.msra.mxu0 %v13004_v28  ;;  %v13066_v28 = vld [vmem:[#allocation22 + $0x11cc] ss:$48 sps:$4 sm:$0xff]  }
 0x6af   :  { %8737 = vmatprep.subr.bf16.mxu0 %v13012_v37  ;;  %v13061_v37 = vld [vmem:[#allocation22 + $0x11c0] ss:$48 sps:$4 sm:$0xff]  }
 0x6b0   :  { %8609 = vmatpush2.bf16.msra.mxu1 %v13007_v40  ;;  %v13069_v40 = vld [vmem:[#allocation22 + $0x1164] ss:$48 sps:$4 sm:$0xff]  }
 0x6b1   :  { %8664 = vmatprep.subr.bf16.mxu1 %v13015_v0  ;;  %v13064_v0 = vld [vmem:[#allocation22 + $0x11c8] ss:$48 sps:$4 sm:$0xff]  }
 0x6b2   :  { %8738 = vmatpush2.bf16.msra.mxu0 %v13010_v63  ;;  %v13072_v63 = vld [vmem:[#allocation22 + $0x116c] ss:$48 sps:$4 sm:$0xff]  }
 0x6b3   :  { %8611 = vmatmul.mubr.bf16.vlgmr.msra.gmra.mxu1 %v14322_v13  ;;  %8793 = vmatprep.subr.bf16.mxu0 %v13018_v21  ;;  %v13067_v21 = vld [vmem:[#allocation22 + $0x1160] ss:$48 sps:$4 sm:$0xff]  }
 0x6b4   :  { %8665 = vmatpush1.bf16.msra.mxu1 %v13013_v22  ;;  %8696 = vmatprep.mubr.bf16.mxu1 %v14366_v44  ;;  %v13075_v22 = vld [vmem:[#allocation22 + $0x1104] ss:$48 sps:$4 sm:$0xff]  }
 0x6b5   :  { %8740 = vmatmul.mubr.bf16.vlgmr.msra.gmra.mxu0 %v14322_v13  ;;  %8666 = vmatprep.subr.bf16.mxu1 %v13021_v46  ;;  %v13039_v13 = vld [vmem:[#allocation22 + $0xd44] ss:$48 sps:$4 sm:$0xff]   ;;  %v13070_v46 = vld [vmem:[#allocation22 + $0x1168] ss:$48 sps:$4 sm:$0xff]  }
 0x6b6   :  { %8794 = vmatpush1.bf16.msra.mxu0 %v13016_v10  ;;  %8825 = vmatprep.mubr.bf16.mxu0 %v14366_v44  ;;  %v13037_v44 = vld [vmem:[#allocation22 + $0xd40] ss:$48 sps:$4 sm:$0xff]   ;;  %v13078_v10 = vld [vmem:[#allocation22 + $0x110c] ss:$48 sps:$4 sm:$0xff]  }
 0x6b7   :  { %8795 = vmatprep.subr.bf16.mxu0 %v13024_v39  ;;  %v13073_v39 = vld [vmem:[#allocation22 + $0x1100] ss:$48 sps:$4 sm:$0xff]  }
 0x6b8   :  { %8667 = vmatpush1.bf16.msra.mxu1 %v13019_v35  ;;  %v13081_v35 = vld [vmem:[#allocation22 + $0x10a4] ss:$48 sps:$4 sm:$0xff]  }
 0x6b9   :  { %8668 = vmatprep.subr.bf16.mxu1 %v13027_v29  ;;  %v13076_v29 = vld [vmem:[#allocation22 + $0x1108] ss:$48 sps:$4 sm:$0xff]  }
 0x6ba   :  { %8796 = vmatpush1.bf16.msra.mxu0 %v13022_v15  ;;  %v13084_v15 = vld [vmem:[#allocation22 + $0x10ac] ss:$48 sps:$4 sm:$0xff]  }
 0x6bb   :  { %8797 = vmatprep.subr.bf16.mxu0 %v13030_v36  ;;  %v13079_v36 = vld [vmem:[#allocation22 + $0x10a0] ss:$48 sps:$4 sm:$0xff]  }
 0x6bc   :  { %8669 = vmatpush1.bf16.msra.mxu1 %v13025_v18  ;;  %v13087_v18 = vld [vmem:[#allocation22 + $0x1044] ss:$48 sps:$4 sm:$0xff]  }
 0x6bd   :  { %8670 = vmatprep.subr.bf16.mxu1 %v13033_v50  ;;  %v13082_v50 = vld [vmem:[#allocation22 + $0x10a8] ss:$48 sps:$4 sm:$0xff]  }
 0x6be   :  { %8798 = vmatpush1.bf16.msra.mxu0 %v13028_v47  ;;  %v13090_v47 = vld [vmem:[#allocation22 + $0x104c] ss:$48 sps:$4 sm:$0xff]  }
 0x6bf   :  { %8799 = vmatprep.subr.bf16.mxu0 %v13036_v32  ;;  %v13085_v32 = vld [vmem:[#allocation22 + $0x1040] ss:$48 sps:$4 sm:$0xff]  }
 0x6c0   :  { %8671 = vmatpush1.bf16.msra.mxu1 %v13031_v16  ;;  %v13093_v16 = vld [vmem:[#allocation22 + $0xfe4] ss:$48 sps:$4 sm:$0xff]  }
 0x6c1   :  { %8672 = vmatprep.subr.bf16.mxu1 %v13039_v13  ;;  %v13088_v13 = vld [vmem:[#allocation22 + $0x1048] ss:$48 sps:$4 sm:$0xff]  }
 0x6c2   :  { %8800 = vmatpush1.bf16.msra.mxu0 %v13034_v49  ;;  %v13096_v49 = vld [vmem:[#allocation22 + $0xfec] ss:$48 sps:$4 sm:$0xff]  }
 0x6c3   :  { %8801 = vmatprep.subr.bf16.mxu0 %v13042_v42  ;;  %v13091_v42 = vld [vmem:[#allocation22 + $0xfe0] ss:$48 sps:$4 sm:$0xff]  }
 0x6c4   :  { %8673 = vmatpush1.bf16.msra.mxu1 %v13037_v44  ;;  %v13099_v44 = vld [vmem:[#allocation22 + $0xf84] ss:$48 sps:$4 sm:$0xff]  }
 0x6c5   :  { %8674 = vmatprep.subr.bf16.mxu1 %v13045_v52  ;;  %v13094_v52 = vld [vmem:[#allocation22 + $0xfe8] ss:$48 sps:$4 sm:$0xff]  }
 0x6c6   :  { %8802 = vmatpush1.bf16.msra.mxu0 %v13040_v51  ;;  %v13102_v51 = vld [vmem:[#allocation22 + $0xf8c] ss:$48 sps:$4 sm:$0xff]  }
 0x6c7   :  { %8803 = vmatprep.subr.bf16.mxu0 %v13048_v58  ;;  %v13097_v58 = vld [vmem:[#allocation22 + $0xf80] ss:$48 sps:$4 sm:$0xff]  }
 0x6c8   :  { %8675 = vmatpush1.bf16.msra.mxu1 %v13043_v60  ;;  %v13105_v60 = vld [vmem:[#allocation22 + $0xf24] ss:$48 sps:$4 sm:$0xff]  }
 0x6c9   :  { %8676 = vmatprep.subr.bf16.mxu1 %v13051_v38  ;;  %v13100_v38 = vld [vmem:[#allocation22 + $0xf88] ss:$48 sps:$4 sm:$0xff]  }
 0x6ca   :  { %8804 = vmatpush1.bf16.msra.mxu0 %v13046_v23  ;;  %v13108_v23 = vld [vmem:[#allocation22 + $0xf2c] ss:$48 sps:$4 sm:$0xff]  }
 0x6cb   :  { %8805 = vmatprep.subr.bf16.mxu0 %v13054_v61  ;;  %v13103_v61 = vld [vmem:[#allocation22 + $0xf20] ss:$48 sps:$4 sm:$0xff]  }
 0x6cc   :  { %8677 = vmatpush1.bf16.msra.mxu1 %v13049_v5  ;;  %v13111_v5 = vld [vmem:[#allocation22 + $0x8cc] ss:$48 sps:$4 sm:$0xff]  }
 0x6cd   :  { %8678 = vmatprep.subr.bf16.mxu1 %v13057_v33  ;;  %v13106_v33 = vld [vmem:[#allocation22 + $0xf28] ss:$48 sps:$4 sm:$0xff]  }
 0x6ce   :  { %8806 = vmatpush1.bf16.msra.mxu0 %v13052_v6  ;;  %v13109_v6 = vld [vmem:[#allocation22 + $0x8c8] ss:$48 sps:$4 sm:$0xff]  }
 0x6cf   :  { %8807 = vmatprep.subr.bf16.mxu0 %v13060_v45  ;;  %v13114_v45 = vld [vmem:[#allocation22 + $0x86c] ss:$48 sps:$4 sm:$0xff]  }
 0x6d0   :  { %8679 = vmatpush1.bf16.msra.mxu1 %v13055_v26  ;;  %v13112_v26 = vld [vmem:[#allocation22 + $0x868] ss:$48 sps:$4 sm:$0xff]  }
 0x6d1   :  { %8680 = vmatprep.subr.bf16.mxu1 %v13063_v30  ;;  %v13117_v30 = vld [vmem:[#allocation22 + $0x80c] ss:$48 sps:$4 sm:$0xff]  }
 0x6d2   :  { %8808 = vmatpush1.bf16.msra.mxu0 %v13058_v25  ;;  %v13115_v25 = vld [vmem:[#allocation22 + $0x808] ss:$48 sps:$4 sm:$0xff]  }
 0x6d3   :  { %8809 = vmatprep.subr.bf16.mxu0 %v13066_v28  ;;  %v13120_v28 = vld [vmem:[#allocation22 + $0x7ac] ss:$48 sps:$4 sm:$0xff]  }
 0x6d4   :  { %8681 = vmatpush2.bf16.msra.mxu1 %v13061_v37  ;;  %v13118_v37 = vld [vmem:[#allocation22 + $0x7a8] ss:$48 sps:$4 sm:$0xff]  }
 0x6d5   :  { %8682 = vmatprep.subr.bf16.mxu1 %v13069_v40  ;;  %v13123_v40 = vld [vmem:[#allocation22 + $0x74c] ss:$48 sps:$4 sm:$0xff]  }
 0x6d6   :  { %8810 = vmatpush2.bf16.msra.mxu0 %v13064_v0  ;;  %v13121_v0 = vld [vmem:[#allocation22 + $0x748] ss:$48 sps:$4 sm:$0xff]  }
 0x6d7   :  { %8811 = vmatprep.subr.bf16.mxu0 %v13072_v63  ;;  %v13126_v63 = vld [vmem:[#allocation22 + $0x6ec] ss:$48 sps:$4 sm:$0xff]  }
 0x6d8   :  { %8683 = vmatpush2.bf16.msra.mxu1 %v13067_v21  ;;  %v13124_v21 = vld [vmem:[#allocation22 + $0x6e8] ss:$48 sps:$4 sm:$0xff]  }
 0x6d9   :  { %8684 = vmatprep.subr.bf16.mxu1 %v13075_v22  ;;  %v13132_v22 = vld [vmem:[#allocation22 + $0x62c] ss:$48 sps:$4 sm:$0xff]  }
 0x6da   :  { %8812 = vmatpush2.bf16.msra.mxu0 %v13070_v46  ;;  %v13130_v46 = vld [vmem:[#allocation22 + $0x628] ss:$48 sps:$4 sm:$0xff]  }
 0x6db   :  { %8813 = vmatprep.subr.bf16.mxu0 %v13078_v10  ;;  %v13135_v10 = vld [vmem:[#allocation22 + $0xbcc] ss:$48 sps:$4 sm:$0xff]  }
 0x6dc   :  { %8685 = vmatpush2.bf16.msra.mxu1 %v13073_v39  ;;  %v13133_v39 = vld [vmem:[#allocation22 + $0xbc8] ss:$48 sps:$4 sm:$0xff]  }
 0x6dd   :  { %8686 = vmatprep.subr.bf16.mxu1 %v13081_v35  ;;  %v13138_v35 = vld [vmem:[#allocation22 + $0xb6c] ss:$48 sps:$4 sm:$0xff]  }
 0x6de   :  { %8814 = vmatpush2.bf16.msra.mxu0 %v13076_v29  ;;  %v13136_v29 = vld [vmem:[#allocation22 + $0xb68] ss:$48 sps:$4 sm:$0xff]  }
 0x6df   :  { %8815 = vmatprep.subr.bf16.mxu0 %v13084_v15  ;;  %v13141_v15 = vld [vmem:[#allocation22 + $0xb0c] ss:$48 sps:$4 sm:$0xff]  }
 0x6e0   :  { %8687 = vmatpush2.bf16.msra.mxu1 %v13079_v36  ;;  %v13139_v36 = vld [vmem:[#allocation22 + $0xb08] ss:$48 sps:$4 sm:$0xff]  }
 0x6e1   :  { %8688 = vmatprep.subr.bf16.mxu1 %v13087_v18  ;;  %v13144_v18 = vld [vmem:[#allocation22 + $0xaac] ss:$48 sps:$4 sm:$0xff]  }
 0x6e2   :  { %8816 = vmatpush2.bf16.msra.mxu0 %v13082_v50  ;;  %v13142_v50 = vld [vmem:[#allocation22 + $0xaa8] ss:$48 sps:$4 sm:$0xff]  }
 0x6e3   :  { %8817 = vmatprep.subr.bf16.mxu0 %v13090_v47  ;;  %v13147_v47 = vld [vmem:[#allocation22 + $0xa4c] ss:$48 sps:$4 sm:$0xff]  }
 0x6e4   :  { %8689 = vmatpush2.bf16.msra.mxu1 %v13085_v32  ;;  %v13145_v32 = vld [vmem:[#allocation22 + $0xa48] ss:$48 sps:$4 sm:$0xff]  }
 0x6e5   :  { %8690 = vmatprep.subr.bf16.mxu1 %v13093_v16  ;;  %v13150_v16 = vld [vmem:[#allocation22 + $0x9ec] ss:$48 sps:$4 sm:$0xff]  }
 0x6e6   :  { %8818 = vmatpush2.bf16.msra.mxu0 %v13088_v13  ;;  %v13148_v13 = vld [vmem:[#allocation22 + $0x9e8] ss:$48 sps:$4 sm:$0xff]  }
 0x6e7   :  { %8819 = vmatprep.subr.bf16.mxu0 %v13096_v49  ;;  %v13153_v49 = vld [vmem:[#allocation22 + $0x98c] ss:$48 sps:$4 sm:$0xff]  }
 0x6e8   :  { %8691 = vmatpush2.bf16.msra.mxu1 %v13091_v42  ;;  %v13151_v42 = vld [vmem:[#allocation22 + $0x988] ss:$48 sps:$4 sm:$0xff]  }
 0x6e9   :  { %8692 = vmatprep.subr.bf16.mxu1 %v13099_v44  ;;  %v13156_v44 = vld [vmem:[#allocation22 + $0x92c] ss:$48 sps:$4 sm:$0xff]  }
 0x6ea   :  { %8820 = vmatpush2.bf16.msra.mxu0 %v13094_v52  ;;  %v13154_v52 = vld [vmem:[#allocation22 + $0x928] ss:$48 sps:$4 sm:$0xff]  }
 0x6eb   :  { %8821 = vmatprep.subr.bf16.mxu0 %v13102_v51  ;;  %v8096_v51 = vpop.f32.mrf.mxu1 }
 0x6ec   :  { %8693 = vmatpush2.bf16.msra.mxu1 %v13097_v58 }
 0x6ed   :  { %8694 = vmatprep.subr.bf16.mxu1 %v13105_v60  ;;  %v8098_v58 = vpop.f32.mrf.mxu1  ;;  %v8139_v60 = vpop.f32.mrf.mxu0 }
 0x6ee   :  { %8822 = vmatpush2.bf16.msra.mxu0 %v13100_v38 }
 0x6ef   :  { %8823 = vmatprep.subr.bf16.mxu0 %v13108_v23  ;;  %v8100_v38 = vpop.f32.mrf.mxu1  ;;  %v8141_v23 = vpop.f32.mrf.mxu0 }
 0x6f0   :  { %8695 = vmatpush2.bf16.msra.mxu1 %v13103_v61 }
 0x6f1   :  { %8750 = vmatprep.subr.bf16.mxu1 %v13111_v5  ;;  %v8102_v61 = vpop.f32.mrf.mxu1  ;;  %v14400_v5 = vpop.f32.mrf.mxu0 }
 0x6f2   :  { %8824 = vmatpush2.bf16.msra.mxu0 %v13106_v33 }
 0x6f3   :  { %8697 = vmatmul.mubr.bf16.vlgmr.msra.gmra.mxu1 %v14368_v3  ;;  %v8182_v33 = vpop.f32.mrf.mxu1 }
 0x6f4   :  { %8751 = vmatpush1.bf16.msra.mxu1 %v13109_v6  ;;  %8782 = vmatprep.mubr.bf16.mxu1 %v14342_v27  ;;  %v13129_v27 = vld [vmem:[#allocation22 + $0x68c] ss:$48 sps:$4 sm:$0xff]   ;;  %v8145_v6 = vpop.f32.mrf.mxu0 }
 0x6f5   :  { %8826 = vmatmul.mubr.bf16.vlgmr.msra.gmra.mxu0 %v14368_v3  ;;  %8752 = vmatprep.subr.bf16.mxu1 %v13114_v45  ;;  %v13127_v3 = vld [vmem:[#allocation22 + $0x688] ss:$48 sps:$4 sm:$0xff]  }
 0x6f6   :  { %v8225_v45 = vpop.f32.mrf.mxu0 }
 0x6f8   :  { %8753 = vmatpush1.bf16.msra.mxu1 %v13112_v26  ;;  %v8184_v26 = vpop.f32.mrf.mxu1 }
 0x6f9   :  { %8754 = vmatprep.subr.bf16.mxu1 %v13117_v30  ;;  %v8227_v30 = vpop.f32.mrf.mxu0 }
 0x6fc   :  { %8755 = vmatpush1.bf16.msra.mxu1 %v13115_v25  ;;  %v14402_v25 = vpop.f32.mrf.mxu1 }
 0x6fd   :  { %8756 = vmatprep.subr.bf16.mxu1 %v13120_v28  ;;  %v8229_v28 = vpop.f32.mrf.mxu0 }
 0x700   :  { %8757 = vmatpush1.bf16.msra.mxu1 %v13118_v37  ;;  %v8188_v37 = vpop.f32.mrf.mxu1 }
 0x701   :  { %8758 = vmatprep.subr.bf16.mxu1 %v13123_v40 }
 0x702   :  { %v8268_v40 = vpop.f32.mrf.mxu1 }
 0x704   :  { %8759 = vmatpush1.bf16.msra.mxu1 %v13121_v0  ;;  %v8231_v0 = vpop.f32.mrf.mxu0 }
 0x705   :  { %8760 = vmatprep.subr.bf16.mxu1 %v13126_v63  ;;  %v8270_v63 = vpop.f32.mrf.mxu1 }
 0x708   :  { %8761 = vmatpush1.bf16.msra.mxu1 %v13124_v21 }
 0x709   :  { %8762 = vmatprep.subr.bf16.mxu1 %v13129_v27  ;;  %v8272_v27 = vpop.f32.mrf.mxu1 }
 0x70c   :  { %8763 = vmatpush1.bf16.msra.mxu1 %v13127_v3 }
 0x70d   :  { %8764 = vmatprep.subr.bf16.mxu1 %v13132_v22  ;;  %v14406_v22 = vpop.f32.mrf.mxu1 }
 0x710   :  { %8765 = vmatpush1.bf16.msra.mxu1 %v13130_v46  ;;  %v8354_v46 = vpop.f32.mrf.mxu1 }
 0x711   :  { %8766 = vmatprep.subr.bf16.mxu1 %v13135_v10 }
 0x714   :  { %8767 = vmatpush2.bf16.msra.mxu1 %v13133_v39 }
 0x715   :  { %8768 = vmatprep.subr.bf16.mxu1 %v13138_v35  ;;  %v8356_v35 = vpop.f32.mrf.mxu1 }
 0x718   :  { %8769 = vmatpush2.bf16.msra.mxu1 %v13136_v29 }
 0x719   :  { %8770 = vmatprep.subr.bf16.mxu1 %v13141_v15  ;;  %v8358_v15 = vpop.f32.mrf.mxu1 }
 0x71c   :  { %8771 = vmatpush2.bf16.msra.mxu1 %v13139_v36 }
 0x71d   :  { %8772 = vmatprep.subr.bf16.mxu1 %v13144_v18  ;;  %v14416_v18 = vpop.f32.mrf.mxu1 }
 0x720   :  { %8773 = vmatpush2.bf16.msra.mxu1 %v13142_v50  ;;  %v14418_v50 = vpop.f32.mrf.mxu1 }
 0x721   :  { %8774 = vmatprep.subr.bf16.mxu1 %v13147_v47 }
 0x724   :  { %8775 = vmatpush2.bf16.msra.mxu1 %v13145_v32 }
 0x725   :  { %8776 = vmatprep.subr.bf16.mxu1 %v13150_v16  ;;  %v14422_v16 = vpop.f32.mrf.mxu1 }
 0x728   :  { %8777 = vmatpush2.bf16.msra.mxu1 %v13148_v13 }
 0x729   :  { %8778 = vmatprep.subr.bf16.mxu1 %v13153_v49  ;;  %v14426_v49 = vpop.f32.mrf.mxu1 }
 0x72c   :  { %8779 = vmatpush2.bf16.msra.mxu1 %v13151_v42 }
 0x72d   :  { %8780 = vmatprep.subr.bf16.mxu1 %v13156_v44  ;;  %v14430_v44 = vpop.f32.mrf.mxu1 }
 0x72e   :  { %15458 = vst [vmem:[#allocation77_spill] sm:$0xff] %v14430_v44 }
 0x730   :  { %8781 = vmatpush2.bf16.msra.mxu1 %v13154_v52  ;;  %v5118_v52 = vld [vmem:[#allocation23] sm:$0xff] }
 0x731   :  { %v5129_v59 = vrot.slane %v5118_v52, %v14191_v4  ;;  %v5133_v41 = vrot.slane %v5118_v52, %v14194_v17  ;;  %v5125_v54 = vrot.slane %v5118_v52, %v14183_v56  ;;  %v5137_v8 = vrot.slane %v5118_v52, %v14197_v31 }
 0x733   :  { %8783 = vmatmul.mubr.bf16.vlgmr.msra.gmra.mxu1 %v14344_v62  ;;  %v8311_v62 = vpop.f32.mrf.mxu0  ;;  %v14432_v57 = vpop.f32.mrf.mxu1  ;;  %v8099_v14 = vadd.f32 %v8098_v58, %v5129_v59  ;;  %v8226_v53 = vadd.f32 %v8225_v45, %v5133_v41  ;;  %v8097_v9 = vadd.f32 %v8096_v51, %v5125_v54  ;;  %v8228_v44 = vadd.f32 %v8227_v30, %v5137_v8 }
 0x734   :  { %v8101_v58 = vadd.f32 %v8100_v38, %v5125_v54  ;;  %v8230_v45 = vadd.f32 %v8229_v28, %v5133_v41  ;;  %v8232_v41 = vadd.f32 %v8231_v0, %v5137_v8 }
 0x735   :  { %v8313_v21 = vpop.f32.mrf.mxu0  ;;  %v14441_v20 = vpop.f32.mrf.mxu1  ;;  %v8142_v48 = vadd.f32 %v8141_v23, %v8099_v14  ;;  %v8269_v1 = vadd.f32 %v8268_v40, %v8226_v53  ;;  %v8140_v24 = vadd.f32 %v8139_v60, %v8097_v9  ;;  %v8271_v23 = vadd.f32 %v8270_v63, %v8228_v44 }
 0x736   :  { %15460 = vst [vmem:[#allocation79_spill] sm:$0xff] %v14441_v20  ;;  %v5141_v20 = vrot.slane %v5118_v52, %v14238_v43  ;;  %v5145_v9 = vrot.slane %v5118_v52, %v14235_v11  ;;  %v8275_v28 = vadd.f32 %v14406_v22, %v8232_v41 }
 0x737   :  { %v14404_v3 = vpop.f32.mrf.mxu0  ;;  %v14446_v34 = vpop.f32.mrf.mxu1  ;;  %v14448_v17 = vadd.f32 %v8184_v26, %v8142_v48  ;;  %v14450_v4 = vadd.f32 %v8182_v33, %v8140_v24  ;;  %v14453_v51 = vadd.f32 %v8311_v62, %v8269_v1  ;;  %v8144_v48 = vadd.f32 %v14400_v5, %v8101_v58 }
 0x738   :  { %v8273_v24 = vadd.f32 %v8272_v27, %v8230_v45  ;;  %v8355_v1 = vadd.f32 %v8354_v46, %v5141_v20  ;;  %v8357_v5 = vadd.f32 %v8356_v35, %v5145_v9  ;;  %v5149_v26 = vrot.slane %v5118_v52, %v14095_v12 }
 0x739   :  { %v14408_v10 = vpop.f32.mrf.mxu0  ;;  %v14457_v14 = vpop.f32.mrf.mxu1  ;;  %v14466_v38 = vadd.f32 %v14402_v25, %v8144_v48  ;;  %v5153_v46 = vrot.slane %v5118_v52, %v14188_v2 }
 0x73a   :  { %v14475_v30 = vadd.f32 %v14404_v3, %v8273_v24  ;;  %v14488_v22 = vadd.f32 %v14408_v10, %v8275_v28  ;;  %v15462_v24 = vld [vmem:[#allocation61_spill] sm:$0xff] }
 0x73b   :  { %v14410_v39 = vpop.f32.mrf.mxu0  ;;  %v8872_v62 = vmul.f32 0.70710677, %v14466_v38 }
 0x73c   :  { %v8398_v0 = vadd.f32 %v14410_v39, %v8355_v1  ;;  %v8875_v58 = vmul.f32 0.70710677, %v14488_v22 }
 0x73d   :  { %v14412_v29 = vpop.f32.mrf.mxu0  ;;  %v15461_v48 = vld [vmem:[#allocation79_spill] sm:$0xff] }
 0x73e   :  { %v14483_v27 = vadd.f32 %v14418_v50, %v8398_v0  ;;  %v8400_v3 = vadd.f32 %v14412_v29, %v8357_v5  ;;  %v8361_v29 = vadd.f32 %v14416_v18, %v5145_v9 }
 0x73f   :  { %v14414_v36 = vpop.f32.mrf.mxu0 }
 0x740   :  { %v8864_v52 = vmul.f32 0.70710677, %v14483_v27 }
 0x741   :  { %v14420_v47 = vpop.f32.mrf.mxu0 }
 0x742   :  { %v8404_v9 = vadd.f32 %v14420_v47, %v8361_v29 }
 0x743   :  { %v8483_v32 = vpop.f32.mrf.mxu0 }
 0x745   :  { %v14424_v13 = vpop.f32.mrf.mxu0 }
 0x747   :  { %v14428_v42 = vpop.f32.mrf.mxu0 }
 0x749   :  { %v14436_v55 = vpop.f32.mrf.mxu0 }
 0x74a   :  { %15459 = vst [vmem:[#allocation78_spill] sm:$0xff] %v14436_v55  ;;  %v8103_v55 = vadd.f32 %v8102_v61, %v5129_v59  ;;  %v8861_v59 = vmul.f32 0.70710677, %v14448_v17  ;;  %v8860_v61 = vmul.f32 0.70710677, %v14450_v4 }
 0x74b   :  { %v14439_v19 = vpop.f32.mrf.mxu0 }
 0x74c   :  { %v8146_v53 = vadd.f32 %v8145_v6, %v8103_v55  ;;  %v8862_v55 = vmul.f32 0.70710677, %v14453_v51  ;;  %v14471_v6 = vadd.f32 %v8313_v21, %v8271_v23  ;;  %13281 = verf.f32 %v8861_v59 }
 0x74d   :  { %v14444_v7 = vpop.f32.mrf.mxu0  ;;  %13283 = verf.f32 %v8860_v61  ;;  %v8484_v21 = vadd.f32 %v8483_v32, %v5149_v26  ;;  %v14495_v32 = vadd.f32 %v14422_v16, %v8400_v3  ;;  %v8486_v16 = vadd.f32 %v14424_v13, %v5153_v46 }
 0x74e   :  { %v14463_v54 = vadd.f32 %v8188_v37, %v8146_v53  ;;  %v8359_v37 = vadd.f32 %v8358_v15, %v5141_v20  ;;  %13285 = verf.f32 %v8862_v55  ;;  %v8863_v63 = vmul.f32 0.70710677, %v14471_v6  ;;  %v14492_v15 = vld [vmem:[#allocation23 + $0x8] sm:$0xf] }
 0x74f   :  { %v14455_v31 = vpop.f32.mrf.mxu0  ;;  %v8874_v20 = vmul.f32 0.70710677, %v14475_v30  ;;  %v8527_v50 = vadd.f32 %v14432_v57, %v8484_v21  ;;  %v8488_v57 = vadd.f32 %v14428_v42, %v5149_v26  ;;  %v8865_v18 = vmul.f32 0.70710677, %v14495_v32  ;;  %v15463_v42 = vld [vmem:[#allocation77_spill] sm:$0xff] }
 0x750   :  { %v8873_v25 = vmul.f32 0.70710677, %v14463_v54  ;;  %v8402_v39 = vadd.f32 %v14414_v36, %v8359_v37  ;;  %v5157_v36 = vrot.slane %v14492_v15, %v14183_v56  ;;  %v8529_v59 = vadd.f32 %v15461_v48, %v8486_v16 }
 0x751   :  { %v14469_v33 = vpop.f32.mrf.mxu0  ;;  %v5161_v61 = vrot.slane %v14492_v15, %v15462_v24  ;;  %v8531_v13 = vadd.f32 %v14446_v34, %v8488_v57  ;;  %v14519_v55 = vadd.f32 %v15463_v42, %v8404_v9  ;;  %v15464_v26 = vld [vmem:[#allocation78_spill] sm:$0xff] }
 0x752   :  { %13287 = verf.f32 %v8873_v25  ;;  %v14500_v10 = vadd.f32 %v14426_v49, %v8402_v39  ;;  %v14510_v49 = vadd.f32 %v14439_v19, %v8527_v50  ;;  %v8490_v28 = vadd.f32 %v15464_v26, %v5153_v46 }
 0x753   :  { %v8655_v8 = vpop.f32.mrf.mxu0  ;;  %13289 = verf.f32 %v8872_v62  ;;  %v14524_v25 = vadd.f32 %v14444_v7, %v8529_v59  ;;  %v8877_v39 = vmul.f32 0.70710677, %v14519_v55  ;;  %v8836_v50 = vmul.f32 0.5, %v14450_v4 }
 0x754   :  { %13291 = verf.f32 %v8863_v63  ;;  %v8876_v23 = vmul.f32 0.70710677, %v14500_v10  ;;  %v8866_v47 = vmul.f32 0.70710677, %v14510_v49  ;;  %v14529_v63 = vadd.f32 %v14455_v31, %v8531_v13 }
 0x755   :  { %v8657_v35 = vpop.f32.mrf.mxu0  ;;  %13293 = verf.f32 %v8874_v20  ;;  %v8533_v21 = vadd.f32 %v14457_v14, %v8490_v28 }
 0x756   :  { %13295 = verf.f32 %v8864_v52  ;;  %v8837_v52 = vmul.f32 0.5, %v14448_v17 }
 0x757   :  { %v8659_v45 = vpop.f32.mrf.mxu0  ;;  %13297 = verf.f32 %v8875_v58  ;;  %v8867_v58 = vmul.f32 0.70710677, %v14524_v25  ;;  %v14542_v57 = vadd.f32 %v14469_v33, %v8533_v21  ;;  %v8848_v33 = vmul.f32 0.5, %v14466_v38 }
 0x758   :  { %13299 = verf.f32 %v8865_v18 }
 0x759   :  { %v8661_v19 = vpop.f32.mrf.mxu0  ;;  %v13282_v5 = vpop.eup %13281  ;;  %13301 = verf.f32 %v8876_v23 }
 0x75a   :  { %v13284_v37 = vpop.eup %13283  ;;  %v8909_v46 = vadd.f32 1.0, %v13282_v5  ;;  %13303 = verf.f32 %v8866_v47 }
 0x75b   :  { %v8908_v29 = vadd.f32 1.0, %v13284_v37  ;;  %13305 = verf.f32 %v8877_v39 }
 0x75c   :  { %v14544_v23 = vmul.f32 %v8909_v46, %v8837_v52  ;;  %13307 = verf.f32 %v8867_v58  ;;  %v15465_v46 = vld [vmem:[#allocation62_spill] sm:$0xff] }
 0x75d   :  { %v5165_v39 = vrot.slane %v14492_v15, %v15465_v46 }
 0x773   :  { %v8612_v60 = vpop.f32.mrf.mxu1 }
 0x774   :  { %v8613_v41 = vadd.f32 %v8612_v60, %v5157_v36  ;;  %v13286_v60 = vpop.eup %13285 }
 0x775   :  { %v8614_v40 = vpop.f32.mrf.mxu1  ;;  %v14526_v62 = vpop.f32.mrf.mxu0 }
 0x776   :  { %v8615_v0 = vadd.f32 %v8614_v40, %v5161_v61  ;;  %v8656_v20 = vadd.f32 %v8655_v8, %v8613_v41  ;;  %v13288_v40 = vpop.eup %13287  ;;  %v8910_v8 = vadd.f32 1.0, %v13286_v60  ;;  %v14552_v41 = vmul.f32 %v8908_v29, %v8836_v50 }
 0x777   :  { %v8616_v44 = vpop.f32.mrf.mxu1  ;;  %v14538_v31 = vpop.f32.mrf.mxu0  ;;  %v8921_v59 = vadd.f32 1.0, %v13288_v40 }
 0x778   :  { %v8617_v3 = vadd.f32 %v8616_v44, %v5157_v36  ;;  %v8658_v16 = vadd.f32 %v8657_v35, %v8615_v0  ;;  %v13290_v44 = vpop.eup %13289  ;;  %v8878_v36 = vmul.f32 0.70710677, %v14529_v63  ;;  %v8838_v35 = vmul.f32 0.5, %v14453_v51 }
 0x779   :  { %v8618_v53 = vpop.f32.mrf.mxu1  ;;  %v13292_v18 = vpop.eup %13291  ;;  %v8920_v5 = vadd.f32 1.0, %v13290_v44  ;;  %v8960_v38 = vadd.f32 %v14544_v23, %v14552_v41 }
 0x77a   :  { %v8660_v4 = vadd.f32 %v8659_v45, %v8617_v3  ;;  %v8619_v9 = vadd.f32 %v8618_v53, %v5161_v61  ;;  %v13294_v48 = vpop.eup %13293  ;;  %v8849_v45 = vmul.f32 0.5, %v14463_v54  ;;  %v8745_v42 = vpop.f32.mrf.mxu0  ;;  %v14556_v53 = vmul.f32 %v8910_v8, %v8838_v35 }
 0x77b   :  { %13309 = verf.f32 %v8878_v36  ;;  %v8879_v61 = vmul.f32 0.70710677, %v14542_v57  ;;  %v13296_v51 = vpop.eup %13295  ;;  %v8911_v28 = vadd.f32 1.0, %v13292_v18  ;;  %v8922_v47 = vadd.f32 1.0, %v13294_v48 }
 0x77c   :  { %v8662_v0 = vadd.f32 %v8661_v19, %v8619_v9  ;;  %v14562_v54 = vmul.f32 %v8921_v59, %v8849_v45  ;;  %v8839_v3 = vmul.f32 0.5, %v14471_v6  ;;  %v8747_v50 = vpop.f32.mrf.mxu0  ;;  %v14571_v29 = vmul.f32 %v8920_v5, %v8848_v33  ;;  %v15466_v6 = vld [vmem:[#allocation63_spill] sm:$0xff] }
 0x77d   :  { %v8961_v52 = vadd.f32 %v8960_v38, %v14556_v53  ;;  %v8912_v58 = vadd.f32 1.0, %v13296_v51  ;;  %v8840_v36 = vmul.f32 0.5, %v14483_v27  ;;  %v8742_v9 = vadd.f32 %v14526_v62, %v5165_v39 }
 0x77e   :  { %v8973_v18 = vadd.f32 %v14562_v54, %v14571_v29  ;;  %v8851_v59 = vmul.f32 0.5, %v14488_v22  ;;  %v8841_v62 = vmul.f32 0.5, %v14495_v32  ;;  %v8852_v22 = vmul.f32 0.5, %v14500_v10 }
 0x77f   :  { %v14586_v35 = vmul.f32 %v8912_v58, %v8840_v36 }
 0x7b3   :  { %v8698_v1 = vpop.f32.mrf.mxu1 }
 0x7b4   :  { %v14534_v7 = vadd.f32 %v8698_v1, %v8656_v20  ;;  %v8850_v20 = vmul.f32 0.5, %v14475_v30  ;;  %v5169_v30 = vrot.slane %v14492_v15, %v15466_v6 }
 0x7b5   :  { %v8700_v34 = vpop.f32.mrf.mxu1  ;;  %v8827_v44 = vpop.f32.mrf.mxu0 }
 0x7b6   :  { %v14546_v17 = vadd.f32 %v8700_v34, %v8658_v16  ;;  %v8868_v1 = vmul.f32 0.70710677, %v14534_v7  ;;  %v13298_v34 = vpop.eup %13297  ;;  %v14574_v16 = vmul.f32 %v8911_v28, %v8839_v3  ;;  %v8744_v5 = vadd.f32 %v14538_v31, %v5169_v30 }
 0x7b7   :  { %v8702_v14 = vpop.f32.mrf.mxu1  ;;  %v13300_v21 = vpop.eup %13299  ;;  %v8923_v8 = vadd.f32 1.0, %v13298_v34 }
 0x7b8   :  { %v14550_v13 = vadd.f32 %v8702_v14, %v8660_v4  ;;  %v8869_v37 = vmul.f32 0.70710677, %v14546_v17  ;;  %13311 = verf.f32 %v8868_v1  ;;  %v13302_v19 = vpop.eup %13301  ;;  %v14576_v14 = vmul.f32 %v8922_v47, %v8850_v20 }
 0x7b9   :  { %v8704_v26 = vpop.f32.mrf.mxu1  ;;  %13313 = verf.f32 %v8879_v61  ;;  %v13304_v4 = vpop.eup %13303  ;;  %v8913_v1 = vadd.f32 1.0, %v13300_v21  ;;  %v8924_v15 = vadd.f32 1.0, %v13302_v19  ;;  %v8962_v27 = vadd.f32 %v8961_v52, %v14574_v16 }
 0x7ba   :  { %v8880_v60 = vmul.f32 0.70710677, %v14550_v13  ;;  %v14569_v40 = vadd.f32 %v8704_v26, %v8662_v0  ;;  %13315 = verf.f32 %v8869_v37  ;;  %v8974_v45 = vadd.f32 %v8973_v18, %v14576_v14  ;;  %v8829_v61 = vpop.f32.mrf.mxu0  ;;  %v13306_v51 = vpop.eup %13305 }
 0x7bb   :  { %v14591_v28 = vmul.f32 %v8923_v8, %v8851_v59  ;;  %v8914_v47 = vadd.f32 1.0, %v13304_v4  ;;  %v8746_v0 = vadd.f32 %v8745_v42, %v5165_v39  ;;  %v8963_v21 = vadd.f32 %v8962_v27, %v14586_v35 }
 0x7bc   :  { %13317 = verf.f32 %v8880_v60  ;;  %v8881_v48 = vmul.f32 0.70710677, %v14569_v40  ;;  %v13308_v60 = vpop.eup %13307  ;;  %v14598_v31 = vmul.f32 %v8913_v1, %v8841_v62  ;;  %v14600_v3 = vmul.f32 %v8924_v15, %v8852_v22  ;;  %v8831_v10 = vpop.f32.mrf.mxu0 }
 0x7bd   :  { %v8842_v20 = vmul.f32 0.5, %v14510_v49  ;;  %v13310_v32 = vpop.eup %13309  ;;  %v8925_v52 = vadd.f32 1.0, %v13306_v51  ;;  %v8853_v8 = vmul.f32 0.5, %v14519_v55  ;;  %v8748_v4 = vadd.f32 %v8747_v50, %v5169_v30 }
 0x7be   :  { %13319 = verf.f32 %v8881_v48  ;;  %v8915_v48 = vadd.f32 1.0, %v13308_v60  ;;  %v8964_v1 = vadd.f32 %v8963_v21, %v14598_v31  ;;  %v8843_v55 = vmul.f32 0.5, %v14524_v25 }
 0x7bf   :  { %v14606_v36 = vmul.f32 %v8914_v47, %v8842_v20  ;;  %v8844_v60 = vmul.f32 0.5, %v14534_v7  ;;  %v8855_v20 = vmul.f32 0.5, %v14542_v57  ;;  %v8856_v7 = vmul.f32 0.5, %v14550_v13 }
 0x7c1   :  { %v8965_v47 = vadd.f32 %v8964_v1, %v14606_v36 }
 0x7f3   :  { %v8784_v33 = vpop.f32.mrf.mxu1 }
 0x7f4   :  { %v8785_v26 = vadd.f32 %v8784_v33, %v8742_v9  ;;  %v13312_v9 = vpop.eup %13311  ;;  %v8926_v33 = vadd.f32 1.0, %v13310_v32 }
 0x7f5   :  { %v8786_v37 = vpop.f32.mrf.mxu1  ;;  %v8916_v51 = vadd.f32 1.0, %v13312_v9 }
 0x7f6   :  { %v14595_v34 = vadd.f32 %v8827_v44, %v8785_v26  ;;  %v8787_v38 = vadd.f32 %v8786_v37, %v8744_v5  ;;  %v8975_v44 = vadd.f32 %v8974_v45, %v14591_v28  ;;  %v13314_v5 = vpop.eup %13313  ;;  %v8833_v45 = vpop.f32.mrf.mxu0  ;;  %v8854_v26 = vmul.f32 0.5, %v14529_v63 }
 0x7f7   :  { %v8788_v19 = vpop.f32.mrf.mxu1  ;;  %v13316_v30 = vpop.eup %13315  ;;  %v14615_v37 = vmul.f32 %v8915_v48, %v8843_v55 }
 0x7f8   :  { %v8870_v58 = vmul.f32 0.70710677, %v14595_v34  ;;  %v8830_v42 = vadd.f32 %v8829_v61, %v8787_v38  ;;  %v8789_v39 = vadd.f32 %v8788_v19, %v8746_v0  ;;  %v8976_v15 = vadd.f32 %v8975_v44, %v14600_v3  ;;  %v13318_v22 = vpop.eup %13317 }
 0x7f9   :  { %v8790_v18 = vpop.f32.mrf.mxu1  ;;  %v14610_v61 = vmul.f32 %v8925_v52, %v8853_v8  ;;  %v14617_v0 = vmul.f32 %v8926_v33, %v8854_v26  ;;  %v8927_v38 = vadd.f32 1.0, %v13314_v5  ;;  %v14622_v19 = vmul.f32 %v8916_v51, %v8844_v60 }
 0x7fa   :  { %13321 = verf.f32 %v8870_v58  ;;  %v8871_v49 = vmul.f32 0.70710677, %v8830_v42  ;;  %v8832_v59 = vadd.f32 %v8831_v10, %v8789_v39  ;;  %v8791_v27 = vadd.f32 %v8790_v18, %v8748_v4  ;;  %v13320_v10 = vpop.eup %13319 }
 0x7fb   :  { %v8977_v21 = vadd.f32 %v8976_v15, %v14610_v61  ;;  %v8917_v63 = vadd.f32 1.0, %v13316_v30  ;;  %v8928_v32 = vadd.f32 1.0, %v13318_v22  ;;  %v8966_v52 = vadd.f32 %v8965_v47, %v14615_v37 }
 0x7fc   :  { %13323 = verf.f32 %v8871_v49  ;;  %v8882_v50 = vmul.f32 0.70710677, %v8832_v59  ;;  %v8834_v62 = vadd.f32 %v8833_v45, %v8791_v27  ;;  %v14626_v39 = vmul.f32 %v8927_v38, %v8855_v20  ;;  %v13157_v20 = vld [vmem:[#allocation28 + $0x78] sm:$0xff]  }
 0x7fd   :  { %v8978_v58 = vadd.f32 %v8977_v21, %v14617_v0  ;;  %v8845_v44 = vmul.f32 0.5, %v14546_v17  ;;  %v8967_v8 = vadd.f32 %v8966_v52, %v14622_v19  ;;  %v14633_v57 = vmul.f32 %v8928_v32, %v8856_v7  ;;  %v13159_v32 = vld [vmem:[#allocation28 + $0x38] sm:$0xff]   ;;  %11474 = vmatprep.subr.bf16.mxu1 %v13157_v20 }
 0x7fe   :  { %13325 = verf.f32 %v8882_v50  ;;  %v8883_v25 = vmul.f32 0.70710677, %v8834_v62  ;;  %v8929_v18 = vadd.f32 1.0, %v13320_v10  ;;  %v8857_v49 = vmul.f32 0.5, %v14569_v40  ;;  %v13160_v52 = vld [vmem:[#allocation28 + $0x138] sm:$0xff]   ;;  %11475 = vmatpush3.bf16.msra.mxu1 %v13159_v32 }
 0x7ff   :  { %v14631_v4 = vmul.f32 %v8917_v63, %v8845_v44  ;;  %v8979_v48 = vadd.f32 %v8978_v58, %v14626_v39  ;;  %v8846_v1 = vmul.f32 0.5, %v14595_v34  ;;  %v8847_v5 = vmul.f32 0.5, %v8830_v42  ;;  %v13158_v63 = vld [vmem:[#allocation28 + $0x178] sm:$0xff]  }
 0x800   :  { %13327 = verf.f32 %v8883_v25  ;;  %v14640_v27 = vmul.f32 %v8929_v18, %v8857_v49  ;;  %v8858_v30 = vmul.f32 0.5, %v8832_v59  ;;  %v8859_v60 = vmul.f32 0.5, %v8834_v62  ;;  %11518 = vmatprep.subr.bf16.mxu0 %v13158_v63 }
 0x801   :  { %v8980_v17 = vadd.f32 %v8979_v48, %v14633_v57  ;;  %v8968_v13 = vadd.f32 %v8967_v8, %v14631_v4  ;;  %11519 = vmatpush3.bf16.msra.mxu0 %v13160_v52 }
 0x803   :  { %v8981_v38 = vadd.f32 %v8980_v17, %v14640_v27  ;;  %v14691_v17 = vld [vmem:[#allocation11] sm:$0xff] }
 0x807   :  { %v13322_v9 = vpop.eup %13321 }
 0x808   :  { %v8918_v15 = vadd.f32 1.0, %v13322_v9 }
 0x809   :  { %v13324_v33 = vpop.eup %13323 }
 0x80a   :  { %v8919_v55 = vadd.f32 1.0, %v13324_v33  ;;  %v14642_v45 = vmul.f32 %v8918_v15, %v8846_v1 }
 0x80b   :  { %v13326_v50 = vpop.eup %13325 }
 0x80c   :  { %v14644_v26 = vmul.f32 %v8919_v55, %v8847_v5  ;;  %v8969_v40 = vadd.f32 %v8968_v13, %v14642_v45  ;;  %v8930_v51 = vadd.f32 1.0, %v13326_v50  ;;  %v1208_v13 = vrot.slane %v14691_v17, %v14183_v56 }
 0x80d   :  { %v13328_v34 = vpop.eup %13327 }
 0x80e   :  { %v8970_v22 = vadd.f32 %v8969_v40, %v14644_v26  ;;  %v14648_v47 = vmul.f32 %v8930_v51, %v8858_v30  ;;  %v8931_v25 = vadd.f32 1.0, %v13328_v34 }
 0x810   :  { %8971 = vadd.xlane.f32.xlu1 %v8970_v22  ;;  %v8982_v42 = vadd.f32 %v8981_v38, %v14648_v47  ;;  %v14652_v21 = vmul.f32 %v8931_v25, %v8859_v60  ;;  %v15470_v22 = vld [vmem:[#allocation51_spill] sm:$0xff] }
 0x811   :  { %v14722_v38 = vadd.f32 %v15470_v22, %v1208_v13  ;;  %v15477_v22 = vld [vmem:[#allocation54_spill] sm:$0xff] }
 0x812   :  { %v8983_v59 = vadd.f32 %v8982_v42, %v14652_v21  ;;  %v15471_v42 = vld [vmem:[#allocation52_spill] sm:$0xff] }
 0x814   :  { %8984 = vadd.xlane.f32.xlu1 %v8983_v59 }
 0x899   :  { %v8972_v10 = vpop.xlane.xlu1 %8971 }
 0x89a   :  { %v8987_v58 = vmul.f32 0.0006510417, %v8972_v10  ;;  %v1220_v10 = vrot.slane %v14691_v17, %v15466_v6 }
 0x89c   :  { %v14656_v62 = vsub.f32 %v14552_v41, %v8987_v58  ;;  %v14659_v44 = vsub.f32 %v14544_v23, %v8987_v58  ;;  %v14662_v8 = vsub.f32 %v14556_v53, %v8987_v58  ;;  %v14671_v49 = vsub.f32 %v14574_v16, %v8987_v58 }
 0x89d   :  { %v8985_v7 = vpop.xlane.xlu1 %8984  ;;  %v14674_v41 = vsub.f32 %v14586_v35, %v8987_v58  ;;  %v14687_v33 = vsub.f32 %v14598_v31, %v8987_v58  ;;  %v14704_v31 = vsub.f32 %v14606_v36, %v8987_v58  ;;  %v14717_v51 = vsub.f32 %v14615_v37, %v8987_v58 }
 0x89e   :  { %15467 = vst [vmem:[#allocation79_spill] sm:$0xff] %v14662_v8  ;;  %v14664_v18 = vmul.f32 0.0006510417, %v8985_v7  ;;  %v9013_v9 = vmul.f32 %v14656_v62, %v14656_v62  ;;  %v9014_v48 = vmul.f32 %v14659_v44, %v14659_v44  ;;  %v9015_v23 = vmul.f32 %v14662_v8, %v14662_v8 }
 0x89f   :  { %v9016_v16 = vmul.f32 %v14671_v49, %v14671_v49  ;;  %v9017_v55 = vmul.f32 %v14674_v41, %v14674_v41  ;;  %15469 = vst [vmem:[#allocation78_spill] sm:$0xff] %v14717_v51  ;;  %v9018_v36 = vmul.f32 %v14687_v33, %v14687_v33  ;;  %v14734_v37 = vsub.f32 %v14622_v19, %v8987_v58 }
 0x8a0   :  { %v9037_v1 = vadd.f32 %v9014_v48, %v9013_v9  ;;  %v14680_v53 = vsub.f32 %v14571_v29, %v14664_v18  ;;  %v14684_v15 = vsub.f32 %v14562_v54, %v14664_v18  ;;  %v1212_v29 = vrot.slane %v14691_v17, %v15462_v24  ;;  %v15473_v48 = vld [vmem:[#allocation46_spill] sm:$0xff] }
 0x8a1   :  { %v14699_v5 = vsub.f32 %v14576_v14, %v14664_v18  ;;  %v14712_v40 = vsub.f32 %v14591_v28, %v14664_v18  ;;  %v1216_v14 = vrot.slane %v14691_v17, %v15465_v46  ;;  %v14726_v60 = vsub.f32 %v14600_v3, %v14664_v18  ;;  %15472 = vst [vmem:[#allocation62_spill] sm:$0xff] %v14734_v37 }
 0x8a2   :  { %v9038_v35 = vadd.f32 %v9037_v1, %v9015_v23  ;;  %v9025_v54 = vmul.f32 %v14680_v53, %v14680_v53  ;;  %v9026_v30 = vmul.f32 %v14684_v15, %v14684_v15  ;;  %v14731_v59 = vadd.f32 %v15471_v42, %v1212_v29 }
 0x8a3   :  { %15468 = vst [vmem:[#allocation77_spill] sm:$0xff] %v14699_v5  ;;  %v9027_v28 = vmul.f32 %v14699_v5, %v14699_v5  ;;  %v9019_v20 = vmul.f32 %v14704_v31, %v14704_v31  ;;  %v14740_v32 = vsub.f32 %v14610_v61, %v14664_v18  ;;  %v9028_v3 = vmul.f32 %v14712_v40, %v14712_v40 }
 0x8a4   :  { %v9039_v50 = vadd.f32 %v9038_v35, %v9016_v16  ;;  %v9050_v25 = vadd.f32 %v9026_v30, %v9025_v54  ;;  %v14747_v7 = vsub.f32 %v14631_v4, %v8987_v58  ;;  %v9020_v19 = vmul.f32 %v14717_v51, %v14717_v51  ;;  %v13163_v51 = vld [vmem:[#allocation28 + $0x30] sm:$0xff]  }
 0x8a5   :  { %v14752_v23 = vadd.f32 %v15473_v48, %v1216_v14  ;;  %v14756_v61 = vsub.f32 %v14617_v0, %v14664_v18  ;;  %v9029_v1 = vmul.f32 %v14726_v60, %v14726_v60  ;;  %v2005_v35 = vadd.f32 %v14731_v59, %v14722_v38 }
 0x8a6   :  { %v9040_v34 = vadd.f32 %v9039_v50, %v9017_v55  ;;  %v9051_v52 = vadd.f32 %v9050_v25, %v9027_v28  ;;  %v14763_v4 = vsub.f32 %v14642_v45, %v8987_v58  ;;  %v9021_v54 = vmul.f32 %v14734_v37, %v14734_v37  ;;  %v15475_v50 = vld [vmem:[#allocation53_spill] sm:$0xff] }
 0x8a7   :  { %v14768_v30 = vadd.f32 %v15475_v50, %v1208_v13  ;;  %v14772_v0 = vsub.f32 %v14626_v39, %v14664_v18  ;;  %v14777_v28 = vadd.f32 %v15477_v22, %v1212_v29  ;;  %v14780_v45 = vsub.f32 %v14644_v26, %v8987_v58 }
 0x8a8   :  { %v9041_v63 = vadd.f32 %v9040_v34, %v9018_v36  ;;  %v9052_v16 = vadd.f32 %v9051_v52, %v9028_v3  ;;  %15474 = vst [vmem:[#allocation63_spill] sm:$0xff] %v14763_v4  ;;  %v9030_v36 = vmul.f32 %v14740_v32, %v14740_v32  ;;  %v9022_v25 = vmul.f32 %v14747_v7, %v14747_v7  ;;  %v15480_v52 = vld [vmem:[#allocation48_spill] sm:$0xff] }
 0x8a9   :  { %15476 = vst [vmem:[#allocation51_spill] sm:$0xff] %v14772_v0  ;;  %v14786_v13 = vsub.f32 %v14633_v57, %v14664_v18  ;;  %v9031_v39 = vmul.f32 %v14756_v61, %v14756_v61  ;;  %v1224_v29 = vrot.slane %v14691_v17, %v14238_v43  ;;  %v9023_v26 = vmul.f32 %v14763_v4, %v14763_v4 }
 0x8aa   :  { %v9042_v9 = vadd.f32 %v9041_v63, %v9019_v20  ;;  %v9053_v34 = vadd.f32 %v9052_v16, %v9029_v1  ;;  %v15479_v63 = vld [vmem:[#allocation47_spill] sm:$0xff]  ;;  %v14802_v57 = vsub.f32 %v14640_v27, %v14664_v18  ;;  %v2006_v1 = vadd.f32 %v2005_v35, %v14752_v23 }
 0x8ab   :  { %15478 = vst [vmem:[#allocation52_spill] sm:$0xff] %v14786_v13  ;;  %v14791_v3 = vadd.f32 %v15479_v63, %v1220_v10  ;;  %v2012_v16 = vadd.f32 %v14777_v28, %v14768_v30  ;;  %v9033_v27 = vmul.f32 %v14786_v13, %v14786_v13 }
 0x8ac   :  { %v9043_v55 = vadd.f32 %v9042_v9, %v9020_v19  ;;  %v9054_v20 = vadd.f32 %v9053_v34, %v9030_v36  ;;  %v14798_v19 = vadd.f32 %v15480_v52, %v1216_v14  ;;  %v9032_v9 = vmul.f32 %v14772_v0, %v14772_v0 }
 0x8ad   :  { %v14813_v14 = vsub.f32 %v14648_v47, %v14664_v18  ;;  %v14819_v34 = vsub.f32 %v14652_v21, %v14664_v18  ;;  %v9034_v35 = vmul.f32 %v14802_v57, %v14802_v57  ;;  %v15485_v21 = vld [vmem:[#allocation50_spill] sm:$0xff]  ;;  %v15486_v18 = vld [vmem:[#allocation65_spill] sm:$0xff] }
 0x8ae   :  { %v9044_v42 = vadd.f32 %v9043_v55, %v9021_v54  ;;  %v9055_v48 = vadd.f32 %v9054_v20, %v9031_v39  ;;  %v9024_v54 = vmul.f32 %v14780_v45, %v14780_v45  ;;  %v15483_v39 = vld [vmem:[#allocation55_spill] sm:$0xff]  ;;  %v15484_v20 = vld [vmem:[#allocation49_spill] sm:$0xff] }
 0x8af   :  { %15481 = vst [vmem:[#allocation46_spill] sm:$0xff] %v14813_v14  ;;  %15482 = vst [vmem:[#allocation53_spill] sm:$0xff] %v14819_v34  ;;  %v14826_v47 = vadd.f32 %v15483_v39, %v1224_v29  ;;  %v14829_v63 = vadd.f32 %v15484_v20, %v1220_v10  ;;  %v9035_v52 = vmul.f32 %v14813_v14, %v14813_v14 }
 0x8b0   :  { %v9045_v58 = vadd.f32 %v9044_v42, %v9022_v25  ;;  %v9056_v50 = vadd.f32 %v9055_v48, %v9032_v9  ;;  %v2007_v25 = vadd.f32 %v2006_v1, %v14791_v3  ;;  %v2013_v42 = vadd.f32 %v2012_v16, %v14798_v19 }
 0x8b1   :  { %v9036_v48 = vmul.f32 %v14819_v34, %v14819_v34 }
 0x8b2   :  { %v9046_v55 = vadd.f32 %v9045_v58, %v9023_v26  ;;  %v9057_v22 = vadd.f32 %v9056_v50, %v9033_v27  ;;  %v1228_v26 = vrot.slane %v14691_v17, %v14235_v11  ;;  %v2165_v58 = vadd.f32 %v15486_v18, %v15485_v21  ;;  %v15488_v27 = vld [vmem:[#allocation57_spill] sm:$0xff]  ;;  %v15489_v50 = vld [vmem:[#allocation66_spill] sm:$0xff] }
 0x8b3   :  { %v2008_v16 = vadd.f32 %v2007_v25, %v14826_v47  ;;  %v2014_v10 = vadd.f32 %v2013_v42, %v14829_v63  ;;  %v14845_v17 = vadd.f32 %v15488_v27, %v1224_v29  ;;  %v15492_v42 = vld [vmem:[#allocation70_spill] sm:$0xff]  ;;  %v13161_v29 = vld [vmem:[#allocation28 + $0x70] sm:$0xff]  }
 0x8b4   :  { %v9047_v36 = vadd.f32 %v9046_v55, %v9024_v54  ;;  %v9058_v9 = vadd.f32 %v9057_v22, %v9034_v35  ;;  %v15487_v54 = vld [vmem:[#allocation56_spill] sm:$0xff]  ;;  %v15490_v22 = vld [vmem:[#allocation59_spill] sm:$0xff]  ;;  %11476 = vmatprep.subr.bf16.mxu1 %v13161_v29 }
 0x8b5   :  { %v14842_v55 = vadd.f32 %v15487_v54, %v1228_v26  ;;  %v2015_v35 = vadd.f32 %v2014_v10, %v14845_v17  ;;  %v14850_v20 = vadd.f32 %v15490_v22, %v1228_v26  ;;  %v13162_v27 = vld [vmem:[#allocation28 + $0x170] sm:$0xff]   ;;  %11477 = vmatpush3.bf16.msra.mxu1 %v13163_v51  ;;  %v13165_v26 = vld [vmem:[#allocation28 + $0x68] sm:$0xff]   ;;  %v13171_v22 = vld [vmem:[#allocation28 + $0x20] sm:$0xff]  }
 0x8b6   :  { %9048 = vadd.xlane.f32.xlu1 %v9047_v36  ;;  %v9059_v1 = vadd.f32 %v9058_v9, %v9035_v52  ;;  %v2166_v36 = vadd.f32 %v2165_v58, %v15489_v50  ;;  %v15491_v52 = vld [vmem:[#allocation69_spill] sm:$0xff]  ;;  %v13164_v58 = vld [vmem:[#allocation28 + $0x130] sm:$0xff]   ;;  %11520 = vmatprep.subr.bf16.mxu0 %v13162_v27  ;;  %v13166_v10 = vld [vmem:[#allocation28 + $0x168] sm:$0xff]  }
 0x8b7   :  { %v2009_v25 = vadd.f32 %v2008_v16, %v14842_v55  ;;  %v2016_v2 = vadd.f32 %v2015_v35, %v14850_v20  ;;  %11521 = vmatpush3.bf16.msra.mxu0 %v13164_v58  ;;  %v13167_v16 = vld [vmem:[#allocation28 + $0x28] sm:$0xff]   ;;  %11478 = vmatprep.subr.bf16.mxu1 %v13165_v26  ;;  %v13170_v35 = vld [vmem:[#allocation28 + $0x160] sm:$0xff]   ;;  %v13175_v51 = vld [vmem:[#allocation28 + $0x18] sm:$0xff]  }
 0x8b8   :  { %v9060_v39 = vadd.f32 %v9059_v1, %v9036_v48  ;;  %v2167_v9 = vadd.f32 %v2166_v36, %v15491_v52  ;;  %v15493_v48 = vld [vmem:[#allocation72_spill] sm:$0xff]  ;;  %v13168_v36 = vld [vmem:[#allocation28 + $0x128] sm:$0xff]   ;;  %11522 = vmatprep.subr.bf16.mxu0 %v13166_v10 }
 0x8b9   :  { %11479 = vmatpush3.bf16.msra.mxu1 %v13167_v16  ;;  %v13177_v29 = vld [vmem:[#allocation28 + $0x50] sm:$0xff]   ;;  %v13181_v26 = vld [vmem:[#allocation28 + $0x48] sm:$0xff]  }
 0x8ba   :  { %9061 = vadd.xlane.f32.xlu1 %v9060_v39  ;;  %v2168_v54 = vadd.f32 %v2167_v9, %v15492_v42  ;;  %v13169_v39 = vld [vmem:[#allocation28 + $0x60] sm:$0xff]   ;;  %v13173_v9 = vld [vmem:[#allocation28 + $0x58] sm:$0xff]   ;;  %v13178_v27 = vld [vmem:[#allocation28 + $0x150] sm:$0xff]  }
 0x8bb   :  { %11523 = vmatpush3.bf16.msra.mxu0 %v13168_v36  ;;  %11480 = vmatprep.subr.bf16.mxu1 %v13169_v39  ;;  %v13179_v58 = vld [vmem:[#allocation28 + $0x10] sm:$0xff]   ;;  %v13182_v10 = vld [vmem:[#allocation28 + $0x148] sm:$0xff]   ;;  %v13185_v39 = vld [vmem:[#allocation28 + $0x40] sm:$0xff]  }
 0x8bc   :  { %v2169_v1 = vadd.f32 %v2168_v54, %v15493_v48  ;;  %11524 = vmatprep.subr.bf16.mxu0 %v13170_v35  ;;  %v13176_v54 = vld [vmem:[#allocation28 + $0x118] sm:$0xff]   ;;  %v13183_v16 = vld [vmem:[#allocation28 + $0x8] sm:$0xff]   ;;  %v13186_v35 = vld [vmem:[#allocation28 + $0x140] sm:$0xff]  }
 0x8bd   :  { %11481 = vmatpush3.bf16.msra.mxu1 %v13171_v22  ;;  %v13184_v36 = vld [vmem:[#allocation28 + $0x108] sm:$0xff]   ;;  %v13187_v22 = vld [vmem:[#allocation28] sm:$0xff]  }
 0x8be   :  { %2010 = vadd.xlane.f32.xlu1 %v2009_v25  ;;  %v13174_v25 = vld [vmem:[#allocation28 + $0x158] sm:$0xff]   ;;  %11482 = vmatprep.subr.bf16.mxu1 %v13173_v9 }
 0x8bf   :  { %v13189_v9 = vld [vmem:[#allocation28 + $0xf8] sm:$0xff]  }
 0x8c1   :  { %11483 = vmatpush3.bf16.msra.mxu1 %v13175_v51  ;;  %v2178_v51 = vpop.xlane.xlu0 %2177 }
 0x8c2   :  { %2017 = vadd.xlane.f32.xlu1 %v2016_v2  ;;  %v13172_v2 = vld [vmem:[#allocation28 + $0x120] sm:$0xff]   ;;  %11484 = vmatprep.subr.bf16.mxu1 %v13177_v29  ;;  %v15494_v29 = vld [vmem:[#allocation64_spill] sm:$0xff] }
 0x8c3   :  { %11525 = vmatpush3.bf16.msra.mxu0 %v13172_v2  ;;  %v13188_v2 = vld [vmem:[#allocation28 + $0x100] sm:$0xff]  }
 0x8c4   :  { %11526 = vmatprep.subr.bf16.mxu0 %v13174_v25  ;;  %v13190_v25 = vld [vmem:[#allocation28 + $0x278] sm:$0xff]  }
 0x8c5   :  { %11485 = vmatpush3.bf16.msra.mxu1 %v13179_v58  ;;  %v15496_v58 = vld [vmem:[#allocation67_spill] sm:$0xff] }
 0x8c6   :  { %2170 = vadd.xlane.f32.xlu1 %v2169_v1  ;;  %v13180_v1 = vld [vmem:[#allocation28 + $0x110] sm:$0xff]   ;;  %11486 = vmatprep.subr.bf16.mxu1 %v13181_v26 }
 0x8c7   :  { %11527 = vmatpush3.bf16.msra.mxu0 %v13176_v54  ;;  %v2180_v54 = vmul.f32 0.0013020834, %v2178_v51  ;;  %v15498_v26 = vld [vmem:[#allocation68_spill] sm:$0xff] }
 0x8c8   :  { %11528 = vmatprep.subr.bf16.mxu0 %v13178_v27 }
 0x8c9   :  { %11487 = vmatpush3.bf16.msra.mxu1 %v13183_v16  ;;  %v14858_v27 = vsub.f32 %v15494_v29, %v2180_v54  ;;  %v15502_v29 = vld [vmem:[#allocation73_spill] sm:$0xff] }
 0x8ca   :  { %11488 = vmatprep.subr.bf16.mxu1 %v13185_v39  ;;  %v15500_v39 = vld [vmem:[#allocation71_spill] sm:$0xff] }
 0x8cb   :  { %11529 = vmatpush3.bf16.msra.mxu0 %v13180_v1  ;;  %15495 = vst [vmem:[#allocation54_spill] sm:$0xff] %v14858_v27  ;;  %v14861_v1 = vsub.f32 %v15496_v58, %v2180_v54  ;;  %v2199_v16 = vmul.f32 %v14858_v27, %v14858_v27  ;;  %v14876_v58 = vsub.f32 %v15502_v29, %v2180_v54 }
 0x8cc   :  { %11530 = vmatprep.subr.bf16.mxu0 %v13182_v10  ;;  %v14864_v10 = vsub.f32 %v15498_v26, %v2180_v54 }
 0x8cd   :  { %11489 = vmatpush3.bf16.msra.mxu1 %v13187_v22  ;;  %15497 = vst [vmem:[#allocation47_spill] sm:$0xff] %v14861_v1  ;;  %15503 = vst [vmem:[#allocation49_spill] sm:$0xff] %v14876_v58 }
 0x8ce   :  { %11496 = vmatprep.subr.bf16.mxu1 %v13189_v9  ;;  %15499 = vst [vmem:[#allocation48_spill] sm:$0xff] %v14864_v10  ;;  %v2201_v22 = vmul.f32 %v14864_v10, %v14864_v10 }
 0x8cf   :  { %11531 = vmatpush3.bf16.msra.mxu0 %v13184_v36  ;;  %v2200_v36 = vmul.f32 %v14861_v1, %v14861_v1  ;;  %v15504_v1 = vld [vmem:[#allocation74_spill] sm:$0xff] }
 0x8d0   :  { %11532 = vmatprep.subr.bf16.mxu0 %v13186_v35  ;;  %v14871_v35 = vsub.f32 %v15500_v39, %v2180_v54  ;;  %v14881_v0 = vsub.f32 %v15504_v1, %v2180_v54  ;;  %v2203_v39 = vmul.f32 %v14876_v58, %v14876_v58 }
 0x8d2   :  { %15501 = vst [vmem:[#allocation55_spill] sm:$0xff] %v14871_v35  ;;  %v2202_v26 = vmul.f32 %v14871_v35, %v14871_v35  ;;  %15505 = vst [vmem:[#allocation50_spill] sm:$0xff] %v14881_v0  ;;  %v14899_v54 = vmul.f32 %v14881_v0, %v14881_v0 }
 0x8d3   :  { %11533 = vmatpush3.bf16.msra.mxu0 %v13188_v2  ;;  %v2212_v2 = vadd.f32 %v2200_v36, %v2199_v16  ;;  %v14885_v36 = vld [vmem:[#allocation25] sm:$0xff] }
 0x8d4   :  { %11562 = vmatprep.subr.bf16.mxu0 %v13190_v25  ;;  %v14891_v35 = vrot.slane %v14885_v36, %v15462_v24  ;;  %v14905_v1 = vrot.slane %v14885_v36, %v14183_v56 }
 0x8d5   :  { %v2213_v27 = vadd.f32 %v2212_v2, %v2201_v22  ;;  %v14895_v22 = vrot.slane %v14885_v36, %v14235_v11  ;;  %v14909_v2 = vrot.slane %v14885_v36, %v14238_v43 }
 0x8d7   :  { %v2214_v10 = vadd.f32 %v2213_v27, %v2202_v26 }
 0x8d9   :  { %v14901_v27 = vadd.f32 %v2214_v10, %v2203_v39  ;;  %v14925_v39 = vrot.slane %v14885_v36, %v15466_v6 }
 0x93f   :  { %v9049_v9 = vpop.xlane.xlu1 %9048 }
 0x940   :  { %v9063_v25 = vmul.f32 0.0006510417, %v9049_v9 }
 0x942   :  { %v9065_v51 = vadd.f32 1e-12, %v9063_v25  ;;  %v14887_v25 = vld [vmem:[#allocation26] sm:$0xff] }
 0x943   :  { %v9062_v37 = vpop.xlane.xlu1 %9061  ;;  %v14917_v26 = vrot.slane %v14887_v25, %v14235_v11  ;;  %v14921_v10 = vrot.slane %v14887_v25, %v14183_v56  ;;  %v14941_v11 = vld [vmem:[#allocation26 + $0x8] sm:$0xf] }
 0x944   :  { %13329 = vrsqrt.f32 %v9065_v51  ;;  %v9064_v16 = vmul.f32 0.0006510417, %v9062_v37  ;;  %v14913_v51 = vrot.slane %v14887_v25, %v15462_v24 }
 0x946   :  { %v9066_v9 = vadd.f32 1e-12, %v9064_v16  ;;  %v14927_v16 = vld [vmem:[#allocation25 + $0x8] sm:$0xf] }
 0x947   :  { %v2011_v29 = vpop.xlane.xlu1 %2010 }
 0x948   :  { %13331 = vrsqrt.f32 %v9066_v9  ;;  %v2019_v37 = vmul.f32 0.0013020834, %v2011_v29 }
 0x94a   :  { %v14930_v9 = vsub.f32 %v14722_v38, %v2019_v37  ;;  %v14933_v29 = vsub.f32 %v14731_v59, %v2019_v37  ;;  %v14936_v0 = vsub.f32 %v14752_v23, %v2019_v37  ;;  %v14939_v58 = vsub.f32 %v14791_v3, %v2019_v37 }
 0x94b   :  { %v2018_v56 = vpop.xlane.xlu1 %2017  ;;  %v14944_v8 = vsub.f32 %v14826_v47, %v2019_v37  ;;  %v14947_v13 = vsub.f32 %v14842_v55, %v2019_v37  ;;  %v14951_v38 = vrot.slane %v14887_v25, %v14238_v43  ;;  %v14955_v59 = vrot.slane %v14887_v25, %v15466_v6 }
 0x94c   :  { %15506 = vst [vmem:[#allocation65_spill] sm:$0xff] %v14930_v9  ;;  %15507 = vst [vmem:[#allocation56_spill] sm:$0xff] %v14933_v29  ;;  %v2020_v23 = vmul.f32 0.0013020834, %v2018_v56  ;;  %v2033_v3 = vmul.f32 %v14930_v9, %v14930_v9  ;;  %v2034_v5 = vmul.f32 %v14933_v29, %v14933_v29  ;;  %v14963_v47 = vrot.slane %v14927_v16, %v15462_v24 }
 0x94d   :  { %15508 = vst [vmem:[#allocation57_spill] sm:$0xff] %v14936_v0  ;;  %15509 = vst [vmem:[#allocation66_spill] sm:$0xff] %v14939_v58  ;;  %v2035_v55 = vmul.f32 %v14936_v0, %v14936_v0  ;;  %v2036_v37 = vmul.f32 %v14939_v58, %v14939_v58  ;;  %v2037_v43 = vmul.f32 %v14944_v8, %v14944_v8 }
 0x94e   :  { %15510 = vst [vmem:[#allocation59_spill] sm:$0xff] %v14944_v8  ;;  %15511 = vst [vmem:[#allocation69_spill] sm:$0xff] %v14947_v13  ;;  %v14973_v56 = vrot.slane %v14941_v11, %v15462_v24  ;;  %v2045_v29 = vadd.f32 %v2034_v5, %v2033_v3  ;;  %v14978_v14 = vsub.f32 %v14768_v30, %v2020_v23 }
 0x94f   :  { %v14981_v4 = vsub.f32 %v14777_v28, %v2020_v23  ;;  %v14984_v0 = vsub.f32 %v14798_v19, %v2020_v23  ;;  %v2171_v58 = vpop.xlane.xlu1 %2170  ;;  %v2038_v8 = vmul.f32 %v14947_v13, %v14947_v13  ;;  %v14989_v34 = vsub.f32 %v14829_v63, %v2020_v23 }
 0x950   :  { %15512 = vst [vmem:[#allocation70_spill] sm:$0xff] %v14978_v14  ;;  %v14992_v24 = vsub.f32 %v14845_v17, %v2020_v23  ;;  %v2046_v30 = vadd.f32 %v2045_v29, %v2035_v55  ;;  %v14997_v28 = vsub.f32 %v14850_v20, %v2020_v23  ;;  %v2039_v19 = vmul.f32 %v14978_v14, %v14978_v14 }
 0x951   :  { %v14975_v9 = vpop.eup %13329  ;;  %15513 = vst [vmem:[#allocation72_spill] sm:$0xff] %v14981_v4  ;;  %15514 = vst [vmem:[#allocation64_spill] sm:$0xff] %v14984_v0  ;;  %v2040_v3 = vmul.f32 %v14981_v4, %v14981_v4  ;;  %v15003_v13 = vmul.f32 0.0013020834, %v2171_v58  ;;  %v2041_v63 = vmul.f32 %v14984_v0, %v14984_v0  ;;  %v2042_v17 = vmul.f32 %v14989_v34, %v14989_v34 }
 0x952   :  { %15515 = vst [vmem:[#allocation67_spill] sm:$0xff] %v14989_v34  ;;  %15516 = vst [vmem:[#allocation68_spill] sm:$0xff] %v14992_v24  ;;  %v9070_v5 = vmul.f32 %v14975_v9, %v14659_v44  ;;  %v2043_v44 = vmul.f32 %v14992_v24, %v14992_v24  ;;  %v2047_v29 = vadd.f32 %v2046_v30, %v2036_v37 }
 0x953   :  { %v2052_v20 = vadd.f32 %v2040_v3, %v2039_v19  ;;  %v9074_v55 = vmul.f32 %v14975_v9, %v14687_v33  ;;  %v9069_v58 = vmul.f32 %v14975_v9, %v14656_v62  ;;  %v9073_v4 = vmul.f32 %v14975_v9, %v14674_v41 }
 0x954   :  { %v9156_v23 = vmul.f32 %v14891_v35, %v9070_v5  ;;  %v9072_v0 = vmul.f32 %v14975_v9, %v14671_v49  ;;  %v9078_v34 = vmul.f32 %v14975_v9, %v14747_v7  ;;  %v2048_v24 = vadd.f32 %v2047_v29, %v2037_v43 }
 0x955   :  { %v2044_v37 = vmul.f32 %v14997_v28, %v14997_v28  ;;  %v2053_v5 = vadd.f32 %v2052_v20, %v2041_v63  ;;  %v9160_v30 = vmul.f32 %v14895_v22, %v9074_v55  ;;  %v15025_v33 = vpop.eup %13331  ;;  %v9155_v19 = vmul.f32 %v14905_v1, %v9069_v58 }
 0x956   :  { %v9242_v62 = vadd.f32 %v14913_v51, %v9156_v23  ;;  %v9159_v41 = vmul.f32 %v14909_v2, %v9073_v4  ;;  %v9158_v49 = vmul.f32 %v14925_v39, %v9072_v0  ;;  %v2049_v3 = vadd.f32 %v2048_v24, %v2038_v8 }
 0x957   :  { %v2054_v14 = vadd.f32 %v2053_v5, %v2042_v17  ;;  %v9082_v43 = vmul.f32 %v15025_v33, %v14684_v15  ;;  %v9086_v7 = vmul.f32 %v15025_v33, %v14740_v32  ;;  %v9246_v63 = vadd.f32 %v14917_v26, %v9160_v30 }
 0x958   :  { %v9081_v29 = vmul.f32 %v15025_v33, %v14680_v53  ;;  %v9085_v20 = vmul.f32 %v15025_v33, %v14726_v60  ;;  %v9164_v4 = vmul.f32 %v14963_v47, %v9078_v34  ;;  %2050 = vadd.xlane.f32.xlu1 %v2049_v3  ;;  %v9241_v15 = vadd.f32 %v14921_v10, %v9155_v19  ;;  %v13194_v19 = vld [vmem:[#allocation28 + $0x270] sm:$0xff]  }
 0x959   :  { %v2055_v0 = vadd.f32 %v2054_v14, %v2043_v44  ;;  %v9168_v24 = vmul.f32 %v14891_v35, %v9082_v43  ;;  %v9172_v8 = vmul.f32 %v14895_v22, %v9086_v7  ;;  %v9245_v23 = vadd.f32 %v14951_v38, %v9159_v41  ;;  %v13196_v3 = vld [vmem:[#allocation28 + $0x230] sm:$0xff]   ;;  %v13197_v43 = vld [vmem:[#allocation28 + $0xe8] sm:$0xff]  }
 0x95a   :  { %v9167_v32 = vmul.f32 %v14905_v1, %v9081_v29  ;;  %v9171_v17 = vmul.f32 %v14909_v2, %v9085_v20  ;;  %v9084_v53 = vmul.f32 %v15025_v33, %v14712_v40  ;;  %v9090_v35 = vmul.f32 %v15025_v33, %v14802_v57  ;;  %v13191_v40 = vld [vmem:[#allocation28 + $0xb8] sm:$0xff]  }
 0x95b   :  { %v2056_v60 = vadd.f32 %v2055_v0, %v2044_v37  ;;  %v9254_v34 = vadd.f32 %v14913_v51, %v9168_v24  ;;  %v9258_v14 = vadd.f32 %v14917_v26, %v9172_v8  ;;  %v9244_v2 = vadd.f32 %v14955_v59, %v9158_v49  ;;  %v13192_v37 = vld [vmem:[#allocation28 + $0x238] sm:$0xff]   ;;  %v13195_v49 = vld [vmem:[#allocation28 + $0xb0] sm:$0xff]   ;;  %v13200_v0 = vld [vmem:[#allocation28 + $0x228] sm:$0xff]  }
 0x95c   :  { %v9253_v22 = vadd.f32 %v14921_v10, %v9167_v32  ;;  %v9257_v44 = vadd.f32 %v14951_v38, %v9171_v17  ;;  %v9170_v1 = vmul.f32 %v14925_v39, %v9084_v53  ;;  %v9176_v51 = vmul.f32 %v14963_v47, %v9090_v35  ;;  %v13202_v24 = vld [vmem:[#allocation28 + $0x260] sm:$0xff]  }
 0x95d   :  { %2057 = vadd.xlane.f32.xlu0 %v2056_v60  ;;  %v9266_v55 = vpack.c.bf16 %v9254_v34, %v9242_v62  ;;  %v9270_v58 = vpack.c.bf16 %v9258_v14, %v9246_v63  ;;  %v15060_v26 = vsub.f32 %v15485_v21, %v15003_v13  ;;  %v15065_v39 = vsub.f32 %v15486_v18, %v15003_v13  ;;  %v13193_v21 = vld [vmem:[#allocation28 + $0xf0] sm:$0xff]   ;;  %v13203_v53 = vld [vmem:[#allocation28 + $0xa0] sm:$0xff]   ;;  %v13205_v14 = vld [vmem:[#allocation28 + $0xd8] sm:$0xff]  }
 0x95e   :  { %v9265_v57 = vpack.c.bf16 %v9253_v22, %v9241_v15  ;;  %v9269_v5 = vpack.c.bf16 %v9257_v44, %v9245_v23  ;;  %v9256_v10 = vadd.f32 %v14955_v59, %v9170_v1  ;;  %v9250_v38 = vadd.f32 %v14973_v56, %v9164_v4  ;;  %v13199_v4 = vld [vmem:[#allocation28 + $0xa8] sm:$0xff]   ;;  %v13204_v34 = vld [vmem:[#allocation28 + $0x220] sm:$0xff]   ;;  %v13206_v44 = vld [vmem:[#allocation28 + $0x258] sm:$0xff]  }
 0x95f   :  { %10084 = vmatprep.mubr.bf16.mxu1 %v9266_v55  ;;  %10166 = vmatprep.mubr.bf16.mxu0 %v9270_v58  ;;  %v9262_v30 = vadd.f32 %v14973_v56, %v9176_v51  ;;  %v15071_v47 = vsub.f32 %v15489_v50, %v15003_v13  ;;  %v2216_v59 = vadd.f32 %v14901_v27, %v14899_v54  ;;  %v13198_v54 = vld [vmem:[#allocation28 + $0x268] sm:$0xff]  }
 0x960   :  { %10085 = vmatmul.mubr.bf16.vlgmr.msra.gmra.mxu1 %v9265_v57  ;;  %10167 = vmatmul.mubr.bf16.vlgmr.msra.gmra.mxu0 %v9269_v5  ;;  %v9268_v62 = vpack.c.bf16 %v9256_v10, %v9244_v2  ;;  %v15077_v18 = vsub.f32 %v15491_v52, %v15003_v13  ;;  %v2193_v56 = vmul.f32 %v15060_v26, %v15060_v26  ;;  %v15519_v57 = vld [vmem:[#allocation46_spill] sm:$0xff]  ;;  %v13207_v10 = vld [vmem:[#allocation28 + $0x98] sm:$0xff]  }
 0x961   :  { %11497 = vmatpush3.bf16.msra.mxu1 %v13191_v40  ;;  %11563 = vmatpush3.bf16.msra.mxu0 %v13192_v37  ;;  %v9274_v41 = vpack.c.bf16 %v9262_v30, %v9250_v38  ;;  %v2194_v50 = vmul.f32 %v15065_v39, %v15065_v39  ;;  %v15085_v52 = vsub.f32 %v15492_v42, %v15003_v13  ;;  %v13201_v42 = vld [vmem:[#allocation28 + $0xe0] sm:$0xff]  }
 0x962   :  { %10125 = vmatprep.mubr.bf16.mxu1 %v9268_v62  ;;  %2217 = vadd.xlane.f32.xlu0 %v2216_v59  ;;  %v2195_v27 = vmul.f32 %v15071_v47, %v15071_v47  ;;  %v15091_v63 = vsub.f32 %v15493_v48, %v15003_v13  ;;  %v2196_v29 = vmul.f32 %v15077_v18, %v15077_v18  ;;  %v15517_v40 = vld [vmem:[#allocation53_spill] sm:$0xff] }
 0x963   :  { %10248 = vmatprep.mubr.bf16.mxu0 %v9274_v41  ;;  %v2205_v7 = vadd.f32 %v2194_v50, %v2193_v56  ;;  %11498 = vmatprep.subr.bf16.mxu1 %v13193_v21  ;;  %v2197_v8 = vmul.f32 %v15085_v52, %v15085_v52  ;;  %v9122_v13 = vrot.slane %v14885_v36, %v14095_v12  ;;  %v13209_v21 = vld [vmem:[#allocation28 + $0xd0] sm:$0xff]  }
 0x964   :  { %11564 = vmatprep.subr.bf16.mxu0 %v13194_v19  ;;  %v9075_v48 = vmul.f32 %v14975_v9, %v14704_v31  ;;  %v9208_v32 = vrot.slane %v14887_v25, %v14095_v12  ;;  %v2198_v17 = vmul.f32 %v15091_v63, %v15091_v63  ;;  %v9142_v60 = vrot.slane %v14927_v16, %v15466_v6  ;;  %v13210_v41 = vld [vmem:[#allocation28 + $0x250] sm:$0xff]  }
 0x965   :  { %v2206_v20 = vadd.f32 %v2205_v7, %v2195_v27  ;;  %11499 = vmatpush3.bf16.msra.mxu1 %v13195_v49  ;;  %11565 = vmatpush3.bf16.msra.mxu0 %v13196_v3  ;;  %v9087_v31 = vmul.f32 %v15025_v33, %v14756_v61  ;;  %v9228_v12 = vrot.slane %v14941_v11, %v15466_v6  ;;  %v15518_v61 = vld [vmem:[#allocation63_spill] sm:$0xff] }
 0x966   :  { %11500 = vmatprep.subr.bf16.mxu1 %v13197_v43  ;;  %11566 = vmatprep.subr.bf16.mxu0 %v13198_v54  ;;  %v9138_v35 = vrot.slane %v14927_v16, %v15465_v46  ;;  %v9161_v1 = vmul.f32 %v9122_v13, %v9075_v48  ;;  %v9080_v2 = vmul.f32 %v14975_v9, %v14780_v45  ;;  %v13208_v45 = vld [vmem:[#allocation28 + $0x218] sm:$0xff]   ;;  %v13211_v54 = vld [vmem:[#allocation28 + $0x90] sm:$0xff]  }
 0x967   :  { %v2207_v15 = vadd.f32 %v2206_v20, %v2196_v29  ;;  %v9224_v55 = vrot.slane %v14941_v11, %v15465_v46  ;;  %v9173_v58 = vmul.f32 %v9122_v13, %v9087_v31  ;;  %v9092_v37 = vmul.f32 %v15025_v33, %v15517_v40  ;;  %v13212_v7 = vld [vmem:[#allocation28 + $0x210] sm:$0xff]   ;;  %v13213_v29 = vld [vmem:[#allocation28 + $0xc8] sm:$0xff]   ;;  %v15520_v20 = vld [vmem:[#allocation77_spill] sm:$0xff] }
 0x968   :  { %v9079_v51 = vmul.f32 %v14975_v9, %v15518_v61  ;;  %v9091_v5 = vmul.f32 %v15025_v33, %v15519_v57  ;;  %v15123_v38 = vadd.f32 %v9208_v32, %v9161_v1  ;;  %v9166_v30 = vmul.f32 %v9142_v60, %v9080_v2  ;;  %v15522_v13 = vld [vmem:[#allocation79_spill] sm:$0xff]  ;;  %v15527_v2 = vld [vmem:[#allocation60_spill] sm:$0xff] }
 0x969   :  { %v2208_v23 = vadd.f32 %v2207_v15, %v2197_v8  ;;  %11501 = vmatpush3.bf16.msra.mxu1 %v13199_v4  ;;  %11567 = vmatpush3.bf16.msra.mxu0 %v13200_v0  ;;  %v15125_v62 = vadd.f32 %v9208_v32, %v9173_v58  ;;  %v9178_v59 = vmul.f32 %v9142_v60, %v9092_v37  ;;  %v15524_v60 = vld [vmem:[#allocation62_spill] sm:$0xff] }
 0x96a   :  { %11502 = vmatprep.subr.bf16.mxu1 %v13201_v42  ;;  %11568 = vmatprep.subr.bf16.mxu0 %v13202_v24  ;;  %v9165_v19 = vmul.f32 %v9138_v35, %v9079_v51  ;;  %v9177_v56 = vmul.f32 %v9138_v35, %v9091_v5  ;;  %v15129_v49 = vadd.f32 %v9228_v12, %v9166_v30  ;;  %v13214_v42 = vld [vmem:[#allocation28 + $0x248] sm:$0xff]   ;;  %v15521_v24 = vld [vmem:[#allocation52_spill] sm:$0xff]  ;;  %v13217_v35 = vld [vmem:[#allocation28 + $0xc0] sm:$0xff]  }
 0x96b   :  { %v2209_v22 = vadd.f32 %v2208_v23, %v2198_v17  ;;  %v9271_v50 = vpack.c.bf16 %v15125_v62, %v15123_v38  ;;  %v15131_v3 = vadd.f32 %v9228_v12, %v9178_v59  ;;  %v9083_v4 = vmul.f32 %v15025_v33, %v15520_v20  ;;  %v15523_v17 = vld [vmem:[#allocation51_spill] sm:$0xff] }
 0x96c   :  { %v15133_v43 = vadd.f32 %v9224_v55, %v9165_v19  ;;  %v15135_v27 = vadd.f32 %v9224_v55, %v9177_v56  ;;  %v9089_v8 = vmul.f32 %v15025_v33, %v15521_v24  ;;  %v9071_v48 = vmul.f32 %v14975_v9, %v15522_v13  ;;  %v13216_v12 = vld [vmem:[#allocation28 + $0x208] sm:$0xff]   ;;  %v13224_v20 = vld [vmem:[#allocation28 + $0x1b0] sm:$0xff]   ;;  %v13228_v24 = vld [vmem:[#allocation28 + $0x1a0] sm:$0xff]  }
 0x96d   :  { %2210 = vadd.xlane.f32.xlu1 %v2209_v22  ;;  %11503 = vmatpush3.bf16.msra.mxu1 %v13203_v53  ;;  %v9276_v0 = vpack.c.bf16 %v15131_v3, %v15129_v49  ;;  %v9106_v32 = vrot.slane %v14885_v36, %v15465_v46  ;;  %v9088_v23 = vmul.f32 %v15025_v33, %v15523_v17  ;;  %v13215_v53 = vld [vmem:[#allocation28 + $0x88] sm:$0xff]   ;;  %v13218_v33 = vld [vmem:[#allocation28 + $0x240] sm:$0xff]   ;;  %v13230_v13 = vld [vmem:[#allocation28 + $0x198] sm:$0xff]  }
 0x96e   :  { %11569 = vmatpush3.bf16.msra.mxu0 %v13204_v34  ;;  %11504 = vmatprep.subr.bf16.mxu1 %v13205_v14  ;;  %v9275_v15 = vpack.c.bf16 %v15135_v27, %v15133_v43  ;;  %v9077_v34 = vmul.f32 %v14975_v9, %v15524_v60  ;;  %v15525_v14 = vld [vmem:[#allocation58_spill] sm:$0xff]  ;;  %v9126_v55 = vrot.slane %v14885_v36, %v15527_v2  ;;  %v13247_v38 = vld [vmem:[#allocation28 + $0x2d0] sm:$0xff]   ;;  %v2163_v27 = vld [vmem:[#allocation16] sm:$0x3f] }
 0x96f   :  { %11570 = vmatprep.subr.bf16.mxu0 %v13206_v44  ;;  %v9130_v31 = vrot.slane %v14927_v16, %v15525_v14  ;;  %v9169_v22 = vmul.f32 %v9106_v32, %v9083_v4  ;;  %v15526_v44 = vld [vmem:[#allocation78_spill] sm:$0xff]  ;;  %v9157_v40 = vmul.f32 %v9106_v32, %v9071_v48  ;;  %v9192_v37 = vrot.slane %v14887_v25, %v15465_v46  ;;  %v13231_v48 = vld [vmem:[#allocation28 + $0x1d0] sm:$0xff]  }
 0x970   :  { %v9076_v1 = vmul.f32 %v14975_v9, %v15526_v44  ;;  %v9174_v61 = vmul.f32 %v9126_v55, %v9088_v23  ;;  %v13219_v16 = vld [vmem:[#allocation28 + $0x80] sm:$0xff]   ;;  %v9216_v57 = vrot.slane %v14941_v11, %v15525_v14  ;;  %v9212_v30 = vrot.slane %v14887_v25, %v15527_v2  ;;  %v13225_v25 = vld [vmem:[#allocation28 + $0x1e8] sm:$0xff]   ;;  %v13232_v32 = vld [vmem:[#allocation28 + $0x190] sm:$0xff]  }
 0x971   :  { %11505 = vmatpush3.bf16.msra.mxu1 %v13207_v10  ;;  %v9175_v58 = vmul.f32 %v9130_v31, %v9089_v8  ;;  %v9163_v51 = vmul.f32 %v9130_v31, %v9077_v34  ;;  %v13220_v9 = vld [vmem:[#allocation28 + $0x200] sm:$0xff]   ;;  %v9255_v5 = vadd.f32 %v9192_v37, %v9169_v22  ;;  %v13221_v10 = vld [vmem:[#allocation28 + $0x1f8] sm:$0xff]   ;;  %v13226_v4 = vld [vmem:[#allocation28 + $0x1a8] sm:$0xff]  }
 0x972   :  { %11571 = vmatpush3.bf16.msra.mxu0 %v13208_v45  ;;  %11506 = vmatprep.subr.bf16.mxu1 %v13209_v21  ;;  %v9162_v36 = vmul.f32 %v9126_v55, %v9076_v1  ;;  %v9243_v21 = vadd.f32 %v9192_v37, %v9157_v40  ;;  %v9260_v59 = vadd.f32 %v9212_v30, %v9174_v61  ;;  %v13229_v8 = vld [vmem:[#allocation28 + $0x1d8] sm:$0xff]   ;;  %v13233_v17 = vld [vmem:[#allocation28 + $0x1c8] sm:$0xff]   ;;  %v13236_v60 = vld [vmem:[#allocation28 + $0x180] sm:$0xff]  }
 0x973   :  { %11572 = vmatprep.subr.bf16.mxu0 %v13210_v41  ;;  %v9261_v45 = vadd.f32 %v9216_v57, %v9175_v58  ;;  %v9249_v19 = vadd.f32 %v9216_v57, %v9163_v51  ;;  %v13222_v41 = vld [vmem:[#allocation28 + $0x1b8] sm:$0xff]   ;;  %v13234_v23 = vld [vmem:[#allocation28 + $0x188] sm:$0xff]   ;;  %v13243_v1 = vld [vmem:[#allocation28 + $0x2e0] sm:$0xff]  }
 0x974   :  { %v9267_v56 = vpack.c.bf16 %v9255_v5, %v9243_v21  ;;  %v9248_v11 = vadd.f32 %v9212_v30, %v9162_v36  ;;  %v13237_v34 = vld [vmem:[#allocation28 + $0x2f8] sm:$0xff]   ;;  %v13241_v22 = vld [vmem:[#allocation28 + $0x2e8] sm:$0xff]   ;;  %v13244_v2 = vld [vmem:[#allocation28 + $0x2a0] sm:$0xff]  }
 0x975   :  { %11507 = vmatpush3.bf16.msra.mxu1 %v13211_v54  ;;  %v13223_v54 = vld [vmem:[#allocation28 + $0x1f0] sm:$0xff]   ;;  %v13238_v31 = vld [vmem:[#allocation28 + $0x2b8] sm:$0xff]   ;;  %v13242_v44 = vld [vmem:[#allocation28 + $0x2a8] sm:$0xff]  }
 0x976   :  { %11573 = vmatpush3.bf16.msra.mxu0 %v13212_v7  ;;  %11508 = vmatprep.subr.bf16.mxu1 %v13213_v29  ;;  %v9273_v7 = vpack.c.bf16 %v9261_v45, %v9249_v19  ;;  %v9272_v29 = vpack.c.bf16 %v9260_v59, %v9248_v11  ;;  %v13245_v55 = vld [vmem:[#allocation28 + $0x2d8] sm:$0xff]   ;;  %v13248_v62 = vld [vmem:[#allocation28 + $0x290] sm:$0xff]   ;;  %v13250_v49 = vld [vmem:[#allocation28 + $0x288] sm:$0xff]  }
 0x977   :  { %11574 = vmatprep.subr.bf16.mxu0 %v13214_v42  ;;  %v13227_v42 = vld [vmem:[#allocation28 + $0x1e0] sm:$0xff]   ;;  %v15529_v59 = vld [vmem:[#allocation76_spill] sm:$0xff] }
 0x978   :  { %v13251_v3 = vld [vmem:[#allocation28 + $0x2c0] sm:$0xff]  }
 0x979   :  { %11509 = vmatpush3.bf16.msra.mxu1 %v13215_v53  ;;  %v13235_v53 = vld [vmem:[#allocation28 + $0x1c0] sm:$0xff]  }
 0x97a   :  { %11575 = vmatpush3.bf16.msra.mxu0 %v13216_v12  ;;  %11510 = vmatprep.subr.bf16.mxu1 %v13217_v35  ;;  %v13239_v12 = vld [vmem:[#allocation28 + $0x2f0] sm:$0xff]   ;;  %v2004_v36 = vld [vmem:[#allocation14] sm:$0x3f]  ;;  %v15528_v45 = vld [vmem:[#allocation61_spill] sm:$0xff] }
 0x97b   :  { %11576 = vmatprep.subr.bf16.mxu0 %v13218_v33  ;;  %v13240_v35 = vld [vmem:[#allocation28 + $0x2b0] sm:$0xff]   ;;  %v13246_v33 = vld [vmem:[#allocation28 + $0x298] sm:$0xff]   ;;  %v15189_v11 = vrot.slane %v2004_v36, %v15525_v14 }
 0x97d   :  { %11511 = vmatpush3.bf16.msra.mxu1 %v13219_v16 }
 0x97e   :  { %11577 = vmatpush3.bf16.msra.mxu0 %v13220_v9  ;;  %11540 = vmatprep.subr.bf16.mxu1 %v13221_v10  ;;  %v2003_v10 = vld [vmem:[#allocation13] sm:$0x3f] }
 0x97f   :  { %v2081_v30 = vrot.slane %v2003_v10, %v15525_v14  ;;  %v2085_v21 = vrot.slane %v2003_v10, %v15528_v45  ;;  %v15177_v43 = vrot.slane %v2003_v10, %v15465_v46  ;;  %v15183_v19 = vrot.slane %v2003_v10, %v15529_v59 }
 0x980   :  { %10126 = vmatmul.mubr.bf16.vlgmr.msra.gmra.mxu1 %v9267_v56 }
 0x981   :  { %10249 = vmatmul.mubr.bf16.vlgmr.msra.gmra.mxu0 %v9273_v7  ;;  %11541 = vmatpush3.bf16.msra.mxu1 %v13222_v41  ;;  %v15530_v41 = vld [vmem:[#allocation75_spill] sm:$0xff]  ;;  %v15192_v7 = vrot.slane %v2004_v36, %v15528_v45 }
 0x982   :  { %10207 = vmatprep.mubr.bf16.mxu1 %v9272_v29  ;;  %11542 = vmatprep.subr.bf16.mxu1 %v13223_v54  ;;  %v15186_v56 = vrot.slane %v2003_v10, %v15530_v41  ;;  %v15195_v29 = vrot.slane %v2004_v36, %v15465_v46 }
 0x985   :  { %11543 = vmatpush3.bf16.msra.mxu1 %v13224_v20  ;;  %v15198_v20 = vrot.slane %v2004_v36, %v15466_v6 }
 0x986   :  { %11544 = vmatprep.subr.bf16.mxu1 %v13225_v25  ;;  %v15201_v25 = vrot.slane %v2004_v36, %v15529_v59 }
 0x989   :  { %11545 = vmatpush3.bf16.msra.mxu1 %v13226_v4  ;;  %v2164_v4 = vld [vmem:[#allocation17] sm:$0x3f] }
 0x98a   :  { %11546 = vmatprep.subr.bf16.mxu1 %v13227_v42 }
 0x98d   :  { %11547 = vmatpush3.bf16.msra.mxu1 %v13228_v24  ;;  %v15204_v24 = vrot.slane %v2004_v36, %v15530_v41 }
 0x98e   :  { %11548 = vmatprep.subr.bf16.mxu1 %v13229_v8  ;;  %v15207_v8 = vrot.slane %v2163_v27, %v15525_v14 }
 0x991   :  { %11549 = vmatpush3.bf16.msra.mxu1 %v13230_v13  ;;  %v15210_v13 = vrot.slane %v2163_v27, %v15528_v45 }
 0x992   :  { %11550 = vmatprep.subr.bf16.mxu1 %v13231_v48  ;;  %v15213_v48 = vrot.slane %v2163_v27, %v15465_v46 }
 0x995   :  { %11551 = vmatpush3.bf16.msra.mxu1 %v13232_v32 }
 0x996   :  { %11552 = vmatprep.subr.bf16.mxu1 %v13233_v17  ;;  %v15216_v17 = vrot.slane %v2163_v27, %v15466_v6 }
 0x999   :  { %11553 = vmatpush3.bf16.msra.mxu1 %v13234_v23  ;;  %v15219_v23 = vrot.slane %v2163_v27, %v15529_v59 }
 0x99a   :  { %11554 = vmatprep.subr.bf16.mxu1 %v13235_v53  ;;  %v15222_v53 = vrot.slane %v2163_v27, %v15530_v41 }
 0x99d   :  { %11555 = vmatpush3.bf16.msra.mxu1 %v13236_v60 }
 0x99e   :  { %11584 = vmatprep.subr.bf16.mxu1 %v13237_v34  ;;  %v15531_v34 = vld [vmem:[#allocation65_spill] sm:$0xff] }
 0x9a0   :  { %10208 = vmatmul.mubr.bf16.vlgmr.msra.gmra.mxu1 %v9271_v50  ;;  %v13249_v50 = vld [vmem:[#allocation28 + $0x2c8] sm:$0xff]  }
 0x9a1   :  { %11585 = vmatpush3.bf16.msra.mxu1 %v13238_v31  ;;  %10289 = vmatprep.mubr.bf16.mxu1 %v9276_v0  ;;  %v13252_v0 = vld [vmem:[#allocation28 + $0x280] sm:$0xff]  }
 0x9a2   :  { %11586 = vmatprep.subr.bf16.mxu1 %v13239_v12  ;;  %v15226_v12 = vrot.slane %v2164_v4, %v15525_v14 }
 0x9a5   :  { %11587 = vmatpush3.bf16.msra.mxu1 %v13240_v35  ;;  %v15229_v35 = vrot.slane %v2164_v4, %v15528_v45  ;;  %v15540_v45 = vld [vmem:[#allocation59_spill] sm:$0xff] }
 0x9a6   :  { %11588 = vmatprep.subr.bf16.mxu1 %v13241_v22  ;;  %v15232_v22 = vrot.slane %v2164_v4, %v15465_v46  ;;  %v15242_v46 = vrot.slane %v2164_v4, %v15466_v6 }
 0x9a9   :  { %11589 = vmatpush3.bf16.msra.mxu1 %v13242_v44 }
 0x9aa   :  { %11590 = vmatprep.subr.bf16.mxu1 %v13243_v1  ;;  %v15532_v1 = vld [vmem:[#allocation70_spill] sm:$0xff] }
 0x9ad   :  { %11591 = vmatpush3.bf16.msra.mxu1 %v13244_v2 }
 0x9ae   :  { %11592 = vmatprep.subr.bf16.mxu1 %v13245_v55  ;;  %v15533_v55 = vld [vmem:[#allocation72_spill] sm:$0xff] }
 0x9b1   :  { %11593 = vmatpush3.bf16.msra.mxu1 %v13246_v33 }
 0x9b2   :  { %11594 = vmatprep.subr.bf16.mxu1 %v13247_v38  ;;  %v15534_v38 = vld [vmem:[#allocation64_spill] sm:$0xff] }
 0x9b5   :  { %11595 = vmatpush3.bf16.msra.mxu1 %v13248_v62 }
 0x9b6   :  { %11596 = vmatprep.subr.bf16.mxu1 %v13249_v50  ;;  %v15535_v50 = vld [vmem:[#allocation56_spill] sm:$0xff] }
 0x9b9   :  { %11597 = vmatpush3.bf16.msra.mxu1 %v13250_v49 }
 0x9ba   :  { %11598 = vmatprep.subr.bf16.mxu1 %v13251_v3  ;;  %v15536_v3 = vld [vmem:[#allocation67_spill] sm:$0xff] }
 0x9bd   :  { %11599 = vmatpush3.bf16.msra.mxu1 %v13252_v0 }
 0x9c0   :  { %10290 = vmatmul.mubr.bf16.vlgmr.msra.gmra.mxu1 %v9275_v15  ;;  %v15180_v15 = vrot.slane %v2003_v10, %v15466_v6  ;;  %v15250_v10 = vrot.slane %v2164_v4, %v15530_v41 }
 0x9e1   :  { %v2051_v58 = vpop.xlane.xlu1 %2050 }
 0x9e2   :  { %v2059_v40 = vmul.f32 0.0013020834, %v2051_v58  ;;  %v15537_v58 = vld [vmem:[#allocation68_spill] sm:$0xff] }
 0x9e4   :  { %v2061_v37 = vadd.f32 1e-12, %v2059_v40 }
 0x9e6   :  { %v2058_v61 = vpop.xlane.xlu0 %2057  ;;  %13333 = vrsqrt.f32 %v2061_v37 }
 0x9e7   :  { %v2060_v16 = vmul.f32 0.0013020834, %v2058_v61 }
 0x9e9   :  { %v2062_v51 = vadd.f32 1e-12, %v2060_v16  ;;  %v15538_v16 = vld [vmem:[#allocation57_spill] sm:$0xff] }
 0x9eb   :  { %13335 = vrsqrt.f32 %v2062_v51  ;;  %v2218_v57 = vpop.xlane.xlu0 %2217 }
 0x9ec   :  { %v2220_v9 = vmul.f32 0.0013020834, %v2218_v57  ;;  %v15539_v57 = vld [vmem:[#allocation66_spill] sm:$0xff] }
 0x9ee   :  { %v2222_v5 = vadd.f32 1e-12, %v2220_v9 }
 0x9f0   :  { %13337 = vrsqrt.f32 %v2222_v5  ;;  %v15247_v5 = vrot.slane %v2164_v4, %v15529_v59  ;;  %v15542_v4 = vld [vmem:[#allocation54_spill] sm:$0xff] }
 0x9f3   :  { %v13334_v54 = vpop.eup %13333 }
 0x9f4   :  { %v2065_v31 = vmul.f32 %v13334_v54, %v15531_v34  ;;  %v2066_v49 = vmul.f32 %v13334_v54, %v15535_v50  ;;  %v2067_v51 = vmul.f32 %v13334_v54, %v15538_v16  ;;  %v2068_v9 = vmul.f32 %v13334_v54, %v15539_v57  ;;  %v15545_v50 = vld [vmem:[#allocation55_spill] sm:$0xff] }
 0x9f5   :  { %v2069_v27 = vmul.f32 %v13334_v54, %v15540_v45 }
 0x9f6   :  { %v2211_v42 = vpop.xlane.xlu1 %2210  ;;  %v2109_v34 = vmul.f32 %v2085_v21, %v2066_v49 }
 0x9f7   :  { %v2219_v32 = vmul.f32 0.0013020834, %v2211_v42 }
 0x9f8   :  { %v13336_v60 = vpop.eup %13335 }
 0x9f9   :  { %v2221_v44 = vadd.f32 1e-12, %v2219_v32  ;;  %v2071_v2 = vmul.f32 %v13336_v60, %v15532_v1  ;;  %v2072_v33 = vmul.f32 %v13336_v60, %v15533_v55  ;;  %v2073_v62 = vmul.f32 %v13336_v60, %v15534_v38  ;;  %v15543_v55 = vld [vmem:[#allocation47_spill] sm:$0xff]  ;;  %v15544_v38 = vld [vmem:[#allocation48_spill] sm:$0xff] }
 0x9fa   :  { %v2074_v0 = vmul.f32 %v13336_v60, %v15536_v3  ;;  %v2075_v14 = vmul.f32 %v13336_v60, %v15537_v58  ;;  %v2076_v40 = vmul.f32 %v13336_v60, %v14997_v28  ;;  %v15541_v28 = vld [vmem:[#allocation69_spill] sm:$0xff]  ;;  %v2108_v60 = vmul.f32 %v2081_v30, %v2065_v31 }
 0x9fb   :  { %13339 = vrsqrt.f32 %v2221_v44  ;;  %v2114_v37 = vmul.f32 %v2081_v30, %v2071_v2  ;;  %v2115_v61 = vmul.f32 %v2085_v21, %v2072_v33  ;;  %v2070_v42 = vmul.f32 %v13334_v54, %v15541_v28  ;;  %v15546_v3 = vld [vmem:[#allocation49_spill] sm:$0xff]  ;;  %v15547_v30 = vld [vmem:[#allocation50_spill] sm:$0xff] }
 0x9fc   :  { %v2116_v32 = vmul.f32 %v15177_v43, %v2073_v62  ;;  %v2117_v6 = vmul.f32 %v15180_v15, %v2074_v0  ;;  %v2118_v44 = vmul.f32 %v15183_v19, %v2075_v14  ;;  %v2119_v1 = vmul.f32 %v15186_v56, %v2076_v40 }
 0x9fd   :  { %v13338_v36 = vpop.eup %13337  ;;  %v2157_v59 = vadd.f32 %v15189_v11, %v2114_v37  ;;  %v2158_v41 = vadd.f32 %v15192_v7, %v2115_v61 }
 0x9fe   :  { %v2231_v2 = vmul.f32 %v13338_v36, %v15542_v4  ;;  %v2232_v33 = vmul.f32 %v13338_v36, %v15543_v55  ;;  %v2233_v54 = vmul.f32 %v13338_v36, %v15544_v38  ;;  %v2234_v62 = vmul.f32 %v13338_v36, %v15545_v50 }
 0x9ff   :  { %v2235_v0 = vmul.f32 %v13338_v36, %v15546_v3  ;;  %v2236_v21 = vmul.f32 %v13338_v36, %v15547_v30  ;;  %v2159_v31 = vadd.f32 %v15195_v29, %v2116_v32  ;;  %v2160_v49 = vadd.f32 %v15198_v20, %v2117_v6 }
 0xa00   :  { %v2274_v58 = vmul.f32 %v15207_v8, %v2231_v2  ;;  %v2275_v14 = vmul.f32 %v15210_v13, %v2232_v33  ;;  %v2276_v40 = vmul.f32 %v15213_v48, %v2233_v54  ;;  %v2277_v37 = vmul.f32 %v15216_v17, %v2234_v62 }
 0xa01   :  { %v2278_v61 = vmul.f32 %v15219_v23, %v2235_v0  ;;  %v2279_v16 = vmul.f32 %v15222_v53, %v2236_v21  ;;  %v2161_v57 = vadd.f32 %v15201_v25, %v2118_v44  ;;  %v2162_v36 = vadd.f32 %v15204_v24, %v2119_v1 }
 0xa02   :  { %v2317_v45 = vadd.f32 %v15226_v12, %v2274_v58  ;;  %v2318_v28 = vadd.f32 %v15229_v35, %v2275_v14  ;;  %v2319_v32 = vadd.f32 %v15232_v22, %v2276_v40  ;;  %v2320_v6 = vadd.f32 %v15242_v46, %v2277_v37 }
 0xa03   :  { %v2321_v4 = vadd.f32 %v15247_v5, %v2278_v61  ;;  %v2322_v2 = vadd.f32 %v15250_v10, %v2279_v16  ;;  %v2110_v55 = vmul.f32 %v15177_v43, %v2067_v51  ;;  %v2111_v33 = vmul.f32 %v15180_v15, %v2068_v9 }
 0xa04   :  { %v2329_v38 = vadd.f32 %v2317_v45, %v2157_v59  ;;  %v2330_v44 = vadd.f32 %v2318_v28, %v2158_v41  ;;  %v2331_v54 = vadd.f32 %v2319_v32, %v2159_v31  ;;  %v2332_v1 = vadd.f32 %v2320_v6, %v2160_v49 }
 0xa05   :  { %v2333_v50 = vadd.f32 %v2321_v4, %v2161_v57  ;;  %v2334_v62 = vadd.f32 %v2322_v2, %v2162_v36  ;;  %v2112_v3 = vmul.f32 %v15183_v19, %v2069_v27  ;;  %v2113_v0 = vmul.f32 %v15186_v56, %v2070_v42 }
 0xa06   :  { %v2341_v30 = vmul.f32 0.5, %v2329_v38  ;;  %v2342_v21 = vmul.f32 0.5, %v2330_v44  ;;  %v2343_v14 = vmul.f32 0.5, %v2331_v54  ;;  %v2344_v40 = vmul.f32 0.5, %v2332_v1 }
 0xa07   :  { %v2345_v37 = vmul.f32 0.5, %v2333_v50  ;;  %v2346_v61 = vmul.f32 0.5, %v2334_v62  ;;  %v2151_v19 = vadd.f32 %v15189_v11, %v2108_v60  ;;  %v2152_v56 = vadd.f32 %v15192_v7, %v2109_v34 }
 0xa08   :  { %v13340_v58 = vpop.eup %13339  ;;  %2353 = vst [vmem:[#allocation32 + $0x30] sm:$0xff] %v2341_v30  ;;  %2354 = vst [vmem:[#allocation32 + $0x38] sm:$0xff] %v2342_v21  ;;  %v2153_v11 = vadd.f32 %v15195_v29, %v2110_v55 }
 0xa09   :  { %v2225_v43 = vmul.f32 %v13340_v58, %v15060_v26  ;;  %v2226_v15 = vmul.f32 %v13340_v58, %v15065_v39  ;;  %v2227_v51 = vmul.f32 %v13340_v58, %v15071_v47  ;;  %v2228_v9 = vmul.f32 %v13340_v58, %v15077_v18  ;;  %2355 = vst [vmem:[#allocation32 + $0x40] sm:$0xff] %v2343_v14 }
 0xa0a   :  { %v2229_v27 = vmul.f32 %v13340_v58, %v15085_v52  ;;  %v2230_v42 = vmul.f32 %v13340_v58, %v15091_v63  ;;  %2356 = vst [vmem:[#allocation32 + $0x48] sm:$0xff] %v2344_v40  ;;  %2357 = vst [vmem:[#allocation32 + $0x50] sm:$0xff] %v2345_v37  ;;  %v2154_v52 = vadd.f32 %v15198_v20, %v2111_v33 }
 0xa0b   :  { %2358 = vst [vmem:[#allocation32 + $0x58] sm:$0xff] %v2346_v61  ;;  %v2268_v26 = vmul.f32 %v15207_v8, %v2225_v43  ;;  %v2269_v39 = vmul.f32 %v15210_v13, %v2226_v15  ;;  %v2270_v47 = vmul.f32 %v15213_v48, %v2227_v51  ;;  %v2271_v18 = vmul.f32 %v15216_v17, %v2228_v9 }
 0xa0c   :  { %v2272_v63 = vmul.f32 %v15219_v23, %v2229_v27  ;;  %v2273_v7 = vmul.f32 %v15222_v53, %v2230_v42 }
 0xa0d   :  { %v2311_v60 = vadd.f32 %v15226_v12, %v2268_v26  ;;  %v2312_v8 = vadd.f32 %v15229_v35, %v2269_v39  ;;  %v2313_v13 = vadd.f32 %v15232_v22, %v2270_v47  ;;  %v2314_v48 = vadd.f32 %v15242_v46, %v2271_v18 }
 0xa0e   :  { %13713 = shalt.err (!%p13710_p10)
}
 0xa0f   :  { %10311 = dma.vmem_to_hbm [thread:$0]  %s10306_s4, 1536, %s15348_s20, [#allocation4], %s13779_s28, %s13779_s28, %s13780_s23   ;;  %v2155_v29 = vadd.f32 %v15201_v25, %v2112_v3  ;;  %v2156_v20 = vadd.f32 %v15204_v24, %v2113_v0  ;;  %v2315_v17 = vadd.f32 %v15247_v5, %v2272_v63  ;;  %v2316_v23 = vadd.f32 %v15250_v10, %v2273_v7 }
 0xa10   :  { %v2323_v53 = vadd.f32 %v2311_v60, %v2151_v19  ;;  %v2324_v12 = vadd.f32 %v2312_v8, %v2152_v56  ;;  %v2325_v35 = vadd.f32 %v2313_v13, %v2153_v11  ;;  %v2326_v22 = vadd.f32 %v2314_v48, %v2154_v52  ;;  %s13794_s1 = smov [#allocation32]  }
 0xa11   :  { %s10317_s26 = sshll.u32 %s13794_s1, 4  ;;  %v2327_v46 = vadd.f32 %v2315_v17, %v2155_v29  ;;  %v2328_v34 = vadd.f32 %v2316_v23, %v2156_v20  ;;  %s10318_s26 = int_to_ptr.vmem [resolvable:$true] %s10317_s26 }
 0xa12   :  { %v2335_v59 = vmul.f32 0.5, %v2323_v53  ;;  %v2336_v41 = vmul.f32 0.5, %v2324_v12  ;;  %v2337_v31 = vmul.f32 0.5, %v2325_v35  ;;  %v2338_v49 = vmul.f32 0.5, %v2326_v22  ;;  %s13722_s20 = scalar_lea.vmem %s10318_s26, 1536  ;;  %p13727_p12 = scmp.lt.s32.totalorder %s10318_s26, %s10318_s26 }
 0xa13   :  { %v2339_v16 = vmul.f32 0.5, %v2327_v46  ;;  %v2340_v25 = vmul.f32 0.5, %v2328_v34  ;;  %p13723_p11 = scmp.ne.s32.totalorder %s10318_s26, %s13722_s20  ;;  %p13728_p13 = scmp.lt.s32.totalorder %s13722_s20, %s13722_s20 }
 0xa14   :  { %2347 = vst [vmem:[#allocation32] sm:$0xff] %v2335_v59  ;;  %2348 = vst [vmem:[#allocation32 + $0x8] sm:$0xff] %v2336_v41 }
 0xa15   :  { %2349 = vst [vmem:[#allocation32 + $0x10] sm:$0xff] %v2337_v31  ;;  %2350 = vst [vmem:[#allocation32 + $0x18] sm:$0xff] %v2338_v49  ;;  %p13729_p0 = por %p13728_p13, %p13727_p12 }
 0xa16   :  { %2351 = vst [vmem:[#allocation32 + $0x20] sm:$0xff] %v2339_v16  ;;  %2352 = vst [vmem:[#allocation32 + $0x28] sm:$0xff] %v2340_v25 }
 0xa17   :  { %p13730_p1 = pnand %p13729_p0, %p13723_p11 }
 0xa19   :  { %13733 = shalt.err (!%p13730_p1)
}
 0xa1a   :  { %10323 = dma.vmem_to_hbm [thread:$0]  %s10318_s26, 1536, %s15349_s21, [#allocation33], %s13779_s28, %s13779_s28, %s13780_s23   ;;  %v11377_v38 = vld [vmem:[#allocation29] ss:$0 sm:$0xff] }
 0xa1b   :  { %s15548_s23 = sld [smem:[#allocation88_spill]] }
 0xa20   :  { %v11490_v24 = vpop.f32.mrf.mxu1  ;;  %v11534_v28 = vpop.f32.mrf.mxu0 }
 0xa22   :  { %v11491_v5 = vpop.f32.mrf.mxu1  ;;  %v11535_v6 = vpop.f32.mrf.mxu0 }
 0xa23   :  { %v11492_v33 = vadd.f32 %v11491_v5, %v11490_v24  ;;  %v11536_v14 = vadd.f32 %v11535_v6, %v11534_v28 }
 0xa24   :  { %v11493_v10 = vpop.f32.mrf.mxu1  ;;  %v11537_v2 = vpop.f32.mrf.mxu0 }
 0xa25   :  { %v10087_v62 = vadd.f32 %v11492_v33, %v11377_v38 }
 0xa26   :  { %v11494_v57 = vpop.f32.mrf.mxu1  ;;  %v11538_v44 = vpop.f32.mrf.mxu0 }
 0xa27   :  { %v11495_v3 = vadd.f32 %v11494_v57, %v11493_v10  ;;  %v11539_v9 = vadd.f32 %v11538_v44, %v11537_v2 }
 0xa29   :  { %v10090_v40 = vadd.f32 %v11495_v3, %v11377_v38 }
 0xa40   :  { %v11512_v36 = vpop.f32.mrf.mxu1 }
 0xa41   :  { %v11578_v50 = vpop.f32.mrf.mxu0 }
 0xa42   :  { %v11513_v45 = vpop.f32.mrf.mxu1 }
 0xa43   :  { %v11514_v1 = vadd.f32 %v11513_v45, %v11512_v36  ;;  %v11579_v58 = vpop.f32.mrf.mxu0 }
 0xa44   :  { %v11515_v32 = vpop.f32.mrf.mxu1  ;;  %v11580_v42 = vadd.f32 %v11579_v58, %v11578_v50 }
 0xa45   :  { %v10128_v30 = vadd.f32 %v11514_v1, %v10087_v62  ;;  %v11581_v51 = vpop.f32.mrf.mxu0 }
 0xa46   :  { %v11516_v4 = vpop.f32.mrf.mxu1 }
 0xa47   :  { %v11517_v21 = vadd.f32 %v11516_v4, %v11515_v32  ;;  %v10169_v15 = vadd.f32 %v11536_v14, %v10128_v30  ;;  %v11582_v39 = vpop.f32.mrf.mxu0 }
 0xa48   :  { %v11583_v7 = vadd.f32 %v11582_v39, %v11581_v51 }
 0xa49   :  { %v10131_v43 = vadd.f32 %v11517_v21, %v10090_v40 }
 0xa4b   :  { %v10172_v26 = vadd.f32 %v11539_v9, %v10131_v43 }
 0xa60   :  { %v11556_v55 = vpop.f32.mrf.mxu1 }
 0xa62   :  { %v11557_v54 = vpop.f32.mrf.mxu1 }
 0xa63   :  { %v11558_v37 = vadd.f32 %v11557_v54, %v11556_v55 }
 0xa64   :  { %v11559_v0 = vpop.f32.mrf.mxu1 }
 0xa65   :  { %v10210_v19 = vadd.f32 %v11558_v37, %v10169_v15 }
 0xa66   :  { %v11560_v61 = vpop.f32.mrf.mxu1 }
 0xa67   :  { %v11561_v56 = vadd.f32 %v11560_v61, %v11559_v0  ;;  %v10251_v11 = vadd.f32 %v11580_v42, %v10210_v19 }
 0xa69   :  { %v10213_v18 = vadd.f32 %v11561_v56, %v10172_v26 }
 0xa6b   :  { %v10254_v13 = vadd.f32 %v11583_v7, %v10213_v18 }
 0xa80   :  { %v11600_v27 = vpop.f32.mrf.mxu1 }
 0xa82   :  { %v11601_v47 = vpop.f32.mrf.mxu1 }
 0xa83   :  { %v11602_v52 = vadd.f32 %v11601_v47, %v11600_v27 }
 0xa84   :  { %v11603_v63 = vpop.f32.mrf.mxu1 }
 0xa85   :  { %v10292_v60 = vadd.f32 %v11602_v52, %v10251_v11 }
 0xa86   :  { %v11604_v8 = vpop.f32.mrf.mxu1 }
 0xa87   :  { %10298 = vst [vmem:[%s15548_s23] sm:$0xff] %v10292_v60  ;;  %v11605_v48 = vadd.f32 %v11604_v8, %v11603_v63 }
 0xa89   :  { %v10295_v29 = vadd.f32 %v11605_v48, %v10254_v13 }
 0xa8b   :  { %10299 = vst [vmem:[%s15548_s23 + $0x8] sm:$0xff] %v10295_v29 }
 0xa8c   :  { %13762 = dma.done.wait [#allocation4], 1536  }
 0xa8d   :  { %13763 = vsyncadd [#allocation4], 4294965760 }
 0xa8e   :  { %13764 = dma.done.wait [#allocation33], 1536  }
 0xa8f   :  { %13765 = vsyncadd [#allocation33], 4294965760 }
 0xa90   :  { %10338 = vsyncpa [#allocation3], 1 }
 0xa91   :  { %10339 = vsyncpa [#allocation6], 1 }
 0xa92   :  { %10340 = vsyncpa [#allocation9], 1 }
 0xa93   :  { %10341 = vsyncpa [#allocation12], 1 }
 0xa94   :  { %10342 = vsyncpa [#allocation15], 1 }
 0xa95   :  { %10343 = vsyncpa [#allocation18], 1 }
 0xa96   :  { %10344 = vsyncpa [#allocation21], 1 }
 0xa97   :  { %10345 = vsyncpa [#allocation24], 1 }
 0xa98   :  { %10346 = vsyncpa [#allocation27], 1 }
 0xa99   :  { %10347 = vsyncpa [#allocation30], 1 }
 0xa9a   :  { %10348 = vsyncpa [#allocation4], 1 }
 0xa9b   :  { %10349 = vsyncpa [#allocation33], 1 }

</bundles_post_ra>
